<compile_context>
chip_gen: v5e
topology: v5e:2x2
jax: 0.10.0
libtpu: 0.0.40
codegen_flags: <defaults>
</compile_context>

<pallas_src>
import math
import functools

import jax
import jax.numpy as jnp
from jax import lax
from jax.experimental import pallas as pl
from jax.experimental.pallas import tpu as pltpu

Q_DIM = 21  # q_dim in the reference module


def _round_up(n, m):
    return ((n + m - 1) // m) * m


# ---------------------------------------------------------------------------
# elementwise helpers (shared by the kernel and the pure-JAX reference)
# ---------------------------------------------------------------------------
def _elu(x):
    # F.elu(alpha=1). exp argument clamped so the unselected branch never
    # produces inf for large positive x.
    return jnp.where(x > 0.0, x, jnp.exp(jnp.minimum(x, 0.0)) - 1.0)


def _softplus(x):
    # Stable softplus: max(x,0) + log(1 + exp(-|x|)); bounded args, no overflow.
    return jnp.maximum(x, 0.0) + jnp.log(1.0 + jnp.exp(-jnp.abs(x)))


def _sigmoid(x):
    # tanh form: a single EUP transcendental instead of exp + divide.
    return 0.5 * (jnp.tanh(0.5 * x) + 1.0)


# ---------------------------------------------------------------------------
# kernel
# ---------------------------------------------------------------------------
def vae_kernel(z_dim, xin_ref, w_ref, b_ref, out_ref):
    """One batch tile of the full VAE forward.

    xin_ref : (TB, feat) f32  lane-dense slab [x (Q_DIM) | eps (z_dim) | 0-pad]
    w_ref   : (8, feat, feat) bf16  zero-padded weights, layer order
              e0, e1, e2, head(mean|var), d0, d1, d2, logits
    b_ref   : (8, feat) f32   zero-padded biases (same order)
    out_ref : (TB, feat) bf16 lane-dense slab [z_mean | z_var | z | x_ | 0-pad]
    """
    feat = w_ref.shape[1]
    tb = out_ref.shape[0]

    x = xin_ref[...]                                    # (TB, feat) f32

    def layer(a, i):
        # bf16 x bf16 -> f32 on the MXU; f32 bias row broadcast-added.
        y = jnp.dot(a.astype(w_ref.dtype), w_ref[i],
                    preferred_element_type=jnp.float32)
        return y + b_ref[i:i + 1, :]

    # ---- encoder ----
    # eps lanes of the input slab hit zero-padded weight rows, so feeding the
    # whole slab into fc_e0 is exact.
    h = _elu(layer(x, 0))                               # (TB, feat)
    h = _elu(layer(h, 1))
    h = _elu(layer(h, 2))

    # fused latent head: lanes [0:z)=mean, [z:2z)=pre-softplus scale, rest 0.
    head = layer(h, 3)

    # softplus applied in place on the scale lanes via a lane-index mask so
    # [mean | scale] stays one contiguous piece (pad lanes get softplus(0),
    # which is discarded below).
    lane = lax.broadcasted_iota(jnp.int32, head.shape, 1)
    mv = jnp.where(lane >= z_dim, _softplus(head), head)

    # ---- reparameterize: Normal(z_mean, z_scale).rsample() ----
    z_mean = mv[:, :z_dim]
    z_scale = mv[:, z_dim:2 * z_dim]
    eps = x[:, Q_DIM:Q_DIM + z_dim]
    z = z_mean + z_scale * eps                          # (TB, z_dim)

    # ---- decoder ----
    z_wide = jnp.concatenate(
        [z, jnp.zeros((tb, feat - z_dim), jnp.float32)], axis=-1)
    d = _elu(layer(z_wide, 4))
    d = _elu(layer(d, 5))
    d = _elu(layer(d, 6))
    x_rec = _sigmoid(layer(d, 7))                       # lanes [0:Q_DIM) valid

    # ---- single lane-dense output slab ----
    pad = feat - (3 * z_dim + Q_DIM)
    pieces = [mv[:, :2 * z_dim], z, x_rec[:, :Q_DIM]]
    if pad > 0:
        pieces.append(jnp.zeros((tb, pad), jnp.float32))
    out_ref[...] = jnp.concatenate(pieces, axis=-1).astype(out_ref.dtype)


# ---------------------------------------------------------------------------
# parameter construction / packing
# ---------------------------------------------------------------------------
def init_linear_params(key, in_features, out_features):
    """Deterministic PyTorch-style nn.Linear init (uniform +-1/sqrt(fan_in))."""
    kw, kb = jax.random.split(key)
    bound = 1.0 / math.sqrt(in_features)
    w = jax.random.uniform(kw, (in_features, out_features), jnp.float32, -bound, bound)
    b = jax.random.uniform(kb, (1, out_features), jnp.float32, -bound, bound)
    return w, b


def init_model_vae_params(key, h_dim, z_dim):
    keys = jax.random.split(key, 9)
    return {
        "fc_e0": init_linear_params(keys[0], Q_DIM, h_dim * 2),
        "fc_e1": init_linear_params(keys[1], h_dim * 2, h_dim * 2),
        "fc_e2": init_linear_params(keys[2], h_dim * 2, h_dim),
        "fc_mean": init_linear_params(keys[3], h_dim, z_dim),
        "fc_var": init_linear_params(keys[4], h_dim, z_dim),   # 'normal' distribution
        "fc_d0": init_linear_params(keys[5], z_dim, h_dim),
        "fc_d1": init_linear_params(keys[6], h_dim, h_dim * 2),
        "fc_d2": init_linear_params(keys[7], h_dim * 2, h_dim * 2),
        "fc_logits": init_linear_params(keys[8], h_dim * 2, Q_DIM),
    }


def pack_params(params, dtype=jnp.bfloat16):
    """Zero-pad every layer to (feat, feat) and stack into one aligned slab.

    Returns (w_slab (8, feat, feat) bf16, b_slab (8, feat) f32), with the
    mean/var heads fused into a single layer producing [mean | var_pre].
    """
    two_h = params["fc_e0"][0].shape[1]
    z_dim = params["fc_mean"][0].shape[1]
    feat = _round_up(max(two_h, 2 * z_dim, Q_DIM + z_dim, 3 * z_dim + Q_DIM), 128)

    def pad_wb(w, b):
        k, m = w.shape
        wp = jnp.zeros((feat, feat), jnp.float32).at[:k, :m].set(w)
        bp = jnp.zeros((feat,), jnp.float32).at[:m].set(jnp.reshape(b, (-1,)))
        return wp, bp

    wm, bm = params["fc_mean"]
    wv, bv = params["fc_var"]
    w_head = jnp.concatenate([wm, wv], axis=1)
    b_head = jnp.concatenate([jnp.reshape(bm, (-1,)), jnp.reshape(bv, (-1,))])

    order = [params["fc_e0"], params["fc_e1"], params["fc_e2"], (w_head, b_head),
             params["fc_d0"], params["fc_d1"], params["fc_d2"], params["fc_logits"]]
    padded = [pad_wb(w, b) for (w, b) in order]
    w_slab = jnp.stack([w for w, _ in padded]).astype(dtype)   # (8, feat, feat)
    b_slab = jnp.stack([b for _, b in padded])                 # (8, feat) f32
    return w_slab, b_slab


def _build_input_slab(x, eps, rows, feat):
    """Lane-dense f32 slab [x | eps | 0-pad], zero-padded to `rows` batch rows."""
    z_dim = eps.shape[1]
    slab = jnp.zeros((rows, feat), jnp.float32)
    slab = slab.at[:x.shape[0], :Q_DIM].set(x.astype(jnp.float32))
    slab = slab.at[:x.shape[0], Q_DIM:Q_DIM + z_dim].set(eps.astype(jnp.float32))
    return slab


# ---------------------------------------------------------------------------
# wrapper
# ---------------------------------------------------------------------------
@functools.partial(jax.jit, static_argnames=("z_dim", "grid_steps", "max_tile_rows"))
def model_vae_forward(x, eps, w_slab, b_slab, *, z_dim, grid_steps=None,
                      max_tile_rows=1024):
    """Returns ((z_mean, z_var), (q_z_params, p_z_params), z, x_).

    grid_steps=None -> fewest grid steps with <= max_tile_rows rows per step
    (single step for small B on v5e/v6e); pass grid_steps=2 on v7x for a
    balanced, padding-free 2-way megacore split.
    """
    B = x.shape[0]
    feat = w_slab.shape[-1]
    n_layers = w_slab.shape[0]

    if grid_steps is None:
        grid_steps = max(1, -(-B // max_tile_rows))          # ceil div
    tile_b = _round_up(-(-B // grid_steps), 16)              # bf16/f32 tile-safe
    b_pad = tile_b * grid_steps

    xin = _build_input_slab(x, eps, b_pad, feat)

    cost = pl.CostEstimate(
        flops=2 * b_pad * n_layers * feat * feat,
        transcendentals=9 * b_pad * feat,
        bytes_accessed=(b_pad * feat * 4            # input slab (f32)
                        + n_layers * feat * feat * 2  # weights (bf16)
                        + n_layers * feat * 4         # biases (f32)
                        + b_pad * feat * 2))          # output slab (bf16)

    out = pl.pallas_call(
        functools.partial(vae_kernel, z_dim),
        out_shape=jax.ShapeDtypeStruct((b_pad, feat), jnp.bfloat16),
        grid=(grid_steps,),
        in_specs=[
            # batch tiles stream; weight/bias slabs keep a constant block index
            # so they stay VMEM-resident across the whole grid.
            pl.BlockSpec((tile_b, feat), lambda i: (i, 0)),
            pl.BlockSpec(w_slab.shape, lambda i: (0, 0, 0)),
            pl.BlockSpec(b_slab.shape, lambda i: (0, 0)),
        ],
        out_specs=pl.BlockSpec((tile_b, feat), lambda i: (i, 0)),
        compiler_params=pltpu.CompilerParams(
            dimension_semantics=("parallel",)),
        cost_estimate=cost,
    )(xin, w_slab, b_slab)

    out = out[:B].astype(jnp.float32)
    z_mean = out[:, 0:z_dim]
    z_var = out[:, z_dim:2 * z_dim]          # NOTE: scale/std of Normal(loc, scale)
    z = out[:, 2 * z_dim:3 * z_dim]
    x_ = out[:, 3 * z_dim:3 * z_dim + Q_DIM]

    # TODO(synk): torch.distributions Normal objects (q_z, p_z) have no Pallas
    # equivalent; return their defining (loc, scale) parameters instead.
    q_z_params = (z_mean, z_var)
    p_z_params = (jnp.zeros_like(z_mean), jnp.ones_like(z_var))
    return (z_mean, z_var), (q_z_params, p_z_params), z, x_


# ---------------------------------------------------------------------------
# pure-JAX reference (same math / same bf16 weight packing) for correctness
# ---------------------------------------------------------------------------
def reference_forward(x, eps, w_slab, b_slab, z_dim):
    feat = w_slab.shape[-1]
    xin = _build_input_slab(x, eps, x.shape[0], feat)

    def layer(a, i):
        return (jnp.dot(a.astype(w_slab.dtype), w_slab[i],
                        preferred_element_type=jnp.float32)
                + b_slab[i:i + 1, :])

    h = _elu(layer(xin, 0))
    h = _elu(layer(h, 1))
    h = _elu(layer(h, 2))
    head = layer(h, 3)
    z_mean = head[:, :z_dim]
    z_var = _softplus(head[:, z_dim:2 * z_dim])
    z = z_mean + z_var * eps
    z_wide = jnp.pad(z, ((0, 0), (0, feat - z_dim)))
    d = _elu(layer(z_wide, 4))
    d = _elu(layer(d, 5))
    d = _elu(layer(d, 6))
    x_ = _sigmoid(layer(d, 7))[:, :Q_DIM]
    return z_mean, z_var, z, x_


if __name__ == "__main__":
    h_dim, z_dim, batch = 64, 8, 384

    key = jax.random.PRNGKey(0)
    k_params, k_x, k_eps = jax.random.split(key, 3)

    params = init_model_vae_params(k_params, h_dim, z_dim)
    w_slab, b_slab = pack_params(params)

    # input x: normalized joint values in [0, 1], shape (B, q_dim=21)
    x = jax.random.uniform(k_x, (batch, Q_DIM), jnp.float32)
    # reparameterization noise (rsample's standard normal draw)
    eps = jax.random.normal(k_eps, (batch, z_dim), jnp.float32)

    rm, rv, rz, rx = reference_forward(x, eps, w_slab, b_slab, z_dim)

    # single-step grid (v5e/v6e default) and balanced 2-way split (v7x megacore)
    for steps in (None, 2):
        (z_mean, z_var), (q_z, p_z), z, x_rec = model_vae_forward(
            x, eps, w_slab, b_slab, z_dim=z_dim, grid_steps=steps)
        jax.block_until_ready((z_mean, z_var, z, x_rec))

        assert z_mean.shape == (batch, z_dim)
        assert z_var.shape == (batch, z_dim)
        assert z.shape == (batch, z_dim)
        assert x_rec.shape == (batch, Q_DIM)
        assert bool(jnp.all(z_var > 0.0))
        assert bool(jnp.all((x_rec >= 0.0) & (x_rec <= 1.0)))

        for got, ref in ((z_mean, rm), (z_var, rv), (z, rz), (x_rec, rx)):
            assert bool(jnp.allclose(got, ref, rtol=2e-2, atol=2e-2)), \
                "mismatch vs JAX reference"

    print("KERNEL_OK")
</pallas_src>

<mosaic_0001>
module attributes {stable_mosaic.version = 11 : i64} {
  func.func @vae_kernel(%arg0: i32, %arg1: memref<384x128xf32, #tpu.memory_space<vmem>>, %arg2: memref<8x128x128xbf16, #tpu.memory_space<vmem>>, %arg3: memref<8x128xf32, #tpu.memory_space<vmem>>, %arg4: memref<384x128xbf16, #tpu.memory_space<vmem>>) attributes {dimension_semantics = [#tpu.dimension_semantics<parallel>], iteration_bounds = array<i64: 1>, scalar_prefetch = 0 : i64, scratch_operands = 0 : i64, tpu.core_type = #tpu.core_type<tc>, window_params = [{transform_indices = @transform_0, window_bounds = array<i64: 384, 128>}, {pipeline_mode = #tpu.pipeline_mode<synchronous>, transform_indices = @transform_1, window_bounds = array<i64: 8, 128, 128>}, {pipeline_mode = #tpu.pipeline_mode<synchronous>, transform_indices = @transform_2, window_bounds = array<i64: 8, 128>}, {transform_indices = @transform_3, window_bounds = array<i64: 384, 128>}]} {
    %c0 = arith.constant 0 : index
    %c0_0 = arith.constant 0 : index
    %0 = vector.load %arg1[%c0, %c0_0] : memref<384x128xf32, #tpu.memory_space<vmem>>, vector<384x128xf32>
    %1 = arith.truncf %0 : vector<384x128xf32> to vector<384x128xbf16>
    %c0_1 = arith.constant 0 : index
    %c0_2 = arith.constant 0 : index
    %c0_3 = arith.constant 0 : index
    %2 = vector.load %arg2[%c0_1, %c0_2, %c0_3] : memref<8x128x128xbf16, #tpu.memory_space<vmem>>, vector<1x128x128xbf16>
    %3 = vector.shape_cast %2 : vector<1x128x128xbf16> to vector<128x128xbf16>
    %cst = arith.constant dense<0.000000e+00> : vector<384x128xf32>
    %4 = tpu.matmul %1, %3, %cst {dimension_numbers = #tpu.dot_dimension_numbers<[1], [0], [0], [1], [0, 0, 1, 1], [], []>} : vector<384x128xbf16>, vector<128x128xbf16>, vector<384x128xf32> -> vector<384x128xf32>
    %c0_4 = arith.constant 0 : index
    %c0_5 = arith.constant 0 : index
    %5 = vector.load %arg3[%c0_4, %c0_5] : memref<8x128xf32, #tpu.memory_space<vmem>>, vector<1x128xf32>
    %6 = vector.broadcast %5 : vector<1x128xf32> to vector<384x128xf32>
    %7 = arith.addf %4, %6 : vector<384x128xf32>
    %cst_6 = arith.constant 0.000000e+00 : f32
    %8 = vector.broadcast %cst_6 : f32 to vector<384x128xf32>
    %9 = arith.cmpf ogt, %7, %8 : vector<384x128xf32>
    %cst_7 = arith.constant 0.000000e+00 : f32
    %10 = vector.broadcast %cst_7 : f32 to vector<384x128xf32>
    %11 = arith.minimumf %7, %10 : vector<384x128xf32>
    %12 = math.exp %11 : vector<384x128xf32>
    %cst_8 = arith.constant 1.000000e+00 : f32
    %13 = vector.broadcast %cst_8 : f32 to vector<384x128xf32>
    %14 = arith.subf %12, %13 : vector<384x128xf32>
    %15 = arith.select %9, %7, %14 : vector<384x128xi1>, vector<384x128xf32>
    %16 = arith.truncf %15 : vector<384x128xf32> to vector<384x128xbf16>
    %c1 = arith.constant 1 : index
    %c0_9 = arith.constant 0 : index
    %c0_10 = arith.constant 0 : index
    %17 = vector.load %arg2[%c1, %c0_9, %c0_10] : memref<8x128x128xbf16, #tpu.memory_space<vmem>>, vector<1x128x128xbf16>
    %18 = vector.shape_cast %17 : vector<1x128x128xbf16> to vector<128x128xbf16>
    %cst_11 = arith.constant dense<0.000000e+00> : vector<384x128xf32>
    %19 = tpu.matmul %16, %18, %cst_11 {dimension_numbers = #tpu.dot_dimension_numbers<[1], [0], [0], [1], [0, 0, 1, 1], [], []>} : vector<384x128xbf16>, vector<128x128xbf16>, vector<384x128xf32> -> vector<384x128xf32>
    %c1_12 = arith.constant 1 : index
    %c0_13 = arith.constant 0 : index
    %20 = vector.load %arg3[%c1_12, %c0_13] : memref<8x128xf32, #tpu.memory_space<vmem>>, vector<1x128xf32>
    %21 = vector.broadcast %20 : vector<1x128xf32> to vector<384x128xf32>
    %22 = arith.addf %19, %21 : vector<384x128xf32>
    %cst_14 = arith.constant 0.000000e+00 : f32
    %23 = vector.broadcast %cst_14 : f32 to vector<384x128xf32>
    %24 = arith.cmpf ogt, %22, %23 : vector<384x128xf32>
    %cst_15 = arith.constant 0.000000e+00 : f32
    %25 = vector.broadcast %cst_15 : f32 to vector<384x128xf32>
    %26 = arith.minimumf %22, %25 : vector<384x128xf32>
    %27 = math.exp %26 : vector<384x128xf32>
    %cst_16 = arith.constant 1.000000e+00 : f32
    %28 = vector.broadcast %cst_16 : f32 to vector<384x128xf32>
    %29 = arith.subf %27, %28 : vector<384x128xf32>
    %30 = arith.select %24, %22, %29 : vector<384x128xi1>, vector<384x128xf32>
    %31 = arith.truncf %30 : vector<384x128xf32> to vector<384x128xbf16>
    %c2 = arith.constant 2 : index
    %c0_17 = arith.constant 0 : index
    %c0_18 = arith.constant 0 : index
    %32 = vector.load %arg2[%c2, %c0_17, %c0_18] : memref<8x128x128xbf16, #tpu.memory_space<vmem>>, vector<1x128x128xbf16>
    %33 = vector.shape_cast %32 : vector<1x128x128xbf16> to vector<128x128xbf16>
    %cst_19 = arith.constant dense<0.000000e+00> : vector<384x128xf32>
    %34 = tpu.matmul %31, %33, %cst_19 {dimension_numbers = #tpu.dot_dimension_numbers<[1], [0], [0], [1], [0, 0, 1, 1], [], []>} : vector<384x128xbf16>, vector<128x128xbf16>, vector<384x128xf32> -> vector<384x128xf32>
    %c2_20 = arith.constant 2 : index
    %c0_21 = arith.constant 0 : index
    %35 = vector.load %arg3[%c2_20, %c0_21] : memref<8x128xf32, #tpu.memory_space<vmem>>, vector<1x128xf32>
    %36 = vector.broadcast %35 : vector<1x128xf32> to vector<384x128xf32>
    %37 = arith.addf %34, %36 : vector<384x128xf32>
    %cst_22 = arith.constant 0.000000e+00 : f32
    %38 = vector.broadcast %cst_22 : f32 to vector<384x128xf32>
    %39 = arith.cmpf ogt, %37, %38 : vector<384x128xf32>
    %cst_23 = arith.constant 0.000000e+00 : f32
    %40 = vector.broadcast %cst_23 : f32 to vector<384x128xf32>
    %41 = arith.minimumf %37, %40 : vector<384x128xf32>
    %42 = math.exp %41 : vector<384x128xf32>
    %cst_24 = arith.constant 1.000000e+00 : f32
    %43 = vector.broadcast %cst_24 : f32 to vector<384x128xf32>
    %44 = arith.subf %42, %43 : vector<384x128xf32>
    %45 = arith.select %39, %37, %44 : vector<384x128xi1>, vector<384x128xf32>
    %46 = arith.truncf %45 : vector<384x128xf32> to vector<384x128xbf16>
    %c3 = arith.constant 3 : index
    %c0_25 = arith.constant 0 : index
    %c0_26 = arith.constant 0 : index
    %47 = vector.load %arg2[%c3, %c0_25, %c0_26] : memref<8x128x128xbf16, #tpu.memory_space<vmem>>, vector<1x128x128xbf16>
    %48 = vector.shape_cast %47 : vector<1x128x128xbf16> to vector<128x128xbf16>
    %cst_27 = arith.constant dense<0.000000e+00> : vector<384x128xf32>
    %49 = tpu.matmul %46, %48, %cst_27 {dimension_numbers = #tpu.dot_dimension_numbers<[1], [0], [0], [1], [0, 0, 1, 1], [], []>} : vector<384x128xbf16>, vector<128x128xbf16>, vector<384x128xf32> -> vector<384x128xf32>
    %c3_28 = arith.constant 3 : index
    %c0_29 = arith.constant 0 : index
    %50 = vector.load %arg3[%c3_28, %c0_29] : memref<8x128xf32, #tpu.memory_space<vmem>>, vector<1x128xf32>
    %51 = vector.broadcast %50 : vector<1x128xf32> to vector<384x128xf32>
    %52 = arith.addf %49, %51 : vector<384x128xf32>
    %53 = tpu.iota {dimensions = array<i32: 1>} : vector<384x128xi32>
    %c8_i32 = arith.constant 8 : i32
    %54 = vector.broadcast %c8_i32 : i32 to vector<384x128xi32>
    %55 = arith.cmpi sge, %53, %54 : vector<384x128xi32>
    %cst_30 = arith.constant 0.000000e+00 : f32
    %56 = vector.broadcast %cst_30 : f32 to vector<384x128xf32>
    %57 = arith.maximumf %52, %56 : vector<384x128xf32>
    %58 = math.absf %52 : vector<384x128xf32>
    %cst_31 = arith.constant 0.000000e+00 : f32
    %59 = vector.broadcast %cst_31 : f32 to vector<384x128xf32>
    %60 = arith.subf %59, %58 : vector<384x128xf32>
    %61 = math.exp %60 : vector<384x128xf32>
    %cst_32 = arith.constant 1.000000e+00 : f32
    %62 = vector.broadcast %cst_32 : f32 to vector<384x128xf32>
    %63 = arith.addf %62, %61 : vector<384x128xf32>
    %64 = math.log %63 : vector<384x128xf32>
    %65 = arith.addf %57, %64 : vector<384x128xf32>
    %66 = arith.select %55, %65, %52 : vector<384x128xi1>, vector<384x128xf32>
    %67 = vector.extract_strided_slice %66 {offsets = [0, 0], sizes = [384, 8], strides = [1, 1]} : vector<384x128xf32> to vector<384x8xf32>
    %68 = vector.extract_strided_slice %66 {offsets = [0, 8], sizes = [384, 8], strides = [1, 1]} : vector<384x128xf32> to vector<384x8xf32>
    %69 = vector.extract_strided_slice %0 {offsets = [0, 21], sizes = [384, 8], strides = [1, 1]} : vector<384x128xf32> to vector<384x8xf32>
    %70 = arith.mulf %68, %69 : vector<384x8xf32>
    %71 = arith.addf %67, %70 : vector<384x8xf32>
    %cst_33 = arith.constant 0.000000e+00 : f32
    %72 = vector.broadcast %cst_33 : f32 to vector<384x120xf32>
    %73 = tpu.concatenate %71, %72 in 1 : vector<384x8xf32>, vector<384x120xf32> -> vector<384x128xf32>
    %74 = arith.truncf %73 : vector<384x128xf32> to vector<384x128xbf16>
    %c4 = arith.constant 4 : index
    %c0_34 = arith.constant 0 : index
    %c0_35 = arith.constant 0 : index
    %75 = vector.load %arg2[%c4, %c0_34, %c0_35] : memref<8x128x128xbf16, #tpu.memory_space<vmem>>, vector<1x128x128xbf16>
    %76 = vector.shape_cast %75 : vector<1x128x128xbf16> to vector<128x128xbf16>
    %cst_36 = arith.constant dense<0.000000e+00> : vector<384x128xf32>
    %77 = tpu.matmul %74, %76, %cst_36 {dimension_numbers = #tpu.dot_dimension_numbers<[1], [0], [0], [1], [0, 0, 1, 1], [], []>} : vector<384x128xbf16>, vector<128x128xbf16>, vector<384x128xf32> -> vector<384x128xf32>
    %c4_37 = arith.constant 4 : index
    %c0_38 = arith.constant 0 : index
    %78 = vector.load %arg3[%c4_37, %c0_38] : memref<8x128xf32, #tpu.memory_space<vmem>>, vector<1x128xf32>
    %79 = vector.broadcast %78 : vector<1x128xf32> to vector<384x128xf32>
    %80 = arith.addf %77, %79 : vector<384x128xf32>
    %cst_39 = arith.constant 0.000000e+00 : f32
    %81 = vector.broadcast %cst_39 : f32 to vector<384x128xf32>
    %82 = arith.cmpf ogt, %80, %81 : vector<384x128xf32>
    %cst_40 = arith.constant 0.000000e+00 : f32
    %83 = vector.broadcast %cst_40 : f32 to vector<384x128xf32>
    %84 = arith.minimumf %80, %83 : vector<384x128xf32>
    %85 = math.exp %84 : vector<384x128xf32>
    %cst_41 = arith.constant 1.000000e+00 : f32
    %86 = vector.broadcast %cst_41 : f32 to vector<384x128xf32>
    %87 = arith.subf %85, %86 : vector<384x128xf32>
    %88 = arith.select %82, %80, %87 : vector<384x128xi1>, vector<384x128xf32>
    %89 = arith.truncf %88 : vector<384x128xf32> to vector<384x128xbf16>
    %c5 = arith.constant 5 : index
    %c0_42 = arith.constant 0 : index
    %c0_43 = arith.constant 0 : index
    %90 = vector.load %arg2[%c5, %c0_42, %c0_43] : memref<8x128x128xbf16, #tpu.memory_space<vmem>>, vector<1x128x128xbf16>
    %91 = vector.shape_cast %90 : vector<1x128x128xbf16> to vector<128x128xbf16>
    %cst_44 = arith.constant dense<0.000000e+00> : vector<384x128xf32>
    %92 = tpu.matmul %89, %91, %cst_44 {dimension_numbers = #tpu.dot_dimension_numbers<[1], [0], [0], [1], [0, 0, 1, 1], [], []>} : vector<384x128xbf16>, vector<128x128xbf16>, vector<384x128xf32> -> vector<384x128xf32>
    %c5_45 = arith.constant 5 : index
    %c0_46 = arith.constant 0 : index
    %93 = vector.load %arg3[%c5_45, %c0_46] : memref<8x128xf32, #tpu.memory_space<vmem>>, vector<1x128xf32>
    %94 = vector.broadcast %93 : vector<1x128xf32> to vector<384x128xf32>
    %95 = arith.addf %92, %94 : vector<384x128xf32>
    %cst_47 = arith.constant 0.000000e+00 : f32
    %96 = vector.broadcast %cst_47 : f32 to vector<384x128xf32>
    %97 = arith.cmpf ogt, %95, %96 : vector<384x128xf32>
    %cst_48 = arith.constant 0.000000e+00 : f32
    %98 = vector.broadcast %cst_48 : f32 to vector<384x128xf32>
    %99 = arith.minimumf %95, %98 : vector<384x128xf32>
    %100 = math.exp %99 : vector<384x128xf32>
    %cst_49 = arith.constant 1.000000e+00 : f32
    %101 = vector.broadcast %cst_49 : f32 to vector<384x128xf32>
    %102 = arith.subf %100, %101 : vector<384x128xf32>
    %103 = arith.select %97, %95, %102 : vector<384x128xi1>, vector<384x128xf32>
    %104 = arith.truncf %103 : vector<384x128xf32> to vector<384x128xbf16>
    %c6 = arith.constant 6 : index
    %c0_50 = arith.constant 0 : index
    %c0_51 = arith.constant 0 : index
    %105 = vector.load %arg2[%c6, %c0_50, %c0_51] : memref<8x128x128xbf16, #tpu.memory_space<vmem>>, vector<1x128x128xbf16>
    %106 = vector.shape_cast %105 : vector<1x128x128xbf16> to vector<128x128xbf16>
    %cst_52 = arith.constant dense<0.000000e+00> : vector<384x128xf32>
    %107 = tpu.matmul %104, %106, %cst_52 {dimension_numbers = #tpu.dot_dimension_numbers<[1], [0], [0], [1], [0, 0, 1, 1], [], []>} : vector<384x128xbf16>, vector<128x128xbf16>, vector<384x128xf32> -> vector<384x128xf32>
    %c6_53 = arith.constant 6 : index
    %c0_54 = arith.constant 0 : index
    %108 = vector.load %arg3[%c6_53, %c0_54] : memref<8x128xf32, #tpu.memory_space<vmem>>, vector<1x128xf32>
    %109 = vector.broadcast %108 : vector<1x128xf32> to vector<384x128xf32>
    %110 = arith.addf %107, %109 : vector<384x128xf32>
    %cst_55 = arith.constant 0.000000e+00 : f32
    %111 = vector.broadcast %cst_55 : f32 to vector<384x128xf32>
    %112 = arith.cmpf ogt, %110, %111 : vector<384x128xf32>
    %cst_56 = arith.constant 0.000000e+00 : f32
    %113 = vector.broadcast %cst_56 : f32 to vector<384x128xf32>
    %114 = arith.minimumf %110, %113 : vector<384x128xf32>
    %115 = math.exp %114 : vector<384x128xf32>
    %cst_57 = arith.constant 1.000000e+00 : f32
    %116 = vector.broadcast %cst_57 : f32 to vector<384x128xf32>
    %117 = arith.subf %115, %116 : vector<384x128xf32>
    %118 = arith.select %112, %110, %117 : vector<384x128xi1>, vector<384x128xf32>
    %119 = arith.truncf %118 : vector<384x128xf32> to vector<384x128xbf16>
    %c7 = arith.constant 7 : index
    %c0_58 = arith.constant 0 : index
    %c0_59 = arith.constant 0 : index
    %120 = vector.load %arg2[%c7, %c0_58, %c0_59] : memref<8x128x128xbf16, #tpu.memory_space<vmem>>, vector<1x128x128xbf16>
    %121 = vector.shape_cast %120 : vector<1x128x128xbf16> to vector<128x128xbf16>
    %cst_60 = arith.constant dense<0.000000e+00> : vector<384x128xf32>
    %122 = tpu.matmul %119, %121, %cst_60 {dimension_numbers = #tpu.dot_dimension_numbers<[1], [0], [0], [1], [0, 0, 1, 1], [], []>} : vector<384x128xbf16>, vector<128x128xbf16>, vector<384x128xf32> -> vector<384x128xf32>
    %c7_61 = arith.constant 7 : index
    %c0_62 = arith.constant 0 : index
    %123 = vector.load %arg3[%c7_61, %c0_62] : memref<8x128xf32, #tpu.memory_space<vmem>>, vector<1x128xf32>
    %124 = vector.broadcast %123 : vector<1x128xf32> to vector<384x128xf32>
    %125 = arith.addf %122, %124 : vector<384x128xf32>
    %cst_63 = arith.constant 5.000000e-01 : f32
    %126 = vector.broadcast %cst_63 : f32 to vector<384x128xf32>
    %127 = arith.mulf %126, %125 : vector<384x128xf32>
    %128 = math.tanh %127 : vector<384x128xf32>
    %cst_64 = arith.constant 1.000000e+00 : f32
    %129 = vector.broadcast %cst_64 : f32 to vector<384x128xf32>
    %130 = arith.addf %128, %129 : vector<384x128xf32>
    %cst_65 = arith.constant 5.000000e-01 : f32
    %131 = vector.broadcast %cst_65 : f32 to vector<384x128xf32>
    %132 = arith.mulf %131, %130 : vector<384x128xf32>
    %133 = vector.extract_strided_slice %66 {offsets = [0, 0], sizes = [384, 16], strides = [1, 1]} : vector<384x128xf32> to vector<384x16xf32>
    %134 = vector.extract_strided_slice %132 {offsets = [0, 0], sizes = [384, 21], strides = [1, 1]} : vector<384x128xf32> to vector<384x21xf32>
    %cst_66 = arith.constant 0.000000e+00 : f32
    %135 = vector.broadcast %cst_66 : f32 to vector<384x83xf32>
    %136 = tpu.concatenate %133, %71, %134, %135 in 1 : vector<384x16xf32>, vector<384x8xf32>, vector<384x21xf32>, vector<384x83xf32> -> vector<384x128xf32>
    %137 = arith.truncf %136 : vector<384x128xf32> to vector<384x128xbf16>
    %c0_67 = arith.constant 0 : index
    %c0_68 = arith.constant 0 : index
    %138 = vector.load %arg4[%c0_67, %c0_68] : memref<384x128xbf16, #tpu.memory_space<vmem>>, vector<384x128xbf16>
    tpu.vector_store %arg4[%c0_67, %c0_68], %137 {strides = array<i32>} : memref<384x128xbf16, #tpu.memory_space<vmem>>, vector<384x128xbf16>,
    return
  }
  func.func @transform_0(%arg0: i32) -> (i32, i32) {
    %c0_i32 = arith.constant 0 : i32
    %c0_i32_0 = arith.constant 0 : i32
    return %arg0, %c0_i32 : i32, i32
  }
  func.func @transform_1(%arg0: i32) -> (i32, i32, i32) {
    %c0_i32 = arith.constant 0 : i32
    %c0_i32_0 = arith.constant 0 : i32
    %c0_i32_1 = arith.constant 0 : i32
    %c0_i32_2 = arith.constant 0 : i32
    return %c0_i32, %c0_i32_0, %c0_i32_1 : i32, i32, i32
  }
  func.func @transform_2(%arg0: i32) -> (i32, i32) {
    %c0_i32 = arith.constant 0 : i32
    %c0_i32_0 = arith.constant 0 : i32
    %c0_i32_1 = arith.constant 0 : i32
    return %c0_i32, %c0_i32_0 : i32, i32
  }
  func.func @transform_3(%arg0: i32) -> (i32, i32) {
    %c0_i32 = arith.constant 0 : i32
    %c0_i32_0 = arith.constant 0 : i32
    return %arg0, %c0_i32 : i32, i32
  }
}

</mosaic_0001>

<bundles_post_ra>
// kernel: model_vae_forward.1
= control target key start
LH: loop header
LB: loop body
LE: loop exit
PB: predicated region body
PF: predicated region fallthrough
CT: control target
= control target key end

     0   :  { %s7500_s24 = smov 115   ;;  %s7501_s25 = smov 120   ;;  %s10459_s1 = inlined_call_operand.vmem [shape: bf16[8,128,128], index: 1, kind: input, shape index: {}]   ;;  %s10460_s2 = inlined_call_operand.vmem [shape: f32[8,128], index: 2, kind: input, shape index: {}]   ;;  %s10461_s0 = inlined_call_operand.vmem [shape: f32[384,128], index: 0, kind: input, shape index: {}]   ;;  %s10462_s3 = inlined_call_operand.vmem [shape: bf16[384,128], index: 3, kind: output, shape index: {}]  }
   0x1   :  { %v6119_v0 = vld [vmem:[%s10459_s1 + $0x38] sm:$0xff]  ;;  %v6118_v1 = vld [vmem:[%s10459_s1 + $0x30] sm:$0xff]  ;;  %v6117_v2 = vld [vmem:[%s10459_s1 + $0x28] sm:$0xff] }
   0x2   :  { %152 = vmatpush.bf16.msra.mxu0 %v6119_v0  ;;  %v6116_v3 = vld [vmem:[%s10459_s1 + $0x20] sm:$0xff]  ;;  %v6115_v4 = vld [vmem:[%s10459_s1 + $0x18] sm:$0xff]  ;;  %v6114_v5 = vld [vmem:[%s10459_s1 + $0x10] sm:$0xff] }
   0x3   :  { %v6113_v6 = vld [vmem:[%s10459_s1 + $0x8] sm:$0xff]  ;;  %v6112_v7 = vld [vmem:[%s10459_s1] sm:$0xff]  ;;  %v7563_v11 = vld [vmem:[%s10461_s0 + $0x10] sm:$0xff] }
   0x4   :  { %v7551_v8 = vld [vmem:[%s10461_s0] sm:$0xff]  ;;  %v7556_v9 = vld [vmem:[%s10461_s0 + $0x8] sm:$0xff]  ;;  %v7568_v12 = vld [vmem:[%s10461_s0 + $0x18] sm:$0xff]  ;;  %2340 = vrot.lane.b32.xlu1 %v7563_v11, %s7500_s24 }
   0x5   :  { %v62_v10 = vpack.c.bf16 %v7556_v9, %v7551_v8  ;;  %v63_v13 = vpack.c.bf16 %v7568_v12, %v7563_v11  ;;  %v7575_v14 = vld [vmem:[%s10461_s0 + $0x20] sm:$0xff]  ;;  %v7580_v15 = vld [vmem:[%s10461_s0 + $0x28] sm:$0xff]  ;;  %v7587_v17 = vld [vmem:[%s10461_s0 + $0x30] sm:$0xff]  ;;  %2336 = vrot.lane.b32.xlu0 %v7551_v8, %s7500_s24 }
   0x6   :  { %153 = vmatpush.bf16.msra.mxu0 %v6118_v1  ;;  %v64_v16 = vpack.c.bf16 %v7580_v15, %v7575_v14  ;;  %v21_v18 = vld [vmem:[%s10461_s0 + $0x38] sm:$0xff]  ;;  %v22_v20 = vld [vmem:[%s10461_s0 + $0x40] sm:$0xff]  ;;  %v23_v21 = vld [vmem:[%s10461_s0 + $0x48] sm:$0xff]  ;;  %2344 = vrot.lane.b32.xlu2 %v7575_v14, %s7500_s24 }
   0x7   :  { %v65_v19 = vpack.c.bf16 %v21_v18, %v7587_v17  ;;  %v66_v22 = vpack.c.bf16 %v23_v21, %v22_v20  ;;  %v24_v23 = vld [vmem:[%s10461_s0 + $0x50] sm:$0xff]  ;;  %v25_v24 = vld [vmem:[%s10461_s0 + $0x58] sm:$0xff]  ;;  %v26_v27 = vld [vmem:[%s10461_s0 + $0x60] sm:$0xff] }
   0x8   :  { %v67_v25 = vpack.c.bf16 %v25_v24, %v24_v23  ;;  %v6127_v26 = vld [vmem:[%s10459_s1 + $0x78] sm:$0xff]  ;;  %v27_v28 = vld [vmem:[%s10461_s0 + $0x68] sm:$0xff]  ;;  %v6126_v29 = vld [vmem:[%s10459_s1 + $0x70] sm:$0xff] }
   0x9   :  { %660 = vmatpush.bf16.msra.mxu1 %v6127_v26  ;;  %v68_v30 = vpack.c.bf16 %v27_v28, %v26_v27  ;;  %v6125_v31 = vld [vmem:[%s10459_s1 + $0x68] sm:$0xff]  ;;  %v6124_v32 = vld [vmem:[%s10459_s1 + $0x60] sm:$0xff]  ;;  %v6123_v33 = vld [vmem:[%s10459_s1 + $0x58] sm:$0xff] }
   0xa   :  { %154 = vmatpush.bf16.msra.mxu0 %v6117_v2  ;;  %v28_v34 = vld [vmem:[%s10461_s0 + $0x70] sm:$0xff]  ;;  %v29_v35 = vld [vmem:[%s10461_s0 + $0x78] sm:$0xff]  ;;  %v6121_v38 = vld [vmem:[%s10459_s1 + $0x48] sm:$0xff] }
   0xb   :  { %v6122_v36 = vld [vmem:[%s10459_s1 + $0x50] sm:$0xff]  ;;  %v69_v37 = vpack.c.bf16 %v29_v35, %v28_v34  ;;  %v6120_v39 = vld [vmem:[%s10459_s1 + $0x40] sm:$0xff]  ;;  %v31_v48 = vld [vmem:[%s10461_s0 + $0x88] sm:$0xff] }
   0xc   :  { %v7644_v40 = vld [vmem:[%s10460_s2] ss:$0 sm:$0xff]  ;;  %v33_v18 = vld [vmem:[%s10461_s0 + $0x98] sm:$0xff]  ;;  %2342 = vrot.lane.b32.xlu1 %v7568_v12, %s7500_s24 }
   0xd   :  { %661 = vmatpush.bf16.msra.mxu1 %v6126_v29  ;;  %v30_v47 = vld [vmem:[%s10461_s0 + $0x80] sm:$0xff]  ;;  %v6143_v8 = vld [vmem:[%s10459_s1 + $0xf8] sm:$0xff]  ;;  %2338 = vrot.lane.b32.xlu0 %v7556_v9, %s7500_s24 }
   0xe   :  { %155 = vmatpush.bf16.msra.mxu0 %v6116_v3  ;;  %v70_v49 = vpack.c.bf16 %v31_v48, %v30_v47  ;;  %v34_v35 = vld [vmem:[%s10461_s0 + $0xa0] sm:$0xff]  ;;  %1676 = vmatpush.bf16.msra.mxu3 %v6143_v8 }
   0xf   :  { %2346 = vrot.lane.b32.xlu2 %v7580_v15, %s7500_s24 }
  0x11   :  { %662 = vmatpush.bf16.msra.mxu1 %v6125_v31 }
  0x12   :  { %156 = vmatpush.bf16.msra.mxu0 %v6115_v4 }
  0x15   :  { %663 = vmatpush.bf16.msra.mxu1 %v6124_v32 }
  0x16   :  { %157 = vmatpush.bf16.msra.mxu0 %v6114_v5 }
  0x17   :  { %2348 = vrot.lane.b32.xlu2 %v7587_v17, %s7500_s24  ;;  %v6141_v17 = vld [vmem:[%s10459_s1 + $0xe8] sm:$0xff] }
  0x19   :  { %664 = vmatpush.bf16.msra.mxu1 %v6123_v33 }
  0x1a   :  { %158 = vmatpush.bf16.msra.mxu0 %v6113_v6 }
  0x1d   :  { %665 = vmatpush.bf16.msra.mxu1 %v6122_v36  ;;  %v35_v36 = vld [vmem:[%s10461_s0 + $0xa8] sm:$0xff] }
  0x1e   :  { %159 = vmatpush.bf16.msra.mxu0 %v6112_v7 }
  0x21   :  { %160 = vmatmul.bf16.vlgmr.msra.gmra.mxu0 %v62_v10  ;;  %666 = vmatpush.bf16.msra.mxu1 %v6121_v38  ;;  %v72_v38 = vpack.c.bf16 %v35_v36, %v34_v35 }
  0x25   :  { %667 = vmatpush.bf16.msra.mxu1 %v6120_v39 }
  0x31   :  { %165 = vmatmul.bf16.gmra.mxu0 %v63_v13 }
  0x41   :  { %170 = vmatmul.bf16.gmra.mxu0 %v64_v16  ;;  %v32_v16 = vld [vmem:[%s10461_s0 + $0x90] sm:$0xff] }
  0x42   :  { %v71_v20 = vpack.c.bf16 %v33_v18, %v32_v16 }
  0x51   :  { %175 = vmatmul.bf16.gmra.mxu0 %v65_v19 }
  0x61   :  { %180 = vmatmul.bf16.gmra.mxu0 %v66_v22 }
  0x71   :  { %185 = vmatmul.bf16.gmra.mxu0 %v67_v25 }
  0x81   :  { %190 = vmatmul.bf16.gmra.mxu0 %v68_v30 }
  0x91   :  { %195 = vmatmul.bf16.gmra.mxu0 %v69_v37 }
  0x9e   :  { %v161_v41 = vpop.f32.mrf.mxu0 }
  0x9f   :  { %v162_v42 = vadd.f32 %v7644_v40, %v161_v41 }
  0xa1   :  { %v329_v43 = vmin.f32 %v162_v42, 0.0  ;;  %200 = vmatmul.bf16.gmra.mxu0 %v70_v49  ;;  %vm281_vm0 = vcmp.gt.f32.partialorder %v162_v42, 0.0 }
  0xa3   :  { %v377_v44 = vmul.f32 1.442695, %v329_v43 }
  0xa5   :  { %6571 = vpow2.f32 %v377_v44 }
  0xa6   :  { %v163_v45 = vpop.f32.mrf.mxu0 }
  0xa7   :  { %v164_v46 = vadd.f32 %v7644_v40, %v163_v45 }
  0xa9   :  { %v330_v50 = vmin.f32 %v164_v46, 0.0  ;;  %vm282_vm1 = vcmp.gt.f32.partialorder %v164_v46, 0.0 }
  0xab   :  { %v379_v51 = vmul.f32 1.442695, %v330_v50  ;;  %v6572_v53 = vpop.eup %6571 }
  0xac   :  { %v5416_v56 = vadd.f32 -1.0, %v6572_v53 }
  0xad   :  { %6573 = vpow2.f32 %v379_v51 }
  0xae   :  { %v166_v52 = vpop.f32.mrf.mxu0  ;;  %v521_v61 = vsel %vm281_vm0, %v162_v42, %v5416_v56  ;;  %v37_v56 = vld [vmem:[%s10461_s0 + $0xb8] sm:$0xff] }
  0xaf   :  { %v167_v54 = vadd.f32 %v7644_v40, %v166_v52 }
  0xb1   :  { %v331_v55 = vmin.f32 %v167_v54, 0.0  ;;  %vm283_vm2 = vcmp.gt.f32.partialorder %v167_v54, 0.0  ;;  %205 = vmatmul.bf16.gmra.mxu0 %v71_v20 }
  0xb3   :  { %v6574_v57 = vpop.eup %6573  ;;  %v381_v59 = vmul.f32 1.442695, %v331_v55  ;;  %v36_v55 = vld [vmem:[%s10461_s0 + $0xb0] sm:$0xff] }
  0xb4   :  { %v5417_v58 = vadd.f32 -1.0, %v6574_v57  ;;  %v73_v57 = vpack.c.bf16 %v37_v56, %v36_v55 }
  0xb5   :  { %6575 = vpow2.f32 %v381_v59 }
  0xb6   :  { %v168_v60 = vpop.f32.mrf.mxu0  ;;  %v522_v62 = vsel %vm282_vm1, %v164_v46, %v5417_v58 }
  0xb7   :  { %v169_v63 = vadd.f32 %v7644_v40, %v168_v60  ;;  %v569_v0 = vpack.c.bf16 %v522_v62, %v521_v61 }
  0xb9   :  { %v332_v1 = vmin.f32 %v169_v63, 0.0  ;;  %668 = vmatmul.bf16.vlgmr.msra.gmra.mxu1 %v569_v0  ;;  %vm284_vm3 = vcmp.gt.f32.partialorder %v169_v63, 0.0 }
  0xbb   :  { %v383_v2 = vmul.f32 1.442695, %v332_v1  ;;  %v6576_v4 = vpop.eup %6575 }
  0xbc   :  { %v5418_v7 = vadd.f32 -1.0, %v6576_v4 }
  0xbd   :  { %6577 = vpow2.f32 %v383_v2 }
  0xbe   :  { %v171_v3 = vpop.f32.mrf.mxu0  ;;  %v523_v22 = vsel %vm283_vm2, %v167_v54, %v5418_v7 }
  0xbf   :  { %v172_v5 = vadd.f32 %v7644_v40, %v171_v3 }
  0xc1   :  { %v333_v6 = vmin.f32 %v172_v5, 0.0  ;;  %vm285_vm4 = vcmp.gt.f32.partialorder %v172_v5, 0.0  ;;  %210 = vmatmul.bf16.gmra.mxu0 %v72_v38 }
  0xc3   :  { %v6578_v10 = vpop.eup %6577  ;;  %v385_v19 = vmul.f32 1.442695, %v333_v6 }
  0xc4   :  { %v5419_v13 = vadd.f32 -1.0, %v6578_v10 }
  0xc5   :  { %6579 = vpow2.f32 %v385_v19 }
  0xc6   :  { %v173_v21 = vpop.f32.mrf.mxu0  ;;  %v524_v23 = vsel %vm284_vm3, %v169_v63, %v5419_v13 }
  0xc7   :  { %v174_v24 = vadd.f32 %v7644_v40, %v173_v21  ;;  %v570_v25 = vpack.c.bf16 %v524_v23, %v523_v22 }
  0xc9   :  { %v334_v26 = vmin.f32 %v174_v24, 0.0  ;;  %673 = vmatmul.bf16.gmra.mxu1 %v570_v25  ;;  %vm286_vm5 = vcmp.gt.f32.partialorder %v174_v24, 0.0 }
  0xcb   :  { %v387_v27 = vmul.f32 1.442695, %v334_v26  ;;  %v6580_v29 = vpop.eup %6579 }
  0xcc   :  { %v5420_v32 = vadd.f32 -1.0, %v6580_v29 }
  0xcd   :  { %6581 = vpow2.f32 %v387_v27 }
  0xce   :  { %v176_v28 = vpop.f32.mrf.mxu0  ;;  %v525_v41 = vsel %vm285_vm4, %v172_v5, %v5420_v32 }
  0xcf   :  { %v177_v30 = vadd.f32 %v7644_v40, %v176_v28 }
  0xd1   :  { %v335_v31 = vmin.f32 %v177_v30, 0.0  ;;  %vm287_vm6 = vcmp.gt.f32.partialorder %v177_v30, 0.0  ;;  %215 = vmatmul.bf16.gmra.mxu0 %v73_v57  ;;  %v6133_v57 = vld [vmem:[%s10459_s1 + $0xa8] sm:$0xff] }
  0xd3   :  { %v6582_v33 = vpop.eup %6581  ;;  %v389_v37 = vmul.f32 1.442695, %v335_v31 }
  0xd4   :  { %v5421_v34 = vadd.f32 -1.0, %v6582_v33 }
  0xd5   :  { %6583 = vpow2.f32 %v389_v37  ;;  %v6135_v37 = vld [vmem:[%s10459_s1 + $0xb8] sm:$0xff] }
  0xd6   :  { %v178_v39 = vpop.f32.mrf.mxu0  ;;  %v526_v42 = vsel %vm286_vm5, %v174_v24, %v5421_v34  ;;  %1168 = vmatpush.bf16.msra.mxu2 %v6135_v37 }
  0xd7   :  { %v179_v43 = vadd.f32 %v7644_v40, %v178_v39  ;;  %v571_v44 = vpack.c.bf16 %v526_v42, %v525_v41 }
  0xd9   :  { %v336_v45 = vmin.f32 %v179_v43, 0.0  ;;  %678 = vmatmul.bf16.gmra.mxu1 %v571_v44  ;;  %vm288_vm7 = vcmp.gt.f32.partialorder %v179_v43, 0.0 }
  0xdb   :  { %v391_v46 = vmul.f32 1.442695, %v336_v45  ;;  %v6584_v48 = vpop.eup %6583 }
  0xdc   :  { %v5422_v51 = vadd.f32 -1.0, %v6584_v48 }
  0xdd   :  { %6585 = vpow2.f32 %v391_v46 }
  0xde   :  { %v181_v47 = vpop.f32.mrf.mxu0  ;;  %v527_v59 = vsel %vm287_vm6, %v177_v30, %v5422_v51  ;;  %v39_v51 = vld [vmem:[%s10461_s0 + $0xc8] sm:$0xff] }
  0xdf   :  { %v182_v49 = vadd.f32 %v7644_v40, %v181_v47 }
  0xe1   :  { %v337_v50 = vmin.f32 %v182_v49, 0.0  ;;  %vm289_vm8 = vcmp.gt.f32.partialorder %v182_v49, 0.0 }
  0xe3   :  { %v6586_v52 = vpop.eup %6585  ;;  %v393_v53 = vmul.f32 1.442695, %v337_v50  ;;  %v38_v50 = vld [vmem:[%s10461_s0 + $0xc0] sm:$0xff] }
  0xe4   :  { %v5423_v54 = vadd.f32 -1.0, %v6586_v52  ;;  %v74_v52 = vpack.c.bf16 %v39_v51, %v38_v50 }
  0xe5   :  { %6587 = vpow2.f32 %v393_v53 }
  0xe6   :  { %v183_v58 = vpop.f32.mrf.mxu0  ;;  %v528_v60 = vsel %vm288_vm7, %v179_v43, %v5423_v54  ;;  %220 = vmatmul.bf16.gmra.mxu0 %v74_v52 }
  0xe7   :  { %v184_v61 = vadd.f32 %v7644_v40, %v183_v58  ;;  %v572_v62 = vpack.c.bf16 %v528_v60, %v527_v59  ;;  %v6132_v60 = vld [vmem:[%s10459_s1 + $0xa0] sm:$0xff] }
  0xe9   :  { %v338_v63 = vmin.f32 %v184_v61, 0.0  ;;  %683 = vmatmul.bf16.gmra.mxu1 %v572_v62  ;;  %vm290_vm9 = vcmp.gt.f32.partialorder %v184_v61, 0.0 }
  0xeb   :  { %v395_v0 = vmul.f32 1.442695, %v338_v63  ;;  %v6588_v1 = vpop.eup %6587  ;;  %v6131_v63 = vld [vmem:[%s10459_s1 + $0x98] sm:$0xff] }
  0xec   :  { %v5424_v4 = vadd.f32 -1.0, %v6588_v1 }
  0xed   :  { %6589 = vpow2.f32 %v395_v0 }
  0xee   :  { %v186_v2 = vpop.f32.mrf.mxu0  ;;  %v529_v13 = vsel %vm289_vm8, %v182_v49, %v5424_v4  ;;  %v6134_v49 = vld [vmem:[%s10459_s1 + $0xb0] sm:$0xff] }
  0xef   :  { %v187_v3 = vadd.f32 %v7644_v40, %v186_v2  ;;  %1169 = vmatpush.bf16.msra.mxu2 %v6134_v49 }
  0xf1   :  { %v339_v5 = vmin.f32 %v187_v3, 0.0  ;;  %vm291_vm10 = vcmp.gt.f32.partialorder %v187_v3, 0.0 }
  0xf3   :  { %v6590_v6 = vpop.eup %6589  ;;  %v397_v7 = vmul.f32 1.442695, %v339_v5  ;;  %1170 = vmatpush.bf16.msra.mxu2 %v6133_v57 }
  0xf4   :  { %v5425_v10 = vadd.f32 -1.0, %v6590_v6 }
  0xf5   :  { %6591 = vpow2.f32 %v397_v7  ;;  %v6129_v7 = vld [vmem:[%s10459_s1 + $0x88] sm:$0xff] }
  0xf6   :  { %v188_v16 = vpop.f32.mrf.mxu0  ;;  %v530_v18 = vsel %vm290_vm9, %v184_v61, %v5425_v10  ;;  %v6128_v10 = vld [vmem:[%s10459_s1 + $0x80] sm:$0xff] }
  0xf7   :  { %v189_v19 = vadd.f32 %v7644_v40, %v188_v16  ;;  %v573_v20 = vpack.c.bf16 %v530_v18, %v529_v13  ;;  %1171 = vmatpush.bf16.msra.mxu2 %v6132_v60 }
  0xf9   :  { %v340_v21 = vmin.f32 %v189_v19, 0.0  ;;  %688 = vmatmul.bf16.gmra.mxu1 %v573_v20  ;;  %vm292_vm11 = vcmp.gt.f32.partialorder %v189_v19, 0.0 }
  0xfb   :  { %v399_v22 = vmul.f32 1.442695, %v340_v21  ;;  %v6592_v23 = vpop.eup %6591  ;;  %1172 = vmatpush.bf16.msra.mxu2 %v6131_v63  ;;  %v40_v21 = vld [vmem:[%s10461_s0 + $0xd0] sm:$0xff] }
  0xfc   :  { %v5426_v26 = vadd.f32 -1.0, %v6592_v23 }
  0xfd   :  { %6593 = vpow2.f32 %v399_v22  ;;  %v41_v22 = vld [vmem:[%s10461_s0 + $0xd8] sm:$0xff] }
  0xfe   :  { %v191_v24 = vpop.f32.mrf.mxu0  ;;  %v531_v31 = vsel %vm291_vm10, %v187_v3, %v5426_v26  ;;  %v6130_v3 = vld [vmem:[%s10459_s1 + $0x90] sm:$0xff] }
  0xff   :  { %v192_v25 = vadd.f32 %v7644_v40, %v191_v24  ;;  %1173 = vmatpush.bf16.msra.mxu2 %v6130_v3  ;;  %v75_v24 = vpack.c.bf16 %v41_v22, %v40_v21 }
 0x101   :  { %v341_v27 = vmin.f32 %v192_v25, 0.0  ;;  %vm293_vm12 = vcmp.gt.f32.partialorder %v192_v25, 0.0  ;;  %225 = vmatmul.bf16.gmra.mxu0 %v75_v24 }
 0x103   :  { %v6594_v28 = vpop.eup %6593  ;;  %v401_v29 = vmul.f32 1.442695, %v341_v27  ;;  %1174 = vmatpush.bf16.msra.mxu2 %v6129_v7 }
 0x104   :  { %v5427_v30 = vadd.f32 -1.0, %v6594_v28 }
 0x105   :  { %6595 = vpow2.f32 %v401_v29 }
 0x106   :  { %v193_v32 = vpop.f32.mrf.mxu0  ;;  %v532_v33 = vsel %vm292_vm11, %v189_v19, %v5427_v30 }
 0x107   :  { %v194_v34 = vadd.f32 %v7644_v40, %v193_v32  ;;  %v574_v35 = vpack.c.bf16 %v532_v33, %v531_v31  ;;  %1175 = vmatpush.bf16.msra.mxu2 %v6128_v10 }
 0x109   :  { %v342_v36 = vmin.f32 %v194_v34, 0.0  ;;  %693 = vmatmul.bf16.gmra.mxu1 %v574_v35  ;;  %vm294_vm13 = vcmp.gt.f32.partialorder %v194_v34, 0.0 }
 0x10b   :  { %v403_v38 = vmul.f32 1.442695, %v342_v36  ;;  %v6596_v39 = vpop.eup %6595 }
 0x10c   :  { %v5428_v43 = vadd.f32 -1.0, %v6596_v39 }
 0x10d   :  { %6597 = vpow2.f32 %v403_v38 }
 0x10e   :  { %v196_v41 = vpop.f32.mrf.mxu0  ;;  %v533_v48 = vsel %vm293_vm12, %v192_v25, %v5428_v43  ;;  %v7727_v25 = vld [vmem:[%s10460_s2 + $0x1] ss:$0 sm:$0xff]  ;;  %v43_v43 = vld [vmem:[%s10461_s0 + $0xe8] sm:$0xff] }
 0x10f   :  { %v197_v42 = vadd.f32 %v7644_v40, %v196_v41 }
 0x111   :  { %v343_v44 = vmin.f32 %v197_v42, 0.0  ;;  %vm295_vm14 = vcmp.gt.f32.partialorder %v197_v42, 0.0 }
 0x113   :  { %v6598_v45 = vpop.eup %6597  ;;  %v405_v46 = vmul.f32 1.442695, %v343_v44 }
 0x114   :  { %v5429_v47 = vadd.f32 -1.0, %v6598_v45 }
 0x115   :  { %6599 = vpow2.f32 %v405_v46 }
 0x116   :  { %v198_v53 = vpop.f32.mrf.mxu0  ;;  %v534_v54 = vsel %vm294_vm13, %v194_v34, %v5429_v47 }
 0x117   :  { %v199_v55 = vadd.f32 %v7644_v40, %v198_v53  ;;  %v575_v56 = vpack.c.bf16 %v534_v54, %v533_v48 }
 0x119   :  { %v344_v58 = vmin.f32 %v199_v55, 0.0  ;;  %698 = vmatmul.bf16.gmra.mxu1 %v575_v56  ;;  %vm296_vm15 = vcmp.gt.f32.partialorder %v199_v55, 0.0 }
 0x11b   :  { %v407_v59 = vmul.f32 1.442695, %v344_v58  ;;  %v6600_v61 = vpop.eup %6599 }
 0x11c   :  { %v5430_v62 = vadd.f32 -1.0, %v6600_v61 }
 0x11d   :  { %6601 = vpow2.f32 %v407_v59 }
 0x11e   :  { %v535_v2 = vsel %vm295_vm14, %v197_v42, %v5430_v62  ;;  %v201_v6 = vpop.f32.mrf.mxu0  ;;  %v42_v42 = vld [vmem:[%s10461_s0 + $0xe0] sm:$0xff] }
 0x11f   :  { %v202_v13 = vadd.f32 %v7644_v40, %v201_v6  ;;  %v76_v44 = vpack.c.bf16 %v43_v43, %v42_v42 }
 0x121   :  { %v345_v16 = vmin.f32 %v202_v13, 0.0  ;;  %vm297_vm0 = vcmp.gt.f32.partialorder %v202_v13, 0.0  ;;  %230 = vmatmul.bf16.gmra.mxu0 %v76_v44 }
 0x123   :  { %v6602_v0 = vpop.eup %6601  ;;  %v409_v20 = vmul.f32 1.442695, %v345_v16 }
 0x124   :  { %v5431_v1 = vadd.f32 -1.0, %v6602_v0 }
 0x125   :  { %6603 = vpow2.f32 %v409_v20 }
 0x126   :  { %v536_v4 = vsel %vm296_vm15, %v199_v55, %v5431_v1  ;;  %v203_v18 = vpop.f32.mrf.mxu0 }
 0x127   :  { %v576_v5 = vpack.c.bf16 %v536_v4, %v535_v2  ;;  %v204_v19 = vadd.f32 %v7644_v40, %v203_v18  ;;  %v44_v4 = vld [vmem:[%s10461_s0 + $0xf0] sm:$0xff] }
 0x129   :  { %703 = vmatmul.bf16.gmra.mxu1 %v576_v5  ;;  %v346_v23 = vmin.f32 %v204_v19, 0.0  ;;  %vm298_vm1 = vcmp.gt.f32.partialorder %v204_v19, 0.0  ;;  %v45_v5 = vld [vmem:[%s10461_s0 + $0xf8] sm:$0xff] }
 0x12a   :  { %v77_v6 = vpack.c.bf16 %v45_v5, %v44_v4 }
 0x12b   :  { %v411_v26 = vmul.f32 1.442695, %v346_v23  ;;  %v6604_v30 = vpop.eup %6603 }
 0x12c   :  { %v5432_v33 = vadd.f32 -1.0, %v6604_v30 }
 0x12d   :  { %6605 = vpow2.f32 %v411_v26 }
 0x12e   :  { %v537_v37 = vsel %vm297_vm0, %v202_v13, %v5432_v33  ;;  %v206_v46 = vpop.f32.mrf.mxu0 }
 0x12f   :  { %v207_v47 = vadd.f32 %v7644_v40, %v206_v46 }
 0x131   :  { %v347_v51 = vmin.f32 %v207_v47, 0.0  ;;  %235 = vmatmul.bf16.gmra.mxu0 %v77_v6  ;;  %vm299_vm5 = vcmp.gt.f32.partialorder %v207_v47, 0.0 }
 0x133   :  { %v6606_v31 = vpop.eup %6605  ;;  %v413_v56 = vmul.f32 1.442695, %v347_v51 }
 0x134   :  { %v5433_v34 = vadd.f32 -1.0, %v6606_v31 }
 0x136   :  { %v669_v27 = vpop.f32.mrf.mxu1  ;;  %v538_v38 = vsel %vm298_vm1, %v204_v19, %v5433_v34  ;;  %v208_v57 = vpop.f32.mrf.mxu0 }
 0x137   :  { %v670_v28 = vadd.f32 %v7727_v25, %v669_v27  ;;  %v577_v39 = vpack.c.bf16 %v538_v38, %v537_v37  ;;  %v209_v59 = vadd.f32 %v7644_v40, %v208_v57 }
 0x139   :  { %v837_v29 = vmin.f32 %v670_v28, 0.0  ;;  %708 = vmatmul.bf16.gmra.mxu1 %v577_v39  ;;  %vm789_vm2 = vcmp.gt.f32.partialorder %v670_v28, 0.0  ;;  %v348_v1 = vmin.f32 %v209_v59, 0.0  ;;  %vm300_vm6 = vcmp.gt.f32.partialorder %v209_v59, 0.0 }
 0x13b   :  { %v885_v32 = vmul.f32 1.442695, %v837_v29  ;;  %v415_v3 = vmul.f32 1.442695, %v348_v1 }
 0x13d   :  { %6607 = vpow2.f32 %v885_v32 }
 0x13e   :  { %v671_v35 = vpop.f32.mrf.mxu1  ;;  %v211_v10 = vpop.f32.mrf.mxu0 }
 0x13f   :  { %v672_v36 = vadd.f32 %v7727_v25, %v671_v35  ;;  %v212_v13 = vadd.f32 %v7644_v40, %v211_v10 }
 0x141   :  { %v838_v41 = vmin.f32 %v672_v36, 0.0  ;;  %vm790_vm3 = vcmp.gt.f32.partialorder %v672_v36, 0.0  ;;  %v349_v21 = vmin.f32 %v212_v13, 0.0  ;;  %vm301_vm9 = vcmp.gt.f32.partialorder %v212_v13, 0.0 }
 0x143   :  { %v887_v45 = vmul.f32 1.442695, %v838_v41  ;;  %v6608_v49 = vpop.eup %6607  ;;  %v417_v30 = vmul.f32 1.442695, %v349_v21 }
 0x144   :  { %v5512_v53 = vadd.f32 -1.0, %v6608_v49 }
 0x145   :  { %6609 = vpow2.f32 %v887_v45 }
 0x146   :  { %v674_v48 = vpop.f32.mrf.mxu1  ;;  %v1029_v61 = vsel %vm789_vm2, %v670_v28, %v5512_v53  ;;  %6611 = vpow2.f32 %v413_v56  ;;  %v213_v31 = vpop.f32.mrf.mxu0 }
 0x147   :  { %v675_v50 = vadd.f32 %v7727_v25, %v674_v48  ;;  %v214_v35 = vadd.f32 %v7644_v40, %v213_v31 }
 0x149   :  { %v839_v52 = vmin.f32 %v675_v50, 0.0  ;;  %vm791_vm4 = vcmp.gt.f32.partialorder %v675_v50, 0.0  ;;  %v350_v43 = vmin.f32 %v214_v35, 0.0  ;;  %vm302_vm10 = vcmp.gt.f32.partialorder %v214_v35, 0.0 }
 0x14b   :  { %v6610_v54 = vpop.eup %6609  ;;  %v889_v58 = vmul.f32 1.442695, %v839_v52  ;;  %v419_v45 = vmul.f32 1.442695, %v350_v43 }
 0x14c   :  { %v5513_v55 = vadd.f32 -1.0, %v6610_v54  ;;  %v6612_v16 = vpop.eup %6611 }
 0x14d   :  { %6613 = vpow2.f32 %v889_v58  ;;  %v5434_v26 = vadd.f32 -1.0, %v6612_v16 }
 0x14e   :  { %v676_v60 = vpop.f32.mrf.mxu1  ;;  %v1030_v62 = vsel %vm790_vm3, %v672_v36, %v5513_v55  ;;  %6615 = vpow2.f32 %v415_v3 }
 0x14f   :  { %v677_v63 = vadd.f32 %v7727_v25, %v676_v60  ;;  %v1077_v0 = vpack.c.bf16 %v1030_v62, %v1029_v61  ;;  %v539_v32 = vsel %vm299_vm5, %v207_v47, %v5434_v26  ;;  %v216_v47 = vpop.f32.mrf.mxu0 }
 0x150   :  { %v217_v48 = vadd.f32 %v7644_v40, %v216_v47 }
 0x151   :  { %v840_v2 = vmin.f32 %v677_v63, 0.0  ;;  %1176 = vmatmul.bf16.vlgmr.msra.gmra.mxu2 %v1077_v0  ;;  %vm792_vm7 = vcmp.gt.f32.partialorder %v677_v63, 0.0 }
 0x152   :  { %v351_v53 = vmin.f32 %v217_v48, 0.0  ;;  %vm303_vm12 = vcmp.gt.f32.partialorder %v217_v48, 0.0 }
 0x153   :  { %v891_v7 = vmul.f32 1.442695, %v840_v2  ;;  %v6614_v19 = vpop.eup %6613 }
 0x154   :  { %v6616_v22 = vpop.eup %6615  ;;  %v5514_v24 = vadd.f32 -1.0, %v6614_v19  ;;  %v421_v61 = vmul.f32 1.442695, %v351_v53 }
 0x155   :  { %6617 = vpow2.f32 %v891_v7  ;;  %v5435_v27 = vadd.f32 -1.0, %v6616_v22 }
 0x156   :  { %v679_v18 = vpop.f32.mrf.mxu1  ;;  %v1031_v38 = vsel %vm791_vm4, %v675_v50, %v5514_v24  ;;  %6619 = vpow2.f32 %v417_v30 }
 0x157   :  { %v680_v20 = vadd.f32 %v7727_v25, %v679_v18  ;;  %v540_v33 = vsel %vm300_vm6, %v209_v59, %v5435_v27  ;;  %v218_v62 = vpop.f32.mrf.mxu0 }
 0x158   :  { %v578_v36 = vpack.c.bf16 %v540_v33, %v539_v32  ;;  %v219_v2 = vadd.f32 %v7644_v40, %v218_v62  ;;  %v46_v62 = vld [vmem:[%s10461_s0 + $0x100] sm:$0xff] }
 0x159   :  { %v841_v23 = vmin.f32 %v680_v20, 0.0  ;;  %vm793_vm8 = vcmp.gt.f32.partialorder %v680_v20, 0.0 }
 0x15a   :  { %713 = vmatmul.bf16.gmra.mxu1 %v578_v36  ;;  %v352_v16 = vmin.f32 %v219_v2, 0.0  ;;  %vm304_vm13 = vcmp.gt.f32.partialorder %v219_v2, 0.0 }
 0x15b   :  { %v6618_v28 = vpop.eup %6617  ;;  %v893_v34 = vmul.f32 1.442695, %v841_v23 }
 0x15c   :  { %v5515_v29 = vadd.f32 -1.0, %v6618_v28  ;;  %v6620_v49 = vpop.eup %6619  ;;  %v423_v19 = vmul.f32 1.442695, %v352_v16 }
 0x15d   :  { %6621 = vpow2.f32 %v893_v34  ;;  %v5436_v57 = vadd.f32 -1.0, %v6620_v49 }
 0x15e   :  { %v681_v37 = vpop.f32.mrf.mxu1  ;;  %v1032_v39 = vsel %vm792_vm7, %v677_v63, %v5515_v29  ;;  %6623 = vpow2.f32 %v419_v45 }
 0x15f   :  { %v682_v41 = vadd.f32 %v7727_v25, %v681_v37  ;;  %v1078_v42 = vpack.c.bf16 %v1032_v39, %v1031_v38  ;;  %v541_v63 = vsel %vm301_vm9, %v212_v13, %v5436_v57 }
 0x161   :  { %v842_v44 = vmin.f32 %v682_v41, 0.0  ;;  %1181 = vmatmul.bf16.gmra.mxu2 %v1078_v42  ;;  %vm794_vm11 = vcmp.gt.f32.partialorder %v682_v41, 0.0 }
 0x163   :  { %v895_v46 = vmul.f32 1.442695, %v842_v44  ;;  %v6622_v50 = vpop.eup %6621 }
 0x164   :  { %v6624_v54 = vpop.eup %6623  ;;  %v5516_v56 = vadd.f32 -1.0, %v6622_v50 }
 0x165   :  { %6625 = vpow2.f32 %v895_v46  ;;  %v5437_v58 = vadd.f32 -1.0, %v6624_v54 }
 0x166   :  { %v684_v51 = vpop.f32.mrf.mxu1  ;;  %v1033_v5 = vsel %vm793_vm8, %v680_v20, %v5516_v56  ;;  %6627 = vpow2.f32 %v421_v61 }
 0x167   :  { %v685_v52 = vadd.f32 %v7727_v25, %v684_v51  ;;  %v542_v0 = vsel %vm302_vm10, %v214_v35, %v5437_v58 }
 0x168   :  { %v579_v3 = vpack.c.bf16 %v542_v0, %v541_v63  ;;  %v47_v63 = vld [vmem:[%s10461_s0 + $0x108] sm:$0xff] }
 0x169   :  { %v843_v55 = vmin.f32 %v685_v52, 0.0  ;;  %vm795_vm14 = vcmp.gt.f32.partialorder %v685_v52, 0.0 }
 0x16a   :  { %718 = vmatmul.bf16.gmra.mxu1 %v579_v3 }
 0x16b   :  { %v6626_v59 = vpop.eup %6625  ;;  %v897_v1 = vmul.f32 1.442695, %v843_v55 }
 0x16c   :  { %v5517_v60 = vadd.f32 -1.0, %v6626_v59  ;;  %v6628_v21 = vpop.eup %6627  ;;  %v221_v59 = vpop.f32.mrf.mxu0 }
 0x16d   :  { %6629 = vpow2.f32 %v897_v1  ;;  %v5438_v28 = vadd.f32 -1.0, %v6628_v21  ;;  %v222_v61 = vadd.f32 %v7644_v40, %v221_v59  ;;  %v78_v1 = vpack.c.bf16 %v47_v63, %v46_v62  ;;  %v6140_v59 = vld [vmem:[%s10459_s1 + $0xe0] sm:$0xff] }
 0x16e   :  { %v686_v4 = vpop.f32.mrf.mxu1  ;;  %v1034_v6 = vsel %vm794_vm11, %v682_v41, %v5517_v60  ;;  %6631 = vpow2.f32 %v423_v19 }
 0x16f   :  { %v687_v7 = vadd.f32 %v7727_v25, %v686_v4  ;;  %v1079_v10 = vpack.c.bf16 %v1034_v6, %v1033_v5  ;;  %v543_v33 = vsel %vm303_vm12, %v217_v48, %v5438_v28  ;;  %v353_v3 = vmin.f32 %v222_v61, 0.0  ;;  %240 = vmatmul.bf16.gmra.mxu0 %v78_v1 }
 0x170   :  { %vm305_vm4 = vcmp.gt.f32.partialorder %v222_v61, 0.0 }
 0x171   :  { %v844_v18 = vmin.f32 %v687_v7, 0.0  ;;  %1186 = vmatmul.bf16.gmra.mxu2 %v1079_v10  ;;  %vm796_vm15 = vcmp.gt.f32.partialorder %v687_v7, 0.0  ;;  %v425_v6 = vmul.f32 1.442695, %v353_v3 }
 0x173   :  { %v899_v13 = vmul.f32 1.442695, %v844_v18  ;;  %v6630_v23 = vpop.eup %6629 }
 0x174   :  { %v6632_v20 = vpop.eup %6631  ;;  %v5518_v27 = vadd.f32 -1.0, %v6630_v23  ;;  %v223_v19 = vpop.f32.mrf.mxu0 }
 0x175   :  { %6633 = vpow2.f32 %v899_v13  ;;  %v5439_v29 = vadd.f32 -1.0, %v6632_v20  ;;  %v224_v13 = vadd.f32 %v7644_v40, %v223_v19 }
 0x176   :  { %v689_v22 = vpop.f32.mrf.mxu1  ;;  %v1035_v37 = vsel %vm795_vm14, %v685_v52, %v5518_v27 }
 0x177   :  { %v690_v24 = vadd.f32 %v7727_v25, %v689_v22  ;;  %v544_v34 = vsel %vm304_vm13, %v219_v2, %v5439_v29  ;;  %v354_v20 = vmin.f32 %v224_v13, 0.0  ;;  %vm306_vm6 = vcmp.gt.f32.partialorder %v224_v13, 0.0 }
 0x178   :  { %v580_v35 = vpack.c.bf16 %v544_v34, %v543_v33 }
 0x179   :  { %v845_v26 = vmin.f32 %v690_v24, 0.0  ;;  %vm797_vm0 = vcmp.gt.f32.partialorder %v690_v24, 0.0  ;;  %v427_v27 = vmul.f32 1.442695, %v354_v20 }
 0x17a   :  { %723 = vmatmul.bf16.gmra.mxu1 %v580_v35 }
 0x17b   :  { %v6634_v30 = vpop.eup %6633  ;;  %v901_v31 = vmul.f32 1.442695, %v845_v26 }
 0x17c   :  { %v5519_v32 = vadd.f32 -1.0, %v6634_v30 }
 0x17d   :  { %6635 = vpow2.f32 %v901_v31 }
 0x17e   :  { %v691_v36 = vpop.f32.mrf.mxu1  ;;  %v1036_v38 = vsel %vm796_vm15, %v687_v7, %v5519_v32 }
 0x17f   :  { %v692_v39 = vadd.f32 %v7727_v25, %v691_v36  ;;  %v1080_v41 = vpack.c.bf16 %v1036_v38, %v1035_v37 }
 0x181   :  { %v846_v42 = vmin.f32 %v692_v39, 0.0  ;;  %1191 = vmatmul.bf16.gmra.mxu2 %v1080_v41  ;;  %vm798_vm1 = vcmp.gt.f32.partialorder %v692_v39, 0.0 }
 0x183   :  { %v903_v43 = vmul.f32 1.442695, %v846_v42  ;;  %v6636_v44 = vpop.eup %6635 }
 0x184   :  { %v5520_v47 = vadd.f32 -1.0, %v6636_v44 }
 0x185   :  { %6637 = vpow2.f32 %v903_v43 }
 0x186   :  { %v694_v45 = vpop.f32.mrf.mxu1  ;;  %v1037_v52 = vsel %vm797_vm0, %v690_v24, %v5520_v47 }
 0x187   :  { %v695_v46 = vadd.f32 %v7727_v25, %v694_v45 }
 0x189   :  { %v847_v48 = vmin.f32 %v695_v46, 0.0  ;;  %vm799_vm2 = vcmp.gt.f32.partialorder %v695_v46, 0.0 }
 0x18b   :  { %v6638_v49 = vpop.eup %6637  ;;  %v905_v51 = vmul.f32 1.442695, %v847_v48  ;;  %v6142_v48 = vld [vmem:[%s10459_s1 + $0xf0] sm:$0xff] }
 0x18c   :  { %v5521_v50 = vadd.f32 -1.0, %v6638_v49  ;;  %1677 = vmatpush.bf16.msra.mxu3 %v6142_v48  ;;  %v52_v48 = vld [vmem:[%s10461_s0 + $0x130] sm:$0xff] }
 0x18d   :  { %6639 = vpow2.f32 %v905_v51 }
 0x18e   :  { %v696_v53 = vpop.f32.mrf.mxu1  ;;  %v1038_v54 = vsel %vm798_vm1, %v692_v39, %v5521_v50 }
 0x18f   :  { %v697_v55 = vadd.f32 %v7727_v25, %v696_v53  ;;  %v1081_v56 = vpack.c.bf16 %v1038_v54, %v1037_v52  ;;  %v48_v52 = vld [vmem:[%s10461_s0 + $0x110] sm:$0xff]  ;;  %v49_v53 = vld [vmem:[%s10461_s0 + $0x118] sm:$0xff] }
 0x190   :  { %v79_v54 = vpack.c.bf16 %v49_v53, %v48_v52  ;;  %1678 = vmatpush.bf16.msra.mxu3 %v6141_v17 }
 0x191   :  { %v848_v57 = vmin.f32 %v697_v55, 0.0  ;;  %1196 = vmatmul.bf16.gmra.mxu2 %v1081_v56  ;;  %vm800_vm3 = vcmp.gt.f32.partialorder %v697_v55, 0.0 }
 0x192   :  { %245 = vmatmul.bf16.gmra.mxu0 %v79_v54 }
 0x193   :  { %v907_v58 = vmul.f32 1.442695, %v848_v57  ;;  %v6640_v60 = vpop.eup %6639 }
 0x194   :  { %v5522_v4 = vadd.f32 -1.0, %v6640_v60  ;;  %1679 = vmatpush.bf16.msra.mxu3 %v6140_v59 }
 0x195   :  { %6641 = vpow2.f32 %v907_v58 }
 0x196   :  { %v699_v0 = vpop.f32.mrf.mxu1  ;;  %v1039_v18 = vsel %vm799_vm2, %v695_v46, %v5522_v4  ;;  %6643 = vpow2.f32 %v425_v6  ;;  %v226_v46 = vpop.f32.mrf.mxu0 }
 0x197   :  { %v700_v2 = vadd.f32 %v7727_v25, %v699_v0  ;;  %v227_v47 = vadd.f32 %v7644_v40, %v226_v46 }
 0x199   :  { %v849_v5 = vmin.f32 %v700_v2, 0.0  ;;  %vm801_vm5 = vcmp.gt.f32.partialorder %v700_v2, 0.0  ;;  %v355_v51 = vmin.f32 %v227_v47, 0.0  ;;  %vm307_vm10 = vcmp.gt.f32.partialorder %v227_v47, 0.0 }
 0x19b   :  { %v6642_v7 = vpop.eup %6641  ;;  %v909_v10 = vmul.f32 1.442695, %v849_v5  ;;  %v429_v56 = vmul.f32 1.442695, %v355_v51 }
 0x19c   :  { %v5523_v16 = vadd.f32 -1.0, %v6642_v7  ;;  %v6644_v28 = vpop.eup %6643  ;;  %v6138_v7 = vld [vmem:[%s10459_s1 + $0xd0] sm:$0xff] }
 0x19d   :  { %6645 = vpow2.f32 %v909_v10  ;;  %v5440_v30 = vadd.f32 -1.0, %v6644_v28 }
 0x19e   :  { %v701_v21 = vpop.f32.mrf.mxu1  ;;  %v1040_v22 = vsel %vm800_vm3, %v697_v55, %v5523_v16  ;;  %6647 = vpow2.f32 %v427_v27  ;;  %v228_v57 = vpop.f32.mrf.mxu0 }
 0x19f   :  { %v702_v23 = vadd.f32 %v7727_v25, %v701_v21  ;;  %v1082_v24 = vpack.c.bf16 %v1040_v22, %v1039_v18  ;;  %v545_v36 = vsel %vm305_vm4, %v222_v61, %v5440_v30  ;;  %v229_v58 = vadd.f32 %v7644_v40, %v228_v57  ;;  %v6137_v22 = vld [vmem:[%s10459_s1 + $0xc8] sm:$0xff] }
 0x1a1   :  { %v850_v26 = vmin.f32 %v702_v23, 0.0  ;;  %1201 = vmatmul.bf16.gmra.mxu2 %v1082_v24  ;;  %vm802_vm7 = vcmp.gt.f32.partialorder %v702_v23, 0.0  ;;  %v356_v63 = vmin.f32 %v229_v58, 0.0  ;;  %vm308_vm11 = vcmp.gt.f32.partialorder %v229_v58, 0.0 }
 0x1a3   :  { %v911_v29 = vmul.f32 1.442695, %v850_v26  ;;  %v6646_v11 = vpop.eup %6645  ;;  %v431_v1 = vmul.f32 1.442695, %v356_v63 }
 0x1a4   :  { %v5524_v32 = vadd.f32 -1.0, %v6646_v11  ;;  %v6648_v33 = vpop.eup %6647 }
 0x1a5   :  { %6649 = vpow2.f32 %v911_v29  ;;  %v5441_v35 = vadd.f32 -1.0, %v6648_v33 }
 0x1a6   :  { %v704_v14 = vpop.f32.mrf.mxu1  ;;  %v1041_v12 = vsel %vm801_vm5, %v700_v2, %v5524_v32  ;;  %v6139_v2 = vld [vmem:[%s10459_s1 + $0xd8] sm:$0xff]  ;;  %v231_v5 = vpop.f32.mrf.mxu0 }
 0x1a7   :  { %v705_v31 = vadd.f32 %v7727_v25, %v704_v14  ;;  %v546_v39 = vsel %vm306_vm6, %v224_v13, %v5441_v35  ;;  %1680 = vmatpush.bf16.msra.mxu3 %v6139_v2  ;;  %v7813_v16 = vadd.f32 %v7644_v40, %v231_v5  ;;  %v51_v40 = vld [vmem:[%s10461_s0 + $0x128] sm:$0xff] }
 0x1a8   :  { %v581_v41 = vpack.c.bf16 %v546_v39, %v545_v36 }
 0x1a9   :  { %v851_v34 = vmin.f32 %v705_v31, 0.0  ;;  %vm803_vm8 = vcmp.gt.f32.partialorder %v705_v31, 0.0  ;;  %v357_v13 = vmin.f32 %v7813_v16, 0.0  ;;  %vm309_vm12 = vcmp.gt.f32.partialorder %v7813_v16, 0.0 }
 0x1aa   :  { %728 = vmatmul.bf16.gmra.mxu1 %v581_v41 }
 0x1ab   :  { %v6650_v37 = vpop.eup %6649  ;;  %v913_v9 = vmul.f32 1.442695, %v851_v34  ;;  %1681 = vmatpush.bf16.msra.mxu3 %v6138_v7  ;;  %v433_v8 = vmul.f32 1.442695, %v357_v13  ;;  %v6136_v34 = vld [vmem:[%s10459_s1 + $0xc0] sm:$0xff] }
 0x1ac   :  { %v5525_v38 = vadd.f32 -1.0, %v6650_v37 }
 0x1ad   :  { %6651 = vpow2.f32 %v913_v9 }
 0x1ae   :  { %v706_v42 = vpop.f32.mrf.mxu1  ;;  %v1042_v43 = vsel %vm802_vm7, %v702_v23, %v5525_v38  ;;  %v50_v23 = vld [vmem:[%s10461_s0 + $0x120] sm:$0xff]  ;;  %v233_v29 = vpop.f32.mrf.mxu0 }
 0x1af   :  { %v707_v15 = vadd.f32 %v7727_v25, %v706_v42  ;;  %v1083_v44 = vpack.c.bf16 %v1042_v43, %v1041_v12  ;;  %v80_v27 = vpack.c.bf16 %v51_v40, %v50_v23  ;;  %1682 = vmatpush.bf16.msra.mxu3 %v6137_v22  ;;  %v7838_v38 = vld [vmem:[%s10460_s2 + $0x2] ss:$0 sm:$0xff] }
 0x1b1   :  { %v852_v45 = vmin.f32 %v707_v15, 0.0  ;;  %1206 = vmatmul.bf16.gmra.mxu2 %v1083_v44  ;;  %vm804_vm9 = vcmp.gt.f32.partialorder %v707_v15, 0.0  ;;  %250 = vmatmul.bf16.gmra.mxu0 %v80_v27 }
 0x1b3   :  { %v915_v49 = vmul.f32 1.442695, %v852_v45  ;;  %v6652_v50 = vpop.eup %6651  ;;  %1683 = vmatpush.bf16.msra.mxu3 %v6136_v34 }
 0x1b4   :  { %v5526_v55 = vadd.f32 -1.0, %v6652_v50 }
 0x1b5   :  { %6653 = vpow2.f32 %v915_v49  ;;  %v53_v49 = vld [vmem:[%s10461_s0 + $0x138] sm:$0xff] }
 0x1b6   :  { %v1043_v62 = vsel %vm803_vm8, %v705_v31, %v5526_v55  ;;  %6655 = vpow2.f32 %v429_v56  ;;  %v709_v4 = vpop.f32.mrf.mxu1  ;;  %v7829_v31 = vld [vmem:[%s10460_s2] ss:$0 sm:$0xff]  ;;  %v236_v12 = vpop.f32.mrf.mxu0  ;;  %v81_v53 = vpack.c.bf16 %v53_v49, %v52_v48 }
 0x1b7   :  { %6657 = vpow2.f32 %v431_v1  ;;  %v710_v10 = vadd.f32 %v7727_v25, %v709_v4  ;;  %v234_v32 = vadd.f32 %v7829_v31, %v233_v29  ;;  %v7841_v41 = vadd.f32 %v7829_v31, %v236_v12 }
 0x1b9   :  { %v853_v19 = vmin.f32 %v710_v10, 0.0  ;;  %v358_v36 = vmin.f32 %v234_v32, 0.0  ;;  %v359_v45 = vmin.f32 %v7841_v41, 0.0  ;;  %vm805_vm13 = vcmp.gt.f32.partialorder %v710_v10, 0.0 }
 0x1ba   :  { %vm310_vm15 = vcmp.gt.f32.partialorder %v234_v32, 0.0  ;;  %vm311_vm0 = vcmp.gt.f32.partialorder %v7841_v41, 0.0 }
 0x1bb   :  { %v6654_v60 = vpop.eup %6653  ;;  %v917_v20 = vmul.f32 1.442695, %v853_v19  ;;  %v435_v37 = vmul.f32 1.442695, %v358_v36  ;;  %v437_v52 = vmul.f32 1.442695, %v359_v45 }
 0x1bc   :  { %v5527_v61 = vadd.f32 -1.0, %v6654_v60  ;;  %v6656_v6 = vpop.eup %6655 }
 0x1bd   :  { %v5442_v18 = vadd.f32 -1.0, %v6656_v6  ;;  %v6658_v21 = vpop.eup %6657  ;;  %6659 = vpow2.f32 %v917_v20 }
 0x1be   :  { %v1044_v0 = vsel %vm804_vm9, %v707_v15, %v5527_v61  ;;  %v5443_v24 = vadd.f32 -1.0, %v6658_v21  ;;  %v711_v26 = vpop.f32.mrf.mxu1  ;;  %6661 = vpow2.f32 %v433_v8  ;;  %v238_v56 = vpop.f32.mrf.mxu0 }
 0x1bf   :  { %v1084_v3 = vpack.c.bf16 %v1044_v0, %v1043_v62  ;;  %v712_v28 = vadd.f32 %v7727_v25, %v711_v26  ;;  %v547_v11 = vsel %vm307_vm10, %v227_v47, %v5442_v18  ;;  %v239_v59 = vadd.f32 %v7829_v31, %v238_v56 }
 0x1c0   :  { %v548_v14 = vsel %vm308_vm11, %v229_v58, %v5443_v24 }
 0x1c1   :  { %1211 = vmatmul.bf16.gmra.mxu2 %v1084_v3  ;;  %v854_v30 = vmin.f32 %v712_v28, 0.0  ;;  %v582_v33 = vpack.c.bf16 %v548_v14, %v547_v11  ;;  %vm806_vm14 = vcmp.gt.f32.partialorder %v712_v28, 0.0  ;;  %255 = vmatmul.bf16.gmra.mxu0 %v81_v53  ;;  %v360_v0 = vmin.f32 %v239_v59, 0.0 }
 0x1c2   :  { %vm312_vm1 = vcmp.gt.f32.partialorder %v239_v59, 0.0 }
 0x1c3   :  { %v919_v35 = vmul.f32 1.442695, %v854_v30  ;;  %733 = vmatmul.bf16.gmra.mxu1 %v582_v33  ;;  %v6660_v9 = vpop.eup %6659  ;;  %v439_v4 = vmul.f32 1.442695, %v360_v0 }
 0x1c4   :  { %v6662_v39 = vpop.eup %6661  ;;  %v5528_v46 = vadd.f32 -1.0, %v6660_v9 }
 0x1c5   :  { %6663 = vpow2.f32 %v919_v35  ;;  %v5444_v44 = vadd.f32 -1.0, %v6662_v39 }
 0x1c6   :  { %6665 = vpow2.f32 %v435_v37  ;;  %v1045_v54 = vsel %vm805_vm13, %v710_v10, %v5528_v46 }
 0x1c7   :  { %v549_v58 = vsel %vm309_vm12, %v7813_v16, %v5444_v44  ;;  %6667 = vpow2.f32 %v437_v52 }
 0x1cb   :  { %v6664_v42 = vpop.eup %6663 }
 0x1cc   :  { %v6666_v47 = vpop.eup %6665  ;;  %v5529_v51 = vadd.f32 -1.0, %v6664_v42 }
 0x1cd   :  { %v5445_v17 = vadd.f32 -1.0, %v6666_v47  ;;  %v6668_v10 = vpop.eup %6667 }
 0x1ce   :  { %v1046_v55 = vsel %vm806_vm14, %v712_v28, %v5529_v51  ;;  %v5446_v21 = vadd.f32 -1.0, %v6668_v10 }
 0x1cf   :  { %v1085_v57 = vpack.c.bf16 %v1046_v55, %v1045_v54  ;;  %v550_v60 = vsel %vm310_vm15, %v234_v32, %v5445_v17 }
 0x1d0   :  { %v583_v62 = vpack.c.bf16 %v550_v60, %v549_v58  ;;  %v551_v29 = vsel %vm311_vm0, %v7841_v41, %v5446_v21 }
 0x1d1   :  { %1216 = vmatmul.bf16.gmra.mxu2 %v1085_v57 }
 0x1d3   :  { %738 = vmatmul.bf16.gmra.mxu1 %v583_v62 }
 0x1d4   :  { %v1177_v43 = vpop.f32.mrf.mxu2 }
 0x1d5   :  { %v7844_v15 = vadd.f32 %v7838_v38, %v1177_v43 }
 0x1d7   :  { %v1345_v50 = vmin.f32 %v7844_v15, 0.0  ;;  %v714_v1 = vpop.f32.mrf.mxu1  ;;  %vm1297_vm2 = vcmp.gt.f32.partialorder %v7844_v15, 0.0 }
 0x1d8   :  { %v715_v3 = vadd.f32 %v7727_v25, %v714_v1 }
 0x1d9   :  { %v1393_v61 = vmul.f32 1.442695, %v1345_v50 }
 0x1da   :  { %v855_v7 = vmin.f32 %v715_v3, 0.0  ;;  %vm807_vm4 = vcmp.gt.f32.partialorder %v715_v3, 0.0 }
 0x1db   :  { %6669 = vpow2.f32 %v1393_v61 }
 0x1dc   :  { %v1179_v63 = vpop.f32.mrf.mxu2  ;;  %6671 = vpow2.f32 %v439_v4  ;;  %v921_v22 = vmul.f32 1.442695, %v855_v7 }
 0x1dd   :  { %v1180_v2 = vadd.f32 %v7838_v38, %v1179_v63 }
 0x1df   :  { %v1346_v5 = vmin.f32 %v1180_v2, 0.0  ;;  %v716_v18 = vpop.f32.mrf.mxu1  ;;  %vm1298_vm3 = vcmp.gt.f32.partialorder %v1180_v2, 0.0 }
 0x1e0   :  { %v717_v23 = vadd.f32 %v7727_v25, %v716_v18 }
 0x1e1   :  { %v1395_v6 = vmul.f32 1.442695, %v1346_v5  ;;  %v6670_v19 = vpop.eup %6669 }
 0x1e2   :  { %v6672_v40 = vpop.eup %6671  ;;  %v856_v26 = vmin.f32 %v717_v23, 0.0  ;;  %v5608_v27 = vadd.f32 -1.0, %v6670_v19  ;;  %vm808_vm5 = vcmp.gt.f32.partialorder %v717_v23, 0.0 }
 0x1e3   :  { %6673 = vpow2.f32 %v1395_v6  ;;  %v5447_v20 = vadd.f32 -1.0, %v6672_v40 }
 0x1e4   :  { %v1182_v16 = vpop.f32.mrf.mxu2  ;;  %6675 = vpow2.f32 %v921_v22  ;;  %v923_v28 = vmul.f32 1.442695, %v856_v26  ;;  %v1537_v34 = vsel %vm1297_vm2, %v7844_v15, %v5608_v27 }
 0x1e5   :  { %v7860_v13 = vadd.f32 %v7838_v38, %v1182_v16  ;;  %v552_v11 = vsel %vm312_vm1, %v239_v59, %v5447_v20 }
 0x1e6   :  { %v584_v30 = vpack.c.bf16 %v552_v11, %v551_v29  ;;  %6677 = vpow2.f32 %v923_v28 }
 0x1e7   :  { %v1347_v24 = vmin.f32 %v7860_v13, 0.0  ;;  %v719_v36 = vpop.f32.mrf.mxu1  ;;  %vm1299_vm6 = vcmp.gt.f32.partialorder %v7860_v13, 0.0 }
 0x1e8   :  { %v720_v12 = vadd.f32 %v7727_v25, %v719_v36  ;;  %743 = vmatmul.bf16.gmra.mxu1 %v584_v30 }
 0x1e9   :  { %v6674_v8 = vpop.eup %6673  ;;  %v1397_v32 = vmul.f32 1.442695, %v1347_v24 }
 0x1ea   :  { %v5609_v14 = vadd.f32 -1.0, %v6674_v8  ;;  %v6676_v39 = vpop.eup %6675  ;;  %v857_v43 = vmin.f32 %v720_v12, 0.0  ;;  %vm809_vm8 = vcmp.gt.f32.partialorder %v720_v12, 0.0 }
 0x1eb   :  { %6679 = vpow2.f32 %v1397_v32  ;;  %v5530_v45 = vadd.f32 -1.0, %v6676_v39 }
 0x1ec   :  { %v1184_v33 = vpop.f32.mrf.mxu2  ;;  %v1538_v35 = vsel %vm1298_vm3, %v1180_v2, %v5609_v14  ;;  %v6678_v44 = vpop.eup %6677  ;;  %v925_v50 = vmul.f32 1.442695, %v857_v43 }
 0x1ed   :  { %v1185_v37 = vadd.f32 %v7838_v38, %v1184_v33  ;;  %v1585_v9 = vpack.c.bf16 %v1538_v35, %v1537_v34  ;;  %v5531_v15 = vadd.f32 -1.0, %v6678_v44  ;;  %v1047_v48 = vsel %vm807_vm4, %v715_v3, %v5530_v45 }
 0x1ef   :  { %v1348_v41 = vmin.f32 %v1185_v37, 0.0  ;;  %1684 = vmatmul.bf16.vlgmr.msra.gmra.mxu3 %v1585_v9  ;;  %v721_v47 = vpop.f32.mrf.mxu1  ;;  %v1048_v52 = vsel %vm808_vm5, %v717_v23, %v5531_v15  ;;  %vm1300_vm7 = vcmp.gt.f32.partialorder %v1185_v37, 0.0 }
 0x1f0   :  { %v722_v17 = vadd.f32 %v7727_v25, %v721_v47  ;;  %v1086_v53 = vpack.c.bf16 %v1048_v52, %v1047_v48 }
 0x1f1   :  { %v1399_v42 = vmul.f32 1.442695, %v1348_v41  ;;  %v6680_v49 = vpop.eup %6679 }
 0x1f2   :  { %v858_v55 = vmin.f32 %v722_v17, 0.0  ;;  %v5610_v56 = vadd.f32 -1.0, %v6680_v49  ;;  %1221 = vmatmul.bf16.gmra.mxu2 %v1086_v53  ;;  %vm810_vm9 = vcmp.gt.f32.partialorder %v722_v17, 0.0 }
 0x1f3   :  { %6681 = vpow2.f32 %v1399_v42 }
 0x1f4   :  { %v1187_v46 = vpop.f32.mrf.mxu2  ;;  %6683 = vpow2.f32 %v925_v50  ;;  %v927_v58 = vmul.f32 1.442695, %v858_v55  ;;  %v1539_v62 = vsel %vm1299_vm6, %v7860_v13, %v5610_v56  ;;  %v241_v50 = vpop.f32.mrf.mxu0 }
 0x1f5   :  { %v1188_v51 = vadd.f32 %v7838_v38, %v1187_v46  ;;  %v242_v52 = vadd.f32 %v7829_v31, %v241_v50 }
 0x1f6   :  { %6685 = vpow2.f32 %v927_v58 }
 0x1f7   :  { %v1349_v54 = vmin.f32 %v1188_v51, 0.0  ;;  %v724_v0 = vpop.f32.mrf.mxu1  ;;  %vm1301_vm10 = vcmp.gt.f32.partialorder %v1188_v51, 0.0  ;;  %v361_v58 = vmin.f32 %v242_v52, 0.0  ;;  %vm313_vm2 = vcmp.gt.f32.partialorder %v242_v52, 0.0 }
 0x1f8   :  { %v725_v3 = vadd.f32 %v7727_v25, %v724_v0 }
 0x1f9   :  { %v6682_v57 = vpop.eup %6681  ;;  %v1401_v60 = vmul.f32 1.442695, %v1349_v54 }
 0x1fa   :  { %v5611_v59 = vadd.f32 -1.0, %v6682_v57  ;;  %v6684_v4 = vpop.eup %6683  ;;  %v859_v7 = vmin.f32 %v725_v3, 0.0  ;;  %vm811_vm12 = vcmp.gt.f32.partialorder %v725_v3, 0.0 }
 0x1fb   :  { %6687 = vpow2.f32 %v1401_v60  ;;  %v5532_v16 = vadd.f32 -1.0, %v6684_v4  ;;  %v55_v60 = vld [vmem:[%s10461_s0 + $0x148] sm:$0xff] }
 0x1fc   :  { %v1189_v61 = vpop.f32.mrf.mxu2  ;;  %v1540_v63 = vsel %vm1300_vm7, %v1185_v37, %v5611_v59  ;;  %v6686_v10 = vpop.eup %6685  ;;  %v929_v40 = vmul.f32 1.442695, %v859_v7  ;;  %v54_v59 = vld [vmem:[%s10461_s0 + $0x140] sm:$0xff] }
 0x1fd   :  { %v1190_v1 = vadd.f32 %v7838_v38, %v1189_v61  ;;  %v1586_v2 = vpack.c.bf16 %v1540_v63, %v1539_v62  ;;  %v5533_v18 = vadd.f32 -1.0, %v6686_v10  ;;  %v1049_v21 = vsel %vm809_vm8, %v720_v12, %v5532_v16 }
 0x1fe   :  { %v441_v62 = vmul.f32 1.442695, %v361_v58  ;;  %v82_v63 = vpack.c.bf16 %v55_v60, %v54_v59 }
 0x1ff   :  { %v1350_v5 = vmin.f32 %v1190_v1, 0.0  ;;  %1689 = vmatmul.bf16.gmra.mxu3 %v1586_v2  ;;  %v726_v13 = vpop.f32.mrf.mxu1  ;;  %v1050_v20 = vsel %vm810_vm9, %v722_v17, %v5533_v18  ;;  %vm1302_vm11 = vcmp.gt.f32.partialorder %v1190_v1, 0.0 }
 0x200   :  { %v727_v24 = vadd.f32 %v7727_v25, %v726_v13  ;;  %v1087_v26 = vpack.c.bf16 %v1050_v20, %v1049_v21  ;;  %260 = vmatmul.bf16.gmra.mxu0 %v82_v63  ;;  %v58_v63 = vld [vmem:[%s10461_s0 + $0x160] sm:$0xff] }
 0x201   :  { %v1403_v6 = vmul.f32 1.442695, %v1350_v5  ;;  %v6688_v22 = vpop.eup %6687 }
 0x202   :  { %v860_v8 = vmin.f32 %v727_v24, 0.0  ;;  %v5612_v28 = vadd.f32 -1.0, %v6688_v22  ;;  %1226 = vmatmul.bf16.gmra.mxu2 %v1087_v26  ;;  %vm812_vm13 = vcmp.gt.f32.partialorder %v727_v24, 0.0 }
 0x203   :  { %6689 = vpow2.f32 %v1403_v6 }
 0x204   :  { %v1192_v19 = vpop.f32.mrf.mxu2  ;;  %6691 = vpow2.f32 %v929_v40  ;;  %v931_v11 = vmul.f32 1.442695, %v860_v8  ;;  %v1541_v33 = vsel %vm1301_vm10, %v1188_v51, %v5612_v28  ;;  %v7894_v8 = vld [vmem:[%s10460_s2 + $0x1] ss:$0 sm:$0xff] }
 0x205   :  { %v1193_v23 = vadd.f32 %v7838_v38, %v1192_v19 }
 0x206   :  { %6693 = vpow2.f32 %v931_v11 }
 0x207   :  { %v1351_v27 = vmin.f32 %v1193_v23, 0.0  ;;  %vm1303_vm14 = vcmp.gt.f32.partialorder %v1193_v23, 0.0 }
 0x209   :  { %v6690_v29 = vpop.eup %6689  ;;  %v1405_v30 = vmul.f32 1.442695, %v1351_v27 }
 0x20a   :  { %v5613_v14 = vadd.f32 -1.0, %v6690_v29  ;;  %v6692_v36 = vpop.eup %6691 }
 0x20b   :  { %6695 = vpow2.f32 %v1405_v30  ;;  %v5534_v39 = vadd.f32 -1.0, %v6692_v36 }
 0x20c   :  { %v1194_v32 = vpop.f32.mrf.mxu2  ;;  %v1542_v34 = vsel %vm1302_vm11, %v1190_v1, %v5613_v14  ;;  %v6694_v12 = vpop.eup %6693 }
 0x20d   :  { %v1195_v35 = vadd.f32 %v7838_v38, %v1194_v32  ;;  %v1587_v25 = vpack.c.bf16 %v1542_v34, %v1541_v33  ;;  %v5535_v41 = vadd.f32 -1.0, %v6694_v12  ;;  %v1051_v43 = vsel %vm811_vm12, %v725_v3, %v5534_v39  ;;  %v243_v1 = vpop.f32.mrf.mxu0 }
 0x20e   :  { %v244_v2 = vadd.f32 %v7829_v31, %v243_v1 }
 0x20f   :  { %v1352_v37 = vmin.f32 %v1195_v35, 0.0  ;;  %1694 = vmatmul.bf16.gmra.mxu3 %v1587_v25  ;;  %v1052_v15 = vsel %vm812_vm13, %v727_v24, %v5535_v41  ;;  %vm1304_vm15 = vcmp.gt.f32.partialorder %v1195_v35, 0.0 }
 0x210   :  { %v1088_v46 = vpack.c.bf16 %v1052_v15, %v1051_v43  ;;  %v362_v5 = vmin.f32 %v244_v2, 0.0  ;;  %vm314_vm3 = vcmp.gt.f32.partialorder %v244_v2, 0.0 }
 0x211   :  { %v1407_v9 = vmul.f32 1.442695, %v1352_v37  ;;  %v6696_v44 = vpop.eup %6695  ;;  %v56_v37 = vld [vmem:[%s10461_s0 + $0x150] sm:$0xff] }
 0x212   :  { %v5614_v48 = vadd.f32 -1.0, %v6696_v44  ;;  %1231 = vmatmul.bf16.gmra.mxu2 %v1088_v46  ;;  %v443_v10 = vmul.f32 1.442695, %v362_v5 }
 0x213   :  { %6697 = vpow2.f32 %v1407_v9  ;;  %v57_v9 = vld [vmem:[%s10461_s0 + $0x158] sm:$0xff] }
 0x214   :  { %v1197_v42 = vpop.f32.mrf.mxu2  ;;  %v1543_v54 = vsel %vm1303_vm14, %v1193_v23, %v5614_v48  ;;  %v83_v41 = vpack.c.bf16 %v57_v9, %v56_v37 }
 0x215   :  { %v1198_v45 = vadd.f32 %v7838_v38, %v1197_v42 }
 0x216   :  { %265 = vmatmul.bf16.gmra.mxu0 %v83_v41 }
 0x217   :  { %v1353_v47 = vmin.f32 %v1198_v45, 0.0  ;;  %vm1305_vm0 = vcmp.gt.f32.partialorder %v1198_v45, 0.0 }
 0x219   :  { %v6698_v49 = vpop.eup %6697  ;;  %v1409_v51 = vmul.f32 1.442695, %v1353_v47 }
 0x21a   :  { %v5615_v17 = vadd.f32 -1.0, %v6698_v49 }
 0x21b   :  { %6699 = vpow2.f32 %v1409_v51 }
 0x21c   :  { %v1199_v53 = vpop.f32.mrf.mxu2  ;;  %v1544_v55 = vsel %vm1304_vm15, %v1195_v35, %v5615_v17  ;;  %6701 = vpow2.f32 %v441_v62 }
 0x21d   :  { %v1200_v56 = vadd.f32 %v7838_v38, %v1199_v53  ;;  %v1588_v57 = vpack.c.bf16 %v1544_v55, %v1543_v54 }
 0x21f   :  { %v1354_v61 = vmin.f32 %v1200_v56, 0.0  ;;  %1699 = vmatmul.bf16.gmra.mxu3 %v1588_v57  ;;  %vm1306_vm1 = vcmp.gt.f32.partialorder %v1200_v56, 0.0 }
 0x221   :  { %v1411_v0 = vmul.f32 1.442695, %v1354_v61  ;;  %v6700_v3 = vpop.eup %6699 }
 0x222   :  { %v5616_v7 = vadd.f32 -1.0, %v6700_v3  ;;  %v6702_v18 = vpop.eup %6701 }
 0x223   :  { %6703 = vpow2.f32 %v1411_v0  ;;  %v5448_v24 = vadd.f32 -1.0, %v6702_v18  ;;  %v59_v0 = vld [vmem:[%s10461_s0 + $0x168] sm:$0xff] }
 0x224   :  { %v1202_v4 = vpop.f32.mrf.mxu2  ;;  %6705 = vpow2.f32 %v443_v10  ;;  %v1545_v22 = vsel %vm1305_vm0, %v1198_v45, %v5616_v7  ;;  %v246_v45 = vpop.f32.mrf.mxu0 }
 0x225   :  { %v1203_v6 = vadd.f32 %v7838_v38, %v1202_v4  ;;  %v553_v33 = vsel %vm313_vm2, %v242_v52, %v5448_v24  ;;  %v7912_v47 = vadd.f32 %v7829_v31, %v246_v45  ;;  %v84_v4 = vpack.c.bf16 %v59_v0, %v58_v63 }
 0x227   :  { %v1355_v16 = vmin.f32 %v1203_v6, 0.0  ;;  %v729_v20 = vpop.f32.mrf.mxu1  ;;  %vm1307_vm4 = vcmp.gt.f32.partialorder %v1203_v6, 0.0  ;;  %v363_v52 = vmin.f32 %v7912_v47, 0.0  ;;  %270 = vmatmul.bf16.gmra.mxu0 %v84_v4  ;;  %vm315_vm10 = vcmp.gt.f32.partialorder %v7912_v47, 0.0 }
 0x228   :  { %v7897_v28 = vadd.f32 %v7894_v8, %v729_v20 }
 0x229   :  { %v6704_v19 = vpop.eup %6703  ;;  %v1413_v13 = vmul.f32 1.442695, %v1355_v16 }
 0x22a   :  { %v5617_v21 = vadd.f32 -1.0, %v6704_v19  ;;  %v6706_v29 = vpop.eup %6705  ;;  %v861_v30 = vmin.f32 %v7897_v28, 0.0  ;;  %vm813_vm6 = vcmp.gt.f32.partialorder %v7897_v28, 0.0 }
 0x22b   :  { %6707 = vpow2.f32 %v1413_v13  ;;  %v5449_v14 = vadd.f32 -1.0, %v6706_v29 }
 0x22c   :  { %v1204_v23 = vpop.f32.mrf.mxu2  ;;  %v1546_v40 = vsel %vm1306_vm1, %v1200_v56, %v5617_v21  ;;  %v933_v35 = vmul.f32 1.442695, %v861_v30  ;;  %v445_v56 = vmul.f32 1.442695, %v363_v52  ;;  %v248_v59 = vpop.f32.mrf.mxu0 }
 0x22d   :  { %v1205_v26 = vadd.f32 %v7838_v38, %v1204_v23  ;;  %v1589_v27 = vpack.c.bf16 %v1546_v40, %v1545_v22  ;;  %v554_v34 = vsel %vm314_vm3, %v244_v2, %v5449_v14  ;;  %v249_v62 = vadd.f32 %v7829_v31, %v248_v59 }
 0x22e   :  { %v585_v25 = vpack.c.bf16 %v554_v34, %v553_v33 }
 0x22f   :  { %v1356_v11 = vmin.f32 %v1205_v26, 0.0  ;;  %1704 = vmatmul.bf16.gmra.mxu3 %v1589_v27  ;;  %v731_v39 = vpop.f32.mrf.mxu1  ;;  %vm1308_vm5 = vcmp.gt.f32.partialorder %v1205_v26, 0.0  ;;  %v364_v2 = vmin.f32 %v249_v62, 0.0  ;;  %vm316_vm11 = vcmp.gt.f32.partialorder %v249_v62, 0.0 }
 0x230   :  { %748 = vmatmul.bf16.gmra.mxu1 %v585_v25  ;;  %v732_v43 = vadd.f32 %v7894_v8, %v731_v39 }
 0x231   :  { %v1415_v32 = vmul.f32 1.442695, %v1356_v11  ;;  %v6708_v36 = vpop.eup %6707  ;;  %v447_v7 = vmul.f32 1.442695, %v364_v2 }
 0x232   :  { %v5618_v44 = vadd.f32 -1.0, %v6708_v36  ;;  %v862_v46 = vmin.f32 %v732_v43, 0.0  ;;  %vm814_vm7 = vcmp.gt.f32.partialorder %v732_v43, 0.0 }
 0x233   :  { %6709 = vpow2.f32 %v1415_v32 }
 0x234   :  { %v1207_v12 = vpop.f32.mrf.mxu2  ;;  %6711 = vpow2.f32 %v933_v35  ;;  %v935_v51 = vmul.f32 1.442695, %v862_v46  ;;  %v1547_v17 = vsel %vm1307_vm4, %v1203_v6, %v5618_v44  ;;  %v251_v22 = vpop.f32.mrf.mxu0 }
 0x235   :  { %v7907_v42 = vadd.f32 %v7838_v38, %v1207_v12  ;;  %v7928_v24 = vadd.f32 %v7829_v31, %v251_v22 }
 0x236   :  { %6713 = vpow2.f32 %v935_v51 }
 0x237   :  { %v1357_v15 = vmin.f32 %v7907_v42, 0.0  ;;  %vm1309_vm8 = vcmp.gt.f32.partialorder %v7907_v42, 0.0  ;;  %vm317_vm14 = vcmp.gt.f32.partialorder %v7928_v24, 0.0 }
 0x239   :  { %v6710_v48 = vpop.eup %6709  ;;  %v1417_v49 = vmul.f32 1.442695, %v1357_v15 }
 0x23a   :  { %v5619_v50 = vadd.f32 -1.0, %v6710_v48  ;;  %v6712_v53 = vpop.eup %6711 }
 0x23b   :  { %6715 = vpow2.f32 %v1417_v49  ;;  %v5536_v61 = vadd.f32 -1.0, %v6712_v53 }
 0x23c   :  { %v1209_v54 = vpop.f32.mrf.mxu2  ;;  %v1548_v55 = vsel %vm1308_vm5, %v1205_v26, %v5619_v50  ;;  %6717 = vpow2.f32 %v445_v56  ;;  %v6714_v3 = vpop.eup %6713 }
 0x23d   :  { %v1210_v57 = vadd.f32 %v7838_v38, %v1209_v54  ;;  %v1590_v58 = vpack.c.bf16 %v1548_v55, %v1547_v17  ;;  %v5537_v6 = vadd.f32 -1.0, %v6714_v3  ;;  %v1053_v10 = vsel %vm813_vm6, %v7897_v28, %v5536_v61  ;;  %v253_v39 = vpop.f32.mrf.mxu0 }
 0x23e   :  { %v365_v28 = vmin.f32 %v7928_v24, 0.0 }
 0x23f   :  { %v1358_v60 = vmin.f32 %v1210_v57, 0.0  ;;  %1709 = vmatmul.bf16.gmra.mxu3 %v1590_v58  ;;  %v1054_v13 = vsel %vm814_vm7, %v732_v43, %v5537_v6  ;;  %vm1310_vm9 = vcmp.gt.f32.partialorder %v1210_v57, 0.0  ;;  %v254_v43 = vadd.f32 %v7829_v31, %v253_v39 }
 0x240   :  { %v1089_v23 = vpack.c.bf16 %v1054_v13, %v1053_v10  ;;  %v734_v29 = vpop.f32.mrf.mxu1  ;;  %v449_v12 = vmul.f32 1.442695, %v365_v28 }
 0x241   :  { %v1419_v1 = vmul.f32 1.442695, %v1358_v60  ;;  %v6716_v5 = vpop.eup %6715  ;;  %v7934_v30 = vadd.f32 %v7894_v8, %v734_v29  ;;  %v366_v46 = vmin.f32 %v254_v43, 0.0  ;;  %vm318_vm15 = vcmp.gt.f32.partialorder %v254_v43, 0.0 }
 0x242   :  { %v6718_v18 = vpop.eup %6717  ;;  %v5620_v21 = vadd.f32 -1.0, %v6716_v5  ;;  %1236 = vmatmul.bf16.gmra.mxu2 %v1089_v23 }
 0x243   :  { %6719 = vpow2.f32 %v1419_v1  ;;  %v5450_v20 = vadd.f32 -1.0, %v6718_v18  ;;  %v863_v25 = vmin.f32 %v7934_v30, 0.0  ;;  %v451_v51 = vmul.f32 1.442695, %v366_v46  ;;  %v7960_v46 = vld [vmem:[%s10460_s2 + $0x3] ss:$0 sm:$0xff] }
 0x244   :  { %v1212_v16 = vpop.f32.mrf.mxu2  ;;  %6721 = vpow2.f32 %v447_v7  ;;  %v1549_v14 = vsel %vm1309_vm8, %v7907_v42, %v5620_v21  ;;  %vm815_vm0 = vcmp.gt.f32.partialorder %v7934_v30, 0.0 }
 0x245   :  { %v1213_v19 = vadd.f32 %v7838_v38, %v1212_v16  ;;  %v555_v36 = vsel %vm315_vm10, %v7912_v47, %v5450_v20  ;;  %v937_v45 = vmul.f32 1.442695, %v863_v25  ;;  %v256_v54 = vpop.f32.mrf.mxu0 }
 0x246   :  { %v257_v7 = vadd.f32 %v7829_v31, %v256_v54 }
 0x247   :  { %v1359_v40 = vmin.f32 %v1213_v19, 0.0  ;;  %vm1311_vm12 = vcmp.gt.f32.partialorder %v1213_v19, 0.0 }
 0x248   :  { %v736_v48 = vpop.f32.mrf.mxu1  ;;  %vm319_vm2 = vcmp.gt.f32.partialorder %v257_v7, 0.0 }
 0x249   :  { %v6720_v26 = vpop.eup %6719  ;;  %v1421_v27 = vmul.f32 1.442695, %v1359_v40  ;;  %v737_v47 = vadd.f32 %v7894_v8, %v736_v48 }
 0x24a   :  { %v5621_v11 = vadd.f32 -1.0, %v6720_v26  ;;  %v6722_v32 = vpop.eup %6721 }
 0x24b   :  { %v5451_v35 = vadd.f32 -1.0, %v6722_v32  ;;  %6723 = vpow2.f32 %v1421_v27  ;;  %v864_v50 = vmin.f32 %v737_v47, 0.0  ;;  %vm816_vm1 = vcmp.gt.f32.partialorder %v737_v47, 0.0 }
 0x24c   :  { %v1214_v33 = vpop.f32.mrf.mxu2  ;;  %v1550_v34 = vsel %vm1310_vm9, %v1210_v57, %v5621_v11  ;;  %6725 = vpow2.f32 %v449_v12  ;;  %v61_v12 = vld [vmem:[%s10461_s0 + $0x178] sm:$0xff] }
 0x24d   :  { %v1215_v37 = vadd.f32 %v7838_v38, %v1214_v33  ;;  %v1591_v9 = vpack.c.bf16 %v1550_v34, %v1549_v14  ;;  %v556_v41 = vsel %vm316_vm11, %v249_v62, %v5451_v35  ;;  %v939_v52 = vmul.f32 1.442695, %v864_v50  ;;  %v258_v10 = vpop.f32.mrf.mxu0 }
 0x24e   :  { %v586_v44 = vpack.c.bf16 %v556_v41, %v555_v36  ;;  %v259_v18 = vadd.f32 %v7829_v31, %v258_v10 }
 0x24f   :  { %v1360_v42 = vmin.f32 %v1215_v37, 0.0  ;;  %1714 = vmatmul.bf16.gmra.mxu3 %v1591_v9  ;;  %vm1312_vm13 = vcmp.gt.f32.partialorder %v1215_v37, 0.0  ;;  %v60_v9 = vld [vmem:[%s10461_s0 + $0x170] sm:$0xff] }
 0x250   :  { %753 = vmatmul.bf16.gmra.mxu1 %v586_v44  ;;  %v739_v60 = vpop.f32.mrf.mxu1  ;;  %v368_v23 = vmin.f32 %v259_v18, 0.0  ;;  %vm320_vm3 = vcmp.gt.f32.partialorder %v259_v18, 0.0 }
 0x251   :  { %v1423_v15 = vmul.f32 1.442695, %v1360_v42  ;;  %v6724_v49 = vpop.eup %6723  ;;  %v740_v22 = vadd.f32 %v7894_v8, %v739_v60  ;;  %v85_v42 = vpack.c.bf16 %v61_v12, %v60_v9 }
 0x252   :  { %v5622_v17 = vadd.f32 -1.0, %v6724_v49  ;;  %v6726_v53 = vpop.eup %6725  ;;  %v455_v28 = vmul.f32 1.442695, %v368_v23 }
 0x253   :  { %6727 = vpow2.f32 %v1423_v15  ;;  %v5452_v59 = vadd.f32 -1.0, %v6726_v53  ;;  %v865_v27 = vmin.f32 %v740_v22, 0.0  ;;  %vm817_vm4 = vcmp.gt.f32.partialorder %v740_v22, 0.0  ;;  %275 = vmatmul.bf16.gmra.mxu0 %v85_v42 }
 0x254   :  { %6729 = vpow2.f32 %v937_v45  ;;  %v1551_v58 = vsel %vm1311_vm12, %v1213_v19, %v5622_v17  ;;  %v1217_v3 = vpop.f32.mrf.mxu2  ;;  %v367_v19 = vmin.f32 %v257_v7, 0.0 }
 0x255   :  { %6731 = vpow2.f32 %v451_v51  ;;  %v557_v4 = vsel %vm317_vm14, %v7928_v24, %v5452_v59  ;;  %v941_v11 = vmul.f32 1.442695, %v865_v27  ;;  %v1218_v31 = vadd.f32 %v7838_v38, %v1217_v3 }
 0x256   :  { %6733 = vpow2.f32 %v939_v52  ;;  %v453_v24 = vmul.f32 1.442695, %v367_v19 }
 0x257   :  { %v1361_v33 = vmin.f32 %v1218_v31, 0.0  ;;  %vm1313_vm6 = vcmp.gt.f32.partialorder %v1218_v31, 0.0 }
 0x258   :  { %v741_v40 = vpop.f32.mrf.mxu1  ;;  %6735 = vpow2.f32 %v453_v24 }
 0x259   :  { %v6728_v55 = vpop.eup %6727  ;;  %v742_v26 = vadd.f32 %v7894_v8, %v741_v40  ;;  %6737 = vpow2.f32 %v455_v28  ;;  %v1425_v35 = vmul.f32 1.442695, %v1361_v33 }
 0x25a   :  { %v6730_v56 = vpop.eup %6729  ;;  %v5623_v57 = vadd.f32 -1.0, %v6728_v55  ;;  %6739 = vpow2.f32 %v941_v11 }
 0x25b   :  { %v6732_v61 = vpop.eup %6731  ;;  %v5538_v1 = vadd.f32 -1.0, %v6730_v56  ;;  %v866_v29 = vmin.f32 %v742_v26, 0.0  ;;  %vm818_vm5 = vcmp.gt.f32.partialorder %v742_v26, 0.0 }
 0x25c   :  { %v1552_v62 = vsel %vm1312_vm13, %v1215_v37, %v5623_v57  ;;  %v5453_v63 = vadd.f32 -1.0, %v6732_v61  ;;  %v6734_v2 = vpop.eup %6733  ;;  %v1219_v14 = vpop.f32.mrf.mxu2 }
 0x25d   :  { %v1592_v0 = vpack.c.bf16 %v1552_v62, %v1551_v58  ;;  %v5539_v6 = vadd.f32 -1.0, %v6734_v2  ;;  %v1055_v13 = vsel %vm815_vm0, %v7934_v30, %v5538_v1  ;;  %v943_v30 = vmul.f32 1.442695, %v866_v29 }
 0x25e   :  { %v558_v5 = vsel %vm318_vm15, %v254_v43, %v5453_v63  ;;  %v1220_v32 = vadd.f32 %v7838_v38, %v1219_v14  ;;  %v6736_v36 = vpop.eup %6735 }
 0x25f   :  { %1719 = vmatmul.bf16.gmra.mxu3 %v1592_v0  ;;  %v587_v16 = vpack.c.bf16 %v558_v5, %v557_v4  ;;  %v1056_v21 = vsel %vm816_vm1, %v737_v47, %v5539_v6  ;;  %6741 = vpow2.f32 %v943_v30  ;;  %v6738_v39 = vpop.eup %6737  ;;  %v5454_v41 = vadd.f32 -1.0, %v6736_v36 }
 0x260   :  { %v1090_v20 = vpack.c.bf16 %v1056_v21, %v1055_v13  ;;  %v1362_v34 = vmin.f32 %v1220_v32, 0.0  ;;  %6743 = vpow2.f32 %v1425_v35  ;;  %v5455_v43 = vadd.f32 -1.0, %v6738_v39  ;;  %v6740_v44 = vpop.eup %6739 }
 0x261   :  { %758 = vmatmul.bf16.gmra.mxu1 %v587_v16  ;;  %v559_v45 = vsel %vm319_vm2, %v257_v7, %v5454_v41  ;;  %v5540_v48 = vadd.f32 -1.0, %v6740_v44  ;;  %vm1314_vm7 = vcmp.gt.f32.partialorder %v1220_v32, 0.0 }
 0x262   :  { %1241 = vmatmul.bf16.gmra.mxu2 %v1090_v20  ;;  %v1427_v37 = vmul.f32 1.442695, %v1362_v34  ;;  %v560_v47 = vsel %vm320_vm3, %v259_v18, %v5455_v43 }
 0x263   :  { %v588_v51 = vpack.c.bf16 %v560_v47, %v559_v45  ;;  %v1057_v50 = vsel %vm817_vm4, %v740_v22, %v5540_v48  ;;  %v2337_v48 = vpop.permute.xlu0 %2336 }
 0x264   :  { %6745 = vpow2.f32 %v1427_v37 }
 0x265   :  { %v744_v25 = vpop.f32.mrf.mxu1  ;;  %v6742_v15 = vpop.eup %6741 }
 0x266   :  { %v5541_v49 = vadd.f32 -1.0, %v6742_v15  ;;  %v6744_v17 = vpop.eup %6743  ;;  %v745_v53 = vadd.f32 %v7894_v8, %v744_v25 }
 0x267   :  { %v5624_v59 = vadd.f32 -1.0, %v6744_v17 }
 0x268   :  { %v1058_v55 = vsel %vm818_vm5, %v742_v26, %v5541_v49  ;;  %v867_v61 = vmin.f32 %v745_v53, 0.0  ;;  %vm819_vm8 = vcmp.gt.f32.partialorder %v745_v53, 0.0 }
 0x269   :  { %v1091_v58 = vpack.c.bf16 %v1058_v55, %v1057_v50  ;;  %v1553_v2 = vsel %vm1313_vm6, %v1218_v31, %v5624_v59 }
 0x26a   :  { %v6746_v60 = vpop.eup %6745  ;;  %v945_v1 = vmul.f32 1.442695, %v867_v61 }
 0x26b   :  { %v5625_v0 = vadd.f32 -1.0, %v6746_v60 }
 0x26c   :  { %6747 = vpow2.f32 %v945_v1 }
 0x26d   :  { %v746_v54 = vpop.f32.mrf.mxu1  ;;  %v1554_v5 = vsel %vm1314_vm7, %v1220_v32, %v5625_v0  ;;  %v1805_v32 = vlaneseq }
 0x26e   :  { %v747_v57 = vadd.f32 %v7894_v8, %v746_v54  ;;  %v1593_v6 = vpack.c.bf16 %v1554_v5, %v1553_v2  ;;  %v8000_v2 = vld [vmem:[%s10460_s2 + $0x2] ss:$0 sm:$0xff] }
 0x26f   :  { %v7978_v9 = vand.u32 127, %v1805_v32 }
 0x270   :  { %v868_v63 = vmin.f32 %v747_v57, 0.0  ;;  %1724 = vmatmul.bf16.gmra.mxu3 %v1593_v6  ;;  %vm820_vm9 = vcmp.gt.f32.partialorder %v747_v57, 0.0 }
 0x271   :  { %763 = vmatmul.bf16.gmra.mxu1 %v588_v51  ;;  %vm1807_vm10 = vcmp.ge.s32.totalorder %v7978_v9, 8 }
 0x272   :  { %v1685_v52 = vpop.f32.mrf.mxu3  ;;  %1246 = vmatmul.bf16.gmra.mxu2 %v1091_v58  ;;  %v947_v4 = vmul.f32 1.442695, %v868_v63  ;;  %v6748_v13 = vpop.eup %6747 }
 0x273   :  { %v7964_v56 = vadd.f32 %v7960_v46, %v1685_v52  ;;  %v5542_v23 = vadd.f32 -1.0, %v6748_v13 }
 0x274   :  { %6749 = vpow2.f32 %v947_v4 }
 0x275   :  { %v1856_v62 = vand.u32 2147483647, %v7964_v56  ;;  %v1222_v18 = vpop.f32.mrf.mxu2  ;;  %v1059_v26 = vsel %vm819_vm8, %v745_v53, %v5542_v23  ;;  %v1808_v45 = vmax.f32 %v7964_v56, 0.0 }
 0x276   :  { %v1223_v31 = vadd.f32 %v7838_v38, %v1222_v18 }
 0x277   :  { %v1904_v3 = vsub.f32 0.0, %v1856_v62 }
 0x278   :  { %v1363_v35 = vmin.f32 %v1223_v31, 0.0  ;;  %vm1315_vm11 = vcmp.gt.f32.partialorder %v1223_v31, 0.0 }
 0x279   :  { %v1952_v7 = vmul.f32 1.442695, %v1904_v3 }
 0x27a   :  { %v1687_v10 = vpop.f32.mrf.mxu3  ;;  %v6750_v21 = vpop.eup %6749  ;;  %v1429_v37 = vmul.f32 1.442695, %v1363_v35 }
 0x27b   :  { %6751 = vpow2.f32 %v1952_v7  ;;  %v7969_v16 = vadd.f32 %v7960_v46, %v1687_v10  ;;  %v5543_v40 = vadd.f32 -1.0, %v6750_v21  ;;  %v2339_v10 = vpop.permute.xlu0 %2338 }
 0x27d   :  { %v1857_v19 = vand.u32 2147483647, %v7969_v16  ;;  %v1060_v29 = vsel %vm820_vm9, %v747_v57, %v5543_v40  ;;  %v1224_v14 = vpop.f32.mrf.mxu2  ;;  %v1809_v61 = vmax.f32 %v7969_v16, 0.0 }
 0x27e   :  { %v1092_v30 = vpack.c.bf16 %v1060_v29, %v1059_v26  ;;  %v1225_v33 = vadd.f32 %v7838_v38, %v1224_v14  ;;  %v7438_v14 = vld [vmem:[%s10461_s0 + $0x38] sm:$0xff] }
 0x27f   :  { %v1905_v22 = vsub.f32 0.0, %v1857_v19 }
 0x280   :  { %v1364_v25 = vmin.f32 %v1225_v33, 0.0  ;;  %vm1316_vm12 = vcmp.gt.f32.partialorder %v1225_v33, 0.0 }
 0x281   :  { %v6752_v20 = vpop.eup %6751  ;;  %v1954_v24 = vmul.f32 1.442695, %v1905_v22 }
 0x282   :  { %v2048_v27 = vadd.f32 1.0, %v6752_v20  ;;  %v1690_v28 = vpop.f32.mrf.mxu3  ;;  %1251 = vmatmul.bf16.gmra.mxu2 %v1092_v30  ;;  %v1431_v12 = vmul.f32 1.442695, %v1364_v25 }
 0x283   :  { %6753 = vpow2.f32 %v1954_v24  ;;  %v7973_v11 = vadd.f32 %v7960_v46, %v1690_v28 }
 0x284   :  { %6755 = vlog2.f32 %v2048_v27 }
 0x285   :  { %v1858_v34 = vand.u32 2147483647, %v7973_v11  ;;  %6757 = vpow2.f32 %v1429_v37  ;;  %v1227_v47 = vpop.f32.mrf.mxu2 }
 0x286   :  { %6759 = vpow2.f32 %v1431_v12  ;;  %v1228_v3 = vadd.f32 %v8000_v2, %v1227_v47 }
 0x287   :  { %v1906_v36 = vsub.f32 0.0, %v1858_v34 }
 0x288   :  { %v1365_v19 = vmin.f32 %v1228_v3, 0.0  ;;  %vm1317_vm13 = vcmp.gt.f32.partialorder %v1228_v3, 0.0 }
 0x289   :  { %v6754_v39 = vpop.eup %6753  ;;  %v1956_v41 = vmul.f32 1.442695, %v1906_v36  ;;  %v261_v36 = vpop.f32.mrf.mxu0 }
 0x28a   :  { %v6756_v42 = vpop.eup %6755  ;;  %v2049_v43 = vadd.f32 1.0, %v6754_v39  ;;  %v1692_v44 = vpop.f32.mrf.mxu3  ;;  %v1433_v40 = vmul.f32 1.442695, %v1365_v19 }
 0x28b   :  { %v2097_v38 = vmul.f32 0.6931472, %v6756_v42  ;;  %6761 = vpow2.f32 %v1956_v41  ;;  %v7982_v15 = vadd.f32 %v7960_v46, %v1692_v44  ;;  %v6758_v50 = vpop.eup %6757 }
 0x28c   :  { %6763 = vlog2.f32 %v2049_v43  ;;  %v6760_v53 = vpop.eup %6759  ;;  %v5626_v55 = vadd.f32 -1.0, %v6758_v50 }
 0x28d   :  { %v2192_v49 = vadd.f32 %v2097_v38, %v1808_v45  ;;  %v1859_v51 = vand.u32 2147483647, %v7982_v15  ;;  %v5627_v59 = vadd.f32 -1.0, %v6760_v53  ;;  %v1229_v4 = vpop.f32.mrf.mxu2  ;;  %v1811_v47 = vmax.f32 %v7982_v15, 0.0 }
 0x28e   :  { %v1555_v0 = vsel %vm1315_vm11, %v1223_v31, %v5626_v55  ;;  %v1230_v5 = vadd.f32 %v8000_v2, %v1229_v4 }
 0x28f   :  { %v1907_v17 = vsub.f32 0.0, %v1859_v51  ;;  %v7989_v52 = vsel %vm1807_vm10, %v2192_v49, %v7964_v56  ;;  %v1556_v6 = vsel %vm1316_vm12, %v1225_v33, %v5627_v59  ;;  %v2341_v33 = vpop.permute.xlu1 %2340 }
 0x290   :  { %10516 = vst [vmem:[#allocation2_spill] sm:$0xff] %v7989_v52  ;;  %v2480_v54 = vmul.f32 %v2337_v48, %v7989_v52  ;;  %v1366_v13 = vmin.f32 %v1230_v5, 0.0  ;;  %v1594_v21 = vpack.c.bf16 %v1556_v6, %v1555_v0  ;;  %vm1318_vm14 = vcmp.gt.f32.partialorder %v1230_v5, 0.0 }
 0x291   :  { %v6762_v57 = vpop.eup %6761  ;;  %v1958_v58 = vmul.f32 1.442695, %v1907_v17 }
 0x292   :  { %v6764_v60 = vpop.eup %6763  ;;  %v2050_v62 = vadd.f32 1.0, %v6762_v57  ;;  %v1695_v63 = vpop.f32.mrf.mxu3  ;;  %2576 = vrot.lane.b32.xlu0 %v2480_v54, %s7501_s25  ;;  %v1435_v24 = vmul.f32 1.442695, %v1366_v13  ;;  %1729 = vmatmul.bf16.gmra.mxu3 %v1594_v21 }
 0x293   :  { %6765 = vpow2.f32 %v1958_v58  ;;  %v7995_v56 = vadd.f32 %v7960_v46, %v1695_v63  ;;  %v2099_v1 = vmul.f32 0.6931472, %v6764_v60 }
 0x294   :  { %6767 = vlog2.f32 %v2050_v62 }
 0x295   :  { %v1860_v7 = vand.u32 2147483647, %v7995_v56  ;;  %v2193_v18 = vadd.f32 %v2099_v1, %v1809_v61  ;;  %6769 = vpow2.f32 %v1433_v40  ;;  %v1232_v34 = vpop.f32.mrf.mxu2  ;;  %v263_v1 = vpop.f32.mrf.mxu0 }
 0x296   :  { %6771 = vpow2.f32 %v1435_v24  ;;  %v1233_v54 = vadd.f32 %v8000_v2, %v1232_v34  ;;  %v7441_v24 = vld [vmem:[%s10461_s0 + $0x48] sm:$0xff] }
 0x297   :  { %v1908_v22 = vsub.f32 0.0, %v1860_v7  ;;  %v8009_v23 = vsel %vm1807_vm10, %v2193_v18, %v7969_v16  ;;  %v1810_v16 = vmax.f32 %v7973_v11, 0.0  ;;  %v2343_v60 = vpop.permute.xlu1 %2342  ;;  %v8049_v7 = vld [vmem:[%s10460_s2] ss:$0 sm:$0xff] }
 0x298   :  { %10517 = vst [vmem:[#allocation3_spill] sm:$0xff] %v8009_v23  ;;  %v2481_v20 = vmul.f32 %v2339_v10, %v8009_v23  ;;  %v1367_v62 = vmin.f32 %v1233_v54, 0.0  ;;  %v264_v19 = vadd.f32 %v8049_v7, %v263_v1  ;;  %vm1319_vm15 = vcmp.gt.f32.partialorder %v1233_v54, 0.0 }
 0x299   :  { %v6766_v26 = vpop.eup %6765  ;;  %v1960_v27 = vmul.f32 1.442695, %v1908_v22  ;;  %v2345_v22 = vpop.permute.xlu2 %2344 }
 0x29a   :  { %v6768_v28 = vpop.eup %6767  ;;  %v2051_v29 = vadd.f32 1.0, %v6766_v26  ;;  %v1697_v31 = vpop.f32.mrf.mxu3  ;;  %2578 = vrot.lane.b32.xlu1 %v2481_v20, %s7501_s25  ;;  %2350 = vrot.lane.b32.xlu0 %v7438_v14, %s7500_s24  ;;  %v1437_v6 = vmul.f32 1.442695, %v1367_v62  ;;  %v370_v26 = vmin.f32 %v264_v19, 0.0  ;;  %vm322_vm2 = vcmp.gt.f32.partialorder %v264_v19, 0.0  ;;  %v7443_v62 = vld [vmem:[%s10461_s0 + $0x58] sm:$0xff] }
 0x29b   :  { %v2101_v30 = vmul.f32 0.6931472, %v6768_v28  ;;  %6773 = vpow2.f32 %v1960_v27  ;;  %v8019_v32 = vadd.f32 %v7960_v46, %v1697_v31  ;;  %v6770_v37 = vpop.eup %6769  ;;  %v1812_v27 = vmax.f32 %v7995_v56, 0.0 }
 0x29c   :  { %6775 = vlog2.f32 %v2051_v29  ;;  %v6772_v41 = vpop.eup %6771  ;;  %v5628_v43 = vadd.f32 -1.0, %v6770_v37  ;;  %v459_v31 = vmul.f32 1.442695, %v370_v26 }
 0x29d   :  { %v2194_v35 = vadd.f32 %v2101_v30, %v1810_v16  ;;  %v1861_v25 = vand.u32 2147483647, %v8019_v32  ;;  %v5629_v38 = vadd.f32 -1.0, %v6772_v41  ;;  %v1234_v55 = vpop.f32.mrf.mxu2 }
 0x29e   :  { %v1557_v50 = vsel %vm1317_vm13, %v1228_v3, %v5628_v43  ;;  %v1235_v57 = vadd.f32 %v8000_v2, %v1234_v55  ;;  %v1813_v43 = vmax.f32 %v8019_v32, 0.0 }
 0x29f   :  { %v1909_v12 = vsub.f32 0.0, %v1861_v25  ;;  %v8025_v39 = vsel %vm1807_vm10, %v2194_v35, %v7973_v11  ;;  %v7439_v11 = vld [vmem:[%s10461_s0 + $0x40] sm:$0xff]  ;;  %v1558_v58 = vsel %vm1318_vm14, %v1230_v5, %v5629_v38  ;;  %v262_v5 = vadd.f32 %v8049_v7, %v261_v36 }
 0x2a0   :  { %10518 = vst [vmem:[#allocation4_spill] sm:$0xff] %v8025_v39  ;;  %v2482_v42 = vmul.f32 %v2341_v33, %v8025_v39  ;;  %v1368_v63 = vmin.f32 %v1235_v57, 0.0  ;;  %v1595_v0 = vpack.c.bf16 %v1558_v58, %v1557_v50  ;;  %vm1320_vm0 = vcmp.gt.f32.partialorder %v1235_v57, 0.0 }
 0x2a1   :  { %v6774_v44 = vpop.eup %6773  ;;  %v1962_v45 = vmul.f32 1.442695, %v1909_v12  ;;  %vm321_vm1 = vcmp.gt.f32.partialorder %v262_v5, 0.0 }
 0x2a2   :  { %v6776_v48 = vpop.eup %6775  ;;  %v2052_v49 = vadd.f32 1.0, %v6774_v44  ;;  %v1700_v51 = vpop.f32.mrf.mxu3  ;;  %2580 = vrot.lane.b32.xlu1 %v2482_v42, %s7501_s25  ;;  %2352 = vrot.lane.b32.xlu0 %v7439_v11, %s7500_s24  ;;  %v1439_v18 = vmul.f32 1.442695, %v1368_v63  ;;  %v7442_v42 = vld [vmem:[%s10461_s0 + $0x50] sm:$0xff] }
 0x2a3   :  { %6777 = vpow2.f32 %v1962_v45  ;;  %v8035_v17 = vadd.f32 %v7960_v46, %v1700_v51  ;;  %v2103_v53 = vmul.f32 0.6931472, %v6776_v48  ;;  %1734 = vmatmul.bf16.gmra.mxu3 %v1595_v0  ;;  %v2347_v44 = vpop.permute.xlu2 %2346 }
 0x2a4   :  { %6779 = vlog2.f32 %v2052_v49 }
 0x2a5   :  { %v1862_v59 = vand.u32 2147483647, %v8035_v17  ;;  %v2195_v61 = vadd.f32 %v2103_v53, %v1811_v47  ;;  %6781 = vpow2.f32 %v1437_v6  ;;  %v1814_v0 = vmax.f32 %v8035_v17, 0.0 }
 0x2a6   :  { %6783 = vpow2.f32 %v1439_v18 }
 0x2a7   :  { %v1910_v3 = vsub.f32 0.0, %v1862_v59  ;;  %v8044_v4 = vsel %vm1807_vm10, %v2195_v61, %v7982_v15  ;;  %v369_v15 = vmin.f32 %v262_v5, 0.0 }
 0x2a8   :  { %10519 = vst [vmem:[#allocation5_spill] sm:$0xff] %v8044_v4  ;;  %v2483_v10 = vmul.f32 %v2343_v60, %v8044_v4 }
 0x2a9   :  { %v6778_v13 = vpop.eup %6777  ;;  %v1964_v21 = vmul.f32 1.442695, %v1910_v3  ;;  %v457_v29 = vmul.f32 1.442695, %v369_v15  ;;  %v266_v3 = vpop.f32.mrf.mxu0 }
 0x2aa   :  { %v6780_v40 = vpop.eup %6779  ;;  %v2053_v20 = vadd.f32 1.0, %v6778_v13  ;;  %2582 = vrot.lane.b32.xlu2 %v2483_v10, %s7501_s25  ;;  %2354 = vrot.lane.b32.xlu1 %v7441_v24, %s7500_s24  ;;  %v8072_v50 = vpop.f32.mrf.mxu3  ;;  %v267_v24 = vadd.f32 %v8049_v7, %v266_v3 }
 0x2ab   :  { %v2105_v28 = vmul.f32 0.6931472, %v6780_v40  ;;  %6785 = vpow2.f32 %v1964_v21  ;;  %v6782_v16 = vpop.eup %6781  ;;  %v2349_v18 = vpop.permute.xlu2 %2348  ;;  %v7444_v40 = vld [vmem:[%s10461_s0 + $0x60] sm:$0xff] }
 0x2ac   :  { %6787 = vlog2.f32 %v2053_v20  ;;  %v6784_v33 = vpop.eup %6783  ;;  %v5630_v35 = vadd.f32 -1.0, %v6782_v16  ;;  %vm323_vm5 = vcmp.gt.f32.partialorder %v267_v24, 0.0 }
 0x2ad   :  { %v2196_v14 = vadd.f32 %v2105_v28, %v1812_v27  ;;  %6789 = vpow2.f32 %v457_v29  ;;  %v749_v36 = vpop.f32.mrf.mxu1  ;;  %v5631_v37 = vadd.f32 -1.0, %v6784_v33  ;;  %v371_v27 = vmin.f32 %v267_v24, 0.0 }
 0x2ae   :  { %6791 = vpow2.f32 %v459_v31  ;;  %v750_v63 = vadd.f32 %v7894_v8, %v749_v36 }
 0x2af   :  { %v8063_v30 = vsel %vm1807_vm10, %v2196_v14, %v7995_v56  ;;  %v1559_v56 = vsel %vm1319_vm15, %v1233_v54, %v5630_v35  ;;  %v1560_v38 = vsel %vm1320_vm0, %v1235_v57, %v5631_v37  ;;  %v461_v16 = vmul.f32 1.442695, %v371_v27  ;;  %v7445_v35 = vld [vmem:[%s10461_s0 + $0x68] sm:$0xff] }
 0x2b0   :  { %10520 = vst [vmem:[#allocation6_spill] sm:$0xff] %v8063_v30  ;;  %v2484_v34 = vmul.f32 %v2345_v22, %v8063_v30  ;;  %v1596_v47 = vpack.c.bf16 %v1560_v38, %v1559_v56  ;;  %v869_v6 = vmin.f32 %v750_v63, 0.0  ;;  %vm821_vm3 = vcmp.gt.f32.partialorder %v750_v63, 0.0 }
 0x2b1   :  { %v6786_v25 = vpop.eup %6785  ;;  %v268_v20 = vpop.f32.mrf.mxu0 }
 0x2b2   :  { %v6788_v12 = vpop.eup %6787  ;;  %v2054_v41 = vadd.f32 1.0, %v6786_v25  ;;  %2584 = vrot.lane.b32.xlu2 %v2484_v34, %s7501_s25  ;;  %2356 = vrot.lane.b32.xlu1 %v7442_v42, %s7500_s24  ;;  %v8093_v22 = vpop.f32.mrf.mxu3  ;;  %v6151_v42 = vld [vmem:[%s10459_s1 + $0x138] sm:$0xff] }
 0x2b3   :  { %v2107_v45 = vmul.f32 0.6931472, %v6788_v12  ;;  %v6790_v48 = vpop.eup %6789  ;;  %1739 = vmatmul.bf16.gmra.mxu3 %v1596_v47  ;;  %2908 = vmatpush.bf16.msrb.mxu0 %v6151_v42 }
 0x2b4   :  { %6793 = vlog2.f32 %v2054_v41  ;;  %v6792_v49 = vpop.eup %6791  ;;  %v5456_v11 = vadd.f32 -1.0, %v6790_v48 }
 0x2b5   :  { %v2197_v51 = vadd.f32 %v2107_v45, %v1813_v43  ;;  %v5457_v53 = vadd.f32 -1.0, %v6792_v49  ;;  %v751_v59 = vpop.f32.mrf.mxu1 }
 0x2b6   :  { %v561_v55 = vsel %vm321_vm1, %v262_v5, %v5456_v11 }
 0x2b7   :  { %v8077_v54 = vsel %vm1807_vm10, %v2197_v51, %v8019_v32  ;;  %v562_v57 = vsel %vm322_vm2, %v264_v19, %v5457_v53  ;;  %v752_v32 = vadd.f32 %v7894_v8, %v751_v59  ;;  %v949_v19 = vmul.f32 1.442695, %v869_v6 }
 0x2b8   :  { %10521 = vst [vmem:[#allocation7_spill] sm:$0xff] %v8077_v54  ;;  %v2485_v58 = vmul.f32 %v2347_v44, %v8077_v54  ;;  %v589_v60 = vpack.c.bf16 %v562_v57, %v561_v55  ;;  %v7446_v44 = vld [vmem:[%s10461_s0 + $0x70] sm:$0xff]  ;;  %v8121_v51 = vadd.f32 %v7960_v46, %v8072_v50 }
 0x2b9   :  { %v870_v5 = vmin.f32 %v752_v32, 0.0  ;;  %6795 = vpow2.f32 %v949_v19  ;;  %vm822_vm4 = vcmp.gt.f32.partialorder %v752_v32, 0.0  ;;  %v271_v12 = vpop.f32.mrf.mxu0  ;;  %v6150_v57 = vld [vmem:[%s10459_s1 + $0x130] sm:$0xff] }
 0x2ba   :  { %v6794_v61 = vpop.eup %6793  ;;  %2358 = vrot.lane.b32.xlu2 %v7443_v62, %s7500_s24  ;;  %2586 = vrot.lane.b32.xlu0 %v2485_v58, %s7501_s25  ;;  %v8103_v34 = vpop.f32.mrf.mxu3  ;;  %v8126_v53 = vadd.f32 %v8049_v7, %v271_v12  ;;  %v1863_v3 = vand.u32 2147483647, %v8121_v51 }
 0x2bb   :  { %v2109_v1 = vmul.f32 0.6931472, %v6794_v61  ;;  %768 = vmatmul.bf16.gmra.mxu1 %v589_v60  ;;  %v951_v13 = vmul.f32 1.442695, %v870_v5  ;;  %2909 = vmatpush.bf16.msrb.mxu0 %v6150_v57 }
 0x2bc   :  { %v373_v60 = vmin.f32 %v8126_v53, 0.0  ;;  %vm325_vm9 = vcmp.gt.f32.partialorder %v8126_v53, 0.0 }
 0x2bd   :  { %v2198_v10 = vadd.f32 %v2109_v1, %v1814_v0  ;;  %6797 = vpow2.f32 %v951_v13  ;;  %v6149_v13 = vld [vmem:[%s10459_s1 + $0x128] sm:$0xff] }
 0x2be   :  { %6799 = vpow2.f32 %v461_v16  ;;  %v465_v6 = vmul.f32 1.442695, %v373_v60 }
 0x2bf   :  { %v8091_v21 = vsel %vm1807_vm10, %v2198_v10, %v8035_v17  ;;  %v269_v17 = vadd.f32 %v8049_v7, %v268_v20  ;;  %v6796_v26 = vpop.eup %6795  ;;  %2910 = vmatpush.bf16.msrb.mxu0 %v6149_v13 }
 0x2c0   :  { %10522 = vst [vmem:[#allocation8_spill] sm:$0xff] %v8091_v21  ;;  %v2486_v15 = vmul.f32 %v2349_v18, %v8091_v21  ;;  %v5544_v31 = vadd.f32 -1.0, %v6796_v26  ;;  %v8159_v26 = vadd.f32 %v7960_v46, %v8093_v22 }
 0x2c1   :  { %v372_v28 = vmin.f32 %v269_v17, 0.0  ;;  %v273_v47 = vpop.f32.mrf.mxu0  ;;  %vm324_vm6 = vcmp.gt.f32.partialorder %v269_v17, 0.0 }
 0x2c2   :  { %2360 = vrot.lane.b32.xlu2 %v7444_v40, %s7500_s24  ;;  %2588 = vrot.lane.b32.xlu0 %v2486_v15, %s7501_s25  ;;  %v1061_v33 = vsel %vm821_vm3, %v750_v63, %v5544_v31  ;;  %v8123_v11 = vpop.f32.mrf.mxu3  ;;  %v8132_v58 = vadd.f32 %v8049_v7, %v273_v47 }
 0x2c3   :  { %v6798_v29 = vpop.eup %6797  ;;  %v463_v25 = vmul.f32 1.442695, %v372_v28 }
 0x2c4   :  { %v5545_v14 = vadd.f32 -1.0, %v6798_v29  ;;  %v6800_v43 = vpop.eup %6799  ;;  %v374_v5 = vmin.f32 %v8132_v58, 0.0  ;;  %vm326_vm12 = vcmp.gt.f32.partialorder %v8132_v58, 0.0 }
 0x2c5   :  { %v1237_v37 = vpop.f32.mrf.mxu2  ;;  %6801 = vpow2.f32 %v463_v25  ;;  %v5458_v45 = vadd.f32 -1.0, %v6800_v43 }
 0x2c6   :  { %v1062_v36 = vsel %vm822_vm4, %v752_v32, %v5545_v14  ;;  %v8117_v38 = vadd.f32 %v8000_v2, %v1237_v37  ;;  %v6147_v14 = vld [vmem:[%s10459_s1 + $0x118] sm:$0xff] }
 0x2c7   :  { %v1093_v41 = vpack.c.bf16 %v1062_v36, %v1061_v33  ;;  %v563_v62 = vsel %vm323_vm5, %v267_v24, %v5458_v45  ;;  %v467_v24 = vmul.f32 1.442695, %v374_v5  ;;  %v8167_v33 = vld [vmem:[%s10460_s2 + $0x1] ss:$0 sm:$0xff] }
 0x2c8   :  { %v1369_v50 = vmin.f32 %v8117_v38, 0.0  ;;  %vm1321_vm7 = vcmp.gt.f32.partialorder %v8117_v38, 0.0 }
 0x2c9   :  { %1256 = vmatmul.bf16.gmra.mxu2 %v1093_v41  ;;  %v6146_v41 = vld [vmem:[%s10459_s1 + $0x110] sm:$0xff] }
 0x2ca   :  { %2362 = vrot.lane.b32.xlu0 %v7445_v35, %s7500_s24  ;;  %v1441_v63 = vmul.f32 1.442695, %v1369_v50  ;;  %v1712_v28 = vpop.f32.mrf.mxu3  ;;  %v1864_v35 = vand.u32 2147483647, %v8159_v26 }
 0x2cb   :  { %v6802_v49 = vpop.eup %6801  ;;  %v8179_v43 = vadd.f32 %v7960_v46, %v1712_v28 }
 0x2cc   :  { %v5459_v59 = vadd.f32 -1.0, %v6802_v49  ;;  %6803 = vpow2.f32 %v1441_v63 }
 0x2cd   :  { %v754_v56 = vpop.f32.mrf.mxu1  ;;  %v1239_v48 = vpop.f32.mrf.mxu2  ;;  %6805 = vpow2.f32 %v465_v6  ;;  %v1867_v13 = vand.u32 2147483647, %v8179_v43 }
 0x2ce   :  { %v8129_v55 = vadd.f32 %v8000_v2, %v1239_v48  ;;  %v8141_v32 = vadd.f32 %v7894_v8, %v754_v56  ;;  %v564_v10 = vsel %vm324_vm6, %v269_v17, %v5459_v59  ;;  %v6148_v17 = vld [vmem:[%s10459_s1 + $0x120] sm:$0xff]  ;;  %v1912_v56 = vsub.f32 0.0, %v1864_v35 }
 0x2cf   :  { %v590_v15 = vpack.c.bf16 %v564_v10, %v563_v62  ;;  %2911 = vmatpush.bf16.msrb.mxu0 %v6148_v17  ;;  %v6145_v62 = vld [vmem:[%s10459_s1 + $0x108] sm:$0xff]  ;;  %v1915_v28 = vsub.f32 0.0, %v1867_v13  ;;  %vm2768_vm6 = vcmask 64512  }
 0x2d0   :  { %v1370_v0 = vmin.f32 %v8129_v55, 0.0  ;;  %v871_v18 = vmin.f32 %v8141_v32, 0.0  ;;  %vm1322_vm8 = vcmp.gt.f32.partialorder %v8129_v55, 0.0  ;;  %vm823_vm11 = vcmp.gt.f32.partialorder %v8141_v32, 0.0 }
 0x2d1   :  { %773 = vmatmul.bf16.gmra.mxu1 %v590_v15 }
 0x2d2   :  { %2364 = vrot.lane.b32.xlu0 %v7446_v44, %s7500_s24  ;;  %v953_v40 = vmul.f32 1.442695, %v871_v18  ;;  %v1443_v20 = vmul.f32 1.442695, %v1370_v0  ;;  %v6804_v31 = vpop.eup %6803  ;;  %v1715_v63 = vpop.f32.mrf.mxu3 }
 0x2d3   :  { %v6806_v25 = vpop.eup %6805  ;;  %v5632_v36 = vadd.f32 -1.0, %v6804_v31  ;;  %2912 = vmatpush.bf16.msrb.mxu0 %v6147_v14 }
 0x2d4   :  { %6807 = vpow2.f32 %v953_v40  ;;  %v5460_v44 = vadd.f32 -1.0, %v6806_v25  ;;  %v8212_v40 = vadd.f32 %v7960_v46, %v1715_v63 }
 0x2d5   :  { %v756_v61 = vpop.f32.mrf.mxu1  ;;  %6809 = vpow2.f32 %v1443_v20  ;;  %v1561_v47 = vsel %vm1321_vm7, %v8117_v38, %v5632_v36 }
 0x2d6   :  { %v8145_v1 = vadd.f32 %v7894_v8, %v756_v61  ;;  %v1911_v8 = vsub.f32 0.0, %v1863_v3  ;;  %6811 = vpow2.f32 %v467_v24  ;;  %v565_v18 = vsel %vm325_vm9, %v8126_v53, %v5460_v44 }
 0x2d7   :  { %2913 = vmatpush.bf16.msrb.mxu0 %v6146_v41  ;;  %v8238_v44 = vadd.f32 %v7960_v46, %v8123_v11 }
 0x2d8   :  { %v872_v19 = vmin.f32 %v8145_v1, 0.0  ;;  %v1966_v16 = vmul.f32 1.442695, %v1911_v8  ;;  %vm824_vm13 = vcmp.gt.f32.partialorder %v8145_v1, 0.0  ;;  %v276_v8 = vpop.f32.mrf.mxu0 }
 0x2da   :  { %v955_v27 = vmul.f32 1.442695, %v872_v19  ;;  %v6808_v37 = vpop.eup %6807 }
 0x2db   :  { %v6810_v42 = vpop.eup %6809  ;;  %v5546_v59 = vadd.f32 -1.0, %v6808_v37  ;;  %2914 = vmatpush.bf16.msrb.mxu0 %v6145_v62 }
 0x2dc   :  { %6813 = vpow2.f32 %v955_v27  ;;  %v6812_v45 = vpop.eup %6811  ;;  %v5633_v48 = vadd.f32 -1.0, %v6810_v42  ;;  %v6144_v27 = vld [vmem:[%s10459_s1 + $0x100] sm:$0xff]  ;;  %v1974_v42 = vmul.f32 1.442695, %v1915_v28 }
 0x2dd   :  { %6815 = vpow2.f32 %v1966_v16  ;;  %v5461_v50 = vadd.f32 -1.0, %v6812_v45  ;;  %v1063_v53 = vsel %vm823_vm11, %v8141_v32, %v5546_v59  ;;  %v8225_v32 = vadd.f32 %v8049_v7, %v276_v8 }
 0x2de   :  { %v759_v29 = vpop.f32.mrf.mxu1  ;;  %v1562_v38 = vsel %vm1322_vm8, %v8129_v55, %v5633_v48  ;;  %v8209_v55 = vadd.f32 %v7960_v46, %v8103_v34  ;;  %vm8315_vm8 = vmpackc.low %vm2768_vm6, %vm2768_vm6 }
 0x2df   :  { %v8170_v22 = vadd.f32 %v8167_v33, %v759_v29  ;;  %v1597_v5 = vpack.c.bf16 %v1562_v38, %v1561_v47  ;;  %v566_v15 = vsel %vm326_vm12, %v8132_v58, %v5461_v50  ;;  %v1968_v58 = vmul.f32 1.442695, %v1912_v56  ;;  %2915 = vmatpush.bf16.msrb.mxu0 %v6144_v27 }
 0x2e0   :  { %v591_v24 = vpack.c.bf16 %v566_v15, %v565_v18  ;;  %v1865_v14 = vand.u32 2147483647, %v8209_v55  ;;  %v278_v48 = vpop.f32.mrf.mxu0  ;;  %vm327_vm2 = vcmp.gt.f32.partialorder %v8225_v32, 0.0 }
 0x2e1   :  { %v873_v12 = vmin.f32 %v8170_v22, 0.0  ;;  %1744 = vmatmul.bf16.gmra.mxu3 %v1597_v5  ;;  %v8243_v59 = vadd.f32 %v8049_v7, %v278_v48  ;;  %vm825_vm14 = vcmp.gt.f32.partialorder %v8170_v22, 0.0 }
 0x2e2   :  { %v6814_v57 = vpop.eup %6813  ;;  %778 = vmatmul.bf16.gmra.mxu1 %v591_v24  ;;  %v1913_v56 = vsub.f32 0.0, %v1865_v14 }
 0x2e3   :  { %v5547_v0 = vadd.f32 -1.0, %v6814_v57  ;;  %v957_v3 = vmul.f32 1.442695, %v873_v12  ;;  %v6816_v19 = vpop.eup %6815  ;;  %v375_v12 = vmin.f32 %v8225_v32, 0.0  ;;  %v376_v46 = vmin.f32 %v8243_v59, 0.0 }
 0x2e4   :  { %v2055_v31 = vadd.f32 1.0, %v6816_v19  ;;  %v1970_v11 = vmul.f32 1.442695, %v1913_v56  ;;  %vm328_vm3 = vcmp.gt.f32.partialorder %v8243_v59, 0.0 }
 0x2e5   :  { %v1242_v61 = vpop.f32.mrf.mxu2  ;;  %6817 = vpow2.f32 %v957_v3  ;;  %v1064_v34 = vsel %vm824_vm13, %v8145_v1, %v5547_v0  ;;  %v1868_v1 = vand.u32 2147483647, %v8212_v40  ;;  %v469_v62 = vmul.f32 1.442695, %v375_v12 }
 0x2e6   :  { %v761_v49 = vpop.f32.mrf.mxu1  ;;  %v8196_v6 = vadd.f32 %v8000_v2, %v1242_v61  ;;  %v1094_v29 = vpack.c.bf16 %v1064_v34, %v1063_v53  ;;  %v1866_v0 = vand.u32 2147483647, %v8238_v44 }
 0x2e7   :  { %v8187_v60 = vadd.f32 %v8167_v33, %v761_v49  ;;  %v1916_v49 = vsub.f32 0.0, %v1868_v1 }
 0x2e8   :  { %v1371_v17 = vmin.f32 %v8196_v6, 0.0  ;;  %1261 = vmatmul.bf16.gmra.mxu2 %v1094_v29  ;;  %vm1323_vm0 = vcmp.gt.f32.partialorder %v8196_v6, 0.0 }
 0x2e9   :  { %v874_v10 = vmin.f32 %v8187_v60, 0.0  ;;  %vm826_vm15 = vcmp.gt.f32.partialorder %v8187_v60, 0.0  ;;  %v1976_v5 = vmul.f32 1.442695, %v1916_v49 }
 0x2ea   :  { %v1445_v25 = vmul.f32 1.442695, %v1371_v17 }
 0x2eb   :  { %v959_v20 = vmul.f32 1.442695, %v874_v10  ;;  %v6818_v41 = vpop.eup %6817  ;;  %v471_v10 = vmul.f32 1.442695, %v376_v46 }
 0x2ec   :  { %v5548_v50 = vadd.f32 -1.0, %v6818_v41 }
 0x2ed   :  { %6819 = vpow2.f32 %v959_v20  ;;  %v1244_v35 = vpop.f32.mrf.mxu2 }
 0x2ee   :  { %v764_v16 = vpop.f32.mrf.mxu1  ;;  %v8233_v37 = vadd.f32 %v8000_v2, %v1244_v35  ;;  %6821 = vpow2.f32 %v1968_v58  ;;  %v1065_v20 = vsel %vm825_vm14, %v8170_v22, %v5548_v50 }
 0x2ef   :  { %v8230_v36 = vadd.f32 %v8167_v33, %v764_v16  ;;  %6823 = vlog2.f32 %v2055_v31  ;;  %v1914_v31 = vsub.f32 0.0, %v1866_v0 }
 0x2f0   :  { %v1372_v45 = vmin.f32 %v8233_v37, 0.0  ;;  %6825 = vpow2.f32 %v1445_v25  ;;  %vm1324_vm1 = vcmp.gt.f32.partialorder %v8233_v37, 0.0 }
 0x2f1   :  { %v875_v57 = vmin.f32 %v8230_v36, 0.0  ;;  %6827 = vpow2.f32 %v1974_v42  ;;  %v1815_v42 = vmax.f32 %v8121_v51, 0.0  ;;  %v1972_v49 = vmul.f32 1.442695, %v1914_v31 }
 0x2f2   :  { %v1447_v63 = vmul.f32 1.442695, %v1372_v45  ;;  %vm827_vm4 = vcmp.gt.f32.partialorder %v8230_v36, 0.0 }
 0x2f3   :  { %v6820_v47 = vpop.eup %6819  ;;  %v961_v7 = vmul.f32 1.442695, %v875_v57 }
 0x2f4   :  { %v5549_v61 = vadd.f32 -1.0, %v6820_v47  ;;  %6829 = vpow2.f32 %v1447_v63  ;;  %v6822_v38 = vpop.eup %6821 }
 0x2f5   :  { %v1247_v19 = vpop.f32.mrf.mxu2  ;;  %v6824_v13 = vpop.eup %6823  ;;  %6831 = vpow2.f32 %v469_v62  ;;  %v2056_v29 = vadd.f32 1.0, %v6822_v38 }
 0x2f6   :  { %v766_v3 = vpop.f32.mrf.mxu1  ;;  %v8253_v15 = vadd.f32 %v8000_v2, %v1247_v19  ;;  %v1066_v53 = vsel %vm826_vm15, %v8187_v60, %v5549_v61  ;;  %v6826_v8 = vpop.eup %6825  ;;  %6833 = vpow2.f32 %v471_v10  ;;  %v2111_v1 = vmul.f32 0.6931472, %v6824_v13 }
 0x2f7   :  { %v8250_v18 = vadd.f32 %v8167_v33, %v766_v3  ;;  %6835 = vpow2.f32 %v1970_v11  ;;  %v6828_v17 = vpop.eup %6827  ;;  %v1095_v27 = vpack.c.bf16 %v1066_v53, %v1065_v20  ;;  %v5634_v22 = vadd.f32 -1.0, %v6826_v8 }
 0x2f8   :  { %6837 = vpow2.f32 %v961_v7  ;;  %v1373_v58 = vmin.f32 %v8253_v15, 0.0  ;;  %v2059_v16 = vadd.f32 1.0, %v6828_v17  ;;  %v2199_v3 = vadd.f32 %v2111_v1, %v1815_v42 }
 0x2f9   :  { %v876_v24 = vmin.f32 %v8250_v18, 0.0  ;;  %6839 = vpow2.f32 %v1976_v5  ;;  %1266 = vmatmul.bf16.gmra.mxu2 %v1095_v27  ;;  %v1563_v45 = vsel %vm1323_vm0, %v8196_v6, %v5634_v22  ;;  %vm828_vm5 = vcmp.gt.f32.partialorder %v8250_v18, 0.0 }
 0x2fa   :  { %v6830_v28 = vpop.eup %6829  ;;  %v1449_v25 = vmul.f32 1.442695, %v1373_v58  ;;  %vm1325_vm7 = vcmp.gt.f32.partialorder %v8253_v15, 0.0 }
 0x2fb   :  { %v963_v34 = vmul.f32 1.442695, %v876_v24  ;;  %v5635_v60 = vadd.f32 -1.0, %v6830_v28  ;;  %v6832_v14 = vpop.eup %6831  ;;  %v1717_v24 = vpop.f32.mrf.mxu3  ;;  %v1816_v28 = vmax.f32 %v8159_v26, 0.0 }
 0x2fc   :  { %v6834_v35 = vpop.eup %6833  ;;  %v5462_v57 = vadd.f32 -1.0, %v6832_v14 }
 0x2fd   :  { %6841 = vpow2.f32 %v963_v34  ;;  %v1249_v12 = vpop.f32.mrf.mxu2  ;;  %v6836_v41 = vpop.eup %6835  ;;  %v1564_v48 = vsel %vm1324_vm1, %v8233_v37, %v5635_v60  ;;  %v5463_v62 = vadd.f32 -1.0, %v6834_v35 }
 0x2fe   :  { %v8267_v56 = vadd.f32 %v8000_v2, %v1249_v12  ;;  %v6838_v47 = vpop.eup %6837  ;;  %6843 = vlog2.f32 %v2056_v29  ;;  %v1598_v50 = vpack.c.bf16 %v1564_v48, %v1563_v45  ;;  %v2057_v6 = vadd.f32 1.0, %v6836_v41 }
 0x2ff   :  { %v6840_v61 = vpop.eup %6839  ;;  %6845 = vlog2.f32 %v2059_v16  ;;  %v5550_v37 = vadd.f32 -1.0, %v6838_v47  ;;  %v567_v7 = vsel %vm327_vm2, %v8225_v32, %v5462_v57  ;;  %v568_v19 = vsel %vm328_vm3, %v8243_v59, %v5463_v62 }
 0x300   :  { %v1374_v63 = vmin.f32 %v8267_v56, 0.0  ;;  %6847 = vpow2.f32 %v1449_v25  ;;  %1749 = vmatmul.bf16.gmra.mxu3 %v1598_v50  ;;  %v2060_v10 = vadd.f32 1.0, %v6840_v61  ;;  %v592_v20 = vpack.c.bf16 %v568_v19, %v567_v7 }
 0x301   :  { %6849 = vpow2.f32 %v1972_v49  ;;  %v1067_v34 = vsel %vm827_vm4, %v8230_v36, %v5550_v37  ;;  %v8291_v32 = vsel %vm1807_vm10, %v2199_v3, %v8121_v51  ;;  %v1819_v36 = vmax.f32 %v8179_v43, 0.0 }
 0x302   :  { %v1451_v5 = vmul.f32 1.442695, %v1374_v63  ;;  %10523 = vst [vmem:[#allocation9_spill] sm:$0xff] %v8291_v32  ;;  %783 = vmatmul.bf16.gmra.mxu1 %v592_v20  ;;  %vm1326_vm9 = vcmp.gt.f32.partialorder %v8267_v56, 0.0  ;;  %v1817_v7 = vmax.f32 %v8209_v55, 0.0 }
 0x303   :  { %v6842_v46 = vpop.eup %6841 }
 0x304   :  { %v8273_v11 = vpop.permute.xlu2 %2582  ;;  %v2577_v0 = vpop.permute.xlu0 %2576  ;;  %v5551_v38 = vadd.f32 -1.0, %v6842_v46  ;;  %6851 = vpow2.f32 %v1451_v5 }
 0x305   :  { %v6844_v13 = vpop.eup %6843  ;;  %v1252_v53 = vpop.f32.mrf.mxu2  ;;  %6853 = vlog2.f32 %v2057_v6  ;;  %v8306_v1 = vadd.f32 %v2577_v0, %v7989_v52 }
 0x306   :  { %v6846_v8 = vpop.eup %6845  ;;  %v8283_v17 = vadd.f32 %v8000_v2, %v1252_v53  ;;  %v1068_v58 = vsel %vm828_vm5, %v8250_v18, %v5551_v38  ;;  %v2113_v59 = vmul.f32 0.6931472, %v6844_v13  ;;  %6855 = vlog2.f32 %v2060_v10  ;;  %v8298_v18 = vld [vmem:[%s10460_s2 + $0x3] ss:$0 sm:$0xff]  ;;  %v1720_v10 = vpop.f32.mrf.mxu3 }
 0x307   :  { %v6848_v27 = vpop.eup %6847  ;;  %v8301_v22 = vadd.f32 %v8298_v18, %v1717_v24  ;;  %v2119_v14 = vmul.f32 0.6931472, %v6846_v8  ;;  %v1096_v16 = vpack.c.bf16 %v1068_v58, %v1067_v34  ;;  %v8348_v8 = vadd.f32 %v8273_v11, %v8044_v4 }
 0x308   :  { %v1375_v29 = vmin.f32 %v8283_v17, 0.0  ;;  %v6850_v31 = vpop.eup %6849  ;;  %v5636_v41 = vadd.f32 -1.0, %v6848_v27  ;;  %v2200_v62 = vadd.f32 %v2113_v59, %v1816_v28  ;;  %v1820_v27 = vmax.f32 %v8212_v40, 0.0 }
 0x309   :  { %v2058_v49 = vadd.f32 1.0, %v6850_v31  ;;  %v2203_v63 = vadd.f32 %v2119_v14, %v1819_v36  ;;  %1271 = vmatmul.bf16.gmra.mxu2 %v1096_v16  ;;  %v1869_v38 = vand.u32 2147483647, %v8301_v22  ;;  %v8356_v59 = vadd.f32 %v8298_v18, %v1720_v10 }
 0x30a   :  { %v6852_v35 = vpop.eup %6851  ;;  %v1453_v47 = vmul.f32 1.442695, %v1375_v29  ;;  %v1565_v6 = vsel %vm1325_vm7, %v8253_v15, %v5636_v41  ;;  %vm1327_vm11 = vcmp.gt.f32.partialorder %v8283_v17, 0.0 }
 0x30b   :  { %v5637_v48 = vadd.f32 -1.0, %v6852_v35  ;;  %v6854_v61 = vpop.eup %6853  ;;  %v1917_v28 = vsub.f32 0.0, %v1869_v38  ;;  %v1870_v16 = vand.u32 2147483647, %v8356_v59 }
 0x30c   :  { %v8303_v60 = vpop.permute.xlu2 %2584  ;;  %v2579_v51 = vpop.permute.xlu1 %2578  ;;  %6857 = vpow2.f32 %v1453_v47  ;;  %v2115_v53 = vmul.f32 0.6931472, %v6854_v61 }
 0x30d   :  { %v8309_v25 = vadd.f32 %v2579_v51, %v8009_v23  ;;  %v2351_v12 = vpop.permute.xlu0 %2350  ;;  %v1254_v46 = vpop.f32.mrf.mxu2  ;;  %v1566_v37 = vsel %vm1326_vm9, %v8267_v56, %v5637_v48  ;;  %6859 = vlog2.f32 %v2058_v49  ;;  %v8344_v56 = vsel %vm1807_vm10, %v2200_v62, %v8159_v26 }
 0x30e   :  { %v2487_v42 = vmul.f32 %v2351_v12, %v8291_v32  ;;  %v6856_v0 = vpop.eup %6855  ;;  %v1255_v3 = vadd.f32 %v8000_v2, %v1254_v46  ;;  %v1599_v5 = vpack.c.bf16 %v1566_v37, %v1565_v6  ;;  %v8339_v2 = vsel %vm1807_vm10, %v2203_v63, %v8179_v43  ;;  %10527 = vst [vmem:[#allocation11_spill] sm:$0xff] %v8344_v56  ;;  %v7449_v6 = vld [vmem:[%s10461_s0 + $0x78] sm:$0xff] }
 0x30f   :  { %v5753_v50 = vpack.c.bf16 %v8309_v25, %v8306_v1  ;;  %v2121_v13 = vmul.f32 0.6931472, %v6856_v0  ;;  %10526 = vst [vmem:[#allocation10_spill] sm:$0xff] %v8339_v2  ;;  %v2201_v36 = vadd.f32 %v2115_v53, %v1817_v7  ;;  %v1978_v14 = vmul.f32 1.442695, %v1917_v28  ;;  %v7452_v28 = vld [vmem:[%s10461_s0 + $0x88] sm:$0xff] }
 0x310   :  { %2590 = vrot.lane.b32.xlu1 %v2487_v42, %s7501_s25  ;;  %v1376_v19 = vmin.f32 %v1255_v3, 0.0  ;;  %1754 = vmatmul.bf16.gmra.mxu3 %v1599_v5  ;;  %v1818_v62 = vmax.f32 %v8238_v44, 0.0  ;;  %v1918_v63 = vsub.f32 0.0, %v1870_v16  ;;  %vm1328_vm12 = vcmp.gt.f32.partialorder %v1255_v3, 0.0 }
 0x311   :  { %5754 = vmatmul.msk.bf16.vlgmr.msrb.gmra.mxu0 %vm8315_vm8, %v5753_v50  ;;  %v2204_v31 = vadd.f32 %v2121_v13, %v1820_v27  ;;  %v8372_v48 = vsel %vm1807_vm10, %v2201_v36, %v8209_v55  ;;  %v8406_v53 = vadd.f32 %v8303_v60, %v8063_v30  ;;  %v7453_v60 = vld [vmem:[%s10461_s0 + $0xa0] sm:$0xff]  ;;  %v1821_v36 = vmax.f32 %v8301_v22, 0.0 }
 0x312   :  { %v1455_v58 = vmul.f32 1.442695, %v1376_v19  ;;  %v6858_v11 = vpop.eup %6857  ;;  %10529 = vst [vmem:[#allocation13_spill] sm:$0xff] %v8372_v48  ;;  %v1980_v38 = vmul.f32 1.442695, %v1918_v63  ;;  %v1822_v63 = vmax.f32 %v8356_v59, 0.0 }
 0x313   :  { %v6860_v51 = vpop.eup %6859  ;;  %v5638_v35 = vadd.f32 -1.0, %v6858_v11  ;;  %v8367_v41 = vsel %vm1807_vm10, %v2204_v31, %v8212_v40  ;;  %10531 = vst [vmem:[#allocation15_spill] sm:$0xff] %v8406_v53 }
 0x314   :  { %v2359_v15 = vpop.permute.xlu2 %2358  ;;  %v2581_v20 = vpop.permute.xlu1 %2580  ;;  %6861 = vpow2.f32 %v1455_v58  ;;  %v2117_v12 = vmul.f32 0.6931472, %v6860_v51  ;;  %10528 = vst [vmem:[#allocation12_spill] sm:$0xff] %v8367_v41  ;;  %v7454_v51 = vld [vmem:[%s10461_s0 + $0x90] sm:$0xff] }
 0x315   :  { %v2491_v24 = vmul.f32 %v2359_v15, %v8339_v2  ;;  %v8352_v34 = vadd.f32 %v2581_v20, %v8025_v39  ;;  %v2353_v43 = vpop.permute.xlu0 %2352  ;;  %6863 = vpow2.f32 %v1978_v14  ;;  %v1567_v46 = vsel %vm1327_vm11, %v8283_v17, %v5638_v35  ;;  %v7451_v15 = vld [vmem:[%s10461_s0 + $0x80] sm:$0xff] }
 0x316   :  { %v2488_v26 = vmul.f32 %v2353_v43, %v8344_v56  ;;  %v2202_v0 = vadd.f32 %v2117_v12, %v1818_v62  ;;  %6865 = vpow2.f32 %v1980_v38 }
 0x317   :  { %2598 = vrot.lane.b32.xlu0 %v2491_v24, %s7501_s25  ;;  %v5756_v40 = vpack.c.bf16 %v8348_v8, %v8352_v34 }
 0x318   :  { %2592 = vrot.lane.b32.xlu1 %v2488_v26, %s7501_s25  ;;  %v8392_v10 = vsel %vm1807_vm10, %v2202_v0, %v8238_v44  ;;  %v1722_v0 = vpop.f32.mrf.mxu3 }
 0x319   :  { %10530 = vst [vmem:[#allocation14_spill] sm:$0xff] %v8392_v10 }
 0x31a   :  { %v6862_v61 = vpop.eup %6861 }
 0x31b   :  { %v5639_v55 = vadd.f32 -1.0, %v6862_v61  ;;  %v6864_v7 = vpop.eup %6863 }
 0x31c   :  { %v2361_v42 = vpop.permute.xlu2 %2360  ;;  %v2355_v47 = vpop.permute.xlu1 %2354  ;;  %v2061_v13 = vadd.f32 1.0, %v6864_v7 }
 0x31d   :  { %v2492_v49 = vmul.f32 %v2361_v42, %v8367_v41  ;;  %v2489_v50 = vmul.f32 %v2355_v47, %v8372_v48  ;;  %v1568_v37 = vsel %vm1328_vm12, %v1255_v3, %v5639_v55  ;;  %v7450_v3 = vld [vmem:[%s10461_s0 + $0x98] sm:$0xff]  ;;  %v6866_v44 = vpop.eup %6865 }
 0x31e   :  { %v1600_v5 = vpack.c.bf16 %v1568_v37, %v1567_v46  ;;  %6867 = vlog2.f32 %v2061_v13  ;;  %v2062_v43 = vadd.f32 1.0, %v6866_v44  ;;  %v7455_v44 = vld [vmem:[%s10461_s0 + $0xa8] sm:$0xff] }
 0x31f   :  { %2594 = vrot.lane.b32.xlu2 %v2489_v50, %s7501_s25  ;;  %2600 = vrot.lane.b32.xlu0 %v2492_v49, %s7501_s25 }
 0x320   :  { %2366 = vrot.lane.b32.xlu1 %v7449_v6, %s7500_s24  ;;  %1759 = vmatmul.bf16.gmra.mxu3 %v1600_v5  ;;  %6869 = vlog2.f32 %v2062_v43 }
 0x321   :  { %5757 = vmatmul.msk.bf16.gmra.mxu0 %vm8315_vm8, %v5756_v40 }
 0x324   :  { %v2357_v17 = vpop.permute.xlu1 %2356  ;;  %v6868_v26 = vpop.eup %6867 }
 0x325   :  { %v2490_v19 = vmul.f32 %v2357_v17, %v8392_v10  ;;  %v2123_v31 = vmul.f32 0.6931472, %v6868_v26  ;;  %v6159_v17 = vld [vmem:[%s10459_s1 + $0x178] sm:$0xff] }
 0x326   :  { %v6870_v35 = vpop.eup %6869  ;;  %3416 = vmatpush.bf16.msrb.mxu1 %v6159_v17 }
 0x327   :  { %2596 = vrot.lane.b32.xlu2 %v2490_v19, %s7501_s25  ;;  %2374 = vrot.lane.b32.xlu0 %v7450_v3, %s7500_s24  ;;  %v2205_v14 = vadd.f32 %v2123_v31, %v1821_v36  ;;  %v2125_v47 = vmul.f32 0.6931472, %v6870_v35  ;;  %v1725_v19 = vpop.f32.mrf.mxu3  ;;  %v7457_v36 = vld [vmem:[%s10461_s0 + $0xb0] sm:$0xff] }
 0x328   :  { %2368 = vrot.lane.b32.xlu1 %v7451_v15, %s7500_s24 }
 0x329   :  { %v8436_v49 = vsel %vm1807_vm10, %v2205_v14, %v8301_v22  ;;  %v2206_v40 = vadd.f32 %v2125_v47, %v1822_v63 }
 0x32a   :  { %10533 = vst [vmem:[#allocation17_spill] sm:$0xff] %v8436_v49 }
 0x32b   :  { %v8445_v22 = vsel %vm1807_vm10, %v2206_v40, %v8356_v59 }
 0x32c   :  { %v2587_v20 = vpop.permute.xlu0 %2586  ;;  %10534 = vst [vmem:[#allocation18_spill] sm:$0xff] %v8445_v22 }
 0x32d   :  { %v8409_v24 = vadd.f32 %v2587_v20, %v8077_v54 }
 0x32f   :  { %10532 = vst [vmem:[#allocation16_spill] sm:$0xff] %v8409_v24  ;;  %v5759_v27 = vpack.c.bf16 %v8409_v24, %v8406_v53  ;;  %2370 = vrot.lane.b32.xlu2 %v7452_v28, %s7500_s24  ;;  %2376 = vrot.lane.b32.xlu0 %v7453_v60, %s7500_s24  ;;  %v8459_v28 = vld [vmem:[%s10460_s2 + $0x2] ss:$0 sm:$0xff]  ;;  %v1727_v26 = vpop.f32.mrf.mxu3 }
 0x330   :  { %v8468_v35 = vadd.f32 %v8298_v18, %v1727_v26 }
 0x331   :  { %5760 = vmatmul.msk.bf16.gmra.mxu0 %vm8315_vm8, %v5759_v27 }
 0x332   :  { %v1873_v63 = vand.u32 2147483647, %v8468_v35 }
 0x334   :  { %v8425_v11 = vpop.permute.xlu0 %2588 }
 0x337   :  { %2372 = vrot.lane.b32.xlu2 %v7454_v51, %s7500_s24 }
 0x338   :  { %v769_v16 = vpop.f32.mrf.mxu1 }
 0x339   :  { %v770_v12 = vadd.f32 %v8167_v33, %v769_v16 }
 0x33b   :  { %v877_v42 = vmin.f32 %v770_v12, 0.0  ;;  %vm829_vm13 = vcmp.gt.f32.partialorder %v770_v12, 0.0 }
 0x33c   :  { %v2363_v50 = vpop.permute.xlu0 %2362 }
 0x33d   :  { %v2493_v61 = vmul.f32 %v2363_v50, %v8436_v49  ;;  %v965_v62 = vmul.f32 1.442695, %v877_v42  ;;  %v1730_v50 = vpop.f32.mrf.mxu3 }
 0x33f   :  { %2602 = vrot.lane.b32.xlu1 %v2493_v61, %s7501_s25  ;;  %6871 = vpow2.f32 %v965_v62 }
 0x340   :  { %v771_v55 = vpop.f32.mrf.mxu1 }
 0x341   :  { %v772_v46 = vadd.f32 %v8167_v33, %v771_v55  ;;  %v8473_v55 = vadd.f32 %v8298_v18, %v1722_v0 }
 0x343   :  { %v878_v6 = vmin.f32 %v772_v46, 0.0  ;;  %vm830_vm14 = vcmp.gt.f32.partialorder %v772_v46, 0.0 }
 0x344   :  { %v2365_v37 = vpop.permute.xlu0 %2364 }
 0x345   :  { %v2494_v38 = vmul.f32 %v2365_v37, %v8445_v22  ;;  %v967_v5 = vmul.f32 1.442695, %v878_v6  ;;  %v6872_v7 = vpop.eup %6871  ;;  %v1921_v6 = vsub.f32 0.0, %v1873_v63 }
 0x346   :  { %v5552_v13 = vadd.f32 -1.0, %v6872_v7 }
 0x347   :  { %2604 = vrot.lane.b32.xlu1 %v2494_v38, %s7501_s25  ;;  %6873 = vpow2.f32 %v967_v5  ;;  %v1871_v38 = vand.u32 2147483647, %v8473_v55  ;;  %v8478_v5 = vadd.f32 %v8298_v18, %v1730_v50 }
 0x348   :  { %v1069_v15 = vsel %vm829_vm13, %v770_v12, %v5552_v13 }
 0x349   :  { %v1874_v0 = vand.u32 2147483647, %v8478_v5 }
 0x34c   :  { %v1257_v20 = vpop.f32.mrf.mxu2 }
 0x34d   :  { %v6874_v3 = vpop.eup %6873  ;;  %v1258_v60 = vadd.f32 %v8459_v28, %v1257_v20 }
 0x34e   :  { %v5553_v59 = vadd.f32 -1.0, %v6874_v3  ;;  %v774_v14 = vpop.f32.mrf.mxu1  ;;  %v1986_v3 = vmul.f32 1.442695, %v1921_v6 }
 0x34f   :  { %2378 = vrot.lane.b32.xlu1 %v7455_v44, %s7500_s24  ;;  %v1377_v31 = vmin.f32 %v1258_v60, 0.0  ;;  %v775_v42 = vadd.f32 %v8167_v33, %v774_v14  ;;  %v1919_v44 = vsub.f32 0.0, %v1871_v38  ;;  %vm1329_vm15 = vcmp.gt.f32.partialorder %v1258_v60, 0.0 }
 0x350   :  { %v1070_v43 = vsel %vm830_vm14, %v772_v46, %v5553_v59  ;;  %v1732_v59 = vpop.f32.mrf.mxu3 }
 0x351   :  { %v1097_v27 = vpack.c.bf16 %v1070_v43, %v1069_v15  ;;  %v1457_v12 = vmul.f32 1.442695, %v1377_v31  ;;  %v879_v61 = vmin.f32 %v775_v42, 0.0  ;;  %v8482_v26 = vadd.f32 %v8298_v18, %v1732_v59 }
 0x352   :  { %v1982_v31 = vmul.f32 1.442695, %v1919_v44  ;;  %vm831_vm1 = vcmp.gt.f32.partialorder %v775_v42, 0.0 }
 0x353   :  { %1276 = vmatmul.bf16.gmra.mxu2 %v1097_v27  ;;  %6875 = vpow2.f32 %v1457_v12  ;;  %v969_v40 = vmul.f32 1.442695, %v879_v61 }
 0x354   :  { %v1259_v51 = vpop.f32.mrf.mxu2 }
 0x355   :  { %v1260_v16 = vadd.f32 %v8459_v28, %v1259_v51  ;;  %v1922_v51 = vsub.f32 0.0, %v1874_v0 }
 0x356   :  { %v776_v46 = vpop.f32.mrf.mxu1 }
 0x357   :  { %2380 = vrot.lane.b32.xlu1 %v7457_v36, %s7500_s24  ;;  %v1378_v47 = vmin.f32 %v1260_v16, 0.0  ;;  %v777_v37 = vadd.f32 %v8167_v33, %v776_v46  ;;  %vm1330_vm0 = vcmp.gt.f32.partialorder %v1260_v16, 0.0  ;;  %v8485_v36 = vadd.f32 %v8298_v18, %v1725_v19 }
 0x358   :  { %v1988_v19 = vmul.f32 1.442695, %v1922_v51 }
 0x359   :  { %v1459_v62 = vmul.f32 1.442695, %v1378_v47  ;;  %v6876_v7 = vpop.eup %6875  ;;  %v880_v17 = vmin.f32 %v777_v37, 0.0  ;;  %vm832_vm2 = vcmp.gt.f32.partialorder %v777_v37, 0.0  ;;  %v1872_v6 = vand.u32 2147483647, %v8485_v36 }
 0x35a   :  { %v5640_v43 = vadd.f32 -1.0, %v6876_v7 }
 0x35b   :  { %6877 = vpow2.f32 %v1459_v62  ;;  %v971_v15 = vmul.f32 1.442695, %v880_v17  ;;  %v1875_v62 = vand.u32 2147483647, %v8482_v26  ;;  %v1920_v0 = vsub.f32 0.0, %v1872_v6 }
 0x35c   :  { %6879 = vpow2.f32 %v969_v40  ;;  %v1569_v50 = vsel %vm1329_vm15, %v1258_v60, %v5640_v43 }
 0x35d   :  { %6881 = vpow2.f32 %v971_v15  ;;  %v1923_v59 = vsub.f32 0.0, %v1875_v62  ;;  %v6158_v15 = vld [vmem:[%s10459_s1 + $0x170] sm:$0xff]  ;;  %v1984_v62 = vmul.f32 1.442695, %v1920_v0 }
 0x35e   :  { %6883 = vpow2.f32 %v1986_v3  ;;  %3417 = vmatpush.bf16.msrb.mxu1 %v6158_v15 }
 0x35f   :  { %v779_v12 = vpop.f32.mrf.mxu1  ;;  %6885 = vpow2.f32 %v1982_v31  ;;  %v1990_v51 = vmul.f32 1.442695, %v1923_v59 }
 0x360   :  { %v8488_v47 = vadd.f32 %v8167_v33, %v779_v12  ;;  %6887 = vpow2.f32 %v1988_v19  ;;  %v6156_v19 = vld [vmem:[%s10459_s1 + $0x160] sm:$0xff] }
 0x361   :  { %v6878_v13 = vpop.eup %6877 }
 0x362   :  { %v6880_v20 = vpop.eup %6879  ;;  %v5641_v27 = vadd.f32 -1.0, %v6878_v13  ;;  %v881_v46 = vmin.f32 %v8488_v47, 0.0  ;;  %v1735_v13 = vpop.f32.mrf.mxu3  ;;  %vm833_vm3 = vcmp.gt.f32.partialorder %v8488_v47, 0.0 }
 0x363   :  { %v5554_v14 = vadd.f32 -1.0, %v6880_v20  ;;  %v6882_v40 = vpop.eup %6881  ;;  %v8494_v60 = vadd.f32 %v8298_v18, %v1735_v13 }
 0x364   :  { %v1570_v61 = vsel %vm1330_vm0, %v1260_v16, %v5641_v27  ;;  %v5555_v38 = vadd.f32 -1.0, %v6882_v40  ;;  %v6884_v17 = vpop.eup %6883  ;;  %v973_v3 = vmul.f32 1.442695, %v881_v46 }
 0x365   :  { %v1601_v63 = vpack.c.bf16 %v1570_v61, %v1569_v50  ;;  %v1071_v7 = vsel %vm831_vm1, %v775_v42, %v5554_v14  ;;  %v2065_v20 = vadd.f32 1.0, %v6884_v17  ;;  %v6157_v14 = vld [vmem:[%s10459_s1 + $0x168] sm:$0xff]  ;;  %v6886_v12 = vpop.eup %6885 }
 0x366   :  { %v1072_v16 = vsel %vm832_vm2, %v777_v37, %v5555_v38  ;;  %6889 = vpow2.f32 %v973_v3  ;;  %v1876_v37 = vand.u32 2147483647, %v8494_v60  ;;  %3418 = vmatpush.bf16.msrb.mxu1 %v6157_v14  ;;  %v2063_v40 = vadd.f32 1.0, %v6886_v12 }
 0x367   :  { %1764 = vmatmul.bf16.gmra.mxu3 %v1601_v63  ;;  %v1098_v44 = vpack.c.bf16 %v1072_v16, %v1071_v7  ;;  %v781_v43 = vpop.f32.mrf.mxu1  ;;  %6891 = vlog2.f32 %v2065_v20 }
 0x368   :  { %v782_v42 = vadd.f32 %v8167_v33, %v781_v43  ;;  %v6888_v33 = vpop.eup %6887  ;;  %6893 = vpow2.f32 %v1990_v51  ;;  %v1924_v46 = vsub.f32 0.0, %v1876_v37  ;;  %v1825_v43 = vmax.f32 %v8468_v35, 0.0 }
 0x369   :  { %1281 = vmatmul.bf16.gmra.mxu2 %v1098_v44  ;;  %v2066_v13 = vadd.f32 1.0, %v6888_v33  ;;  %v6155_v44 = vld [vmem:[%s10459_s1 + $0x158] sm:$0xff] }
 0x36a   :  { %v882_v50 = vmin.f32 %v782_v42, 0.0  ;;  %3419 = vmatpush.bf16.msrb.mxu1 %v6156_v19  ;;  %v1992_v16 = vmul.f32 1.442695, %v1924_v46  ;;  %vm834_vm4 = vcmp.gt.f32.partialorder %v782_v42, 0.0 }
 0x36b   :  { %v1262_v27 = vpop.f32.mrf.mxu2 }
 0x36c   :  { %v8501_v31 = vadd.f32 %v8459_v28, %v1262_v27  ;;  %v975_v63 = vmul.f32 1.442695, %v882_v50  ;;  %v6890_v38 = vpop.eup %6889 }
 0x36d   :  { %v6892_v59 = vpop.eup %6891  ;;  %v5556_v15 = vadd.f32 -1.0, %v6890_v38 }
 0x36e   :  { %v1379_v61 = vmin.f32 %v8501_v31, 0.0  ;;  %6895 = vpow2.f32 %v975_v63  ;;  %v6894_v20 = vpop.eup %6893  ;;  %3420 = vmatpush.bf16.msrb.mxu1 %v6155_v44  ;;  %v2131_v51 = vmul.f32 0.6931472, %v6892_v59  ;;  %vm1331_vm5 = vcmp.gt.f32.partialorder %v8501_v31, 0.0 }
 0x36f   :  { %6897 = vpow2.f32 %v1984_v62  ;;  %v6154_v62 = vld [vmem:[%s10459_s1 + $0x150] sm:$0xff]  ;;  %v2067_v46 = vadd.f32 1.0, %v6894_v20 }
 0x370   :  { %v1461_v7 = vmul.f32 1.442695, %v1379_v61  ;;  %6899 = vlog2.f32 %v2063_v40  ;;  %v1073_v61 = vsel %vm833_vm3, %v8488_v47, %v5556_v15  ;;  %v8528_v40 = vadd.f32 %v8425_v11, %v8091_v21  ;;  %v6153_v11 = vld [vmem:[%s10459_s1 + $0x148] sm:$0xff] }
 0x372   :  { %6901 = vpow2.f32 %v1461_v7  ;;  %3421 = vmatpush.bf16.msrb.mxu1 %v6154_v62 }
 0x373   :  { %v1264_v17 = vpop.f32.mrf.mxu2  ;;  %6903 = vlog2.f32 %v2066_v13  ;;  %v2209_v13 = vadd.f32 %v2131_v51, %v1825_v43 }
 0x374   :  { %v8514_v3 = vadd.f32 %v8459_v28, %v1264_v17  ;;  %v6896_v27 = vpop.eup %6895  ;;  %6905 = vpow2.f32 %v1992_v16 }
 0x375   :  { %v6898_v14 = vpop.eup %6897  ;;  %v5557_v50 = vadd.f32 -1.0, %v6896_v27 }
 0x376   :  { %v1380_v0 = vmin.f32 %v8514_v3, 0.0  ;;  %v6900_v33 = vpop.eup %6899  ;;  %v2064_v47 = vadd.f32 1.0, %v6898_v14  ;;  %3422 = vmatpush.bf16.msrb.mxu1 %v6153_v11  ;;  %v8550_v14 = vsel %vm1807_vm10, %v2209_v13, %v8468_v35  ;;  %vm1332_vm6 = vcmp.gt.f32.partialorder %v8514_v3, 0.0  ;;  %v8575_v11 = vld [vmem:[%s10460_s2 + $0x4] ss:$0 sm:$0xff] }
 0x377   :  { %v1074_v7 = vsel %vm834_vm4, %v782_v42, %v5557_v50  ;;  %v2127_v43 = vmul.f32 0.6931472, %v6900_v33  ;;  %10535 = vst [vmem:[#allocation19_spill] sm:$0xff] %v8550_v14 }
 0x378   :  { %v1463_v37 = vmul.f32 1.442695, %v1380_v0  ;;  %v6902_v17 = vpop.eup %6901  ;;  %v1099_v59 = vpack.c.bf16 %v1074_v7, %v1073_v61  ;;  %v1823_v0 = vmax.f32 %v8473_v55, 0.0 }
 0x379   :  { %v8508_v6 = vpop.permute.xlu2 %2594  ;;  %v6904_v44 = vpop.eup %6903  ;;  %v5642_v20 = vadd.f32 -1.0, %v6902_v17 }
 0x37a   :  { %6907 = vpow2.f32 %v1463_v37  ;;  %1286 = vmatmul.bf16.gmra.mxu2 %v1099_v59  ;;  %v6906_v42 = vpop.eup %6905  ;;  %v1826_v37 = vmax.f32 %v8478_v5, 0.0  ;;  %v2133_v61 = vmul.f32 0.6931472, %v6904_v44  ;;  %v8567_v59 = vadd.f32 %v8508_v6, %v8372_v48  ;;  %v7458_v6 = vld [vmem:[%s10460_s2 + $0x1] ss:$0 sm:$0xff] }
 0x37b   :  { %6909 = vlog2.f32 %v2067_v46  ;;  %v2068_v7 = vadd.f32 1.0, %v6906_v42  ;;  %v1571_v42 = vsel %vm1331_vm5, %v8501_v31, %v5642_v20 }
 0x37c   :  { %v1267_v38 = vpop.f32.mrf.mxu2  ;;  %6911 = vlog2.f32 %v2064_v47  ;;  %v2210_v31 = vadd.f32 %v2133_v61, %v1826_v37 }
 0x37d   :  { %v8544_v27 = vadd.f32 %v8459_v28, %v1267_v38  ;;  %v6152_v38 = vld [vmem:[%s10459_s1 + $0x140] sm:$0xff] }
 0x37e   :  { %3423 = vmatpush.bf16.msrb.mxu1 %v6152_v38 }
 0x37f   :  { %v784_v50 = vpop.f32.mrf.mxu1  ;;  %v1381_v46 = vmin.f32 %v8544_v27, 0.0  ;;  %vm1333_vm7 = vcmp.gt.f32.partialorder %v8544_v27, 0.0 }
 0x380   :  { %v6908_v51 = vpop.eup %6907 }
 0x381   :  { %v2597_v12 = vpop.permute.xlu2 %2596  ;;  %v5643_v33 = vadd.f32 -1.0, %v6908_v51  ;;  %v6910_v38 = vpop.eup %6909  ;;  %v2207_v51 = vadd.f32 %v2127_v43, %v1823_v0  ;;  %v8607_v43 = vsel %vm1807_vm10, %v2210_v31, %v8478_v5 }
 0x382   :  { %v2591_v63 = vpop.permute.xlu1 %2590  ;;  %v8559_v17 = vadd.f32 %v2597_v12, %v8392_v10  ;;  %v1465_v12 = vmul.f32 1.442695, %v1381_v46  ;;  %v2135_v37 = vmul.f32 0.6931472, %v6910_v38  ;;  %10538 = vst [vmem:[#allocation22_spill] sm:$0xff] %v8607_v43 }
 0x383   :  { %v8531_v19 = vadd.f32 %v2591_v63, %v8291_v32  ;;  %v1572_v46 = vsel %vm1332_vm6, %v8514_v3, %v5643_v33  ;;  %v1737_v3 = vpop.f32.mrf.mxu3 }
 0x384   :  { %10536 = vst [vmem:[#allocation20_spill] sm:$0xff] %v8559_v17  ;;  %v1269_v44 = vpop.f32.mrf.mxu2  ;;  %6913 = vpow2.f32 %v1465_v12  ;;  %v1602_v16 = vpack.c.bf16 %v1572_v46, %v1571_v42  ;;  %v1824_v12 = vmax.f32 %v8485_v36, 0.0  ;;  %v8617_v46 = vsel %vm1807_vm10, %v2207_v51, %v8473_v55 }
 0x385   :  { %v5762_v15 = vpack.c.bf16 %v8531_v19, %v8528_v40  ;;  %6915 = vlog2.f32 %v2068_v7  ;;  %10539 = vst [vmem:[#allocation23_spill] sm:$0xff] %v8617_v46  ;;  %v8620_v5 = vadd.f32 %v8298_v18, %v1737_v3 }
 0x386   :  { %1769 = vmatmul.bf16.gmra.mxu3 %v1602_v16 }
 0x387   :  { %5763 = vmatmul.msk.bf16.gmra.mxu0 %vm8315_vm8, %v5762_v15  ;;  %v786_v20 = vpop.f32.mrf.mxu1 }
 0x388   :  { %v8611_v42 = vadd.f32 %v7458_v6, %v786_v20 }
 0x389   :  { %v2371_v62 = vpop.permute.xlu2 %2370  ;;  %v2599_v63 = vpop.permute.xlu0 %2598 }
 0x38a   :  { %v2497_v35 = vmul.f32 %v2371_v62, %v8550_v14  ;;  %v2593_v47 = vpop.permute.xlu1 %2592  ;;  %v8563_v13 = vadd.f32 %v2599_v63, %v8339_v2  ;;  %v8586_v62 = vadd.f32 %v7458_v6, %v784_v50  ;;  %v8589_v63 = vadd.f32 %v8459_v28, %v1269_v44 }
 0x38b   :  { %v8570_v15 = vadd.f32 %v2593_v47, %v8344_v56  ;;  %v1827_v44 = vmax.f32 %v8482_v26, 0.0  ;;  %vm836_vm12 = vcmp.gt.f32.partialorder %v8611_v42, 0.0 }
 0x38c   :  { %10537 = vst [vmem:[#allocation21_spill] sm:$0xff] %v8563_v13  ;;  %2610 = vrot.lane.b32.xlu0 %v2497_v35, %s7501_s25  ;;  %v6912_v35 = vpop.eup %6911  ;;  %v883_v58 = vmin.f32 %v8586_v62, 0.0  ;;  %v1382_v50 = vmin.f32 %v8589_v63, 0.0  ;;  %v1272_v16 = vpop.f32.mrf.mxu2  ;;  %vm1334_vm9 = vcmp.gt.f32.partialorder %v8589_v63, 0.0  ;;  %vm835_vm11 = vcmp.gt.f32.partialorder %v8586_v62, 0.0 }
 0x38d   :  { %v2129_v7 = vmul.f32 0.6931472, %v6912_v35  ;;  %v2211_v6 = vadd.f32 %v2135_v37, %v1827_v44  ;;  %v8626_v20 = vadd.f32 %v8459_v28, %v1272_v16  ;;  %v5765_v55 = vpack.c.bf16 %v8567_v59, %v8570_v15 }
 0x38e   :  { %v2917_v47 = vpop.f32.mrf.mxu0  ;;  %v977_v61 = vmul.f32 1.442695, %v883_v58  ;;  %v1467_v33 = vmul.f32 1.442695, %v1382_v50  ;;  %v1877_v44 = vand.u32 2147483647, %v8620_v5 }
 0x38f   :  { %v8600_v29 = vadd.f32 %v8575_v11, %v2917_v47  ;;  %v6914_v47 = vpop.eup %6913  ;;  %v2208_v50 = vadd.f32 %v2129_v7, %v1824_v12  ;;  %v8643_v12 = vsel %vm1807_vm10, %v2211_v6, %v8482_v26  ;;  %vm1335_vm15 = vcmp.gt.f32.partialorder %v8626_v20, 0.0 }
 0x390   :  { %6917 = vpow2.f32 %v977_v61  ;;  %v6916_v35 = vpop.eup %6915  ;;  %v5644_v61 = vadd.f32 -1.0, %v6914_v47  ;;  %10540 = vst [vmem:[#allocation24_spill] sm:$0xff] %v8643_v12 }
 0x391   :  { %v3085_v0 = vmin.f32 %v8600_v29, 0.0  ;;  %v2373_v57 = vpop.permute.xlu2 %2372  ;;  %v8609_v56 = vpop.permute.xlu0 %2600  ;;  %6919 = vpow2.f32 %v1467_v33  ;;  %vm3037_vm13 = vcmp.gt.f32.partialorder %v8600_v29, 0.0 }
 0x392   :  { %v2498_v58 = vmul.f32 %v2373_v57, %v8607_v43  ;;  %v2367_v38 = vpop.permute.xlu1 %2366  ;;  %v884_v57 = vmin.f32 %v8611_v42, 0.0 }
 0x393   :  { %v2495_v31 = vmul.f32 %v2367_v38, %v8617_v46  ;;  %v3133_v51 = vmul.f32 1.442695, %v3085_v0  ;;  %v1383_v38 = vmin.f32 %v8626_v20, 0.0 }
 0x394   :  { %2612 = vrot.lane.b32.xlu0 %v2498_v58, %s7501_s25  ;;  %v979_v33 = vmul.f32 1.442695, %v884_v57  ;;  %v1828_v58 = vmax.f32 %v8494_v60, 0.0  ;;  %v1274_v2 = vpop.f32.mrf.mxu2 }
 0x395   :  { %2606 = vrot.lane.b32.xlu2 %v2495_v31, %s7501_s25  ;;  %v1469_v7 = vmul.f32 1.442695, %v1383_v38  ;;  %v2137_v31 = vmul.f32 0.6931472, %v6916_v35  ;;  %v1573_v35 = vsel %vm1333_vm7, %v8544_v27, %v5644_v61  ;;  %v1275_v27 = vadd.f32 %v8459_v28, %v1274_v2 }
 0x396   :  { %v2919_v3 = vpop.f32.mrf.mxu0  ;;  %v6918_v0 = vpop.eup %6917  ;;  %6921 = vpow2.f32 %v979_v33 }
 0x397   :  { %v8634_v37 = vadd.f32 %v8575_v11, %v2919_v3  ;;  %5766 = vmatmul.msk.bf16.gmra.mxu0 %vm8315_vm8, %v5765_v55  ;;  %v6920_v47 = vpop.eup %6919  ;;  %6923 = vpow2.f32 %v3133_v51  ;;  %v1740_v55 = vpop.f32.mrf.mxu3  ;;  %v8650_v3 = vsel %vm1807_vm10, %v2208_v50, %v8485_v36  ;;  %v1925_v51 = vsub.f32 0.0, %v1877_v44  ;;  %v7459_v36 = vld [vmem:[%s10461_s0 + $0xc8] sm:$0xff] }
 0x398   :  { %10541 = vst [vmem:[#allocation25_spill] sm:$0xff] %v8650_v3  ;;  %v5645_v6 = vadd.f32 -1.0, %v6920_v47  ;;  %v8657_v33 = vadd.f32 %v8298_v18, %v1740_v55  ;;  %v5558_v50 = vadd.f32 -1.0, %v6918_v0  ;;  %6925 = vpow2.f32 %v1469_v7 }
 0x399   :  { %v3086_v16 = vmin.f32 %v8634_v37, 0.0  ;;  %v2375_v57 = vpop.permute.xlu0 %2374  ;;  %v2212_v61 = vadd.f32 %v2137_v31, %v1828_v58  ;;  %v1994_v7 = vmul.f32 1.442695, %v1925_v51  ;;  %vm3038_vm14 = vcmp.gt.f32.partialorder %v8634_v37, 0.0 }
 0x39a   :  { %v2369_v48 = vpop.permute.xlu1 %2368  ;;  %v2499_v26 = vmul.f32 %v2375_v57, %v8643_v12  ;;  %v1574_v18 = vsel %vm1334_vm9, %v8589_v63, %v5645_v6  ;;  %v1878_v2 = vand.u32 2147483647, %v8657_v33  ;;  %v1075_v31 = vsel %vm835_vm11, %v8586_v62, %v5558_v50 }
 0x39b   :  { %v3135_v38 = vmul.f32 1.442695, %v3086_v16  ;;  %v2496_v10 = vmul.f32 %v2369_v48, %v8650_v3  ;;  %v1603_v48 = vpack.c.bf16 %v1574_v18, %v1573_v35  ;;  %v1384_v16 = vmin.f32 %v1275_v27, 0.0 }
 0x39c   :  { %2386 = vrot.lane.b32.xlu0 %v7459_v36, %s7500_s24  ;;  %2614 = vrot.lane.b32.xlu1 %v2499_v26, %s7501_s25  ;;  %v6922_v44 = vpop.eup %6921  ;;  %v8681_v55 = vsel %vm1807_vm10, %v2212_v61, %v8494_v60  ;;  %v1926_v62 = vsub.f32 0.0, %v1878_v2  ;;  %v5768_v60 = vpack.c.bf16 %v8563_v13, %v8559_v17  ;;  %v7461_v61 = vld [vmem:[%s10461_s0 + $0xb8] sm:$0xff]  ;;  %vm1336_vm0 = vcmp.gt.f32.partialorder %v1275_v27, 0.0 }
 0x39d   :  { %6927 = vpow2.f32 %v3135_v38  ;;  %2608 = vrot.lane.b32.xlu2 %v2496_v10, %s7501_s25  ;;  %v6924_v0 = vpop.eup %6923  ;;  %v5559_v63 = vadd.f32 -1.0, %v6922_v44  ;;  %v1471_v58 = vmul.f32 1.442695, %v1384_v16  ;;  %10542 = vst [vmem:[#allocation26_spill] sm:$0xff] %v8681_v55  ;;  %1774 = vmatmul.bf16.gmra.mxu3 %v1603_v48  ;;  %v7460_v44 = vld [vmem:[%s10461_s0 + $0xd0] sm:$0xff] }
 0x39e   :  { %v2922_v47 = vpop.f32.mrf.mxu0  ;;  %v6926_v35 = vpop.eup %6925  ;;  %v5824_v51 = vadd.f32 -1.0, %v6924_v0 }
 0x39f   :  { %v8674_v57 = vadd.f32 %v8575_v11, %v2922_v47  ;;  %v1076_v6 = vsel %vm836_vm12, %v8611_v42, %v5559_v63  ;;  %6929 = vpow2.f32 %v1471_v58  ;;  %v5646_v0 = vadd.f32 -1.0, %v6926_v35 }
 0x3a0   :  { %v1100_v36 = vpack.c.bf16 %v1076_v6, %v1075_v31  ;;  %6931 = vpow2.f32 %v1994_v7  ;;  %v3277_v48 = vsel %vm3037_vm13, %v8600_v29, %v5824_v51  ;;  %v1996_v7 = vmul.f32 1.442695, %v1926_v62  ;;  %v7462_v51 = vld [vmem:[%s10461_s0 + $0xd8] sm:$0xff] }
 0x3a1   :  { %v3087_v10 = vmin.f32 %v8674_v57, 0.0  ;;  %v2377_v26 = vpop.permute.xlu0 %2376  ;;  %vm3039_vm1 = vcmp.gt.f32.partialorder %v8674_v57, 0.0 }
 0x3a2   :  { %v2500_v38 = vmul.f32 %v2377_v26, %v8681_v55  ;;  %1291 = vmatmul.bf16.gmra.mxu2 %v1100_v36 }
 0x3a3   :  { %v6928_v18 = vpop.eup %6927  ;;  %v3137_v42 = vmul.f32 1.442695, %v3087_v10 }
 0x3a4   :  { %v5825_v50 = vadd.f32 -1.0, %v6928_v18  ;;  %2388 = vrot.lane.b32.xlu0 %v7460_v44, %s7500_s24  ;;  %2616 = vrot.lane.b32.xlu1 %v2500_v38, %s7501_s25  ;;  %v7463_v38 = vld [vmem:[%s10461_s0 + $0xc0] sm:$0xff] }
 0x3a5   :  { %2382 = vrot.lane.b32.xlu2 %v7461_v61, %s7500_s24  ;;  %v6930_v58 = vpop.eup %6929  ;;  %6933 = vpow2.f32 %v3137_v42 }
 0x3a6   :  { %v3278_v47 = vsel %vm3038_vm14, %v8634_v37, %v5825_v50  ;;  %v2924_v16 = vpop.f32.mrf.mxu0  ;;  %v6932_v31 = vpop.eup %6931  ;;  %v5647_v29 = vadd.f32 -1.0, %v6930_v58  ;;  %v1575_v37 = vsel %vm1335_vm15, %v8626_v20, %v5646_v0  ;;  %6935 = vpow2.f32 %v1996_v7 }
 0x3a7   :  { %v3325_v2 = vpack.c.bf16 %v3278_v47, %v3277_v48  ;;  %v2925_v63 = vadd.f32 %v8575_v11, %v2924_v16  ;;  %5769 = vmatmul.msk.bf16.gmra.mxu0 %vm8315_vm8, %v5768_v60  ;;  %v2069_v35 = vadd.f32 1.0, %v6932_v31  ;;  %v8716_v60 = vadd.f32 %v8609_v56, %v8367_v41 }
 0x3a8   :  { %v1576_v6 = vsel %vm1336_vm0, %v1275_v27, %v5647_v29 }
 0x3a9   :  { %v3088_v10 = vmin.f32 %v2925_v63, 0.0  ;;  %3424 = vmatmul.bf16.vlgmr.msrb.gmra.mxu1 %v3325_v2  ;;  %v1604_v36 = vpack.c.bf16 %v1576_v6, %v1575_v37  ;;  %v7464_v2 = vld [vmem:[%s10461_s0 + $0xe0] sm:$0xff]  ;;  %vm3040_vm2 = vcmp.gt.f32.partialorder %v2925_v63, 0.0  ;;  %v1829_v6 = vmax.f32 %v8620_v5, 0.0 }
 0x3ab   :  { %v3139_v26 = vmul.f32 1.442695, %v3088_v10  ;;  %v6934_v20 = vpop.eup %6933 }
 0x3ac   :  { %2390 = vrot.lane.b32.xlu1 %v7462_v51, %s7500_s24  ;;  %v6936_v27 = vpop.eup %6935  ;;  %v5826_v42 = vadd.f32 -1.0, %v6934_v20  ;;  %v1830_v20 = vmax.f32 %v8657_v33, 0.0 }
 0x3ad   :  { %6937 = vpow2.f32 %v3139_v26  ;;  %2384 = vrot.lane.b32.xlu2 %v7463_v38, %s7500_s24  ;;  %1779 = vmatmul.bf16.gmra.mxu3 %v1604_v36  ;;  %v2070_v47 = vadd.f32 1.0, %v6936_v27 }
 0x3ae   :  { %v2927_v18 = vpop.f32.mrf.mxu0  ;;  %6939 = vlog2.f32 %v2069_v35  ;;  %v3279_v10 = vsel %vm3039_vm1, %v8674_v57, %v5826_v42 }
 0x3af   :  { %v2928_v62 = vadd.f32 %v8575_v11, %v2927_v18  ;;  %6941 = vlog2.f32 %v2070_v47 }
 0x3b1   :  { %v3089_v50 = vmin.f32 %v2928_v62, 0.0  ;;  %v2603_v44 = vpop.permute.xlu1 %2602  ;;  %vm3041_vm3 = vcmp.gt.f32.partialorder %v2928_v62, 0.0 }
 0x3b2   :  { %v8719_v61 = vadd.f32 %v2603_v44, %v8436_v49 }
 0x3b3   :  { %v6938_v48 = vpop.eup %6937  ;;  %v3141_v56 = vmul.f32 1.442695, %v3089_v50 }
 0x3b4   :  { %v5827_v16 = vadd.f32 -1.0, %v6938_v48  ;;  %v5771_v7 = vpack.c.bf16 %v8719_v61, %v8716_v60  ;;  %2392 = vrot.lane.b32.xlu1 %v7464_v2, %s7500_s24  ;;  %v6940_v58 = vpop.eup %6939 }
 0x3b5   :  { %6943 = vpow2.f32 %v3141_v56  ;;  %v2139_v38 = vmul.f32 0.6931472, %v6940_v58  ;;  %v6942_v57 = vpop.eup %6941 }
 0x3b6   :  { %v2929_v31 = vpop.f32.mrf.mxu0  ;;  %v3280_v29 = vsel %vm3040_vm2, %v2925_v63, %v5827_v16  ;;  %v2141_v27 = vmul.f32 0.6931472, %v6942_v57  ;;  %v1742_v16 = vpop.f32.mrf.mxu3 }
 0x3b7   :  { %v2930_v37 = vadd.f32 %v8575_v11, %v2929_v31  ;;  %5772 = vmatmul.msk.bf16.gmra.mxu0 %vm8315_vm8, %v5771_v7  ;;  %v3326_v26 = vpack.c.bf16 %v3280_v29, %v3279_v10  ;;  %v2213_v18 = vadd.f32 %v2139_v38, %v1829_v6  ;;  %v8755_v6 = vld [vmem:[%s10460_s2 + $0x3] ss:$0 sm:$0xff] }
 0x3b8   :  { %v2214_v2 = vadd.f32 %v2141_v27, %v1830_v20  ;;  %v7467_v27 = vld [vmem:[%s10461_s0 + $0xf0] sm:$0xff] }
 0x3b9   :  { %v3090_v35 = vmin.f32 %v2930_v37, 0.0  ;;  %3429 = vmatmul.bf16.gmra.mxu1 %v3326_v26  ;;  %v8735_v51 = vpop.permute.xlu1 %2604  ;;  %v8741_v50 = vsel %vm1807_vm10, %v2213_v18, %v8620_v5  ;;  %vm3042_vm4 = vcmp.gt.f32.partialorder %v2930_v37, 0.0 }
 0x3ba   :  { %10543 = vst [vmem:[#allocation27_spill] sm:$0xff] %v8741_v50  ;;  %v8748_v5 = vsel %vm1807_vm10, %v2214_v2, %v8657_v33  ;;  %v7466_v33 = vld [vmem:[%s10461_s0 + $0xe8] sm:$0xff] }
 0x3bb   :  { %v3143_v36 = vmul.f32 1.442695, %v3090_v35  ;;  %v6944_v63 = vpop.eup %6943  ;;  %10544 = vst [vmem:[#allocation28_spill] sm:$0xff] %v8748_v5 }
 0x3bc   :  { %v5828_v42 = vadd.f32 -1.0, %v6944_v63 }
 0x3bd   :  { %6945 = vpow2.f32 %v3143_v36 }
 0x3be   :  { %v3281_v56 = vsel %vm3041_vm3, %v2928_v62, %v5828_v42  ;;  %v1745_v26 = vpop.f32.mrf.mxu3  ;;  %v8758_v62 = vadd.f32 %v8755_v6, %v1742_v16 }
 0x3bf   :  { %v8766_v18 = vadd.f32 %v8755_v6, %v1745_v26 }
 0x3c1   :  { %v2379_v44 = vpop.permute.xlu1 %2378  ;;  %v1880_v20 = vand.u32 2147483647, %v8766_v18 }
 0x3c2   :  { %v2501_v48 = vmul.f32 %v2379_v44, %v8741_v50 }
 0x3c3   :  { %v6946_v47 = vpop.eup %6945 }
 0x3c4   :  { %v5829_v7 = vadd.f32 -1.0, %v6946_v47  ;;  %2618 = vrot.lane.b32.xlu2 %v2501_v48, %s7501_s25 }
 0x3c6   :  { %v3282_v58 = vsel %vm3042_vm4, %v2930_v37, %v5829_v7  ;;  %v1879_v37 = vand.u32 2147483647, %v8758_v62  ;;  %v1747_v35 = vpop.f32.mrf.mxu3  ;;  %v1928_v7 = vsub.f32 0.0, %v1880_v20 }
 0x3c7   :  { %v3327_v31 = vpack.c.bf16 %v3282_v58, %v3281_v56  ;;  %v8775_v48 = vadd.f32 %v8755_v6, %v1747_v35 }
 0x3c8   :  { %v1927_v36 = vsub.f32 0.0, %v1879_v37 }
 0x3c9   :  { %3434 = vmatmul.bf16.gmra.mxu1 %v3327_v31  ;;  %v2381_v10 = vpop.permute.xlu1 %2380  ;;  %v1881_v58 = vand.u32 2147483647, %v8775_v48 }
 0x3ca   :  { %v2502_v29 = vmul.f32 %v2381_v10, %v8748_v5  ;;  %v1998_v63 = vmul.f32 1.442695, %v1927_v36  ;;  %v2000_v10 = vmul.f32 1.442695, %v1928_v7 }
 0x3cb   :  { %v1929_v26 = vsub.f32 0.0, %v1881_v58 }
 0x3cc   :  { %2620 = vrot.lane.b32.xlu2 %v2502_v29, %s7501_s25  ;;  %6947 = vpow2.f32 %v1998_v63 }
 0x3cd   :  { %v2002_v36 = vmul.f32 1.442695, %v1929_v26 }
 0x3ce   :  { %v1750_v42 = vpop.f32.mrf.mxu3 }
 0x3cf   :  { %v8780_v37 = vadd.f32 %v8755_v6, %v1750_v42 }
 0x3d1   :  { %v1882_v20 = vand.u32 2147483647, %v8780_v37 }
 0x3d2   :  { %v6948_v29 = vpop.eup %6947 }
 0x3d3   :  { %v2071_v35 = vadd.f32 1.0, %v6948_v29  ;;  %v1930_v7 = vsub.f32 0.0, %v1882_v20 }
 0x3d4   :  { %2394 = vrot.lane.b32.xlu2 %v7466_v33, %s7500_s24 }
 0x3d6   :  { %v1277_v38 = vpop.f32.mrf.mxu2  ;;  %v1752_v33 = vpop.f32.mrf.mxu3 }
 0x3d7   :  { %v1278_v57 = vadd.f32 %v8459_v28, %v1277_v38 }
 0x3d9   :  { %v1385_v44 = vmin.f32 %v1278_v57, 0.0  ;;  %vm1337_vm5 = vcmp.gt.f32.partialorder %v1278_v57, 0.0 }
 0x3db   :  { %v1473_v2 = vmul.f32 1.442695, %v1385_v44 }
 0x3dc   :  { %2396 = vrot.lane.b32.xlu2 %v7467_v27, %s7500_s24 }
 0x3dd   :  { %6949 = vpow2.f32 %v1473_v2  ;;  %v8784_v2 = vadd.f32 %v8755_v6, %v1752_v33 }
 0x3de   :  { %v1279_v47 = vpop.f32.mrf.mxu2 }
 0x3df   :  { %v1280_v16 = vadd.f32 %v8459_v28, %v1279_v47  ;;  %v1883_v20 = vand.u32 2147483647, %v8784_v2 }
 0x3e1   :  { %v1386_v56 = vmin.f32 %v1280_v16, 0.0  ;;  %vm1338_vm6 = vcmp.gt.f32.partialorder %v1280_v16, 0.0 }
 0x3e3   :  { %v1475_v31 = vmul.f32 1.442695, %v1386_v56  ;;  %v6950_v38 = vpop.eup %6949  ;;  %v8788_v56 = vadd.f32 %v8735_v51, %v8445_v22 }
 0x3e4   :  { %v5648_v27 = vadd.f32 -1.0, %v6950_v38 }
 0x3e5   :  { %6951 = vpow2.f32 %v1475_v31 }
 0x3e6   :  { %6953 = vpow2.f32 %v2000_v10  ;;  %v1755_v10 = vpop.f32.mrf.mxu3  ;;  %v1577_v29 = vsel %vm1337_vm5, %v1278_v57, %v5648_v27  ;;  %v1831_v57 = vmax.f32 %v8758_v62, 0.0 }
 0x3e7   :  { %6955 = vlog2.f32 %v2071_v35 }
 0x3e8   :  { %6957 = vpow2.f32 %v2002_v36 }
 0x3eb   :  { %v6952_v63 = vpop.eup %6951 }
 0x3ec   :  { %v5649_v44 = vadd.f32 -1.0, %v6952_v63  ;;  %v6954_v47 = vpop.eup %6953  ;;  %v2004_v63 = vmul.f32 1.442695, %v1930_v7 }
 0x3ed   :  { %v2072_v31 = vadd.f32 1.0, %v6954_v47  ;;  %v6956_v36 = vpop.eup %6955  ;;  %v8802_v47 = vadd.f32 %v8755_v6, %v1755_v10 }
 0x3ee   :  { %v1578_v26 = vsel %vm1338_vm6, %v1280_v16, %v5649_v44  ;;  %v6958_v51 = vpop.eup %6957  ;;  %v2143_v16 = vmul.f32 0.6931472, %v6956_v36  ;;  %v1931_v44 = vsub.f32 0.0, %v1883_v20 }
 0x3ef   :  { %v2607_v42 = vpop.permute.xlu2 %2606  ;;  %v1605_v33 = vpack.c.bf16 %v1578_v26, %v1577_v29  ;;  %6959 = vlog2.f32 %v2072_v31  ;;  %v2073_v27 = vadd.f32 1.0, %v6958_v51  ;;  %v1282_v29 = vpop.f32.mrf.mxu2  ;;  %v6167_v26 = vld [vmem:[%s10459_s1 + $0x1b8] sm:$0xff]  ;;  %v1884_v36 = vand.u32 2147483647, %v8802_v47 }
 0x3f0   :  { %v8791_v58 = vadd.f32 %v2607_v42, %v8617_v46  ;;  %6961 = vpow2.f32 %v2004_v63  ;;  %v2215_v7 = vadd.f32 %v2143_v16, %v1831_v57  ;;  %v1757_v63 = vpop.f32.mrf.mxu3  ;;  %3924 = vmatpush.bf16.msrb.mxu2 %v6167_v26  ;;  %v1832_v51 = vmax.f32 %v8766_v18, 0.0 }
 0x3f1   :  { %1784 = vmatmul.bf16.gmra.mxu3 %v1605_v33  ;;  %6963 = vlog2.f32 %v2073_v27  ;;  %v2006_v33 = vmul.f32 1.442695, %v1931_v44  ;;  %v1932_v27 = vsub.f32 0.0, %v1884_v36 }
 0x3f2   :  { %v5774_v38 = vpack.c.bf16 %v8791_v58, %v8788_v56  ;;  %v8816_v16 = vsel %vm1807_vm10, %v2215_v7, %v8758_v62 }
 0x3f3   :  { %10545 = vst [vmem:[#allocation29_spill] sm:$0xff] %v8816_v16  ;;  %6965 = vpow2.f32 %v2006_v33 }
 0x3f4   :  { %5775 = vmatmul.msk.bf16.gmra.mxu0 %vm8315_vm8, %v5774_v38  ;;  %v8808_v38 = vadd.f32 %v8459_v28, %v1282_v29 }
 0x3f5   :  { %v6960_v31 = vpop.eup %6959 }
 0x3f6   :  { %v1387_v10 = vmin.f32 %v8808_v38, 0.0  ;;  %v6962_v20 = vpop.eup %6961  ;;  %v2145_v57 = vmul.f32 0.6931472, %v6960_v31  ;;  %v8825_v31 = vadd.f32 %v8755_v6, %v1757_v63  ;;  %v1833_v63 = vmax.f32 %v8775_v48, 0.0 }
 0x3f7   :  { %v2609_v42 = vpop.permute.xlu2 %2608  ;;  %v1284_v22 = vpop.f32.mrf.mxu2  ;;  %v2074_v46 = vadd.f32 1.0, %v6962_v20  ;;  %v2008_v20 = vmul.f32 1.442695, %v1932_v27  ;;  %vm1339_vm7 = vcmp.gt.f32.partialorder %v8808_v38, 0.0 }
 0x3f8   :  { %v1477_v35 = vmul.f32 1.442695, %v1387_v10  ;;  %v8819_v44 = vadd.f32 %v2609_v42, %v8650_v3  ;;  %v8829_v62 = vadd.f32 %v8459_v28, %v1284_v22  ;;  %v6964_v7 = vpop.eup %6963  ;;  %v2216_v10 = vadd.f32 %v2145_v57, %v1832_v51  ;;  %v1760_v3 = vpop.f32.mrf.mxu3 }
 0x3f9   :  { %v1885_v22 = vand.u32 2147483647, %v8825_v31  ;;  %v6966_v33 = vpop.eup %6965 }
 0x3fa   :  { %10546 = vst [vmem:[#allocation30_spill] sm:$0xff] %v8819_v44  ;;  %6967 = vpow2.f32 %v1477_v35  ;;  %v1388_v36 = vmin.f32 %v8829_v62, 0.0  ;;  %v8851_v27 = vsel %vm1807_vm10, %v2216_v10, %v8766_v18  ;;  %v8862_v18 = vld [vmem:[%s10460_s2 + $0x2] ss:$0 sm:$0xff]  ;;  %v1834_v10 = vmax.f32 %v8780_v37, 0.0 }
 0x3fb   :  { %6969 = vlog2.f32 %v2074_v46  ;;  %10548 = vst [vmem:[#allocation32_spill] sm:$0xff] %v8851_v27  ;;  %vm1340_vm9 = vcmp.gt.f32.partialorder %v8829_v62, 0.0 }
 0x3fe   :  { %v2611_v29 = vpop.permute.xlu0 %2610 }
 0x3ff   :  { %v2383_v0 = vpop.permute.xlu2 %2382  ;;  %v8822_v26 = vadd.f32 %v2611_v29, %v8550_v14  ;;  %v1479_v29 = vmul.f32 1.442695, %v1388_v36  ;;  %v1933_v36 = vsub.f32 0.0, %v1885_v22  ;;  %v1287_v49 = vpop.f32.mrf.mxu2 }
 0x400   :  { %v2503_v41 = vmul.f32 %v2383_v0, %v8816_v16  ;;  %v2147_v0 = vmul.f32 0.6931472, %v6964_v7  ;;  %v6968_v57 = vpop.eup %6967 }
 0x401   :  { %10547 = vst [vmem:[#allocation31_spill] sm:$0xff] %v8822_v26  ;;  %v5777_v42 = vpack.c.bf16 %v8822_v26, %v8819_v44  ;;  %6971 = vpow2.f32 %v1479_v29  ;;  %v6970_v29 = vpop.eup %6969  ;;  %v5650_v21 = vadd.f32 -1.0, %v6968_v57 }
 0x402   :  { %2622 = vrot.lane.b32.xlu0 %v2503_v41, %s7501_s25  ;;  %v8845_v41 = vadd.f32 %v8755_v6, %v1760_v3  ;;  %6973 = vpow2.f32 %v2008_v20  ;;  %v2217_v14 = vadd.f32 %v2147_v0, %v1833_v63  ;;  %v6166_v3 = vld [vmem:[%s10459_s1 + $0x1b0] sm:$0xff]  ;;  %v2010_v0 = vmul.f32 1.442695, %v1933_v36 }
 0x403   :  { %3925 = vmatpush.bf16.msrb.mxu2 %v6166_v3 }
 0x404   :  { %v2932_v28 = vpop.f32.mrf.mxu0  ;;  %5778 = vmatmul.msk.bf16.gmra.mxu0 %vm8315_vm8, %v5777_v42  ;;  %v2075_v42 = vadd.f32 1.0, %v6966_v33  ;;  %v1886_v20 = vand.u32 2147483647, %v8845_v41  ;;  %v8865_v33 = vadd.f32 %v8862_v18, %v1287_v49  ;;  %v8872_v57 = vsel %vm1807_vm10, %v2217_v14, %v8775_v48 }
 0x405   :  { %v8842_v35 = vadd.f32 %v8575_v11, %v2932_v28  ;;  %10549 = vst [vmem:[#allocation33_spill] sm:$0xff] %v8872_v57  ;;  %v2149_v49 = vmul.f32 0.6931472, %v6970_v29  ;;  %v1579_v29 = vsel %vm1339_vm7, %v8808_v38, %v5650_v21 }
 0x406   :  { %v2613_v51 = vpop.permute.xlu0 %2612  ;;  %6975 = vlog2.f32 %v2075_v42  ;;  %v6165_v42 = vld [vmem:[%s10459_s1 + $0x1a8] sm:$0xff]  ;;  %v1934_v36 = vsub.f32 0.0, %v1886_v20  ;;  %vm1341_vm13 = vcmp.gt.f32.partialorder %v8865_v33, 0.0 }
 0x407   :  { %v3091_v46 = vmin.f32 %v8842_v35, 0.0  ;;  %v2385_v7 = vpop.permute.xlu2 %2384  ;;  %v6972_v22 = vpop.eup %6971  ;;  %v8883_v3 = vadd.f32 %v2613_v51, %v8607_v43  ;;  %3926 = vmatpush.bf16.msrb.mxu2 %v6165_v42  ;;  %v2218_v42 = vadd.f32 %v2149_v49, %v1834_v10  ;;  %vm3043_vm11 = vcmp.gt.f32.partialorder %v8842_v35, 0.0 }
 0x408   :  { %v2504_v28 = vmul.f32 %v2385_v7, %v8851_v27  ;;  %v6974_v32 = vpop.eup %6973  ;;  %v1289_v38 = vpop.f32.mrf.mxu2 }
 0x409   :  { %v3145_v63 = vmul.f32 1.442695, %v3091_v46  ;;  %v5651_v46 = vadd.f32 -1.0, %v6972_v22  ;;  %v2076_v20 = vadd.f32 1.0, %v6974_v32  ;;  %v6164_v32 = vld [vmem:[%s10459_s1 + $0x1a0] sm:$0xff] }
 0x40a   :  { %2624 = vrot.lane.b32.xlu0 %v2504_v28, %s7501_s25  ;;  %v1389_v28 = vmin.f32 %v8865_v33, 0.0 }
 0x40b   :  { %6977 = vpow2.f32 %v3145_v63  ;;  %v1580_v51 = vsel %vm1340_vm9, %v8829_v62, %v5651_v46  ;;  %v7469_v62 = vld [vmem:[%s10461_s0 + $0xf8] sm:$0xff]  ;;  %v8909_v46 = vadd.f32 %v8862_v18, %v1289_v38  ;;  %3927 = vmatpush.bf16.msrb.mxu2 %v6164_v32 }
 0x40c   :  { %v2934_v7 = vpop.f32.mrf.mxu0  ;;  %v1481_v54 = vmul.f32 1.442695, %v1389_v28  ;;  %6979 = vpow2.f32 %v2010_v0  ;;  %v1606_v63 = vpack.c.bf16 %v1580_v51, %v1579_v29  ;;  %v6976_v0 = vpop.eup %6975 }
 0x40d   :  { %v8876_v30 = vadd.f32 %v8575_v11, %v2934_v7  ;;  %v1390_v10 = vmin.f32 %v8909_v46, 0.0  ;;  %vm1342_vm14 = vcmp.gt.f32.partialorder %v8909_v46, 0.0 }
 0x40e   :  { %v2615_v14 = vpop.permute.xlu1 %2614  ;;  %v2387_v48 = vpop.permute.xlu0 %2386  ;;  %6981 = vpow2.f32 %v1481_v54  ;;  %1789 = vmatmul.bf16.gmra.mxu3 %v1606_v63  ;;  %v2151_v54 = vmul.f32 0.6931472, %v6976_v0 }
 0x40f   :  { %v3092_v7 = vmin.f32 %v8876_v30, 0.0  ;;  %v8890_v22 = vadd.f32 %v2615_v14, %v8643_v12  ;;  %v2505_v39 = vmul.f32 %v2387_v48, %v8872_v57  ;;  %v2012_v14 = vmul.f32 1.442695, %v1934_v36  ;;  %v6163_v36 = vld [vmem:[%s10459_s1 + $0x198] sm:$0xff] }
 0x410   :  { %v1835_v48 = vmax.f32 %v8784_v2, 0.0  ;;  %v1483_v38 = vmul.f32 1.442695, %v1390_v10  ;;  %3928 = vmatpush.bf16.msrb.mxu2 %v6163_v36  ;;  %vm3044_vm12 = vcmp.gt.f32.partialorder %v8876_v30, 0.0 }
 0x411   :  { %v3147_v28 = vmul.f32 1.442695, %v3092_v7  ;;  %v5780_v21 = vpack.c.bf16 %v8890_v22, %v8883_v3  ;;  %2626 = vrot.lane.b32.xlu1 %v2505_v39, %s7501_s25  ;;  %v6978_v49 = vpop.eup %6977 }
 0x412   :  { %2398 = vrot.lane.b32.xlu0 %v7469_v62, %s7500_s24  ;;  %v6980_v7 = vpop.eup %6979  ;;  %v5830_v0 = vadd.f32 -1.0, %v6978_v49 }
 0x413   :  { %6983 = vpow2.f32 %v3147_v28  ;;  %v8924_v28 = vsel %vm1807_vm10, %v2218_v42, %v8780_v37  ;;  %v6162_v37 = vld [vmem:[%s10459_s1 + $0x190] sm:$0xff]  ;;  %v2077_v42 = vadd.f32 1.0, %v6980_v7 }
 0x414   :  { %v2937_v39 = vpop.f32.mrf.mxu0  ;;  %5781 = vmatmul.msk.bf16.gmra.mxu0 %vm8315_vm8, %v5780_v21  ;;  %6985 = vlog2.f32 %v2076_v20  ;;  %10550 = vst [vmem:[#allocation34_spill] sm:$0xff] %v8924_v28  ;;  %v6982_v32 = vpop.eup %6981  ;;  %3929 = vmatpush.bf16.msrb.mxu2 %v6162_v37  ;;  %v3283_v36 = vsel %vm3043_vm11, %v8842_v35, %v5830_v0 }
 0x415   :  { %v8916_v29 = vadd.f32 %v8575_v11, %v2937_v39  ;;  %6987 = vpow2.f32 %v2012_v14  ;;  %v2219_v39 = vadd.f32 %v2151_v54, %v1835_v48  ;;  %v7470_v14 = vld [vmem:[%s10461_s0 + $0x100] sm:$0xff]  ;;  %v1836_v48 = vmax.f32 %v8802_v47, 0.0 }
 0x416   :  { %v2617_v51 = vpop.permute.xlu1 %2616  ;;  %v2389_v21 = vpop.permute.xlu0 %2388  ;;  %6989 = vpow2.f32 %v1483_v38 }
 0x417   :  { %v3093_v20 = vmin.f32 %v8916_v29, 0.0  ;;  %v2506_v63 = vmul.f32 %v2389_v21, %v8924_v28  ;;  %v5652_v21 = vadd.f32 -1.0, %v6982_v32  ;;  %6991 = vlog2.f32 %v2077_v42 }
 0x418   :  { %vm3045_vm15 = vcmp.gt.f32.partialorder %v8916_v29, 0.0 }
 0x419   :  { %v6984_v62 = vpop.eup %6983  ;;  %2628 = vrot.lane.b32.xlu1 %v2506_v63, %s7501_s25  ;;  %v3149_v49 = vmul.f32 1.442695, %v3093_v20  ;;  %v6161_v20 = vld [vmem:[%s10459_s1 + $0x188] sm:$0xff] }
 0x41a   :  { %v5831_v43 = vadd.f32 -1.0, %v6984_v62  ;;  %2400 = vrot.lane.b32.xlu0 %v7470_v14, %s7500_s24  ;;  %v6986_v10 = vpop.eup %6985  ;;  %v8947_v14 = vsel %vm1807_vm10, %v2219_v39, %v8784_v2  ;;  %3930 = vmatpush.bf16.msrb.mxu2 %v6161_v20 }
 0x41b   :  { %v6988_v38 = vpop.eup %6987  ;;  %10551 = vst [vmem:[#allocation35_spill] sm:$0xff] %v8947_v14  ;;  %v2153_v0 = vmul.f32 0.6931472, %v6986_v10  ;;  %6993 = vpow2.f32 %v3149_v49 }
 0x41c   :  { %v2939_v54 = vpop.f32.mrf.mxu0  ;;  %v3284_v7 = vsel %vm3044_vm12, %v8876_v30, %v5831_v43  ;;  %v6990_v35 = vpop.eup %6989  ;;  %v8954_v30 = vadd.f32 %v2617_v51, %v8681_v55  ;;  %v1581_v51 = vsel %vm1341_vm13, %v8865_v33, %v5652_v21  ;;  %v2078_v42 = vadd.f32 1.0, %v6988_v38  ;;  %v6160_v33 = vld [vmem:[%s10459_s1 + $0x180] sm:$0xff] }
 0x41d   :  { %v8942_v63 = vadd.f32 %v8575_v11, %v2939_v54  ;;  %v3328_v62 = vpack.c.bf16 %v3284_v7, %v3283_v36  ;;  %v5653_v54 = vadd.f32 -1.0, %v6990_v35  ;;  %v7471_v7 = vld [vmem:[%s10461_s0 + $0x108] sm:$0xff]  ;;  %v2220_v38 = vadd.f32 %v2153_v0, %v1836_v48  ;;  %v6992_v35 = vpop.eup %6991 }
 0x41e   :  { %v2619_v43 = vpop.permute.xlu2 %2618  ;;  %v2391_v32 = vpop.permute.xlu1 %2390  ;;  %3931 = vmatpush.bf16.msrb.mxu2 %v6160_v33 }
 0x41f   :  { %v3094_v2 = vmin.f32 %v8942_v63, 0.0  ;;  %3439 = vmatmul.bf16.gmra.mxu1 %v3328_v62  ;;  %v8959_v39 = vadd.f32 %v2619_v43, %v8741_v50  ;;  %v2507_v37 = vmul.f32 %v2391_v32, %v8947_v14  ;;  %v1582_v21 = vsel %vm1342_vm14, %v8909_v46, %v5653_v54  ;;  %v8983_v62 = vld [vmem:[%s10460_s2 + $0x5] ss:$0 sm:$0xff] }
 0x420   :  { %v1607_v20 = vpack.c.bf16 %v1582_v21, %v1581_v51  ;;  %v1837_v46 = vmax.f32 %v8825_v31, 0.0  ;;  %v9000_v51 = vsel %vm1807_vm10, %v2220_v38, %v8802_v47  ;;  %vm3046_vm0 = vcmp.gt.f32.partialorder %v8942_v63, 0.0 }
 0x421   :  { %v3151_v10 = vmul.f32 1.442695, %v3094_v2  ;;  %v5783_v49 = vpack.c.bf16 %v8959_v39, %v8954_v30  ;;  %2630 = vrot.lane.b32.xlu2 %v2507_v37, %s7501_s25  ;;  %2402 = vrot.lane.b32.xlu1 %v7471_v7, %s7500_s24  ;;  %v6994_v32 = vpop.eup %6993  ;;  %10552 = vst [vmem:[#allocation36_spill] sm:$0xff] %v9000_v51 }
 0x422   :  { %1794 = vmatmul.bf16.gmra.mxu3 %v1607_v20 }
 0x423   :  { %6995 = vpow2.f32 %v3151_v10  ;;  %v2155_v10 = vmul.f32 0.6931472, %v6992_v35 }
 0x424   :  { %v2942_v43 = vpop.f32.mrf.mxu0  ;;  %5784 = vmatmul.msk.bf16.gmra.mxu0 %vm8315_vm8, %v5783_v49  ;;  %6997 = vlog2.f32 %v2078_v42  ;;  %v5832_v49 = vadd.f32 -1.0, %v6994_v32 }
 0x425   :  { %v8988_v2 = vadd.f32 %v8575_v11, %v2942_v43  ;;  %v1292_v33 = vpop.f32.mrf.mxu2  ;;  %v7472_v43 = vld [vmem:[%s10461_s0 + $0x110] sm:$0xff]  ;;  %v2221_v35 = vadd.f32 %v2155_v10, %v1837_v46 }
 0x426   :  { %v3425_v48 = vpop.f32.mrf.mxu1  ;;  %v8991_v0 = vpop.permute.xlu2 %2620  ;;  %v9016_v52 = vadd.f32 %v8862_v18, %v1292_v33 }
 0x427   :  { %v3095_v37 = vmin.f32 %v8988_v2, 0.0  ;;  %v8995_v54 = vadd.f32 %v8983_v62, %v3425_v48  ;;  %v2393_v42 = vpop.permute.xlu1 %2392  ;;  %vm3047_vm1 = vcmp.gt.f32.partialorder %v8988_v2, 0.0 }
 0x428   :  { %v2508_v7 = vmul.f32 %v2393_v42, %v9000_v51  ;;  %v3285_v42 = vsel %vm3045_vm15, %v8916_v29, %v5832_v49  ;;  %v9022_v29 = vsel %vm1807_vm10, %v2221_v35, %v8825_v31  ;;  %vm1343_vm5 = vcmp.gt.f32.partialorder %v9016_v52, 0.0 }
 0x429   :  { %v6996_v21 = vpop.eup %6995  ;;  %v3593_v20 = vmin.f32 %v8995_v54, 0.0  ;;  %2404 = vrot.lane.b32.xlu1 %v7472_v43, %s7500_s24  ;;  %v3153_v38 = vmul.f32 1.442695, %v3095_v37  ;;  %10553 = vst [vmem:[#allocation37_spill] sm:$0xff] %v9022_v29  ;;  %vm3545_vm3 = vcmp.gt.f32.partialorder %v8995_v54, 0.0 }
 0x42a   :  { %v5833_v48 = vadd.f32 -1.0, %v6996_v21  ;;  %2632 = vrot.lane.b32.xlu2 %v2508_v7, %s7501_s25  ;;  %v6998_v47 = vpop.eup %6997  ;;  %v1838_v21 = vmax.f32 %v8845_v41, 0.0 }
 0x42b   :  { %v3641_v55 = vmul.f32 1.442695, %v3593_v20  ;;  %v2157_v43 = vmul.f32 0.6931472, %v6998_v47  ;;  %6999 = vpow2.f32 %v3153_v38  ;;  %v9034_v47 = vpop.f32.mrf.mxu3  ;;  %v9039_v38 = vld [vmem:[%s10460_s2 + $0x4] ss:$0 sm:$0xff] }
 0x42c   :  { %v2944_v32 = vpop.f32.mrf.mxu0  ;;  %v3286_v36 = vsel %vm3046_vm0, %v8942_v63, %v5833_v48  ;;  %v1391_v63 = vmin.f32 %v9016_v52, 0.0 }
 0x42d   :  { %v2945_v50 = vadd.f32 %v8575_v11, %v2944_v32  ;;  %v3329_v12 = vpack.c.bf16 %v3286_v36, %v3285_v42  ;;  %v1294_v36 = vpop.f32.mrf.mxu2  ;;  %7001 = vpow2.f32 %v3641_v55  ;;  %v2222_v33 = vadd.f32 %v2157_v43, %v1838_v21 }
 0x42e   :  { %v3427_v7 = vpop.f32.mrf.mxu1  ;;  %v2395_v4 = vpop.permute.xlu2 %2394  ;;  %v1485_v20 = vmul.f32 1.442695, %v1391_v63 }
 0x42f   :  { %v3096_v37 = vmin.f32 %v2945_v50, 0.0  ;;  %v3428_v46 = vadd.f32 %v8983_v62, %v3427_v7  ;;  %3444 = vmatmul.bf16.gmra.mxu1 %v3329_v12  ;;  %v2509_v11 = vmul.f32 %v2395_v4, %v9022_v29  ;;  %v7473_v12 = vld [vmem:[%s10461_s0 + $0x118] sm:$0xff]  ;;  %v9032_v4 = vadd.f32 %v8862_v18, %v1294_v36 }
 0x430   :  { %v9047_v18 = vsel %vm1807_vm10, %v2222_v33, %v8845_v41  ;;  %v7475_v33 = vld [vmem:[%s10461_s0 + $0x120] sm:$0xff]  ;;  %vm3048_vm2 = vcmp.gt.f32.partialorder %v2945_v50, 0.0 }
 0x431   :  { %v3155_v10 = vmul.f32 1.442695, %v3096_v37  ;;  %v3594_v49 = vmin.f32 %v3428_v46, 0.0  ;;  %2634 = vrot.lane.b32.xlu0 %v2509_v11, %s7501_s25  ;;  %v7000_v55 = vpop.eup %6999  ;;  %10554 = vst [vmem:[#allocation38_spill] sm:$0xff] %v9047_v18  ;;  %v1392_v21 = vmin.f32 %v9032_v4, 0.0  ;;  %vm3546_vm4 = vcmp.gt.f32.partialorder %v3428_v46, 0.0 }
 0x432   :  { %2406 = vrot.lane.b32.xlu2 %v7473_v12, %s7500_s24  ;;  %v5834_v63 = vadd.f32 -1.0, %v7000_v55  ;;  %vm1344_vm6 = vcmp.gt.f32.partialorder %v9032_v4, 0.0 }
 0x433   :  { %7003 = vpow2.f32 %v3155_v10  ;;  %v3643_v31 = vmul.f32 1.442695, %v3594_v49  ;;  %v7002_v43 = vpop.eup %7001  ;;  %v1487_v36 = vmul.f32 1.442695, %v1392_v21  ;;  %v9065_v23 = vpop.f32.mrf.mxu3 }
 0x434   :  { %v2947_v48 = vpop.f32.mrf.mxu0  ;;  %7005 = vpow2.f32 %v1485_v20  ;;  %v5920_v12 = vadd.f32 -1.0, %v7002_v43 }
 0x435   :  { %7007 = vpow2.f32 %v3643_v31  ;;  %v9042_v35 = vadd.f32 %v9039_v38, %v2947_v48 }
 0x436   :  { %v3430_v32 = vpop.f32.mrf.mxu1  ;;  %v2397_v42 = vpop.permute.xlu2 %2396  ;;  %7009 = vpow2.f32 %v1487_v36  ;;  %v3785_v36 = vsel %vm3545_vm3, %v8995_v54, %v5920_v12 }
 0x437   :  { %v3097_v7 = vmin.f32 %v9042_v35, 0.0  ;;  %v9052_v37 = vadd.f32 %v8983_v62, %v3430_v32  ;;  %v2510_v11 = vmul.f32 %v2397_v42, %v9047_v18  ;;  %v3287_v42 = vsel %vm3047_vm1, %v8988_v2, %v5834_v63 }
 0x438   :  { %vm3049_vm7 = vcmp.gt.f32.partialorder %v9042_v35, 0.0 }
 0x439   :  { %v7004_v10 = vpop.eup %7003  ;;  %v3595_v41 = vmin.f32 %v9052_v37, 0.0  ;;  %2636 = vrot.lane.b32.xlu0 %v2510_v11, %s7501_s25  ;;  %v3157_v48 = vmul.f32 1.442695, %v3097_v7  ;;  %vm3547_vm11 = vcmp.gt.f32.partialorder %v9052_v37, 0.0 }
 0x43a   :  { %v7006_v49 = vpop.eup %7005  ;;  %v5835_v20 = vadd.f32 -1.0, %v7004_v10  ;;  %2408 = vrot.lane.b32.xlu2 %v7475_v33, %s7500_s24 }
 0x43b   :  { %v7008_v31 = vpop.eup %7007  ;;  %v5654_v10 = vadd.f32 -1.0, %v7006_v49  ;;  %v3645_v44 = vmul.f32 1.442695, %v3595_v41  ;;  %7011 = vpow2.f32 %v3157_v48 }
 0x43c   :  { %v5921_v55 = vadd.f32 -1.0, %v7008_v31  ;;  %v2949_v32 = vpop.f32.mrf.mxu0  ;;  %v3288_v21 = vsel %vm3048_vm2, %v2945_v50, %v5835_v20  ;;  %v7010_v2 = vpop.eup %7009 }
 0x43d   :  { %v2950_v43 = vadd.f32 %v9039_v38, %v2949_v32  ;;  %v3330_v11 = vpack.c.bf16 %v3288_v21, %v3287_v42  ;;  %v5655_v49 = vadd.f32 -1.0, %v7010_v2  ;;  %v1583_v20 = vsel %vm1343_vm5, %v9016_v52, %v5654_v10 }
 0x43e   :  { %v3786_v33 = vsel %vm3546_vm4, %v3428_v46, %v5921_v55  ;;  %v3432_v26 = vpop.f32.mrf.mxu1  ;;  %7013 = vpow2.f32 %v3645_v44  ;;  %v7476_v46 = vld [vmem:[%s10461_s0 + $0x128] sm:$0xff]  ;;  %v1767_v44 = vpop.f32.mrf.mxu3 }
 0x43f   :  { %v3833_v7 = vpack.c.bf16 %v3786_v33, %v3785_v36  ;;  %v3098_v31 = vmin.f32 %v2950_v43, 0.0  ;;  %3449 = vmatmul.bf16.gmra.mxu1 %v3330_v11  ;;  %v3433_v50 = vadd.f32 %v8983_v62, %v3432_v26  ;;  %v1584_v12 = vsel %vm1344_vm6, %v9032_v4, %v5655_v49  ;;  %v7477_v36 = vld [vmem:[%s10461_s0 + $0x130] sm:$0xff] }
 0x440   :  { %v1608_v26 = vpack.c.bf16 %v1584_v12, %v1583_v20  ;;  %vm3050_vm9 = vcmp.gt.f32.partialorder %v2950_v43, 0.0 }
 0x441   :  { %v3159_v63 = vmul.f32 1.442695, %v3098_v31  ;;  %3932 = vmatmul.bf16.vlgmr.msrb.gmra.mxu2 %v3833_v7  ;;  %v3596_v54 = vmin.f32 %v3433_v50, 0.0  ;;  %2410 = vrot.lane.b32.xlu0 %v7476_v46, %s7500_s24  ;;  %v7012_v48 = vpop.eup %7011  ;;  %vm3548_vm12 = vcmp.gt.f32.partialorder %v3433_v50, 0.0 }
 0x442   :  { %1799 = vmatmul.bf16.gmra.mxu3 %v1608_v26  ;;  %v5836_v42 = vadd.f32 -1.0, %v7012_v48 }
 0x443   :  { %7015 = vpow2.f32 %v3159_v63  ;;  %v3647_v41 = vmul.f32 1.442695, %v3596_v54 }
 0x444   :  { %v7014_v52 = vpop.eup %7013  ;;  %v3289_v7 = vsel %vm3049_vm7, %v9042_v35, %v5836_v42 }
 0x445   :  { %7017 = vpow2.f32 %v3647_v41  ;;  %v5922_v4 = vadd.f32 -1.0, %v7014_v52 }
 0x446   :  { %v3435_v55 = vpop.f32.mrf.mxu1  ;;  %v1770_v41 = vpop.f32.mrf.mxu3 }
 0x447   :  { %v3436_v32 = vadd.f32 %v8983_v62, %v3435_v55  ;;  %v3787_v46 = vsel %vm3547_vm11, %v9052_v37, %v5922_v4  ;;  %v9094_v37 = vadd.f32 %v8755_v6, %v9065_v23 }
 0x449   :  { %v7016_v21 = vpop.eup %7015  ;;  %v3597_v11 = vmin.f32 %v3436_v32, 0.0  ;;  %2412 = vrot.lane.b32.xlu0 %v7477_v36, %s7500_s24  ;;  %vm3549_vm13 = vcmp.gt.f32.partialorder %v3436_v32, 0.0 }
 0x44a   :  { %v5837_v10 = vadd.f32 -1.0, %v7016_v21 }
 0x44b   :  { %v7018_v33 = vpop.eup %7017  ;;  %v3649_v63 = vmul.f32 1.442695, %v3597_v11 }
 0x44c   :  { %v3290_v31 = vsel %vm3050_vm9, %v2950_v43, %v5837_v10  ;;  %v5923_v2 = vadd.f32 -1.0, %v7018_v33  ;;  %v9089_v43 = vadd.f32 %v8755_v6, %v9034_v47  ;;  %v1888_v33 = vand.u32 2147483647, %v9094_v37 }
 0x44d   :  { %v3331_v49 = vpack.c.bf16 %v3290_v31, %v3289_v7  ;;  %7019 = vpow2.f32 %v3649_v63  ;;  %v9102_v63 = vadd.f32 %v8755_v6, %v1767_v44  ;;  %v9110_v44 = vadd.f32 %v8755_v6, %v1770_v41 }
 0x44e   :  { %v3437_v20 = vpop.f32.mrf.mxu1  ;;  %v3788_v12 = vsel %vm3548_vm12, %v3433_v50, %v5923_v2  ;;  %v1887_v52 = vand.u32 2147483647, %v9089_v43  ;;  %v1772_v42 = vpop.f32.mrf.mxu3  ;;  %v1936_v23 = vsub.f32 0.0, %v1888_v33 }
 0x44f   :  { %v3438_v54 = vadd.f32 %v8983_v62, %v3437_v20  ;;  %3454 = vmatmul.bf16.gmra.mxu1 %v3331_v49  ;;  %v3834_v26 = vpack.c.bf16 %v3788_v12, %v3787_v46  ;;  %v9097_v10 = vadd.f32 %v8755_v6, %v1772_v42 }
 0x450   :  { %v1935_v36 = vsub.f32 0.0, %v1887_v52 }
 0x451   :  { %v3598_v48 = vmin.f32 %v3438_v54, 0.0  ;;  %3937 = vmatmul.bf16.gmra.mxu2 %v3834_v26  ;;  %vm3550_vm14 = vcmp.gt.f32.partialorder %v3438_v54, 0.0  ;;  %v1891_v31 = vand.u32 2147483647, %v9097_v10 }
 0x452   :  { %v2014_v2 = vmul.f32 1.442695, %v1935_v36 }
 0x453   :  { %v3651_v35 = vmul.f32 1.442695, %v3598_v48  ;;  %v7020_v55 = vpop.eup %7019  ;;  %v1939_v20 = vsub.f32 0.0, %v1891_v31  ;;  %v9119_v31 = vadd.f32 %v8991_v0, %v8748_v5 }
 0x454   :  { %v5924_v21 = vadd.f32 -1.0, %v7020_v55 }
 0x455   :  { %7021 = vpow2.f32 %v3651_v35  ;;  %v2022_v12 = vmul.f32 1.442695, %v1939_v20  ;;  %10555 = vst [vmem:[#allocation39_spill] sm:$0xff] %v9119_v31 }
 0x456   :  { %v3789_v4 = vsel %vm3549_vm13, %v3436_v32, %v5924_v21  ;;  %v1775_v49 = vpop.f32.mrf.mxu3  ;;  %7023 = vpow2.f32 %v2014_v2  ;;  %v1889_v32 = vand.u32 2147483647, %v9102_v63 }
 0x457   :  { %v9105_v46 = vadd.f32 %v8755_v6, %v1775_v49 }
 0x458   :  { %v1937_v48 = vsub.f32 0.0, %v1889_v32 }
 0x459   :  { %v1892_v26 = vand.u32 2147483647, %v9105_v46 }
 0x45a   :  { %v2018_v52 = vmul.f32 1.442695, %v1937_v48 }
 0x45b   :  { %v7022_v11 = vpop.eup %7021  ;;  %v1940_v55 = vsub.f32 0.0, %v1892_v26 }
 0x45c   :  { %v5925_v50 = vadd.f32 -1.0, %v7022_v11  ;;  %v7024_v35 = vpop.eup %7023  ;;  %v1890_v11 = vand.u32 2147483647, %v9110_v44 }
 0x45d   :  { %v2079_v42 = vadd.f32 1.0, %v7024_v35 }
 0x45e   :  { %v3790_v47 = vsel %vm3550_vm14, %v3438_v54, %v5925_v50  ;;  %v2016_v54 = vmul.f32 1.442695, %v1936_v23  ;;  %v2024_v50 = vmul.f32 1.442695, %v1940_v55  ;;  %v1938_v2 = vsub.f32 0.0, %v1890_v11 }
 0x45f   :  { %v3835_v7 = vpack.c.bf16 %v3790_v47, %v3789_v4 }
 0x460   :  { %7025 = vpow2.f32 %v2016_v54  ;;  %v2020_v48 = vmul.f32 1.442695, %v1938_v2 }
 0x461   :  { %3942 = vmatmul.bf16.gmra.mxu2 %v3835_v7  ;;  %7027 = vpow2.f32 %v2022_v12 }
 0x462   :  { %7029 = vpow2.f32 %v2018_v52 }
 0x463   :  { %7031 = vlog2.f32 %v2079_v42 }
 0x464   :  { %7033 = vpow2.f32 %v2024_v50 }
 0x466   :  { %v7026_v21 = vpop.eup %7025 }
 0x467   :  { %v7028_v47 = vpop.eup %7027  ;;  %v2080_v33 = vadd.f32 1.0, %v7026_v21  ;;  %v1839_v21 = vmax.f32 %v9089_v43, 0.0 }
 0x468   :  { %v2083_v49 = vadd.f32 1.0, %v7028_v47  ;;  %v7030_v54 = vpop.eup %7029 }
 0x469   :  { %v7032_v26 = vpop.eup %7031  ;;  %7035 = vlog2.f32 %v2080_v33  ;;  %v2081_v52 = vadd.f32 1.0, %v7030_v54 }
 0x46a   :  { %7037 = vlog2.f32 %v2083_v49  ;;  %v7034_v55 = vpop.eup %7033  ;;  %v1777_v49 = vpop.f32.mrf.mxu3 }
 0x46b   :  { %v2084_v47 = vadd.f32 1.0, %v7034_v55 }
 0x471   :  { %v2952_v36 = vpop.f32.mrf.mxu0 }
 0x472   :  { %v9114_v4 = vadd.f32 %v9039_v38, %v2952_v36  ;;  %v2159_v36 = vmul.f32 0.6931472, %v7032_v26  ;;  %v1843_v26 = vmax.f32 %v9097_v10, 0.0 }
 0x474   :  { %v3099_v7 = vmin.f32 %v9114_v4, 0.0  ;;  %v2623_v41 = vpop.permute.xlu0 %2622  ;;  %v2223_v2 = vadd.f32 %v2159_v36, %v1839_v21  ;;  %vm3051_vm15 = vcmp.gt.f32.partialorder %v9114_v4, 0.0 }
 0x475   :  { %v9122_v23 = vadd.f32 %v2623_v41, %v8816_v16 }
 0x476   :  { %v3161_v12 = vmul.f32 1.442695, %v3099_v7  ;;  %v7036_v7 = vpop.eup %7035 }
 0x477   :  { %10556 = vst [vmem:[#allocation40_spill] sm:$0xff] %v9122_v23  ;;  %v5786_v32 = vpack.c.bf16 %v9122_v23, %v9119_v31  ;;  %v7038_v41 = vpop.eup %7037  ;;  %v2161_v5 = vmul.f32 0.6931472, %v7036_v7 }
 0x478   :  { %7039 = vpow2.f32 %v3161_v12  ;;  %v1840_v12 = vmax.f32 %v9094_v37, 0.0  ;;  %v2167_v55 = vmul.f32 0.6931472, %v7038_v41 }
 0x479   :  { %v2954_v35 = vpop.f32.mrf.mxu0  ;;  %5787 = vmatmul.msk.bf16.gmra.mxu0 %vm8315_vm8, %v5786_v32  ;;  %7041 = vpow2.f32 %v2020_v48 }
 0x47a   :  { %v2955_v0 = vadd.f32 %v9039_v38, %v2954_v35  ;;  %7043 = vlog2.f32 %v2081_v52 }
 0x47b   :  { %v9131_v42 = vpop.permute.xlu2 %2630 }
 0x47c   :  { %v3100_v11 = vmin.f32 %v2955_v0, 0.0  ;;  %v2625_v50 = vpop.permute.xlu0 %2624  ;;  %vm3052_vm0 = vcmp.gt.f32.partialorder %v2955_v0, 0.0 }
 0x47d   :  { %v9140_v52 = vadd.f32 %v2625_v50, %v8851_v27  ;;  %v9155_v27 = vadd.f32 %v8755_v6, %v1777_v49 }
 0x47e   :  { %v3163_v33 = vmul.f32 1.442695, %v3100_v11  ;;  %v7040_v35 = vpop.eup %7039 }
 0x47f   :  { %v7042_v20 = vpop.eup %7041 }
 0x480   :  { %7045 = vpow2.f32 %v3163_v33  ;;  %v7044_v7 = vpop.eup %7043  ;;  %v2082_v50 = vadd.f32 1.0, %v7042_v20  ;;  %v1841_v20 = vmax.f32 %v9102_v63, 0.0 }
 0x481   :  { %v2957_v32 = vpop.f32.mrf.mxu0  ;;  %7047 = vlog2.f32 %v2084_v47  ;;  %v9151_v47 = vsel %vm1807_vm10, %v2223_v2, %v9089_v43  ;;  %v2227_v43 = vadd.f32 %v2167_v55, %v1843_v26  ;;  %v2163_v31 = vmul.f32 0.6931472, %v7044_v7 }
 0x482   :  { %v9135_v54 = vadd.f32 %v9039_v38, %v2957_v32  ;;  %10557 = vst [vmem:[#allocation41_spill] sm:$0xff] %v9151_v47  ;;  %v5838_v32 = vadd.f32 -1.0, %v7040_v35  ;;  %7049 = vlog2.f32 %v2082_v50  ;;  %v1844_v26 = vmax.f32 %v9105_v46, 0.0 }
 0x483   :  { %v2627_v48 = vpop.permute.xlu1 %2626 }
 0x484   :  { %v3101_v21 = vmin.f32 %v9135_v54, 0.0  ;;  %v9143_v11 = vpop.permute.xlu2 %2632  ;;  %v9146_v36 = vadd.f32 %v2627_v48, %v8872_v57  ;;  %v2399_v33 = vpop.permute.xlu0 %2398  ;;  %v2224_v57 = vadd.f32 %v2161_v5, %v1840_v12  ;;  %v3291_v49 = vsel %vm3051_vm15, %v9114_v4, %v5838_v32 }
 0x485   :  { %v2511_v41 = vmul.f32 %v2399_v33, %v9151_v47  ;;  %v1893_v5 = vand.u32 2147483647, %v9155_v27  ;;  %vm3053_vm1 = vcmp.gt.f32.partialorder %v9135_v54, 0.0 }
 0x486   :  { %v7046_v16 = vpop.eup %7045  ;;  %v5789_v48 = vpack.c.bf16 %v9146_v36, %v9140_v52  ;;  %v3165_v35 = vmul.f32 1.442695, %v3101_v21  ;;  %v1780_v21 = vpop.f32.mrf.mxu3  ;;  %v9178_v4 = vsel %vm1807_vm10, %v2224_v57, %v9094_v37 }
 0x487   :  { %v5839_v23 = vadd.f32 -1.0, %v7046_v16  ;;  %2638 = vrot.lane.b32.xlu1 %v2511_v41, %s7501_s25  ;;  %v7048_v2 = vpop.eup %7047  ;;  %v9173_v41 = vsel %vm1807_vm10, %v2227_v43, %v9097_v10  ;;  %10559 = vst [vmem:[#allocation43_spill] sm:$0xff] %v9178_v4  ;;  %v9190_v10 = vld [vmem:[%s10460_s2 + $0x3] ss:$0 sm:$0xff]  ;;  %v1941_v43 = vsub.f32 0.0, %v1893_v5  ;;  %v1842_v5 = vmax.f32 %v9110_v44, 0.0 }
 0x488   :  { %v2169_v55 = vmul.f32 0.6931472, %v7048_v2  ;;  %10558 = vst [vmem:[#allocation42_spill] sm:$0xff] %v9173_v41  ;;  %7051 = vpow2.f32 %v3165_v35  ;;  %v9193_v57 = vadd.f32 %v9190_v10, %v1780_v21 }
 0x489   :  { %v2959_v6 = vpop.f32.mrf.mxu0  ;;  %5790 = vmatmul.msk.bf16.gmra.mxu0 %vm8315_vm8, %v5789_v48  ;;  %v3292_v33 = vsel %vm3052_vm0, %v2955_v0, %v5839_v23  ;;  %v9182_v23 = vadd.f32 %v9131_v42, %v8947_v14 }
 0x48a   :  { %v2960_v16 = vadd.f32 %v9039_v38, %v2959_v6  ;;  %v3332_v12 = vpack.c.bf16 %v3292_v33, %v3291_v49  ;;  %v2225_v6 = vadd.f32 %v2163_v31, %v1841_v20  ;;  %v7050_v49 = vpop.eup %7049  ;;  %v2228_v33 = vadd.f32 %v2169_v55, %v1844_v26 }
 0x48b   :  { %v2629_v48 = vpop.permute.xlu1 %2628 }
 0x48c   :  { %v3102_v0 = vmin.f32 %v2960_v16, 0.0  ;;  %3459 = vmatmul.bf16.gmra.mxu1 %v3332_v12  ;;  %v2407_v7 = vpop.permute.xlu2 %2406  ;;  %v9185_v32 = vadd.f32 %v2629_v48, %v8924_v28  ;;  %v2401_v50 = vpop.permute.xlu0 %2400  ;;  %v1894_v12 = vand.u32 2147483647, %v9193_v57  ;;  %v9215_v26 = vsel %vm1807_vm10, %v2228_v33, %v9105_v46  ;;  %v7479_v46 = vld [vmem:[%s10461_s0 + $0x138] sm:$0xff] }
 0x48d   :  { %v2515_v37 = vmul.f32 %v2407_v7, %v9173_v41  ;;  %v2512_v42 = vmul.f32 %v2401_v50, %v9178_v4  ;;  %v2026_v7 = vmul.f32 1.442695, %v1941_v43  ;;  %vm3054_vm2 = vcmp.gt.f32.partialorder %v2960_v16, 0.0 }
 0x48e   :  { %10560 = vst [vmem:[#allocation44_spill] sm:$0xff] %v9185_v32  ;;  %v3167_v2 = vmul.f32 1.442695, %v3102_v0  ;;  %v7052_v48 = vpop.eup %7051  ;;  %v2165_v0 = vmul.f32 0.6931472, %v7050_v49  ;;  %v1942_v43 = vsub.f32 0.0, %v1894_v12  ;;  %v5792_v35 = vpack.c.bf16 %v9182_v23, %v9185_v32 }
 0x48f   :  { %2646 = vrot.lane.b32.xlu0 %v2515_v37, %s7501_s25  ;;  %2640 = vrot.lane.b32.xlu1 %v2512_v42, %s7501_s25  ;;  %v9209_v37 = vsel %vm1807_vm10, %v2225_v6, %v9102_v63  ;;  %v1845_v28 = vmax.f32 %v9155_v27, 0.0 }
 0x490   :  { %7053 = vpow2.f32 %v3167_v2  ;;  %10561 = vst [vmem:[#allocation45_spill] sm:$0xff] %v9209_v37  ;;  %v5840_v2 = vadd.f32 -1.0, %v7052_v48  ;;  %v2226_v63 = vadd.f32 %v2165_v0, %v1842_v5  ;;  %v2028_v12 = vmul.f32 1.442695, %v1942_v43 }
 0x491   :  { %v2962_v21 = vpop.f32.mrf.mxu0  ;;  %7055 = vpow2.f32 %v2026_v7 }
 0x492   :  { %v9203_v50 = vadd.f32 %v9039_v38, %v2962_v21  ;;  %v3293_v7 = vsel %vm3053_vm1, %v9135_v54, %v5840_v2 }
 0x493   :  { %v2403_v31 = vpop.permute.xlu1 %2402 }
 0x494   :  { %v3103_v20 = vmin.f32 %v9203_v50, 0.0  ;;  %v2409_v55 = vpop.permute.xlu2 %2408  ;;  %v2513_v42 = vmul.f32 %v2403_v31, %v9209_v37  ;;  %vm3055_vm3 = vcmp.gt.f32.partialorder %v9203_v50, 0.0 }
 0x495   :  { %v2516_v49 = vmul.f32 %v2409_v55, %v9215_v26  ;;  %v6175_v55 = vld [vmem:[%s10459_s1 + $0x1f8] sm:$0xff] }
 0x496   :  { %v7054_v21 = vpop.eup %7053  ;;  %2642 = vrot.lane.b32.xlu2 %v2513_v42, %s7501_s25  ;;  %v3169_v33 = vmul.f32 1.442695, %v3103_v20  ;;  %v9238_v42 = vsel %vm1807_vm10, %v2226_v63, %v9110_v44  ;;  %4432 = vmatpush.bf16.msrb.mxu3 %v6175_v55  ;;  %v7480_v63 = vld [vmem:[%s10461_s0 + $0x158] sm:$0xff] }
 0x497   :  { %v5841_v6 = vadd.f32 -1.0, %v7054_v21  ;;  %2648 = vrot.lane.b32.xlu0 %v2516_v49, %s7501_s25  ;;  %2414 = vrot.lane.b32.xlu1 %v7479_v46, %s7500_s24  ;;  %10562 = vst [vmem:[#allocation46_spill] sm:$0xff] %v9238_v42  ;;  %v7056_v43 = vpop.eup %7055 }
 0x498   :  { %7057 = vpow2.f32 %v3169_v33  ;;  %v2085_v21 = vadd.f32 1.0, %v7056_v43 }
 0x499   :  { %v2964_v48 = vpop.f32.mrf.mxu0  ;;  %5793 = vmatmul.msk.bf16.gmra.mxu0 %vm8315_vm8, %v5792_v35  ;;  %v3294_v5 = vsel %vm3054_vm2, %v2960_v16, %v5841_v6  ;;  %7059 = vpow2.f32 %v2028_v12  ;;  %v7481_v6 = vld [vmem:[%s10461_s0 + $0x140] sm:$0xff] }
 0x49a   :  { %v2965_v0 = vadd.f32 %v9039_v38, %v2964_v48  ;;  %v3333_v31 = vpack.c.bf16 %v3294_v5, %v3293_v7 }
 0x49b   :  { %v2405_v20 = vpop.permute.xlu1 %2404 }
 0x49c   :  { %v3104_v49 = vmin.f32 %v2965_v0, 0.0  ;;  %v3440_v35 = vpop.f32.mrf.mxu1  ;;  %3464 = vmatmul.bf16.gmra.mxu1 %v3333_v31  ;;  %v2514_v54 = vmul.f32 %v2405_v20, %v9238_v42  ;;  %v9260_v20 = vadd.f32 %v9143_v11, %v9000_v51  ;;  %vm3056_vm4 = vcmp.gt.f32.partialorder %v2965_v0, 0.0 }
 0x49d   :  { %v9242_v16 = vadd.f32 %v8983_v62, %v3440_v35 }
 0x49e   :  { %v3171_v2 = vmul.f32 1.442695, %v3104_v49  ;;  %2644 = vrot.lane.b32.xlu2 %v2514_v54, %s7501_s25  ;;  %v7058_v33 = vpop.eup %7057  ;;  %10563 = vst [vmem:[#allocation47_spill] sm:$0xff] %v9260_v20 }
 0x49f   :  { %v3599_v44 = vmin.f32 %v9242_v16, 0.0  ;;  %2422 = vrot.lane.b32.xlu0 %v7480_v63, %s7500_s24  ;;  %2416 = vrot.lane.b32.xlu1 %v7481_v6, %s7500_s24  ;;  %v7060_v48 = vpop.eup %7059  ;;  %v5842_v43 = vadd.f32 -1.0, %v7058_v33  ;;  %v7483_v6 = vld [vmem:[%s10461_s0 + $0x160] sm:$0xff]  ;;  %vm3551_vm5 = vcmp.gt.f32.partialorder %v9242_v16, 0.0 }
 0x4a0   :  { %7061 = vpow2.f32 %v3171_v2  ;;  %v2086_v2 = vadd.f32 1.0, %v7060_v48 }
 0x4a1   :  { %v2967_v46 = vpop.f32.mrf.mxu0  ;;  %7063 = vlog2.f32 %v2085_v21  ;;  %v3653_v7 = vmul.f32 1.442695, %v3599_v44  ;;  %v7482_v21 = vld [vmem:[%s10461_s0 + $0x148] sm:$0xff] }
 0x4a2   :  { %v9255_v12 = vadd.f32 %v9039_v38, %v2967_v46  ;;  %v6174_v46 = vld [vmem:[%s10459_s1 + $0x1f0] sm:$0xff] }
 0x4a3   :  { %v2635_v55 = vpop.permute.xlu0 %2634  ;;  %7065 = vpow2.f32 %v3653_v7  ;;  %4433 = vmatpush.bf16.msrb.mxu3 %v6174_v46 }
 0x4a4   :  { %v3105_v5 = vmin.f32 %v9255_v12, 0.0  ;;  %v3442_v31 = vpop.f32.mrf.mxu1  ;;  %v9266_v35 = vadd.f32 %v2635_v55, %v9022_v29  ;;  %7067 = vlog2.f32 %v2086_v2  ;;  %vm3057_vm7 = vcmp.gt.f32.partialorder %v9255_v12, 0.0 }
 0x4a5   :  { %v9263_v49 = vadd.f32 %v8983_v62, %v3442_v31 }
 0x4a6   :  { %10564 = vst [vmem:[#allocation48_spill] sm:$0xff] %v9266_v35  ;;  %v7062_v54 = vpop.eup %7061  ;;  %2418 = vrot.lane.b32.xlu2 %v7482_v21, %s7500_s24  ;;  %v3173_v33 = vmul.f32 1.442695, %v3105_v5  ;;  %v5795_v48 = vpack.c.bf16 %v9266_v35, %v9260_v20  ;;  %v6173_v5 = vld [vmem:[%s10459_s1 + $0x1e8] sm:$0xff] }
 0x4a7   :  { %v5843_v44 = vadd.f32 -1.0, %v7062_v54  ;;  %v3600_v11 = vmin.f32 %v9263_v49, 0.0  ;;  %2424 = vrot.lane.b32.xlu0 %v7483_v6, %s7500_s24  ;;  %v7064_v7 = vpop.eup %7063  ;;  %v3295_v54 = vsel %vm3055_vm3, %v9203_v50, %v5842_v43  ;;  %4434 = vmatpush.bf16.msrb.mxu3 %v6173_v5  ;;  %vm3552_vm6 = vcmp.gt.f32.partialorder %v9263_v49, 0.0  ;;  %v6171_v5 = vld [vmem:[%s10459_s1 + $0x1d8] sm:$0xff] }
 0x4a9   :  { %v3655_v31 = vmul.f32 1.442695, %v3600_v11  ;;  %v2969_v55 = vpop.f32.mrf.mxu0  ;;  %v3296_v21 = vsel %vm3056_vm4, %v2965_v0, %v5843_v44  ;;  %5796 = vmatmul.msk.bf16.gmra.mxu0 %vm8315_vm8, %v5795_v48  ;;  %v2171_v0 = vmul.f32 0.6931472, %v7064_v7  ;;  %v7066_v43 = vpop.eup %7065  ;;  %v7484_v44 = vld [vmem:[%s10461_s0 + $0x150] sm:$0xff] }
 0x4aa   :  { %v2970_v6 = vadd.f32 %v9039_v38, %v2969_v55  ;;  %v3334_v63 = vpack.c.bf16 %v3296_v21, %v3295_v54  ;;  %v5926_v48 = vadd.f32 -1.0, %v7066_v43  ;;  %v1846_v54 = vmax.f32 %v9193_v57, 0.0 }
 0x4ab   :  { %7069 = vpow2.f32 %v3655_v31  ;;  %v9293_v50 = vpop.permute.xlu0 %2636  ;;  %v2229_v7 = vadd.f32 %v2171_v0, %v1845_v28 }
 0x4ac   :  { %7071 = vpow2.f32 %v3173_v33  ;;  %v3106_v11 = vmin.f32 %v2970_v6, 0.0  ;;  %v3445_v14 = vpop.f32.mrf.mxu1  ;;  %3469 = vmatmul.bf16.gmra.mxu1 %v3334_v63  ;;  %v6172_v63 = vld [vmem:[%s10459_s1 + $0x1e0] sm:$0xff]  ;;  %v7068_v33 = vpop.eup %7067  ;;  %v3791_v43 = vsel %vm3551_vm5, %v9242_v16, %v5926_v48  ;;  %vm3058_vm9 = vcmp.gt.f32.partialorder %v2970_v6, 0.0 }
 0x4ad   :  { %v9296_v38 = vadd.f32 %v8983_v62, %v3445_v14  ;;  %4435 = vmatpush.bf16.msrb.mxu3 %v6172_v63  ;;  %v9315_v28 = vsel %vm1807_vm10, %v2229_v7, %v9155_v27  ;;  %v6170_v27 = vld [vmem:[%s10459_s1 + $0x1d0] sm:$0xff] }
 0x4ae   :  { %v3175_v2 = vmul.f32 1.442695, %v3106_v11  ;;  %2420 = vrot.lane.b32.xlu2 %v7484_v44, %s7500_s24  ;;  %v2173_v11 = vmul.f32 0.6931472, %v7068_v33 }
 0x4af   :  { %v3601_v46 = vmin.f32 %v9296_v38, 0.0  ;;  %vm3553_vm11 = vcmp.gt.f32.partialorder %v9296_v38, 0.0 }
 0x4b0   :  { %7073 = vpow2.f32 %v3175_v2  ;;  %v2230_v16 = vadd.f32 %v2173_v11, %v1846_v54  ;;  %v6168_v11 = vld [vmem:[%s10459_s1 + $0x1c0] sm:$0xff] }
 0x4b1   :  { %v7070_v14 = vpop.eup %7069  ;;  %v3657_v21 = vmul.f32 1.442695, %v3601_v46  ;;  %4436 = vmatpush.bf16.msrb.mxu3 %v6171_v5 }
 0x4b2   :  { %v7072_v31 = vpop.eup %7071  ;;  %v5927_v55 = vadd.f32 -1.0, %v7070_v14  ;;  %v9335_v54 = vsel %vm1807_vm10, %v2230_v16, %v9193_v57  ;;  %v9346_v57 = vld [vmem:[%s10460_s2 + $0x6] ss:$0 sm:$0xff] }
 0x4b3   :  { %v2411_v0 = vpop.permute.xlu0 %2410  ;;  %v5844_v63 = vadd.f32 -1.0, %v7072_v31  ;;  %7075 = vpow2.f32 %v3657_v21 }
 0x4b4   :  { %v3447_v44 = vpop.f32.mrf.mxu1  ;;  %v3792_v2 = vsel %vm3552_vm6, %v9263_v49, %v5927_v55  ;;  %v2517_v46 = vmul.f32 %v2411_v0, %v9315_v28 }
 0x4b5   :  { %v3448_v14 = vadd.f32 %v8983_v62, %v3447_v44  ;;  %v3836_v51 = vpack.c.bf16 %v3792_v2, %v3791_v43  ;;  %v3297_v48 = vsel %vm3057_vm7, %v9255_v12, %v5844_v63  ;;  %4437 = vmatpush.bf16.msrb.mxu3 %v6170_v27 }
 0x4b6   :  { %v7074_v29 = vpop.eup %7073  ;;  %2650 = vrot.lane.b32.xlu1 %v2517_v46, %s7501_s25 }
 0x4b7   :  { %v5845_v33 = vadd.f32 -1.0, %v7074_v29  ;;  %v3602_v20 = vmin.f32 %v3448_v14, 0.0  ;;  %3947 = vmatmul.bf16.gmra.mxu2 %v3836_v51  ;;  %v9327_v29 = vpop.f32.mrf.mxu3  ;;  %v6169_v51 = vld [vmem:[%s10459_s1 + $0x1c8] sm:$0xff]  ;;  %vm3554_vm12 = vcmp.gt.f32.partialorder %v3448_v14, 0.0 }
 0x4b9   :  { %v3659_v49 = vmul.f32 1.442695, %v3602_v20  ;;  %v3298_v7 = vsel %vm3058_vm9, %v2970_v6, %v5845_v33  ;;  %v7076_v21 = vpop.eup %7075  ;;  %4438 = vmatpush.bf16.msrb.mxu3 %v6169_v51  ;;  %v7485_v51 = vld [vmem:[%s10461_s0 + $0x168] sm:$0xff] }
 0x4ba   :  { %v3335_v31 = vpack.c.bf16 %v3298_v7, %v3297_v48  ;;  %v5928_v44 = vadd.f32 -1.0, %v7076_v21 }
 0x4bb   :  { %7077 = vpow2.f32 %v3659_v49  ;;  %v2413_v20 = vpop.permute.xlu0 %2412 }
 0x4bc   :  { %v3450_v55 = vpop.f32.mrf.mxu1  ;;  %3474 = vmatmul.bf16.gmra.mxu1 %v3335_v31  ;;  %v2518_v6 = vmul.f32 %v2413_v20, %v9335_v54  ;;  %v3793_v27 = vsel %vm3553_vm11, %v9296_v38, %v5928_v44 }
 0x4bd   :  { %v3451_v12 = vadd.f32 %v8983_v62, %v3450_v55  ;;  %4439 = vmatpush.bf16.msrb.mxu3 %v6168_v11 }
 0x4be   :  { %2652 = vrot.lane.b32.xlu1 %v2518_v6, %s7501_s25 }
 0x4bf   :  { %v3603_v5 = vmin.f32 %v3451_v12, 0.0  ;;  %v9348_v2 = vpop.f32.mrf.mxu3  ;;  %vm3555_vm13 = vcmp.gt.f32.partialorder %v3451_v12, 0.0 }
 0x4c1   :  { %v7078_v0 = vpop.eup %7077  ;;  %v3661_v63 = vmul.f32 1.442695, %v3603_v5 }
 0x4c2   :  { %v5929_v43 = vadd.f32 -1.0, %v7078_v0 }
 0x4c3   :  { %7079 = vpow2.f32 %v3661_v63  ;;  %v7486_v63 = vld [vmem:[%s10461_s0 + $0x170] sm:$0xff] }
 0x4c4   :  { %v3452_v46 = vpop.f32.mrf.mxu1  ;;  %v3933_v33 = vpop.f32.mrf.mxu2  ;;  %v3794_v16 = vsel %vm3554_vm12, %v3448_v14, %v5929_v43 }
 0x4c5   :  { %v3453_v49 = vadd.f32 %v8983_v62, %v3452_v46  ;;  %v3934_v48 = vadd.f32 %v9346_v57, %v3933_v33  ;;  %v3837_v7 = vpack.c.bf16 %v3794_v16, %v3793_v27 }
 0x4c6   :  { %2426 = vrot.lane.b32.xlu1 %v7485_v51, %s7500_s24 }
 0x4c7   :  { %v3604_v31 = vmin.f32 %v3453_v49, 0.0  ;;  %3952 = vmatmul.bf16.gmra.mxu2 %v3837_v7  ;;  %v4101_v55 = vmin.f32 %v3934_v48, 0.0  ;;  %v1787_v5 = vpop.f32.mrf.mxu3  ;;  %vm3556_vm14 = vcmp.gt.f32.partialorder %v3453_v49, 0.0  ;;  %vm4053_vm15 = vcmp.gt.f32.partialorder %v3934_v48, 0.0 }
 0x4c8   :  { %v9368_v27 = vadd.f32 %v9190_v10, %v1787_v5 }
 0x4c9   :  { %v3663_v20 = vmul.f32 1.442695, %v3604_v31  ;;  %v4149_v21 = vmul.f32 1.442695, %v4101_v55  ;;  %v7080_v6 = vpop.eup %7079 }
 0x4ca   :  { %v5930_v46 = vadd.f32 -1.0, %v7080_v6 }
 0x4cb   :  { %7081 = vpow2.f32 %v3663_v20 }
 0x4cc   :  { %v3455_v38 = vpop.f32.mrf.mxu1  ;;  %v3935_v14 = vpop.f32.mrf.mxu2  ;;  %7083 = vpow2.f32 %v4149_v21  ;;  %v3795_v55 = vsel %vm3555_vm13, %v3451_v12, %v5930_v46  ;;  %v9378_v12 = vadd.f32 %v9190_v10, %v9327_v29 }
 0x4cd   :  { %v9359_v11 = vadd.f32 %v8983_v62, %v3455_v38  ;;  %v3936_v44 = vadd.f32 %v9346_v57, %v3935_v14  ;;  %v1897_v38 = vand.u32 2147483647, %v9368_v27 }
 0x4ce   :  { %2428 = vrot.lane.b32.xlu1 %v7486_v63, %s7500_s24 }
 0x4cf   :  { %v3605_v0 = vmin.f32 %v9359_v11, 0.0  ;;  %v4102_v43 = vmin.f32 %v3936_v44, 0.0  ;;  %v1790_v14 = vpop.f32.mrf.mxu3  ;;  %vm4054_vm0 = vcmp.gt.f32.partialorder %v3936_v44, 0.0  ;;  %vm3557_vm1 = vcmp.gt.f32.partialorder %v9359_v11, 0.0 }
 0x4d1   :  { %v7082_v33 = vpop.eup %7081  ;;  %v4151_v16 = vmul.f32 1.442695, %v4102_v43  ;;  %v3665_v31 = vmul.f32 1.442695, %v3605_v0 }
 0x4d2   :  { %v5931_v7 = vadd.f32 -1.0, %v7082_v33  ;;  %v7084_v35 = vpop.eup %7083 }
 0x4d3   :  { %7085 = vpow2.f32 %v4151_v16  ;;  %v6016_v46 = vadd.f32 -1.0, %v7084_v35 }
 0x4d4   :  { %v3457_v51 = vpop.f32.mrf.mxu1  ;;  %v3796_v20 = vsel %vm3556_vm14, %v3453_v49, %v5931_v7  ;;  %v3938_v6 = vpop.f32.mrf.mxu2  ;;  %7087 = vpow2.f32 %v3665_v31  ;;  %v1945_v49 = vsub.f32 0.0, %v1897_v38 }
 0x4d5   :  { %v3458_v63 = vadd.f32 %v8983_v62, %v3457_v51  ;;  %v3838_v21 = vpack.c.bf16 %v3796_v20, %v3795_v55  ;;  %v9373_v5 = vadd.f32 %v9346_v57, %v3938_v6  ;;  %v9381_v62 = vadd.f32 %v9190_v10, %v1790_v14 }
 0x4d6   :  { %v1895_v55 = vand.u32 2147483647, %v9378_v12  ;;  %v2034_v20 = vmul.f32 1.442695, %v1945_v49  ;;  %v4293_v6 = vsel %vm4053_vm15, %v3934_v48, %v6016_v46 }
 0x4d7   :  { %v3606_v43 = vmin.f32 %v3458_v63, 0.0  ;;  %3957 = vmatmul.bf16.gmra.mxu2 %v3838_v21  ;;  %v4103_v0 = vmin.f32 %v9373_v5, 0.0  ;;  %v1898_v38 = vand.u32 2147483647, %v9381_v62  ;;  %v1792_v17 = vpop.f32.mrf.mxu3  ;;  %vm3558_vm2 = vcmp.gt.f32.partialorder %v3458_v63, 0.0 }
 0x4d8   :  { %v1943_v13 = vsub.f32 0.0, %v1895_v55  ;;  %vm4055_vm3 = vcmp.gt.f32.partialorder %v9373_v5, 0.0 }
 0x4d9   :  { %v3667_v33 = vmul.f32 1.442695, %v3606_v43  ;;  %v7086_v16 = vpop.eup %7085  ;;  %v4153_v31 = vmul.f32 1.442695, %v4103_v0  ;;  %v9388_v0 = vadd.f32 %v9190_v10, %v9348_v2  ;;  %v1946_v48 = vsub.f32 0.0, %v1898_v38 }
 0x4da   :  { %v6017_v7 = vadd.f32 -1.0, %v7086_v16  ;;  %v7088_v51 = vpop.eup %7087 }
 0x4db   :  { %7089 = vpow2.f32 %v3667_v33  ;;  %v5932_v14 = vadd.f32 -1.0, %v7088_v51  ;;  %v2030_v51 = vmul.f32 1.442695, %v1943_v13  ;;  %v1896_v55 = vand.u32 2147483647, %v9388_v0 }
 0x4dc   :  { %v4294_v21 = vsel %vm4054_vm0, %v3936_v44, %v6017_v7  ;;  %v3940_v29 = vpop.f32.mrf.mxu2  ;;  %7091 = vpow2.f32 %v4153_v31  ;;  %v9391_v44 = vadd.f32 %v9190_v10, %v1792_v17 }
 0x4dd   :  { %v4341_v35 = vpack.c.bf16 %v4294_v21, %v4293_v6  ;;  %v3941_v43 = vadd.f32 %v9346_v57, %v3940_v29  ;;  %7093 = vpow2.f32 %v2034_v20  ;;  %v3797_v7 = vsel %vm3557_vm1, %v9359_v11, %v5932_v14 }
 0x4de   :  { %v2036_v20 = vmul.f32 1.442695, %v1946_v48  ;;  %v1899_v29 = vand.u32 2147483647, %v9391_v44 }
 0x4df   :  { %v4104_v16 = vmin.f32 %v3941_v43, 0.0  ;;  %4440 = vmatmul.bf16.vlgmr.msrb.gmra.mxu3 %v4341_v35  ;;  %vm4056_vm4 = vcmp.gt.f32.partialorder %v3941_v43, 0.0 }
 0x4e0   :  { %v1947_v14 = vsub.f32 0.0, %v1899_v29 }
 0x4e1   :  { %v7090_v33 = vpop.eup %7089  ;;  %v4155_v46 = vmul.f32 1.442695, %v4104_v16  ;;  %v1944_v16 = vsub.f32 0.0, %v1896_v55 }
 0x4e2   :  { %v5933_v49 = vadd.f32 -1.0, %v7090_v33  ;;  %v7092_v21 = vpop.eup %7091 }
 0x4e3   :  { %7095 = vpow2.f32 %v4155_v46  ;;  %v7094_v38 = vpop.eup %7093  ;;  %v6018_v11 = vadd.f32 -1.0, %v7092_v21 }
 0x4e4   :  { %v3798_v31 = vsel %vm3558_vm2, %v3458_v63, %v5933_v49  ;;  %v3943_v6 = vpop.f32.mrf.mxu2  ;;  %7097 = vpow2.f32 %v2030_v51  ;;  %v2089_v13 = vadd.f32 1.0, %v7094_v38  ;;  %v2032_v49 = vmul.f32 1.442695, %v1944_v16 }
 0x4e5   :  { %v3839_v2 = vpack.c.bf16 %v3798_v31, %v3797_v7  ;;  %v9398_v17 = vadd.f32 %v9346_v57, %v3943_v6  ;;  %7099 = vpow2.f32 %v2036_v20  ;;  %v4295_v7 = vsel %vm4055_vm3, %v9373_v5, %v6018_v11 }
 0x4e6   :  { %7101 = vlog2.f32 %v2089_v13  ;;  %v2038_v6 = vmul.f32 1.442695, %v1947_v14  ;;  %v1849_v14 = vmax.f32 %v9368_v27, 0.0 }
 0x4e7   :  { %3962 = vmatmul.bf16.gmra.mxu2 %v3839_v2  ;;  %v4105_v35 = vmin.f32 %v9398_v17, 0.0  ;;  %v1795_v2 = vpop.f32.mrf.mxu3  ;;  %vm4057_vm5 = vcmp.gt.f32.partialorder %v9398_v17, 0.0 }
 0x4e8   :  { %v9405_v20 = vadd.f32 %v9190_v10, %v1795_v2 }
 0x4e9   :  { %v7096_v63 = vpop.eup %7095  ;;  %v4157_v48 = vmul.f32 1.442695, %v4105_v35 }
 0x4ea   :  { %v6019_v33 = vadd.f32 -1.0, %v7096_v63  ;;  %v7098_v21 = vpop.eup %7097  ;;  %v1900_v11 = vand.u32 2147483647, %v9405_v20 }
 0x4eb   :  { %v7100_v29 = vpop.eup %7099  ;;  %7103 = vpow2.f32 %v4157_v48  ;;  %v2087_v16 = vadd.f32 1.0, %v7098_v21 }
 0x4ec   :  { %v3945_v46 = vpop.f32.mrf.mxu2  ;;  %v4296_v31 = vsel %vm4056_vm4, %v3941_v43, %v6019_v33  ;;  %7105 = vpow2.f32 %v2032_v49  ;;  %v2090_v43 = vadd.f32 1.0, %v7100_v29  ;;  %v7102_v63 = vpop.eup %7101  ;;  %v1948_v48 = vsub.f32 0.0, %v1900_v11  ;;  %v9412_v49 = vld [vmem:[%s10460_s2 + $0x4] ss:$0 sm:$0xff] }
 0x4ed   :  { %v3946_v51 = vadd.f32 %v9346_v57, %v3945_v46  ;;  %v4342_v55 = vpack.c.bf16 %v4296_v31, %v4295_v7  ;;  %7107 = vpow2.f32 %v2038_v6  ;;  %v2179_v31 = vmul.f32 0.6931472, %v7102_v63 }
 0x4ee   :  { %v2040_v53 = vmul.f32 1.442695, %v1948_v48  ;;  %v1847_v48 = vmax.f32 %v9378_v12, 0.0 }
 0x4ef   :  { %v4106_v38 = vmin.f32 %v3946_v51, 0.0  ;;  %4445 = vmatmul.bf16.gmra.mxu3 %v4342_v55  ;;  %v2233_v24 = vadd.f32 %v2179_v31, %v1849_v14  ;;  %vm4058_vm6 = vcmp.gt.f32.partialorder %v3946_v51, 0.0 }
 0x4f0   :  { %v2643_v35 = vpop.permute.xlu2 %2642 }
 0x4f1   :  { %v4159_v5 = vmul.f32 1.442695, %v4106_v38  ;;  %v7104_v13 = vpop.eup %7103 }
 0x4f2   :  { %v7106_v46 = vpop.eup %7105  ;;  %v6020_v55 = vadd.f32 -1.0, %v7104_v13  ;;  %v1850_v13 = vmax.f32 %v9381_v62, 0.0 }
 0x4f3   :  { %7109 = vpow2.f32 %v4159_v5  ;;  %v7108_v6 = vpop.eup %7107  ;;  %v9420_v5 = vadd.f32 %v9293_v50, %v9047_v18 }
 0x4f4   :  { %7111 = vlog2.f32 %v2087_v16  ;;  %v2088_v16 = vadd.f32 1.0, %v7106_v46  ;;  %v2091_v11 = vadd.f32 1.0, %v7108_v6  ;;  %v4297_v18 = vsel %vm4057_vm5, %v9398_v17, %v6020_v55 }
 0x4f5   :  { %7113 = vlog2.f32 %v2090_v43  ;;  %v9441_v17 = vsel %vm1807_vm10, %v2233_v24, %v9368_v27 }
 0x4f6   :  { %v2972_v33 = vpop.f32.mrf.mxu0  ;;  %7115 = vlog2.f32 %v2088_v16  ;;  %10565 = vst [vmem:[#allocation49_spill] sm:$0xff] %v9441_v17 }
 0x4f7   :  { %v9415_v7 = vadd.f32 %v9412_v49, %v2972_v33  ;;  %7117 = vlog2.f32 %v2091_v11  ;;  %v9446_v11 = vadd.f32 %v2643_v35, %v9209_v37 }
 0x4f8   :  { %v2645_v2 = vpop.permute.xlu2 %2644  ;;  %7119 = vpow2.f32 %v2040_v53 }
 0x4f9   :  { %v3107_v21 = vmin.f32 %v9415_v7, 0.0  ;;  %v2639_v29 = vpop.permute.xlu1 %2638  ;;  %v7110_v38 = vpop.eup %7109  ;;  %vm3059_vm7 = vcmp.gt.f32.partialorder %v9415_v7, 0.0 }
 0x4fa   :  { %v9423_v43 = vadd.f32 %v2639_v29, %v9151_v47  ;;  %v6021_v33 = vadd.f32 -1.0, %v7110_v38  ;;  %v7112_v63 = vpop.eup %7111 }
 0x4fb   :  { %v7114_v32 = vpop.eup %7113  ;;  %v3177_v50 = vmul.f32 1.442695, %v3107_v21  ;;  %v2175_v38 = vmul.f32 0.6931472, %v7112_v63 }
 0x4fc   :  { %v5798_v46 = vpack.c.bf16 %v9423_v43, %v9420_v5  ;;  %v4298_v29 = vsel %vm4058_vm6, %v3946_v51, %v6021_v33  ;;  %v2181_v47 = vmul.f32 0.6931472, %v7114_v32  ;;  %v9449_v32 = vadd.f32 %v2645_v2, %v9238_v42  ;;  %v7116_v33 = vpop.eup %7115 }
 0x4fd   :  { %v4343_v14 = vpack.c.bf16 %v4298_v29, %v4297_v18  ;;  %7121 = vpow2.f32 %v3177_v50  ;;  %v2231_v50 = vadd.f32 %v2175_v38, %v1847_v48  ;;  %v7118_v2 = vpop.eup %7117  ;;  %v1851_v38 = vmax.f32 %v9391_v44, 0.0 }
 0x4fe   :  { %v2974_v6 = vpop.f32.mrf.mxu0  ;;  %5799 = vmatmul.msk.bf16.gmra.mxu0 %vm8315_vm8, %v5798_v46  ;;  %10566 = vst [vmem:[#allocation50_spill] sm:$0xff] %v9449_v32  ;;  %v2234_v63 = vadd.f32 %v2181_v47, %v1850_v13  ;;  %v7120_v29 = vpop.eup %7119 }
 0x4ff   :  { %v9435_v31 = vadd.f32 %v9412_v49, %v2974_v6  ;;  %4450 = vmatmul.bf16.gmra.mxu3 %v4343_v14  ;;  %v1797_v6 = vpop.f32.mrf.mxu3  ;;  %v9474_v48 = vsel %vm1807_vm10, %v2231_v50, %v9378_v12  ;;  %v2092_v37 = vadd.f32 1.0, %v7120_v29 }
 0x500   :  { %v2419_v51 = vpop.permute.xlu2 %2418  ;;  %v9469_v47 = vsel %vm1807_vm10, %v2234_v63, %v9381_v62  ;;  %v9485_v62 = vld [vmem:[%s10460_s2 + $0x5] ss:$0 sm:$0xff] }
 0x501   :  { %v3108_v18 = vmin.f32 %v9435_v31, 0.0  ;;  %v2521_v55 = vmul.f32 %v2419_v51, %v9441_v17  ;;  %v2641_v21 = vpop.permute.xlu1 %2640  ;;  %v2647_v16 = vpop.permute.xlu0 %2646  ;;  %10568 = vst [vmem:[#allocation52_spill] sm:$0xff] %v9469_v47  ;;  %vm3060_vm9 = vcmp.gt.f32.partialorder %v9435_v31, 0.0 }
 0x502   :  { %v9452_v53 = vadd.f32 %v2641_v21, %v9178_v4  ;;  %v9455_v24 = vadd.f32 %v2647_v16, %v9173_v41  ;;  %v9478_v16 = vadd.f32 %v9190_v10, %v1797_v6  ;;  %v2183_v6 = vmul.f32 0.6931472, %v7118_v2 }
 0x503   :  { %v3179_v27 = vmul.f32 1.442695, %v3108_v18  ;;  %2658 = vrot.lane.b32.xlu0 %v2521_v55, %s7501_s25  ;;  %v7122_v51 = vpop.eup %7121  ;;  %v1848_v18 = vmax.f32 %v9388_v0, 0.0  ;;  %v2177_v55 = vmul.f32 0.6931472, %v7116_v33 }
 0x504   :  { %10567 = vst [vmem:[#allocation51_spill] sm:$0xff] %v9452_v53  ;;  %v5846_v46 = vadd.f32 -1.0, %v7122_v51  ;;  %v5801_v51 = vpack.c.bf16 %v9446_v11, %v9452_v53  ;;  %v1901_v2 = vand.u32 2147483647, %v9478_v16 }
 0x505   :  { %7123 = vpow2.f32 %v3179_v27  ;;  %v2232_v41 = vadd.f32 %v2177_v55, %v1848_v18 }
 0x506   :  { %v2977_v14 = vpop.f32.mrf.mxu0  ;;  %7125 = vlog2.f32 %v2092_v37  ;;  %v1949_v53 = vsub.f32 0.0, %v1901_v2 }
 0x507   :  { %v9463_v21 = vadd.f32 %v9412_v49, %v2977_v14 }
 0x508   :  { %v2421_v13 = vpop.permute.xlu2 %2420 }
 0x509   :  { %v3109_v27 = vmin.f32 %v9463_v21, 0.0  ;;  %v3460_v14 = vpop.f32.mrf.mxu1  ;;  %v2522_v33 = vmul.f32 %v2421_v13, %v9469_v47  ;;  %v2415_v35 = vpop.permute.xlu1 %2414  ;;  %vm3061_vm11 = vcmp.gt.f32.partialorder %v9463_v21, 0.0 }
 0x50a   :  { %v9488_v12 = vadd.f32 %v9485_v62, %v3460_v14  ;;  %v2519_v63 = vmul.f32 %v2415_v35, %v9474_v48  ;;  %v9491_v50 = vpop.permute.xlu0 %2648 }
 0x50b   :  { %v7124_v4 = vpop.eup %7123  ;;  %2660 = vrot.lane.b32.xlu0 %v2522_v33, %s7501_s25  ;;  %v3181_v35 = vmul.f32 1.442695, %v3109_v27  ;;  %v2235_v33 = vadd.f32 %v2183_v6, %v1851_v38  ;;  %v9509_v27 = vsel %vm1807_vm10, %v2232_v41, %v9388_v0 }
 0x50c   :  { %v5847_v13 = vadd.f32 -1.0, %v7124_v4  ;;  %v3607_v42 = vmin.f32 %v9488_v12, 0.0  ;;  %2654 = vrot.lane.b32.xlu2 %v2519_v63, %s7501_s25  ;;  %v3299_v4 = vsel %vm3059_vm7, %v9415_v7, %v5846_v46  ;;  %v1800_v7 = vpop.f32.mrf.mxu3  ;;  %vm3559_vm13 = vcmp.gt.f32.partialorder %v9488_v12, 0.0 }
 0x50d   :  { %7127 = vpow2.f32 %v3181_v35  ;;  %v9519_v38 = vadd.f32 %v9190_v10, %v1800_v7 }
 0x50e   :  { %v2979_v14 = vpop.f32.mrf.mxu0  ;;  %5802 = vmatmul.msk.bf16.gmra.mxu0 %vm8315_vm8, %v5801_v51  ;;  %v3300_v29 = vsel %vm3060_vm9, %v9435_v31, %v5847_v13  ;;  %v3669_v55 = vmul.f32 1.442695, %v3607_v42  ;;  %v9516_v42 = vsel %vm1807_vm10, %v2235_v33, %v9391_v44  ;;  %v7126_v13 = vpop.eup %7125 }
 0x50f   :  { %v2980_v63 = vadd.f32 %v9412_v49, %v2979_v14  ;;  %v3336_v18 = vpack.c.bf16 %v3300_v29, %v3299_v4  ;;  %v1902_v14 = vand.u32 2147483647, %v9519_v38  ;;  %v2185_v4 = vmul.f32 0.6931472, %v7126_v13 }
 0x510   :  { %7129 = vpow2.f32 %v3669_v55 }
 0x511   :  { %v3110_v47 = vmin.f32 %v2980_v63, 0.0  ;;  %v3462_v17 = vpop.f32.mrf.mxu1  ;;  %3479 = vmatmul.bf16.gmra.mxu1 %v3336_v18  ;;  %v2417_v51 = vpop.permute.xlu1 %2416  ;;  %v1950_v7 = vsub.f32 0.0, %v1902_v14  ;;  %vm3062_vm12 = vcmp.gt.f32.partialorder %v2980_v63, 0.0 }
 0x512   :  { %v3463_v31 = vadd.f32 %v9485_v62, %v3462_v17  ;;  %v2520_v37 = vmul.f32 %v2417_v51, %v9509_v27  ;;  %v2423_v46 = vpop.permute.xlu0 %2422  ;;  %v2042_v17 = vmul.f32 1.442695, %v1949_v53 }
 0x513   :  { %v3183_v6 = vmul.f32 1.442695, %v3110_v47  ;;  %v2523_v41 = vmul.f32 %v2423_v46, %v9516_v42  ;;  %v7128_v44 = vpop.eup %7127  ;;  %v1852_v47 = vmax.f32 %v9405_v20, 0.0  ;;  %v5804_v46 = vpack.c.bf16 %v9455_v24, %v9449_v32 }
 0x514   :  { %v3608_v0 = vmin.f32 %v3463_v31, 0.0  ;;  %2656 = vrot.lane.b32.xlu2 %v2520_v37, %s7501_s25  ;;  %v5848_v55 = vadd.f32 -1.0, %v7128_v44  ;;  %vm3560_vm14 = vcmp.gt.f32.partialorder %v3463_v31, 0.0 }
 0x515   :  { %7131 = vpow2.f32 %v3183_v6  ;;  %2662 = vrot.lane.b32.xlu1 %v2523_v41, %s7501_s25  ;;  %v2236_v37 = vadd.f32 %v2185_v4, %v1852_v47  ;;  %v2044_v47 = vmul.f32 1.442695, %v1950_v7 }
 0x516   :  { %v3671_v35 = vmul.f32 1.442695, %v3608_v0  ;;  %v2982_v2 = vpop.f32.mrf.mxu0  ;;  %v7130_v18 = vpop.eup %7129  ;;  %v7489_v0 = vld [vmem:[%s10461_s0 + $0x178] sm:$0xff]  ;;  %v3301_v44 = vsel %vm3061_vm11, %v9463_v21, %v5848_v55  ;;  %s7502_s0 = smov 16  }
 0x517   :  { %v9526_v10 = vadd.f32 %v9412_v49, %v2982_v2  ;;  %v5934_v13 = vadd.f32 -1.0, %v7130_v18 }
 0x518   :  { %7133 = vpow2.f32 %v3671_v35 }
 0x519   :  { %v3111_v29 = vmin.f32 %v9526_v10, 0.0  ;;  %v3465_v33 = vpop.f32.mrf.mxu1  ;;  %7135 = vpow2.f32 %v2042_v17  ;;  %vm3063_vm15 = vcmp.gt.f32.partialorder %v9526_v10, 0.0 }
 0x51a   :  { %v9531_v53 = vadd.f32 %v9485_v62, %v3465_v33  ;;  %v2425_v33 = vpop.permute.xlu0 %2424 }
 0x51b   :  { %v7132_v51 = vpop.eup %7131  ;;  %v3185_v17 = vmul.f32 1.442695, %v3111_v29  ;;  %v9549_v29 = vsel %vm1807_vm10, %v2236_v37, %v9405_v20 }
 0x51c   :  { %v5849_v6 = vadd.f32 -1.0, %v7132_v51  ;;  %v3609_v41 = vmin.f32 %v9531_v53, 0.0  ;;  %2430 = vrot.lane.b32.xlu2 %v7489_v0, %s7500_s24  ;;  %v2524_v7 = vmul.f32 %v2425_v33, %v9549_v29  ;;  %vm3561_vm2 = vcmp.gt.f32.partialorder %v9531_v53, 0.0 }
 0x51d   :  { %7137 = vpow2.f32 %v3185_v17 }
 0x51e   :  { %v7134_v35 = vpop.eup %7133  ;;  %v2984_v2 = vpop.f32.mrf.mxu0  ;;  %5805 = vmatmul.msk.bf16.gmra.mxu0 %vm8315_vm8, %v5804_v46  ;;  %v3302_v14 = vsel %vm3062_vm12, %v2980_v63, %v5849_v6  ;;  %v3673_v18 = vmul.f32 1.442695, %v3609_v41  ;;  %v3799_v63 = vsel %vm3559_vm13, %v9488_v12, %v5934_v13  ;;  %7139 = vpow2.f32 %v2044_v47 }
 0x51f   :  { %v5935_v4 = vadd.f32 -1.0, %v7134_v35  ;;  %v2985_v51 = vadd.f32 %v9412_v49, %v2984_v2  ;;  %v3337_v32 = vpack.c.bf16 %v3302_v14, %v3301_v44  ;;  %v7136_v0 = vpop.eup %7135 }
 0x520   :  { %v2093_v2 = vadd.f32 1.0, %v7136_v0  ;;  %7141 = vpow2.f32 %v3673_v18 }
 0x521   :  { %v3112_v46 = vmin.f32 %v2985_v51, 0.0  ;;  %v3467_v21 = vpop.f32.mrf.mxu1  ;;  %3484 = vmatmul.bf16.gmra.mxu1 %v3337_v32  ;;  %v3800_v55 = vsel %vm3560_vm14, %v3463_v31, %v5935_v4  ;;  %vm3064_vm0 = vcmp.gt.f32.partialorder %v2985_v51, 0.0 }
 0x522   :  { %v3468_v6 = vadd.f32 %v9485_v62, %v3467_v21  ;;  %v3840_v35 = vpack.c.bf16 %v3800_v55, %v3799_v63 }
 0x523   :  { %v3187_v41 = vmul.f32 1.442695, %v3112_v46  ;;  %v7138_v37 = vpop.eup %7137  ;;  %v9567_v46 = vadd.f32 %v9491_v50, %v9215_v26 }
 0x524   :  { %v3610_v44 = vmin.f32 %v3468_v6, 0.0  ;;  %3967 = vmatmul.bf16.gmra.mxu2 %v3840_v35  ;;  %2664 = vrot.lane.b32.xlu2 %v2524_v7, %s7501_s25  ;;  %v7140_v31 = vpop.eup %7139  ;;  %v5850_v47 = vadd.f32 -1.0, %v7138_v37  ;;  %vm3562_vm1 = vcmp.gt.f32.partialorder %v3468_v6, 0.0  ;;  %v1853_v35 = vmax.f32 %v9478_v16, 0.0 }
 0x525   :  { %7143 = vpow2.f32 %v3187_v41  ;;  %v2094_v21 = vadd.f32 1.0, %v7140_v31 }
 0x526   :  { %v3675_v20 = vmul.f32 1.442695, %v3610_v44  ;;  %7145 = vlog2.f32 %v2093_v2  ;;  %v2987_v32 = vpop.f32.mrf.mxu0  ;;  %v7142_v14 = vpop.eup %7141  ;;  %v3303_v50 = vsel %vm3063_vm15, %v9526_v10, %v5850_v47 }
 0x527   :  { %v9556_v12 = vadd.f32 %v9412_v49, %v2987_v32  ;;  %v5936_v44 = vadd.f32 -1.0, %v7142_v14 }
 0x528   :  { %7147 = vpow2.f32 %v3675_v20  ;;  %v2651_v17 = vpop.permute.xlu1 %2650 }
 0x529   :  { %v3470_v13 = vpop.f32.mrf.mxu1  ;;  %v3113_v4 = vmin.f32 %v9556_v12, 0.0  ;;  %v9563_v0 = vadd.f32 %v2651_v17, %v9315_v28  ;;  %7149 = vlog2.f32 %v2094_v21  ;;  %v3801_v21 = vsel %vm3561_vm2, %v9531_v53, %v5936_v44 }
 0x52a   :  { %v9560_v33 = vadd.f32 %v9485_v62, %v3470_v13  ;;  %vm3065_vm3 = vcmp.gt.f32.partialorder %v9556_v12, 0.0 }
 0x52b   :  { %v7144_v18 = vpop.eup %7143  ;;  %v5807_v2 = vpack.c.bf16 %v9563_v0, %v9567_v46  ;;  %v3189_v20 = vmul.f32 1.442695, %v3113_v4 }
 0x52c   :  { %v5851_v63 = vadd.f32 -1.0, %v7144_v18  ;;  %v3611_v55 = vmin.f32 %v9560_v33, 0.0  ;;  %v7146_v7 = vpop.eup %7145  ;;  %vm3563_vm5 = vcmp.gt.f32.partialorder %v9560_v33, 0.0 }
 0x52d   :  { %7151 = vpow2.f32 %v3189_v20 }
 0x52e   :  { %v7148_v41 = vpop.eup %7147  ;;  %v3304_v37 = vsel %vm3064_vm0, %v2985_v51, %v5851_v63  ;;  %v2989_v31 = vpop.f32.mrf.mxu0  ;;  %5808 = vmatmul.msk.bf16.gmra.mxu0 %vm8315_vm8, %v5807_v2  ;;  %v3677_v17 = vmul.f32 1.442695, %v3611_v55  ;;  %v2187_v51 = vmul.f32 0.6931472, %v7146_v7 }
 0x52f   :  { %v5937_v32 = vadd.f32 -1.0, %v7148_v41  ;;  %v3338_v13 = vpack.c.bf16 %v3304_v37, %v3303_v50  ;;  %v2990_v18 = vadd.f32 %v9412_v49, %v2989_v31  ;;  %v7150_v37 = vpop.eup %7149 }
 0x530   :  { %v9581_v4 = vpop.permute.xlu1 %2652  ;;  %7153 = vpow2.f32 %v3677_v17  ;;  %v2237_v50 = vadd.f32 %v2187_v51, %v1853_v35  ;;  %v2189_v7 = vmul.f32 0.6931472, %v7150_v37 }
 0x531   :  { %v3472_v14 = vpop.f32.mrf.mxu1  ;;  %3489 = vmatmul.bf16.gmra.mxu1 %v3338_v13  ;;  %v3802_v10 = vsel %vm3562_vm1, %v3468_v6, %v5937_v32  ;;  %v3114_v47 = vmin.f32 %v2990_v18, 0.0  ;;  %v1854_v6 = vmax.f32 %v9519_v38, 0.0  ;;  %vm3066_vm4 = vcmp.gt.f32.partialorder %v2990_v18, 0.0 }
 0x532   :  { %v3473_v63 = vadd.f32 %v9485_v62, %v3472_v14  ;;  %v3841_v2 = vpack.c.bf16 %v3802_v10, %v3801_v21  ;;  %v9589_v32 = vsel %vm1807_vm10, %v2237_v50, %v9478_v16 }
 0x533   :  { %v3191_v55 = vmul.f32 1.442695, %v3114_v47  ;;  %v7152_v13 = vpop.eup %7151 }
 0x534   :  { %v3612_v41 = vmin.f32 %v3473_v63, 0.0  ;;  %3972 = vmatmul.bf16.gmra.mxu2 %v3841_v2  ;;  %v5852_v10 = vadd.f32 -1.0, %v7152_v13  ;;  %v2238_v2 = vadd.f32 %v2189_v7, %v1854_v6  ;;  %vm3564_vm6 = vcmp.gt.f32.partialorder %v3473_v63, 0.0 }
 0x535   :  { %7155 = vpow2.f32 %v3191_v55 }
 0x536   :  { %v3679_v31 = vmul.f32 1.442695, %v3612_v41  ;;  %v7154_v44 = vpop.eup %7153  ;;  %v9607_v6 = vsel %vm1807_vm10, %v2238_v2, %v9519_v38  ;;  %v10569_v38 = vpack.i.bf16 %v8309_v25, %v8306_v1  ;;  %v7490_v2 = vld [vmem:[%s10460_s2 + $0x3] ss:$0 sm:$0xff] }
 0x537   :  { %v5938_v16 = vadd.f32 -1.0, %v7154_v44 }
 0x538   :  { %7157 = vpow2.f32 %v3679_v31  ;;  %v2427_v53 = vpop.permute.xlu1 %2426  ;;  %v3305_v31 = vsel %vm3065_vm3, %v9556_v12, %v5852_v10 }
 0x539   :  { %v3475_v20 = vpop.f32.mrf.mxu1  ;;  %v2525_v35 = vmul.f32 %v2427_v53, %v9589_v32  ;;  %v3803_v44 = vsel %vm3563_vm5, %v9560_v33, %v5938_v16 }
 0x53a   :  { %v9592_v17 = vadd.f32 %v9485_v62, %v3475_v20  ;;  %v3948_v14 = vpop.f32.mrf.mxu2 }
 0x53b   :  { %v9596_v51 = vadd.f32 %v9346_v57, %v3948_v14  ;;  %v7156_v47 = vpop.eup %7155  ;;  %2666 = vrot.lane.b32.xlu0 %v2525_v35, %s7501_s25 }
 0x53c   :  { %v3613_v21 = vmin.f32 %v9592_v17, 0.0  ;;  %v5853_v55 = vadd.f32 -1.0, %v7156_v47  ;;  %vm3565_vm7 = vcmp.gt.f32.partialorder %v9592_v17, 0.0 }
 0x53d   :  { %v4107_v41 = vmin.f32 %v9596_v51, 0.0  ;;  %vm4059_vm9 = vcmp.gt.f32.partialorder %v9596_v51, 0.0 }
 0x53e   :  { %v7158_v50 = vpop.eup %7157  ;;  %v3306_v13 = vsel %vm3066_vm4, %v2990_v18, %v5853_v55  ;;  %v3681_v20 = vmul.f32 1.442695, %v3613_v21  ;;  %v1802_v55 = vpop.f32.mrf.mxu3 }
 0x53f   :  { %v5939_v37 = vadd.f32 -1.0, %v7158_v50  ;;  %v3339_v53 = vpack.c.bf16 %v3306_v13, %v3305_v31  ;;  %v4161_v14 = vmul.f32 1.442695, %v4107_v41  ;;  %v9621_v16 = vadd.f32 %v7490_v2, %v1802_v55 }
 0x540   :  { %v2429_v7 = vpop.permute.xlu1 %2428  ;;  %7159 = vpow2.f32 %v3681_v20 }
 0x541   :  { %v3477_v35 = vpop.f32.mrf.mxu1  ;;  %v3804_v47 = vsel %vm3564_vm6, %v3473_v63, %v5939_v37  ;;  %3494 = vmatmul.bf16.gmra.mxu1 %v3339_v53  ;;  %v2526_v12 = vmul.f32 %v2429_v7, %v9607_v6  ;;  %7161 = vpow2.f32 %v4161_v14  ;;  %v1903_v1 = vand.u32 2147483647, %v9621_v16 }
 0x542   :  { %v3478_v50 = vadd.f32 %v9485_v62, %v3477_v35  ;;  %v3950_v18 = vpop.f32.mrf.mxu2  ;;  %v3842_v10 = vpack.c.bf16 %v3804_v47, %v3803_v44  ;;  %v10570_v53 = vpack.i.bf16 %v8531_v19, %v8528_v40  ;;  %v10571_v14 = vpack.i.bf16 %v8348_v8, %v8352_v34 }
 0x543   :  { %v3951_v21 = vadd.f32 %v9346_v57, %v3950_v18  ;;  %6324 = vrot.lane.b32.xlu0 %v10569_v38, %s7502_s0  ;;  %2668 = vrot.lane.b32.xlu1 %v2526_v12, %s7501_s25  ;;  %v1951_v18 = vsub.f32 0.0, %v1903_v1 }
 0x544   :  { %v3614_v41 = vmin.f32 %v3478_v50, 0.0  ;;  %3977 = vmatmul.bf16.gmra.mxu2 %v3842_v10  ;;  %vm3566_vm11 = vcmp.gt.f32.partialorder %v3478_v50, 0.0 }
 0x545   :  { %v4108_v33 = vmin.f32 %v3951_v21, 0.0  ;;  %vm4060_vm12 = vcmp.gt.f32.partialorder %v3951_v21, 0.0 }
 0x546   :  { %v3683_v63 = vmul.f32 1.442695, %v3614_v41  ;;  %v7160_v31 = vpop.eup %7159 }
 0x547   :  { %v4163_v37 = vmul.f32 1.442695, %v4108_v33  ;;  %v7162_v20 = vpop.eup %7161  ;;  %v5940_v35 = vadd.f32 -1.0, %v7160_v31  ;;  %v10572_v31 = vpack.i.bf16 %v8719_v61, %v8716_v60  ;;  %v10574_v60 = vpack.i.bf16 %v8890_v22, %v8883_v3 }
 0x548   :  { %7163 = vpow2.f32 %v3683_v63  ;;  %v6022_v47 = vadd.f32 -1.0, %v7162_v20  ;;  %v2046_v63 = vmul.f32 1.442695, %v1951_v18 }
 0x549   :  { %7165 = vpow2.f32 %v4163_v37  ;;  %v3805_v19 = vsel %vm3565_vm7, %v9592_v17, %v5940_v35 }
 0x54a   :  { %v3953_v13 = vpop.f32.mrf.mxu2  ;;  %v4299_v38 = vsel %vm4059_vm9, %v9596_v51, %v6022_v47 }
 0x54b   :  { %v3954_v25 = vadd.f32 %v9346_v57, %v3953_v13  ;;  %6339 = vrot.lane.b32.xlu0 %v10570_v53, %s7502_s0  ;;  %6329 = vrot.lane.b32.xlu1 %v10571_v14, %s7502_s0  ;;  %v10573_v13 = vpack.i.bf16 %v8567_v59, %v8570_v15  ;;  %v10575_v59 = vpack.i.bf16 %v8791_v58, %v8788_v56 }
 0x54c   :  { %v10576_v56 = vpack.i.bf16 %v9146_v36, %v9140_v52  ;;  %v10577_v58 = vpack.i.bf16 %v8959_v39, %v8954_v30  ;;  %v10578_v39 = vpack.i.bf16 %v9423_v43, %v9420_v5 }
 0x54d   :  { %v4109_v7 = vmin.f32 %v3954_v25, 0.0  ;;  %vm4061_vm13 = vcmp.gt.f32.partialorder %v3954_v25, 0.0 }
 0x54e   :  { %v7164_v44 = vpop.eup %7163 }
 0x54f   :  { %v7166_v12 = vpop.eup %7165  ;;  %v5941_v10 = vadd.f32 -1.0, %v7164_v44  ;;  %v4165_v40 = vmul.f32 1.442695, %v4109_v7 }
 0x550   :  { %v6023_v55 = vadd.f32 -1.0, %v7166_v12 }
 0x551   :  { %v3806_v41 = vsel %vm3566_vm11, %v3478_v50, %v5941_v10  ;;  %7167 = vpow2.f32 %v4165_v40 }
 0x552   :  { %v3955_v8 = vpop.f32.mrf.mxu2  ;;  %v3843_v34 = vpack.c.bf16 %v3806_v41, %v3805_v19  ;;  %v4300_v33 = vsel %vm4060_vm12, %v3951_v21, %v6023_v55  ;;  %7169 = vpow2.f32 %v2046_v63 }
 0x553   :  { %v3956_v2 = vadd.f32 %v9346_v57, %v3955_v8  ;;  %v4344_v37 = vpack.c.bf16 %v4300_v33, %v4299_v38  ;;  %6354 = vrot.lane.b32.xlu0 %v10572_v31, %s7502_s0  ;;  %6344 = vrot.lane.b32.xlu1 %v10573_v13, %s7502_s0  ;;  %v1855_v33 = vmax.f32 %v9621_v16, 0.0 }
 0x554   :  { %3982 = vmatmul.bf16.gmra.mxu2 %v3843_v34 }
 0x555   :  { %v4110_v17 = vmin.f32 %v3956_v2, 0.0  ;;  %4455 = vmatmul.bf16.gmra.mxu3 %v4344_v37  ;;  %vm4062_vm14 = vcmp.gt.f32.partialorder %v3956_v2, 0.0 }
 0x557   :  { %v4167_v51 = vmul.f32 1.442695, %v4110_v17  ;;  %v7168_v21 = vpop.eup %7167 }
 0x558   :  { %v7170_v15 = vpop.eup %7169  ;;  %v6024_v1 = vadd.f32 -1.0, %v7168_v21 }
 0x559   :  { %7171 = vpow2.f32 %v4167_v51  ;;  %v2095_v14 = vadd.f32 1.0, %v7170_v15 }
 0x55a   :  { %v3958_v50 = vpop.f32.mrf.mxu2  ;;  %v4301_v47 = vsel %vm4061_vm13, %v3954_v25, %v6024_v1  ;;  %v2758_v25 = vadd.f32 %v9581_v4, %v9335_v54  ;;  %v10579_v4 = vld [vmem:[#allocation44_spill] sm:$0xff] }
 0x55b   :  { %v3959_v20 = vadd.f32 %v9346_v57, %v3958_v50  ;;  %6369 = vrot.lane.b32.xlu0 %v10574_v60, %s7502_s0  ;;  %6359 = vrot.lane.b32.xlu1 %v10575_v59, %s7502_s0  ;;  %7173 = vlog2.f32 %v2095_v14  ;;  %v10580_v34 = vpack.i.bf16 %v9182_v23, %v10579_v4  ;;  %v9682_v23 = vld [vmem:[%s10460_s2 + $0x6] ss:$0 sm:$0xff]  ;;  %v10581_v60 = vpack.i.bf16 %v9563_v0, %v9567_v46  ;;  %v10582_v59 = vld [vmem:[#allocation51_spill] sm:$0xff]  ;;  %v10584_v46 = vld [vmem:[#allocation49_spill] sm:$0xff] }
 0x55c   :  { %v10583_v15 = vpack.i.bf16 %v9446_v11, %v10582_v59  ;;  %v9707_v11 = vld [vmem:[%s10460_s2 + $0x7] ss:$0 sm:$0xff] }
 0x55d   :  { %v4111_v61 = vmin.f32 %v3959_v20, 0.0  ;;  %vm4063_vm15 = vcmp.gt.f32.partialorder %v3959_v20, 0.0 }
 0x55f   :  { %v7172_v53 = vpop.eup %7171  ;;  %v4169_v7 = vmul.f32 1.442695, %v4111_v61 }
 0x560   :  { %v6025_v35 = vadd.f32 -1.0, %v7172_v53 }
 0x561   :  { %7175 = vpow2.f32 %v4169_v7  ;;  %v7174_v41 = vpop.eup %7173 }
 0x562   :  { %v3960_v44 = vpop.f32.mrf.mxu2  ;;  %v4302_v12 = vsel %vm4062_vm14, %v3956_v2, %v6025_v35  ;;  %v4441_v30 = vpop.f32.mrf.mxu3 }
 0x563   :  { %v3961_v3 = vadd.f32 %v9346_v57, %v3960_v44  ;;  %v4345_v22 = vpack.c.bf16 %v4302_v12, %v4301_v47  ;;  %6384 = vrot.lane.b32.xlu0 %v10576_v56, %s7502_s0  ;;  %6374 = vrot.lane.b32.xlu1 %v10577_v58, %s7502_s0 }
 0x565   :  { %v4112_v18 = vmin.f32 %v3961_v3, 0.0  ;;  %4460 = vmatmul.bf16.gmra.mxu3 %v4345_v22  ;;  %vm4064_vm0 = vcmp.gt.f32.partialorder %v3961_v3, 0.0 }
 0x566   :  { %v2655_v10 = vpop.permute.xlu2 %2654 }
 0x567   :  { %v4171_v55 = vmul.f32 1.442695, %v4112_v18  ;;  %v2759_v40 = vadd.f32 %v2655_v10, %v9474_v48  ;;  %v7176_v36 = vpop.eup %7175 }
 0x568   :  { %v6026_v63 = vadd.f32 -1.0, %v7176_v36 }
 0x569   :  { %7177 = vpow2.f32 %v4171_v55  ;;  %v5810_v19 = vpack.c.bf16 %v2759_v40, %v2758_v25  ;;  %v6418_v9 = vpack.i.bf16 %v2759_v40, %v2758_v25  ;;  %v10585_v25 = vld [vmem:[#allocation16_spill] sm:$0xff]  ;;  %v10586_v40 = vld [vmem:[#allocation15_spill] sm:$0xff] }
 0x56a   :  { %v3963_v52 = vpop.f32.mrf.mxu2  ;;  %v4303_v51 = vsel %vm4063_vm15, %v3959_v20, %v6026_v63  ;;  %v4443_v1 = vpop.f32.mrf.mxu3 }
 0x56b   :  { %v3964_v8 = vadd.f32 %v9346_v57, %v3963_v52  ;;  %5811 = vmatmul.msk.bf16.gmra.mxu0 %vm8315_vm8, %v5810_v19  ;;  %6399 = vrot.lane.b32.xlu0 %v10578_v39, %s7502_s0  ;;  %v2191_v57 = vmul.f32 0.6931472, %v7174_v41  ;;  %v4444_v12 = vadd.f32 %v9707_v11, %v4443_v1  ;;  %v10587_v52 = vpack.i.bf16 %v10585_v25, %v10586_v40 }
 0x56c   :  { %6389 = vrot.lane.b32.xlu1 %v10580_v34, %s7502_s0 }
 0x56d   :  { %v4113_v38 = vmin.f32 %v3964_v8, 0.0  ;;  %v2239_v43 = vadd.f32 %v2191_v57, %v1855_v33  ;;  %v4562_v58 = vmul.f32 0.5, %v4444_v12 }
 0x56e   :  { %v2657_v2 = vpop.permute.xlu2 %2656 }
 0x56f   :  { %v7178_v37 = vpop.eup %7177  ;;  %v4173_v13 = vmul.f32 1.442695, %v4113_v38  ;;  %v9694_v53 = vadd.f32 %v2657_v2, %v9509_v27  ;;  %v9699_v14 = vsel %vm1807_vm10, %v2239_v43, %v9621_v16  ;;  %vm4065_vm10 = vcmp.gt.f32.partialorder %v3964_v8, 0.0 }
 0x570   :  { %v6027_v31 = vadd.f32 -1.0, %v7178_v37  ;;  %v10588_v37 = vld [vmem:[#allocation52_spill] sm:$0xff] }
 0x571   :  { %7179 = vpow2.f32 %v4173_v13 }
 0x572   :  { %v3965_v17 = vpop.f32.mrf.mxu2  ;;  %v4304_v5 = vsel %vm4064_vm0, %v3961_v3, %v6027_v31  ;;  %v4442_v3 = vadd.f32 %v9707_v11, %v4441_v30 }
 0x573   :  { %v3966_v50 = vadd.f32 %v9682_v23, %v3965_v17  ;;  %v4346_v21 = vpack.c.bf16 %v4304_v5, %v4303_v51  ;;  %6414 = vrot.lane.b32.xlu0 %v10581_v60, %s7502_s0  ;;  %v10590_v5 = vld [vmem:[#allocation20_spill] sm:$0xff] }
 0x574   :  { %6404 = vrot.lane.b32.xlu1 %v10583_v15, %s7502_s0  ;;  %v4561_v19 = vmul.f32 0.5, %v4442_v3 }
 0x575   :  { %v4114_v20 = vmin.f32 %v3966_v50, 0.0  ;;  %4465 = vmatmul.bf16.gmra.mxu3 %v4346_v21  ;;  %v2659_v61 = vpop.permute.xlu0 %2658  ;;  %vm4066_vm1 = vcmp.gt.f32.partialorder %v3966_v50, 0.0 }
 0x576   :  { %v2431_v0 = vpop.permute.xlu2 %2430  ;;  %v9702_v35 = vadd.f32 %v2659_v61, %v10584_v46 }
 0x577   :  { %v4175_v7 = vmul.f32 1.442695, %v4114_v20  ;;  %v2527_v44 = vmul.f32 %v2431_v0, %v9699_v14  ;;  %v7180_v16 = vpop.eup %7179 }
 0x578   :  { %v5813_v47 = vpack.c.bf16 %v9702_v35, %v9694_v53  ;;  %v6028_v18 = vadd.f32 -1.0, %v7180_v16 }
 0x579   :  { %7181 = vpow2.f32 %v4175_v7  ;;  %2670 = vrot.lane.b32.xlu2 %v2527_v44, %s7501_s25  ;;  %s7503_s25 = smov 24  }
 0x57a   :  { %7183 = vtanh.f32 %v4562_v58  ;;  %v4305_v30 = vsel %vm4065_vm10, %v3964_v8, %v6028_v18  ;;  %v10589_v8 = vld [vmem:[#allocation21_spill] sm:$0xff]  ;;  %v10593_v58 = vld [vmem:[#allocation30_spill] sm:$0xff] }
 0x57b   :  { %v2992_v22 = vpop.f32.mrf.mxu0  ;;  %5814 = vmatmul.msk.bf16.gmra.mxu0 %vm8315_vm8, %v5813_v47  ;;  %7185 = vtanh.f32 %v4561_v19  ;;  %v10591_v43 = vpack.i.bf16 %v10589_v8, %v10590_v5 }
 0x57c   :  { %v2993_v56 = vadd.f32 %v9412_v49, %v2992_v22  ;;  %6419 = vrot.lane.b32.xlu1 %v6418_v9, %s7502_s0  ;;  %v10592_v22 = vld [vmem:[#allocation31_spill] sm:$0xff] }
 0x57d   :  { %v2661_v33 = vpop.permute.xlu0 %2660  ;;  %v10594_v18 = vpack.i.bf16 %v10592_v22, %v10593_v58 }
 0x57e   :  { %v3115_v10 = vmin.f32 %v2993_v56, 0.0  ;;  %v2762_v31 = vadd.f32 %v2661_v33, %v10588_v37  ;;  %vm3067_vm2 = vcmp.gt.f32.partialorder %v2993_v56, 0.0 }
 0x57f   :  { %v7182_v55 = vpop.eup %7181 }
 0x580   :  { %v6029_v41 = vadd.f32 -1.0, %v7182_v55  ;;  %v3193_v36 = vmul.f32 1.442695, %v3115_v10  ;;  %v7184_v2 = vpop.eup %7183  ;;  %v4446_v10 = vpop.f32.mrf.mxu3 }
 0x581   :  { %6334 = vrot.lane.b32.xlu2 %v10587_v52, %s7502_s0  ;;  %v7186_v51 = vpop.eup %7185 }
 0x582   :  { %v4306_v39 = vsel %vm4066_vm1, %v3966_v50, %v6029_v41  ;;  %7187 = vpow2.f32 %v3193_v36  ;;  %v4658_v50 = vadd.f32 1.0, %v7184_v2  ;;  %v4657_v20 = vadd.f32 1.0, %v7186_v51  ;;  %v10595_v2 = vld [vmem:[#allocation40_spill] sm:$0xff] }
 0x583   :  { %v2994_v4 = vpop.f32.mrf.mxu0  ;;  %v4347_v34 = vpack.c.bf16 %v4306_v39, %v4305_v30 }
 0x584   :  { %v2995_v38 = vadd.f32 %v9412_v49, %v2994_v4  ;;  %v4706_v1 = vmul.f32 0.5, %v4658_v50  ;;  %v4705_v9 = vmul.f32 0.5, %v4657_v20 }
 0x585   :  { %4470 = vmatmul.bf16.gmra.mxu3 %v4347_v34 }
 0x586   :  { %v3116_v63 = vmin.f32 %v2995_v38, 0.0  ;;  %vm3068_vm3 = vcmp.gt.f32.partialorder %v2995_v38, 0.0  ;;  %v6443_v19 = vpack.i.bf16 %v4706_v1, %v4705_v9  ;;  %v10598_v1 = vld [vmem:[#allocation48_spill] sm:$0xff] }
 0x587   :  { %v2663_v57 = vpop.permute.xlu1 %2662 }
 0x588   :  { %v3195_v13 = vmul.f32 1.442695, %v3116_v63  ;;  %v2763_v17 = vadd.f32 %v2663_v57, %v9516_v42  ;;  %v7188_v15 = vpop.eup %7187 }
 0x589   :  { %6349 = vrot.lane.b32.xlu2 %v10591_v43, %s7502_s0  ;;  %v5854_v44 = vadd.f32 -1.0, %v7188_v15 }
 0x58a   :  { %7189 = vpow2.f32 %v3195_v13  ;;  %v6428_v21 = vpack.i.bf16 %v2763_v17, %v2762_v31  ;;  %v5816_v60 = vpack.c.bf16 %v2763_v17, %v2762_v31  ;;  %v4448_v17 = vpop.f32.mrf.mxu3 }
 0x58b   :  { %v2997_v59 = vpop.f32.mrf.mxu0  ;;  %v3307_v25 = vsel %vm3067_vm2, %v2993_v56, %v5854_v44  ;;  %v10596_v56 = vld [vmem:[#allocation39_spill] sm:$0xff]  ;;  %v4449_v50 = vadd.f32 %v9707_v11, %v4448_v17  ;;  %v9781_v17 = vld [vmem:[%s10460_s2 + $0x4] ss:$0 sm:$0xff] }
 0x58c   :  { %v2998_v61 = vadd.f32 %v9412_v49, %v2997_v59  ;;  %6429 = vrot.lane.b32.xlu0 %v6428_v21, %s7502_s0  ;;  %5817 = vmatmul.msk.bf16.gmra.mxu0 %vm8315_vm8, %v5816_v60 }
 0x58e   :  { %v3117_v0 = vmin.f32 %v2998_v61, 0.0  ;;  %v3480_v7 = vpop.f32.mrf.mxu1  ;;  %vm3069_vm4 = vcmp.gt.f32.partialorder %v2998_v61, 0.0 }
 0x58f   :  { %v9735_v47 = vadd.f32 %v9485_v62, %v3480_v7 }
 0x590   :  { %v7190_v12 = vpop.eup %7189  ;;  %v3197_v55 = vmul.f32 1.442695, %v3117_v0  ;;  %v10599_v0 = vld [vmem:[#allocation47_spill] sm:$0xff] }
 0x591   :  { %v5855_v16 = vadd.f32 -1.0, %v7190_v12  ;;  %v3615_v3 = vmin.f32 %v9735_v47, 0.0  ;;  %6364 = vrot.lane.b32.xlu2 %v10594_v18, %s7502_s0  ;;  %v10600_v7 = vpack.i.bf16 %v10598_v1, %v10599_v0  ;;  %vm3567_vm6 = vcmp.gt.f32.partialorder %v9735_v47, 0.0 }
 0x592   :  { %7191 = vpow2.f32 %v3197_v55 }
 0x593   :  { %v2999_v41 = vpop.f32.mrf.mxu0  ;;  %v3308_v40 = vsel %vm3068_vm3, %v2995_v38, %v5855_v16  ;;  %v3685_v30 = vmul.f32 1.442695, %v3615_v3  ;;  %v10597_v38 = vpack.i.bf16 %v10595_v2, %v10596_v56  ;;  %v4447_v16 = vadd.f32 %v9707_v11, %v4446_v10  ;;  %v10601_v2 = vld [vmem:[#allocation50_spill] sm:$0xff] }
 0x594   :  { %v3000_v52 = vadd.f32 %v9412_v49, %v2999_v41  ;;  %6444 = vrot.lane.b32.xlu0 %v6443_v19, %s7503_s25  ;;  %v3340_v36 = vpack.c.bf16 %v3308_v40, %v3307_v25  ;;  %v4564_v3 = vmul.f32 0.5, %v4449_v50 }
 0x595   :  { %7193 = vpow2.f32 %v3685_v30  ;;  %v4563_v10 = vmul.f32 0.5, %v4447_v16 }
 0x596   :  { %v3118_v39 = vmin.f32 %v3000_v52, 0.0  ;;  %v3482_v4 = vpop.f32.mrf.mxu1  ;;  %3499 = vmatmul.bf16.gmra.mxu1 %v3340_v36  ;;  %vm3070_vm5 = vcmp.gt.f32.partialorder %v3000_v52, 0.0 }
 0x597   :  { %v3483_v34 = vadd.f32 %v9485_v62, %v3482_v4 }
 0x598   :  { %v3199_v33 = vmul.f32 1.442695, %v3118_v39  ;;  %v7192_v13 = vpop.eup %7191 }
 0x599   :  { %v3616_v63 = vmin.f32 %v3483_v34, 0.0  ;;  %6379 = vrot.lane.b32.xlu2 %v10597_v38, %s7502_s0  ;;  %v5856_v21 = vadd.f32 -1.0, %v7192_v13  ;;  %vm3568_vm7 = vcmp.gt.f32.partialorder %v3483_v34, 0.0  ;;  %v2665_v13 = vpop.permute.xlu2 %2664 }
 0x59a   :  { %7195 = vpow2.f32 %v3199_v33 }
 0x59b   :  { %v3687_v57 = vmul.f32 1.442695, %v3616_v63  ;;  %v3002_v31 = vpop.f32.mrf.mxu0  ;;  %v7194_v43 = vpop.eup %7193  ;;  %v3309_v58 = vsel %vm3069_vm4, %v2998_v61, %v5856_v21 }
 0x59c   :  { %v9750_v51 = vadd.f32 %v9412_v49, %v3002_v31  ;;  %v5942_v44 = vadd.f32 -1.0, %v7194_v43 }
 0x59d   :  { %7197 = vpow2.f32 %v3687_v57 }
 0x59e   :  { %v3119_v8 = vmin.f32 %v9750_v51, 0.0  ;;  %v3485_v5 = vpop.f32.mrf.mxu1  ;;  %v3807_v30 = vsel %vm3567_vm6, %v9735_v47, %v5942_v44  ;;  %v10602_v47 = vpack.i.bf16 %v9455_v24, %v10601_v2  ;;  %v6423_v24 = vpack.i.bf16 %v9702_v35, %v9694_v53 }
 0x59f   :  { %v9755_v60 = vadd.f32 %v9485_v62, %v3485_v5  ;;  %vm3071_vm9 = vcmp.gt.f32.partialorder %v9750_v51, 0.0 }
 0x5a0   :  { %v7196_v59 = vpop.eup %7195  ;;  %v3201_v12 = vmul.f32 1.442695, %v3119_v8 }
 0x5a1   :  { %v5857_v15 = vadd.f32 -1.0, %v7196_v59  ;;  %v3617_v20 = vmin.f32 %v9755_v60, 0.0  ;;  %6394 = vrot.lane.b32.xlu2 %v10600_v7, %s7502_s0  ;;  %vm3569_vm13 = vcmp.gt.f32.partialorder %v9755_v60, 0.0 }
 0x5a2   :  { %7199 = vpow2.f32 %v3201_v12  ;;  %v2764_v12 = vadd.f32 %v2665_v13, %v9549_v29 }
 0x5a3   :  { %v7198_v9 = vpop.eup %7197  ;;  %v3004_v22 = vpop.f32.mrf.mxu0  ;;  %v3310_v18 = vsel %vm3070_vm5, %v3000_v52, %v5857_v15  ;;  %v3689_v25 = vmul.f32 1.442695, %v3617_v20  ;;  %7201 = vtanh.f32 %v4564_v3 }
 0x5a4   :  { %v5943_v55 = vadd.f32 -1.0, %v7198_v9  ;;  %v3005_v19 = vadd.f32 %v9412_v49, %v3004_v22  ;;  %v3341_v41 = vpack.c.bf16 %v3310_v18, %v3309_v58 }
 0x5a5   :  { %7203 = vpow2.f32 %v3689_v25 }
 0x5a6   :  { %v3120_v40 = vmin.f32 %v3005_v19, 0.0  ;;  %v3487_v36 = vpop.f32.mrf.mxu1  ;;  %3504 = vmatmul.bf16.gmra.mxu1 %v3341_v41  ;;  %v3808_v39 = vsel %vm3568_vm7, %v3483_v34, %v5943_v55  ;;  %vm3072_vm11 = vcmp.gt.f32.partialorder %v3005_v19, 0.0 }
 0x5a7   :  { %v9767_v61 = vadd.f32 %v9485_v62, %v3487_v36  ;;  %v3968_v52 = vpop.f32.mrf.mxu2  ;;  %v3844_v4 = vpack.c.bf16 %v3808_v39, %v3807_v30 }
 0x5a8   :  { %v3203_v49 = vmul.f32 1.442695, %v3120_v40  ;;  %v9770_v33 = vadd.f32 %v9682_v23, %v3968_v52  ;;  %v7200_v38 = vpop.eup %7199 }
 0x5a9   :  { %v3618_v63 = vmin.f32 %v9767_v61, 0.0  ;;  %3987 = vmatmul.bf16.gmra.mxu2 %v3844_v4  ;;  %6409 = vrot.lane.b32.xlu2 %v10602_v47, %s7502_s0  ;;  %v7202_v31 = vpop.eup %7201  ;;  %v5858_v59 = vadd.f32 -1.0, %v7200_v38  ;;  %vm3570_vm12 = vcmp.gt.f32.partialorder %v9767_v61, 0.0  ;;  %v9812_v47 = vld [vmem:[%s10460_s2 + $0x5] ss:$0 sm:$0xff] }
 0x5aa   :  { %7205 = vpow2.f32 %v3203_v49  ;;  %v4115_v34 = vmin.f32 %v9770_v33, 0.0  ;;  %v4660_v44 = vadd.f32 1.0, %v7202_v31  ;;  %vm4067_vm14 = vcmp.gt.f32.partialorder %v9770_v33, 0.0 }
 0x5ab   :  { %7207 = vtanh.f32 %v4563_v10  ;;  %v3691_v56 = vmul.f32 1.442695, %v3618_v63  ;;  %v3007_v57 = vpop.f32.mrf.mxu0  ;;  %v7204_v21 = vpop.eup %7203  ;;  %v3311_v41 = vsel %vm3071_vm9, %v9750_v51, %v5858_v59 }
 0x5ac   :  { %v9784_v8 = vadd.f32 %v9781_v17, %v3007_v57  ;;  %v4177_v5 = vmul.f32 1.442695, %v4115_v34  ;;  %v5944_v18 = vadd.f32 -1.0, %v7204_v21  ;;  %v4708_v49 = vmul.f32 0.5, %v4660_v44  ;;  %v4451_v63 = vpop.f32.mrf.mxu3 }
 0x5ad   :  { %7209 = vpow2.f32 %v3691_v56  ;;  %v2667_v50 = vpop.permute.xlu0 %2666 }
 0x5ae   :  { %v3490_v43 = vpop.f32.mrf.mxu1  ;;  %v3121_v15 = vmin.f32 %v9784_v8, 0.0  ;;  %v2765_v1 = vadd.f32 %v2667_v50, %v9589_v32  ;;  %7211 = vpow2.f32 %v4177_v5  ;;  %v3809_v56 = vsel %vm3569_vm13, %v9755_v60, %v5944_v18 }
 0x5af   :  { %v9790_v20 = vadd.f32 %v9485_v62, %v3490_v43  ;;  %v3970_v0 = vpop.f32.mrf.mxu2  ;;  %vm3073_vm0 = vcmp.gt.f32.partialorder %v9784_v8, 0.0 }
 0x5b0   :  { %v7206_v7 = vpop.eup %7205  ;;  %v9795_v9 = vadd.f32 %v9682_v23, %v3970_v0  ;;  %v6433_v62 = vpack.i.bf16 %v2765_v1, %v2764_v12  ;;  %v5819_v3 = vpack.c.bf16 %v2765_v1, %v2764_v12  ;;  %v3205_v55 = vmul.f32 1.442695, %v3121_v15 }
 0x5b1   :  { %v7208_v53 = vpop.eup %7207  ;;  %v5859_v35 = vadd.f32 -1.0, %v7206_v7  ;;  %v3619_v16 = vmin.f32 %v9790_v20, 0.0  ;;  %6424 = vrot.lane.b32.xlu2 %v6423_v24, %s7502_s0  ;;  %vm3571_vm1 = vcmp.gt.f32.partialorder %v9790_v20, 0.0 }
 0x5b2   :  { %v4116_v22 = vmin.f32 %v9795_v9, 0.0  ;;  %v4659_v40 = vadd.f32 1.0, %v7208_v53  ;;  %6434 = vrot.lane.b32.xlu1 %v6433_v62, %s7502_s0  ;;  %5820 = vmatmul.msk.bf16.gmra.mxu0 %vm8315_vm8, %v5819_v3  ;;  %vm4068_vm15 = vcmp.gt.f32.partialorder %v9795_v9, 0.0 }
 0x5b3   :  { %v7210_v58 = vpop.eup %7209  ;;  %v3312_v25 = vsel %vm3072_vm11, %v3005_v19, %v5859_v35  ;;  %v3009_v39 = vpop.f32.mrf.mxu0  ;;  %v3693_v52 = vmul.f32 1.442695, %v3619_v16 }
 0x5b4   :  { %v5945_v36 = vadd.f32 -1.0, %v7210_v58  ;;  %v4179_v30 = vmul.f32 1.442695, %v4116_v22  ;;  %v3342_v10 = vpack.c.bf16 %v3312_v25, %v3311_v41  ;;  %v3010_v4 = vadd.f32 %v9781_v17, %v3009_v39  ;;  %v7212_v38 = vpop.eup %7211  ;;  %v4453_v18 = vpop.f32.mrf.mxu3 }
 0x5b5   :  { %v4707_v57 = vmul.f32 0.5, %v4659_v40  ;;  %v6030_v21 = vadd.f32 -1.0, %v7212_v38  ;;  %v4452_v38 = vadd.f32 %v9707_v11, %v4451_v63 }
 0x5b6   :  { %7213 = vpow2.f32 %v4179_v30  ;;  %v3492_v51 = vpop.f32.mrf.mxu1  ;;  %3509 = vmatmul.bf16.gmra.mxu1 %v3342_v10  ;;  %v3810_v19 = vsel %vm3570_vm12, %v9767_v61, %v5945_v36  ;;  %v3122_v2 = vmin.f32 %v3010_v4, 0.0  ;;  %v9816_v61 = vpop.permute.xlu0 %6324  ;;  %vm3074_vm10 = vcmp.gt.f32.partialorder %v3010_v4, 0.0 }
 0x5b7   :  { %7215 = vpow2.f32 %v3205_v55  ;;  %v3493_v34 = vadd.f32 %v9812_v47, %v3492_v51  ;;  %v3973_v31 = vpop.f32.mrf.mxu2  ;;  %v3845_v13 = vpack.c.bf16 %v3810_v19, %v3809_v56  ;;  %v6448_v50 = vpack.i.bf16 %v4708_v49, %v4707_v57 }
 0x5b8   :  { %7217 = vpow2.f32 %v3693_v52  ;;  %v3207_v24 = vmul.f32 1.442695, %v3122_v2  ;;  %v9819_v43 = vadd.f32 %v9682_v23, %v3973_v31  ;;  %v4307_v53 = vsel %vm4067_vm14, %v9770_v33, %v6030_v21 }
 0x5b9   :  { %v3620_v5 = vmin.f32 %v3493_v34, 0.0  ;;  %3992 = vmatmul.bf16.gmra.mxu2 %v3845_v13  ;;  %v4454_v30 = vadd.f32 %v9707_v11, %v4453_v18  ;;  %vm3572_vm2 = vcmp.gt.f32.partialorder %v3493_v34, 0.0  ;;  %v4565_v21 = vmul.f32 0.5, %v4452_v38 }
 0x5ba   :  { %7219 = vpow2.f32 %v3207_v24  ;;  %v4117_v15 = vmin.f32 %v9819_v43, 0.0  ;;  %6449 = vrot.lane.b32.xlu1 %v6448_v50, %s7503_s25  ;;  %vm4069_vm3 = vcmp.gt.f32.partialorder %v9819_v43, 0.0  ;;  %vm5137_vm14 = vcmask 130048  }
 0x5bb   :  { %v3695_v59 = vmul.f32 1.442695, %v3620_v5  ;;  %v4566_v13 = vmul.f32 0.5, %v4454_v30 }
 0x5bc   :  { %v7214_v60 = vpop.eup %7213  ;;  %v4181_v44 = vmul.f32 1.442695, %v4117_v15 }
 0x5bd   :  { %v7216_v1 = vpop.eup %7215  ;;  %v6031_v0 = vadd.f32 -1.0, %v7214_v60  ;;  %7221 = vpow2.f32 %v3695_v59 }
 0x5be   :  { %v7218_v7 = vpop.eup %7217  ;;  %v3495_v12 = vpop.f32.mrf.mxu1  ;;  %v5860_v16 = vadd.f32 -1.0, %v7216_v1  ;;  %7223 = vpow2.f32 %v4181_v44 }
 0x5bf   :  { %v4308_v35 = vsel %vm4068_vm15, %v9795_v9, %v6031_v0  ;;  %v9828_v62 = vadd.f32 %v9812_v47, %v3495_v12  ;;  %v3975_v3 = vpop.f32.mrf.mxu2  ;;  %v5946_v41 = vadd.f32 -1.0, %v7218_v7  ;;  %v9833_v33 = vpop.permute.xlu0 %6339  ;;  %vm5186_vm15 = vcmask 195584  }
 0x5c0   :  { %v4348_v22 = vpack.c.bf16 %v4308_v35, %v4307_v53  ;;  %v7220_v58 = vpop.eup %7219  ;;  %v3976_v55 = vadd.f32 %v9682_v23, %v3975_v3  ;;  %v3313_v10 = vsel %vm3073_vm0, %v9784_v8, %v5860_v16  ;;  %v2669_v53 = vpop.permute.xlu1 %2668  ;;  %vm5235_vm0 = vcmask 367616  }
 0x5c1   :  { %v5861_v25 = vadd.f32 -1.0, %v7220_v58  ;;  %v3621_v40 = vmin.f32 %v9828_v62, 0.0  ;;  %v3811_v2 = vsel %vm3571_vm1, %v9790_v20, %v5946_v41  ;;  %vm3573_vm5 = vcmp.gt.f32.partialorder %v9828_v62, 0.0 }
 0x5c2   :  { %4475 = vmatmul.bf16.gmra.mxu3 %v4348_v22  ;;  %v4118_v9 = vmin.f32 %v3976_v55, 0.0  ;;  %vm4070_vm4 = vcmp.gt.f32.partialorder %v3976_v55, 0.0 }
 0x5c3   :  { %v7222_v36 = vpop.eup %7221  ;;  %v3314_v52 = vsel %vm3074_vm10, %v3010_v4, %v5861_v25  ;;  %v3697_v19 = vmul.f32 1.442695, %v3621_v40  ;;  %v2766_v25 = vadd.f32 %v2669_v53, %v9607_v6 }
 0x5c4   :  { %v5947_v39 = vadd.f32 -1.0, %v7222_v36  ;;  %v4183_v49 = vmul.f32 1.442695, %v4118_v9  ;;  %v3343_v51 = vpack.c.bf16 %v3314_v52, %v3313_v10  ;;  %v7224_v4 = vpop.eup %7223 }
 0x5c5   :  { %v6032_v20 = vadd.f32 -1.0, %v7224_v4 }
 0x5c6   :  { %v3812_v56 = vsel %vm3572_vm2, %v3493_v34, %v5947_v39  ;;  %7225 = vpow2.f32 %v4183_v49  ;;  %v3497_v57 = vpop.f32.mrf.mxu1  ;;  %3514 = vmatmul.bf16.gmra.mxu1 %v3343_v51 }
 0x5c7   :  { %v3846_v31 = vpack.c.bf16 %v3812_v56, %v3811_v2  ;;  %v3498_v24 = vadd.f32 %v9812_v47, %v3497_v57  ;;  %v3978_v8 = vpop.f32.mrf.mxu2  ;;  %7227 = vpow2.f32 %v3697_v19  ;;  %v9845_v15 = vpop.permute.xlu0 %6354  ;;  %v4309_v44 = vsel %vm4069_vm3, %v9819_v43, %v6032_v20 }
 0x5c8   :  { %v9842_v5 = vadd.f32 %v9682_v23, %v3978_v8  ;;  %7229 = vtanh.f32 %v4566_v13 }
 0x5c9   :  { %v3622_v50 = vmin.f32 %v3498_v24, 0.0  ;;  %3997 = vmatmul.bf16.gmra.mxu2 %v3846_v31  ;;  %vm3574_vm6 = vcmp.gt.f32.partialorder %v3498_v24, 0.0 }
 0x5ca   :  { %v4119_v63 = vmin.f32 %v9842_v5, 0.0 }
 0x5cb   :  { %v3699_v34 = vmul.f32 1.442695, %v3622_v50 }
 0x5cc   :  { %v7226_v59 = vpop.eup %7225  ;;  %v4185_v0 = vmul.f32 1.442695, %v4119_v63 }
 0x5cd   :  { %v6033_v60 = vadd.f32 -1.0, %v7226_v59  ;;  %7231 = vpow2.f32 %v3699_v34  ;;  %v7228_v1 = vpop.eup %7227 }
 0x5ce   :  { %7233 = vtanh.f32 %v4565_v21  ;;  %v7230_v3 = vpop.eup %7229  ;;  %v5948_v22 = vadd.f32 -1.0, %v7228_v1 }
 0x5cf   :  { %v3980_v7 = vpop.f32.mrf.mxu2  ;;  %v4310_v12 = vsel %vm4070_vm4, %v3976_v55, %v6033_v60  ;;  %7235 = vpow2.f32 %v4185_v0  ;;  %v4662_v9 = vadd.f32 1.0, %v7230_v3  ;;  %v9853_v10 = vpop.permute.xlu0 %6369 }
 0x5d0   :  { %v3981_v35 = vadd.f32 %v9682_v23, %v3980_v7  ;;  %v4349_v16 = vpack.c.bf16 %v4310_v12, %v4309_v44  ;;  %v3813_v52 = vsel %vm3573_vm5, %v9828_v62, %v5948_v22  ;;  %v9866_v60 = vpop.permute.xlu1 %6329 }
 0x5d1   :  { %v4710_v13 = vmul.f32 0.5, %v4662_v9 }
 0x5d2   :  { %v4120_v58 = vmin.f32 %v3981_v35, 0.0  ;;  %4480 = vmatmul.bf16.gmra.mxu3 %v4349_v16  ;;  %vm4072_vm7 = vcmp.gt.f32.partialorder %v3981_v35, 0.0 }
 0x5d3   :  { %v2671_v18 = vpop.permute.xlu2 %2670  ;;  %v7232_v41 = vpop.eup %7231 }
 0x5d4   :  { %v2767_v40 = vadd.f32 %v2671_v18, %v9699_v14  ;;  %v7234_v36 = vpop.eup %7233  ;;  %v5949_v30 = vadd.f32 -1.0, %v7232_v41  ;;  %v4187_v43 = vmul.f32 1.442695, %v4120_v58 }
 0x5d5   :  { %v4661_v51 = vadd.f32 1.0, %v7234_v36  ;;  %v7236_v31 = vpop.eup %7235 }
 0x5d6   :  { %v6438_v55 = vpack.i.bf16 %v2767_v40, %v2766_v25  ;;  %v5822_v39 = vpack.c.bf16 %v2767_v40, %v2766_v25  ;;  %7237 = vpow2.f32 %v4187_v43  ;;  %v3814_v49 = vsel %vm3574_vm6, %v3498_v24, %v5949_v30 }
 0x5d7   :  { %v3983_v19 = vpop.f32.mrf.mxu2  ;;  %v3847_v56 = vpack.c.bf16 %v3814_v49, %v3813_v52  ;;  %v4709_v8 = vmul.f32 0.5, %v4661_v51  ;;  %v6034_v4 = vadd.f32 -1.0, %v7236_v31  ;;  %v9871_v44 = vpop.permute.xlu0 %6384 }
 0x5d8   :  { %v4456_v2 = vpop.f32.mrf.mxu3  ;;  %6439 = vrot.lane.b32.xlu2 %v6438_v55, %s7502_s0  ;;  %5823 = vmatmul.msk.bf16.gmra.mxu0 %vm8315_vm8, %v5822_v39  ;;  %v9860_v38 = vadd.f32 %v9682_v23, %v3983_v19  ;;  %vm4071_vm8 = vcmp.gt.f32.partialorder %v9842_v5, 0.0  ;;  %v9877_v40 = vpop.permute.xlu1 %6344 }
 0x5d9   :  { %v4457_v57 = vadd.f32 %v9707_v11, %v4456_v2  ;;  %4002 = vmatmul.bf16.gmra.mxu2 %v3847_v56  ;;  %v6453_v20 = vpack.i.bf16 %v4710_v13, %v4709_v8  ;;  %v4311_v7 = vsel %vm4071_vm8, %v9842_v5, %v6034_v4 }
 0x5da   :  { %v4121_v62 = vmin.f32 %v9860_v38, 0.0  ;;  %vm4073_vm11 = vcmp.gt.f32.partialorder %v9860_v38, 0.0 }
 0x5db   :  { %v4567_v50 = vmul.f32 0.5, %v4457_v57  ;;  %v9882_v39 = vpop.permute.xlu2 %6334 }
 0x5dc   :  { %v7238_v24 = vpop.eup %7237  ;;  %v4189_v45 = vmul.f32 1.442695, %v4121_v62 }
 0x5dd   :  { %v6035_v21 = vadd.f32 -1.0, %v7238_v24  ;;  %7239 = vtanh.f32 %v4567_v50 }
 0x5de   :  { %7241 = vpow2.f32 %v4189_v45 }
 0x5df   :  { %v3985_v34 = vpop.f32.mrf.mxu2  ;;  %v4312_v59 = vsel %vm4072_vm7, %v3981_v35, %v6035_v21  ;;  %v9879_v36 = vpop.permute.xlu0 %6399 }
 0x5e0   :  { %v4458_v63 = vpop.f32.mrf.mxu3  ;;  %6454 = vrot.lane.b32.xlu2 %v6453_v20, %s7503_s25  ;;  %v3986_v1 = vadd.f32 %v9682_v23, %v3985_v34  ;;  %v4350_v12 = vpack.c.bf16 %v4312_v59, %v4311_v7  ;;  %v9889_v20 = vpop.permute.xlu1 %6359 }
 0x5e1   :  { %v4459_v0 = vadd.f32 %v9707_v11, %v4458_v63 }
 0x5e2   :  { %v4122_v53 = vmin.f32 %v3986_v1, 0.0  ;;  %4485 = vmatmul.bf16.gmra.mxu3 %v4350_v12  ;;  %vm4074_vm9 = vcmp.gt.f32.partialorder %v3986_v1, 0.0 }
 0x5e3   :  { %v4568_v16 = vmul.f32 0.5, %v4459_v0  ;;  %v7240_v22 = vpop.eup %7239  ;;  %v9893_v59 = vpop.permute.xlu2 %6349 }
 0x5e4   :  { %v4191_v3 = vmul.f32 1.442695, %v4122_v53  ;;  %v7242_v41 = vpop.eup %7241  ;;  %v4663_v5 = vadd.f32 1.0, %v7240_v22 }
 0x5e5   :  { %7243 = vtanh.f32 %v4568_v16  ;;  %v6036_v55 = vadd.f32 -1.0, %v7242_v41 }
 0x5e6   :  { %7245 = vpow2.f32 %v4191_v3  ;;  %v4711_v49 = vmul.f32 0.5, %v4663_v5 }
 0x5e7   :  { %v4313_v24 = vsel %vm4073_vm11, %v9860_v38, %v6036_v55  ;;  %v9891_v34 = vpop.permute.xlu0 %6414 }
 0x5e8   :  { %v3012_v35 = vpop.f32.mrf.mxu0  ;;  %v4461_v58 = vpop.f32.mrf.mxu3 }
 0x5e9   :  { %v9874_v18 = vadd.f32 %v9781_v17, %v3012_v35  ;;  %v4462_v23 = vadd.f32 %v9707_v11, %v4461_v58 }
 0x5eb   :  { %v7244_v25 = vpop.eup %7243  ;;  %v3123_v30 = vmin.f32 %v9874_v18, 0.0  ;;  %v4569_v52 = vmul.f32 0.5, %v4462_v23  ;;  %vm3075_vm13 = vcmp.gt.f32.partialorder %v9874_v18, 0.0 }
 0x5ec   :  { %v4664_v9 = vadd.f32 1.0, %v7244_v25  ;;  %v7246_v43 = vpop.eup %7245 }
 0x5ed   :  { %v6037_v51 = vadd.f32 -1.0, %v7246_v43  ;;  %v3209_v2 = vmul.f32 1.442695, %v3123_v30  ;;  %7247 = vtanh.f32 %v4569_v52  ;;  %v9902_v30 = vpop.permute.xlu1 %6374 }
 0x5ee   :  { %v4712_v19 = vmul.f32 0.5, %v4664_v9 }
 0x5ef   :  { %v4314_v31 = vsel %vm4074_vm9, %v3986_v1, %v6037_v51  ;;  %7249 = vpow2.f32 %v3209_v2 }
 0x5f0   :  { %v3014_v56 = vpop.f32.mrf.mxu0  ;;  %v4463_v57 = vpop.f32.mrf.mxu3  ;;  %v6458_v13 = vpack.i.bf16 %v4712_v19, %v4711_v49  ;;  %v4351_v4 = vpack.c.bf16 %v4314_v31, %v4313_v24  ;;  %v6327_v24 = vunpack.i.h.bf16 %v9816_v61 }
 0x5f1   :  { %v3015_v8 = vadd.f32 %v9781_v17, %v3014_v56  ;;  %v4464_v62 = vadd.f32 %v9707_v11, %v4463_v57  ;;  %v9908_v57 = vpop.permute.xlu2 %6364 }
 0x5f2   :  { %6459 = vrot.lane.b32.xlu0 %v6458_v13, %s7503_s25  ;;  %4490 = vmatmul.bf16.gmra.mxu3 %v4351_v4  ;;  %v6326_v4 = vunpack.i.l.bf16 %v9816_v61 }
 0x5f3   :  { %v3124_v50 = vmin.f32 %v3015_v8, 0.0  ;;  %v4570_v21 = vmul.f32 0.5, %v4464_v62  ;;  %v7248_v63 = vpop.eup %7247  ;;  %vm3076_vm12 = vcmp.gt.f32.partialorder %v3015_v8, 0.0 }
 0x5f4   :  { %v4665_v53 = vadd.f32 1.0, %v7248_v63  ;;  %v10603_v63 = vld [vmem:[#allocation3_spill] sm:$0xff] }
 0x5f5   :  { %v3211_v45 = vmul.f32 1.442695, %v3124_v50  ;;  %7251 = vtanh.f32 %v4570_v21  ;;  %v7250_v12 = vpop.eup %7249 }
 0x5f6   :  { %v5862_v58 = vadd.f32 -1.0, %v7250_v12  ;;  %v4713_v41 = vmul.f32 0.5, %v4665_v53 }
 0x5f7   :  { %7253 = vpow2.f32 %v3211_v45 }
 0x5f8   :  { %v3017_v1 = vpop.f32.mrf.mxu0  ;;  %v4466_v0 = vpop.f32.mrf.mxu3  ;;  %v3315_v56 = vsel %vm3075_vm13, %v9874_v18, %v5862_v58 }
 0x5f9   :  { %v9896_v38 = vadd.f32 %v9781_v17, %v3017_v1  ;;  %v4467_v7 = vadd.f32 %v9707_v11, %v4466_v0  ;;  %v5139_v1 = vsel %vm5137_vm14, %v10603_v63, %v6327_v24  ;;  %v10604_v0 = vld [vmem:[#allocation2_spill] sm:$0xff] }
 0x5fb   :  { %v7252_v16 = vpop.eup %7251  ;;  %v3125_v3 = vmin.f32 %v9896_v38, 0.0  ;;  %v4571_v23 = vmul.f32 0.5, %v4467_v7  ;;  %v5138_v7 = vsel %vm5137_vm14, %v10604_v0, %v6326_v4  ;;  %vm3077_vm10 = vcmp.gt.f32.partialorder %v9896_v38, 0.0 }
 0x5fc   :  { %v4666_v22 = vadd.f32 1.0, %v7252_v16 }
 0x5fd   :  { %v7254_v35 = vpop.eup %7253  ;;  %v3213_v43 = vmul.f32 1.442695, %v3125_v3  ;;  %7255 = vtanh.f32 %v4571_v23 }
 0x5fe   :  { %v5863_v5 = vadd.f32 -1.0, %v7254_v35  ;;  %v4714_v25 = vmul.f32 0.5, %v4666_v22  ;;  %v9900_v9 = vpop.permute.xlu0 %6429  ;;  %v9920_v35 = vpop.permute.xlu1 %6389 }
 0x5ff   :  { %7257 = vpow2.f32 %v3213_v43 }
 0x600   :  { %v3019_v55 = vpop.f32.mrf.mxu0  ;;  %v4468_v52 = vpop.f32.mrf.mxu3  ;;  %v6463_v49 = vpack.i.bf16 %v4714_v25, %v4713_v41  ;;  %v3316_v51 = vsel %vm3076_vm12, %v3015_v8, %v5863_v5 }
 0x601   :  { %v3020_v19 = vadd.f32 %v9781_v17, %v3019_v55  ;;  %v4469_v2 = vadd.f32 %v9707_v11, %v4468_v52  ;;  %v3344_v31 = vpack.c.bf16 %v3316_v51, %v3315_v56  ;;  %v9925_v55 = vpop.permute.xlu2 %6379 }
 0x602   :  { %6464 = vrot.lane.b32.xlu1 %v6463_v49, %s7503_s25 }
 0x603   :  { %v3126_v13 = vmin.f32 %v3020_v19, 0.0  ;;  %v4572_v62 = vmul.f32 0.5, %v4469_v2  ;;  %3519 = vmatmul.bf16.gmra.mxu1 %v3344_v31  ;;  %v7256_v21 = vpop.eup %7255  ;;  %vm3078_vm1 = vcmp.gt.f32.partialorder %v3020_v19, 0.0 }
 0x604   :  { %v4667_v58 = vadd.f32 1.0, %v7256_v21 }
 0x605   :  { %v3215_v8 = vmul.f32 1.442695, %v3126_v13  ;;  %7259 = vtanh.f32 %v4572_v62  ;;  %v7258_v53 = vpop.eup %7257 }
 0x606   :  { %v6445_v50 = vpop.permute.xlu0 %6444  ;;  %v5864_v52 = vadd.f32 -1.0, %v7258_v53  ;;  %v4715_v31 = vmul.f32 0.5, %v4667_v58 }
 0x607   :  { %7261 = vpow2.f32 %v3215_v8  ;;  %v6447_v18 = vunpack.i.h.bf16 %v6445_v50  ;;  %v6446_v45 = vunpack.i.l.bf16 %v6445_v50 }
 0x608   :  { %v4471_v12 = vpop.f32.mrf.mxu3  ;;  %v3317_v50 = vsel %vm3077_vm10, %v9896_v38, %v5864_v52 }
 0x609   :  { %v5187_v61 = vsel %vm5186_vm15, %v5138_v7, %v6446_v45  ;;  %v5188_v16 = vsel %vm5186_vm15, %v5139_v1, %v6447_v18  ;;  %v3022_v3 = vpop.f32.mrf.mxu0  ;;  %v4472_v22 = vadd.f32 %v9707_v11, %v4471_v12  ;;  %v9935_v12 = vpop.permute.xlu1 %6404 }
 0x60a   :  { %v5236_v23 = vsel %vm5235_vm0, %v5187_v61, 0.0  ;;  %v5237_v41 = vsel %vm5235_vm0, %v5188_v16, 0.0  ;;  %v3023_v5 = vadd.f32 %v9781_v17, %v3022_v3  ;;  %v9938_v38 = vpop.permute.xlu2 %6394 }
 0x60b   :  { %v7260_v25 = vpop.eup %7259  ;;  %v6179_v43 = vpack.c.bf16 %v5237_v41, %v5236_v23  ;;  %v4573_v56 = vmul.f32 0.5, %v4472_v22 }
 0x60c   :  { %v4668_v49 = vadd.f32 1.0, %v7260_v25  ;;  %v3127_v51 = vmin.f32 %v3023_v5, 0.0  ;;  %vm3079_vm2 = vcmp.gt.f32.partialorder %v3023_v5, 0.0 }
 0x60d   :  { %v7262_v2 = vpop.eup %7261  ;;  %6180 = vst [vmem:[%s10462_s3] sm:$0xff] %v6179_v43   ;;  %7263 = vtanh.f32 %v4573_v56 }
 0x60e   :  { %v5865_v13 = vadd.f32 -1.0, %v7262_v2  ;;  %v4716_v62 = vmul.f32 0.5, %v4668_v49  ;;  %v3217_v24 = vmul.f32 1.442695, %v3127_v51 }
 0x610   :  { %v4473_v4 = vpop.f32.mrf.mxu3  ;;  %v6468_v8 = vpack.i.bf16 %v4716_v62, %v4715_v31  ;;  %v3318_v21 = vsel %vm3078_vm1, %v3020_v19, %v5865_v13  ;;  %7265 = vpow2.f32 %v3217_v24 }
 0x611   :  { %v3024_v18 = vpop.f32.mrf.mxu0  ;;  %v4474_v45 = vadd.f32 %v9707_v11, %v4473_v4  ;;  %v3345_v63 = vpack.c.bf16 %v3318_v21, %v3317_v50  ;;  %v9941_v51 = vpop.permute.xlu1 %6419 }
 0x612   :  { %v3025_v1 = vadd.f32 %v9781_v17, %v3024_v18  ;;  %6469 = vrot.lane.b32.xlu2 %v6468_v8, %s7503_s25  ;;  %v9943_v62 = vpop.permute.xlu2 %6409 }
 0x613   :  { %v4574_v0 = vmul.f32 0.5, %v4474_v45  ;;  %v3500_v7 = vpop.f32.mrf.mxu1  ;;  %3524 = vmatmul.bf16.gmra.mxu1 %v3345_v63  ;;  %v7264_v11 = vpop.eup %7263 }
 0x614   :  { %v3128_v53 = vmin.f32 %v3025_v1, 0.0  ;;  %v3501_v61 = vadd.f32 %v9812_v47, %v3500_v7  ;;  %v4669_v22 = vadd.f32 1.0, %v7264_v11  ;;  %vm3080_vm3 = vcmp.gt.f32.partialorder %v3025_v1, 0.0 }
 0x615   :  { %7267 = vtanh.f32 %v4574_v0 }
 0x616   :  { %v3219_v19 = vmul.f32 1.442695, %v3128_v53  ;;  %v3623_v16 = vmin.f32 %v3501_v61, 0.0  ;;  %v7266_v3 = vpop.eup %7265  ;;  %v4717_v2 = vmul.f32 0.5, %v4669_v22  ;;  %vm3575_vm4 = vcmp.gt.f32.partialorder %v3501_v61, 0.0 }
 0x617   :  { %v5866_v52 = vadd.f32 -1.0, %v7266_v3 }
 0x618   :  { %7269 = vpow2.f32 %v3219_v19  ;;  %v3701_v58 = vmul.f32 1.442695, %v3623_v16 }
 0x619   :  { %v3319_v8 = vsel %vm3079_vm2, %v3023_v5, %v5866_v52 }
 0x61a   :  { %7271 = vpow2.f32 %v3701_v58  ;;  %v9952_v5 = vpop.permute.xlu2 %6424  ;;  %v6332_v58 = vunpack.i.h.bf16 %v9866_v60 }
 0x61b   :  { %v7268_v23 = vpop.eup %7267  ;;  %v3502_v41 = vpop.f32.mrf.mxu1 }
 0x61c   :  { %v4670_v25 = vadd.f32 1.0, %v7268_v23  ;;  %v3503_v43 = vadd.f32 %v9812_v47, %v3502_v41  ;;  %v6331_v23 = vunpack.i.l.bf16 %v9866_v60 }
 0x61e   :  { %v7270_v49 = vpop.eup %7269  ;;  %v4718_v56 = vmul.f32 0.5, %v4670_v25  ;;  %v3624_v31 = vmin.f32 %v3503_v43, 0.0  ;;  %vm3576_vm5 = vcmp.gt.f32.partialorder %v3503_v43, 0.0 }
 0x61f   :  { %v5867_v13 = vadd.f32 -1.0, %v7270_v49  ;;  %v9960_v49 = vld [vmem:[%s10460_s2 + $0x6] ss:$0 sm:$0xff] }
 0x620   :  { %v3703_v24 = vmul.f32 1.442695, %v3624_v31  ;;  %v6473_v4 = vpack.i.bf16 %v4718_v56, %v4717_v2  ;;  %v7272_v45 = vpop.eup %7271 }
 0x621   :  { %v3320_v50 = vsel %vm3080_vm3, %v3025_v1, %v5867_v13  ;;  %v5950_v53 = vadd.f32 -1.0, %v7272_v45  ;;  %v10605_v13 = vld [vmem:[#allocation5_spill] sm:$0xff] }
 0x622   :  { %7273 = vpow2.f32 %v3703_v24  ;;  %6474 = vrot.lane.b32.xlu0 %v6473_v4, %s7503_s25  ;;  %v3346_v21 = vpack.c.bf16 %v3320_v50, %v3319_v8  ;;  %v5141_v24 = vsel %vm5137_vm14, %v10605_v13, %v6332_v58  ;;  %v10606_v4 = vld [vmem:[#allocation4_spill] sm:$0xff]  ;;  %v6337_v58 = vunpack.i.h.bf16 %v9882_v39 }
 0x623   :  { %v3505_v18 = vpop.f32.mrf.mxu1  ;;  %v3815_v3 = vsel %vm3575_vm4, %v3501_v61, %v5950_v53  ;;  %v5140_v8 = vsel %vm5137_vm14, %v10606_v4, %v6331_v23 }
 0x624   :  { %v9947_v63 = vadd.f32 %v9812_v47, %v3505_v18  ;;  %3529 = vmatmul.bf16.gmra.mxu1 %v3346_v21  ;;  %v9950_v7 = vpop.permute.xlu1 %6434 }
 0x626   :  { %v3625_v0 = vmin.f32 %v9947_v63, 0.0  ;;  %vm3577_vm6 = vcmp.gt.f32.partialorder %v9947_v63, 0.0 }
 0x628   :  { %v7274_v19 = vpop.eup %7273  ;;  %v3705_v11 = vmul.f32 1.442695, %v3625_v0 }
 0x629   :  { %v5951_v16 = vadd.f32 -1.0, %v7274_v19 }
 0x62a   :  { %7275 = vpow2.f32 %v3705_v11 }
 0x62b   :  { %v3507_v1 = vpop.f32.mrf.mxu1  ;;  %v3816_v22 = vsel %vm3576_vm5, %v3503_v43, %v5951_v16 }
 0x62c   :  { %v3508_v41 = vadd.f32 %v9812_v47, %v3507_v1  ;;  %v3988_v25 = vpop.f32.mrf.mxu2  ;;  %v3848_v52 = vpack.c.bf16 %v3816_v22, %v3815_v3  ;;  %v6450_v61 = vpop.permute.xlu1 %6449 }
 0x62d   :  { %v9963_v2 = vadd.f32 %v9960_v49, %v3988_v25  ;;  %v6452_v31 = vunpack.i.h.bf16 %v6450_v61  ;;  %v6451_v60 = vunpack.i.l.bf16 %v6450_v61 }
 0x62e   :  { %v3626_v56 = vmin.f32 %v3508_v41, 0.0  ;;  %4007 = vmatmul.bf16.gmra.mxu2 %v3848_v52  ;;  %vm3578_vm7 = vcmp.gt.f32.partialorder %v3508_v41, 0.0 }
 0x62f   :  { %v4123_v43 = vmin.f32 %v9963_v2, 0.0  ;;  %v5190_v21 = vsel %vm5186_vm15, %v5141_v24, %v6452_v31  ;;  %v5189_v18 = vsel %vm5186_vm15, %v5140_v8, %v6451_v60  ;;  %v3027_v45 = vpop.f32.mrf.mxu0  ;;  %v10607_v24 = vld [vmem:[#allocation7_spill] sm:$0xff]  ;;  %vm4075_vm8 = vcmp.gt.f32.partialorder %v9963_v2, 0.0 }
 0x630   :  { %v3707_v50 = vmul.f32 1.442695, %v3626_v56  ;;  %v5239_v0 = vsel %vm5235_vm0, %v5190_v21, 0.0  ;;  %v5238_v53 = vsel %vm5235_vm0, %v5189_v18, 0.0  ;;  %v9975_v19 = vadd.f32 %v9781_v17, %v3027_v45  ;;  %v7276_v11 = vpop.eup %7275 }
 0x631   :  { %v4193_v1 = vmul.f32 1.442695, %v4123_v43  ;;  %v6184_v3 = vpack.c.bf16 %v5239_v0, %v5238_v53  ;;  %v6336_v56 = vunpack.i.l.bf16 %v9882_v39  ;;  %v5952_v31 = vadd.f32 -1.0, %v7276_v11 }
 0x632   :  { %7277 = vpow2.f32 %v3707_v50  ;;  %v9977_v16 = vpop.permute.xlu2 %6439  ;;  %v3129_v23 = vmin.f32 %v9975_v19, 0.0  ;;  %v5143_v4 = vsel %vm5137_vm14, %v10607_v24, %v6337_v58  ;;  %v10608_v50 = vld [vmem:[#allocation6_spill] sm:$0xff]  ;;  %vm3081_vm11 = vcmp.gt.f32.partialorder %v9975_v19, 0.0 }
 0x633   :  { %v3510_v22 = vpop.f32.mrf.mxu1  ;;  %6296 = vst [vmem:[%s10462_s3 + $0x8] sm:$0xff] %v6184_v3   ;;  %7279 = vpow2.f32 %v4193_v1  ;;  %v5142_v21 = vsel %vm5137_vm14, %v10608_v50, %v6336_v56  ;;  %v3817_v1 = vsel %vm3577_vm6, %v9947_v63, %v5952_v31 }
 0x634   :  { %v9982_v25 = vadd.f32 %v9812_v47, %v3510_v22  ;;  %v3990_v52 = vpop.f32.mrf.mxu2  ;;  %v3221_v8 = vmul.f32 1.442695, %v3129_v23 }
 0x635   :  { %v3991_v61 = vadd.f32 %v9960_v49, %v3990_v52 }
 0x636   :  { %v3627_v43 = vmin.f32 %v9982_v25, 0.0  ;;  %vm3579_vm13 = vcmp.gt.f32.partialorder %v9982_v25, 0.0 }
 0x637   :  { %v4124_v60 = vmin.f32 %v3991_v61, 0.0  ;;  %v3029_v45 = vpop.f32.mrf.mxu0  ;;  %vm4076_vm9 = vcmp.gt.f32.partialorder %v3991_v61, 0.0 }
 0x638   :  { %v7278_v13 = vpop.eup %7277  ;;  %v3709_v0 = vmul.f32 1.442695, %v3627_v43  ;;  %v3030_v53 = vadd.f32 %v9781_v17, %v3029_v45 }
 0x639   :  { %v5953_v39 = vadd.f32 -1.0, %v7278_v13  ;;  %v4195_v18 = vmul.f32 1.442695, %v4124_v60  ;;  %v7280_v13 = vpop.eup %7279 }
 0x63a   :  { %v6455_v11 = vpop.permute.xlu2 %6454  ;;  %v3130_v52 = vmin.f32 %v3030_v53, 0.0  ;;  %vm3082_vm12 = vcmp.gt.f32.partialorder %v3030_v53, 0.0 }
 0x63b   :  { %7281 = vpow2.f32 %v4195_v18  ;;  %v6457_v3 = vunpack.i.h.bf16 %v6455_v11  ;;  %v6456_v22 = vunpack.i.l.bf16 %v6455_v11  ;;  %v3512_v58 = vpop.f32.mrf.mxu1  ;;  %v3818_v23 = vsel %vm3578_vm7, %v3508_v41, %v5953_v39 }
 0x63c   :  { %7283 = vpow2.f32 %v3221_v8  ;;  %v3513_v56 = vadd.f32 %v9812_v47, %v3512_v58  ;;  %v3849_v24 = vpack.c.bf16 %v3818_v23, %v3817_v1  ;;  %v3993_v50 = vpop.f32.mrf.mxu2  ;;  %v3223_v17 = vmul.f32 1.442695, %v3130_v52 }
 0x63d   :  { %v5192_v60 = vsel %vm5186_vm15, %v5143_v4, %v6457_v3  ;;  %v5191_v43 = vsel %vm5186_vm15, %v5142_v21, %v6456_v22  ;;  %7285 = vpow2.f32 %v3709_v0  ;;  %v10003_v8 = vadd.f32 %v9960_v49, %v3993_v50 }
 0x63e   :  { %v5241_v45 = vsel %vm5235_vm0, %v5192_v60, 0.0  ;;  %v5240_v63 = vsel %vm5235_vm0, %v5191_v43, 0.0  ;;  %4012 = vmatmul.bf16.gmra.mxu2 %v3849_v24  ;;  %v3628_v41 = vmin.f32 %v3513_v56, 0.0  ;;  %v6038_v39 = vadd.f32 -1.0, %v7280_v13 }
 0x63f   :  { %v6189_v31 = vpack.c.bf16 %v5241_v45, %v5240_v63  ;;  %7287 = vpow2.f32 %v3223_v17  ;;  %v4125_v21 = vmin.f32 %v10003_v8, 0.0  ;;  %v10018_v45 = vld [vmem:[%s10460_s2 + $0x7] ss:$0 sm:$0xff]  ;;  %vm3580_vm10 = vcmp.gt.f32.partialorder %v3513_v56, 0.0 }
 0x640   :  { %v3711_v4 = vmul.f32 1.442695, %v3628_v41  ;;  %v4315_v22 = vsel %vm4075_vm8, %v9963_v2, %v6038_v39  ;;  %vm4077_vm1 = vcmp.gt.f32.partialorder %v10003_v8, 0.0 }
 0x641   :  { %v7282_v18 = vpop.eup %7281  ;;  %6297 = vst [vmem:[%s10462_s3 + $0x10] sm:$0xff] %v6189_v31   ;;  %v4197_v0 = vmul.f32 1.442695, %v4125_v21 }
 0x642   :  { %v7284_v11 = vpop.eup %7283  ;;  %v6039_v1 = vadd.f32 -1.0, %v7282_v18  ;;  %7289 = vpow2.f32 %v3711_v4 }
 0x643   :  { %v3515_v3 = vpop.f32.mrf.mxu1  ;;  %v7286_v23 = vpop.eup %7285  ;;  %v5868_v52 = vadd.f32 -1.0, %v7284_v11  ;;  %7291 = vpow2.f32 %v4197_v0 }
 0x644   :  { %v4316_v58 = vsel %vm4076_vm9, %v3991_v61, %v6039_v1  ;;  %v10012_v24 = vadd.f32 %v9812_v47, %v3515_v3  ;;  %v3995_v13 = vpop.f32.mrf.mxu2  ;;  %v5954_v31 = vadd.f32 -1.0, %v7286_v23 }
 0x645   :  { %v4476_v60 = vpop.f32.mrf.mxu3  ;;  %v4352_v43 = vpack.c.bf16 %v4316_v58, %v4315_v22  ;;  %v7288_v50 = vpop.eup %7287  ;;  %v3996_v17 = vadd.f32 %v9960_v49, %v3995_v13  ;;  %v3321_v18 = vsel %vm3081_vm11, %v9975_v19, %v5868_v52 }
 0x646   :  { %v4477_v63 = vadd.f32 %v10018_v45, %v4476_v60  ;;  %v5869_v2 = vadd.f32 -1.0, %v7288_v50  ;;  %v3629_v61 = vmin.f32 %v10012_v24, 0.0  ;;  %v3819_v23 = vsel %vm3579_vm13, %v9982_v25, %v5954_v31 }
 0x647   :  { %4495 = vmatmul.bf16.gmra.mxu3 %v4352_v43  ;;  %v4126_v41 = vmin.f32 %v3996_v17, 0.0  ;;  %vm4078_vm2 = vcmp.gt.f32.partialorder %v3996_v17, 0.0  ;;  %vm3581_vm3 = vcmp.gt.f32.partialorder %v10012_v24, 0.0 }
 0x648   :  { %v7290_v39 = vpop.eup %7289  ;;  %v3322_v4 = vsel %vm3082_vm12, %v3030_v53, %v5869_v2  ;;  %v4575_v1 = vmul.f32 0.5, %v4477_v63  ;;  %v3713_v22 = vmul.f32 1.442695, %v3629_v61 }
 0x649   :  { %v5955_v21 = vadd.f32 -1.0, %v7290_v39  ;;  %v4199_v11 = vmul.f32 1.442695, %v4126_v41  ;;  %v3347_v3 = vpack.c.bf16 %v3322_v4, %v3321_v18  ;;  %v7292_v53 = vpop.eup %7291 }
 0x64a   :  { %v6040_v25 = vadd.f32 -1.0, %v7292_v53 }
 0x64b   :  { %7293 = vpow2.f32 %v4199_v11  ;;  %v3517_v58 = vpop.f32.mrf.mxu1  ;;  %3534 = vmatmul.bf16.gmra.mxu1 %v3347_v3  ;;  %v3820_v13 = vsel %vm3580_vm10, %v3513_v56, %v5955_v21 }
 0x64c   :  { %v3518_v0 = vadd.f32 %v9812_v47, %v3517_v58  ;;  %v3998_v60 = vpop.f32.mrf.mxu2  ;;  %v3850_v19 = vpack.c.bf16 %v3820_v13, %v3819_v23  ;;  %7295 = vtanh.f32 %v4575_v1  ;;  %v4317_v11 = vsel %vm4077_vm1, %v10003_v8, %v6040_v25 }
 0x64d   :  { %v4478_v43 = vpop.f32.mrf.mxu3  ;;  %v10028_v52 = vadd.f32 %v9960_v49, %v3998_v60  ;;  %7297 = vpow2.f32 %v3713_v22  ;;  %v7496_v22 = vld [vmem:[%s10460_s2 + $0x4] ss:$0 sm:$0xff] }
 0x64e   :  { %v4479_v50 = vadd.f32 %v10018_v45, %v4478_v43  ;;  %v3630_v63 = vmin.f32 %v3518_v0, 0.0  ;;  %4017 = vmatmul.bf16.gmra.mxu2 %v3850_v19  ;;  %vm3582_vm4 = vcmp.gt.f32.partialorder %v3518_v0, 0.0 }
 0x64f   :  { %v4127_v2 = vmin.f32 %v10028_v52, 0.0  ;;  %vm4079_vm5 = vcmp.gt.f32.partialorder %v10028_v52, 0.0 }
 0x650   :  { %v4576_v61 = vmul.f32 0.5, %v4479_v50  ;;  %v3715_v56 = vmul.f32 1.442695, %v3630_v63 }
 0x651   :  { %v7294_v31 = vpop.eup %7293  ;;  %v4201_v41 = vmul.f32 1.442695, %v4127_v2 }
 0x652   :  { %7299 = vtanh.f32 %v4576_v61  ;;  %v6041_v47 = vadd.f32 -1.0, %v7294_v31  ;;  %v7296_v39 = vpop.eup %7295 }
 0x653   :  { %7301 = vpow2.f32 %v3715_v56  ;;  %v7298_v18 = vpop.eup %7297  ;;  %v4671_v60 = vadd.f32 1.0, %v7296_v39 }
 0x654   :  { %v4000_v4 = vpop.f32.mrf.mxu2  ;;  %v4318_v1 = vsel %vm4078_vm2, %v3996_v17, %v6041_v47  ;;  %7303 = vpow2.f32 %v4201_v41  ;;  %v5956_v53 = vadd.f32 -1.0, %v7298_v18 }
 0x655   :  { %v3032_v21 = vpop.f32.mrf.mxu0  ;;  %v4001_v3 = vadd.f32 %v9960_v49, %v4000_v4  ;;  %v4481_v23 = vpop.f32.mrf.mxu3  ;;  %v4353_v13 = vpack.c.bf16 %v4318_v1, %v4317_v11  ;;  %v4719_v56 = vmul.f32 0.5, %v4671_v60 }
 0x656   :  { %v10038_v58 = vadd.f32 %v7496_v22, %v3032_v21  ;;  %v4482_v43 = vadd.f32 %v10018_v45, %v4481_v23  ;;  %v3821_v47 = vsel %vm3581_vm3, %v10012_v24, %v5956_v53 }
 0x657   :  { %v4128_v50 = vmin.f32 %v4001_v3, 0.0  ;;  %4500 = vmatmul.bf16.gmra.mxu3 %v4353_v13  ;;  %vm4080_vm6 = vcmp.gt.f32.partialorder %v4001_v3, 0.0 }
 0x658   :  { %v7300_v19 = vpop.eup %7299  ;;  %v3131_v63 = vmin.f32 %v10038_v58, 0.0  ;;  %v4577_v25 = vmul.f32 0.5, %v4482_v43  ;;  %vm3083_vm7 = vcmp.gt.f32.partialorder %v10038_v58, 0.0 }
 0x659   :  { %v7302_v8 = vpop.eup %7301  ;;  %v4672_v17 = vadd.f32 1.0, %v7300_v19  ;;  %v4203_v61 = vmul.f32 1.442695, %v4128_v50 }
 0x65a   :  { %v5957_v2 = vadd.f32 -1.0, %v7302_v8  ;;  %v7304_v39 = vpop.eup %7303  ;;  %v3225_v18 = vmul.f32 1.442695, %v3131_v63  ;;  %v6342_v8 = vunpack.i.h.bf16 %v9833_v33 }
 0x65b   :  { %v4720_v31 = vmul.f32 0.5, %v4672_v17  ;;  %7305 = vpow2.f32 %v4203_v61  ;;  %v6042_v24 = vadd.f32 -1.0, %v7304_v39  ;;  %v6341_v17 = vunpack.i.l.bf16 %v9833_v33  ;;  %v10610_v33 = vld [vmem:[#allocation8_spill] sm:$0xff] }
 0x65c   :  { %v3822_v41 = vsel %vm3582_vm4, %v3518_v0, %v5957_v2  ;;  %v4003_v4 = vpop.f32.mrf.mxu2  ;;  %7307 = vtanh.f32 %v4577_v25 }
 0x65d   :  { %v3034_v21 = vpop.f32.mrf.mxu0  ;;  %v3851_v11 = vpack.c.bf16 %v3822_v41, %v3821_v47  ;;  %v6478_v1 = vpack.i.bf16 %v4720_v31, %v4719_v56  ;;  %v10045_v23 = vadd.f32 %v9960_v49, %v4003_v4  ;;  %v4483_v43 = vpop.f32.mrf.mxu3  ;;  %7309 = vpow2.f32 %v3225_v18  ;;  %v10609_v18 = vld [vmem:[#allocation9_spill] sm:$0xff] }
 0x65e   :  { %v10047_v13 = vadd.f32 %v7496_v22, %v3034_v21  ;;  %v4484_v60 = vadd.f32 %v10018_v45, %v4483_v43  ;;  %v4319_v56 = vsel %vm4079_vm5, %v10028_v52, %v6042_v24  ;;  %v5145_v4 = vsel %vm5137_vm14, %v10609_v18, %v6342_v8 }
 0x65f   :  { %4022 = vmatmul.bf16.gmra.mxu2 %v3851_v11  ;;  %6479 = vrot.lane.b32.xlu1 %v6478_v1, %s7503_s25  ;;  %v4129_v0 = vmin.f32 %v10045_v23, 0.0  ;;  %v5144_v21 = vsel %vm5137_vm14, %v10610_v33, %v6341_v17  ;;  %vm4081_vm9 = vcmp.gt.f32.partialorder %v10045_v23, 0.0 }
 0x660   :  { %v3132_v19 = vmin.f32 %v10047_v13, 0.0  ;;  %v4578_v53 = vmul.f32 0.5, %v4484_v60  ;;  %v6352_v60 = vunpack.i.h.bf16 %v9893_v59  ;;  %vm3084_vm8 = vcmp.gt.f32.partialorder %v10047_v13, 0.0 }
 0x661   :  { %v7306_v50 = vpop.eup %7305  ;;  %v4205_v61 = vmul.f32 1.442695, %v4129_v0 }
 0x662   :  { %v3227_v22 = vmul.f32 1.442695, %v3132_v19  ;;  %v6043_v63 = vadd.f32 -1.0, %v7306_v50  ;;  %7311 = vtanh.f32 %v4578_v53  ;;  %v7308_v2 = vpop.eup %7307 }
 0x663   :  { %v7310_v43 = vpop.eup %7309  ;;  %v4673_v0 = vadd.f32 1.0, %v7308_v2 }
 0x664   :  { %v6460_v25 = vpop.permute.xlu0 %6459  ;;  %7313 = vpow2.f32 %v3227_v22  ;;  %v4005_v31 = vpop.f32.mrf.mxu2  ;;  %v4320_v39 = vsel %vm4080_vm6, %v4001_v3, %v6043_v63  ;;  %v6351_v63 = vunpack.i.l.bf16 %v9893_v59  ;;  %v5870_v2 = vadd.f32 -1.0, %v7310_v43  ;;  %v10612_v43 = vld [vmem:[#allocation14_spill] sm:$0xff] }
 0x665   :  { %v6462_v47 = vunpack.i.h.bf16 %v6460_v25  ;;  %v6461_v41 = vunpack.i.l.bf16 %v6460_v25  ;;  %v10062_v11 = vadd.f32 %v9960_v49, %v4005_v31  ;;  %v4354_v1 = vpack.c.bf16 %v4320_v39, %v4319_v56  ;;  %v4486_v19 = vpop.f32.mrf.mxu3 }
 0x666   :  { %7315 = vpow2.f32 %v4205_v61  ;;  %v4487_v22 = vadd.f32 %v10018_v45, %v4486_v19 }
 0x667   :  { %v5193_v52 = vsel %vm5186_vm15, %v5144_v21, %v6461_v41  ;;  %v5194_v24 = vsel %vm5186_vm15, %v5145_v4, %v6462_v47  ;;  %v4130_v3 = vmin.f32 %v10062_v11, 0.0  ;;  %4505 = vmatmul.bf16.gmra.mxu3 %v4354_v1  ;;  %v10611_v47 = vld [vmem:[#allocation10_spill] sm:$0xff]  ;;  %v4721_v41 = vmul.f32 0.5, %v4673_v0 }
 0x668   :  { %v5242_v53 = vsel %vm5235_vm0, %v5193_v52, 0.0  ;;  %v5243_v50 = vsel %vm5235_vm0, %v5194_v24, 0.0  ;;  %v7312_v8 = vpop.eup %7311  ;;  %v5149_v61 = vsel %vm5137_vm14, %v10611_v47, %v6352_v60  ;;  %v4579_v4 = vmul.f32 0.5, %v4487_v22 }
 0x669   :  { %v6194_v17 = vpack.c.bf16 %v5243_v50, %v5242_v53  ;;  %v4674_v25 = vadd.f32 1.0, %v7312_v8  ;;  %v4207_v56 = vmul.f32 1.442695, %v4130_v3  ;;  %v5148_v60 = vsel %vm5137_vm14, %v10612_v43, %v6351_v63 }
 0x66a   :  { %v7314_v31 = vpop.eup %7313  ;;  %v3323_v52 = vsel %vm3083_vm7, %v10038_v58, %v5870_v2  ;;  %v6346_v2 = vunpack.i.l.bf16 %v9877_v40  ;;  %vm4082_vm11 = vcmp.gt.f32.partialorder %v10062_v11, 0.0 }
 0x66b   :  { %6298 = vst [vmem:[%s10462_s3 + $0x18] sm:$0xff] %v6194_v17   ;;  %v5871_v39 = vadd.f32 -1.0, %v7314_v31  ;;  %v4722_v18 = vmul.f32 0.5, %v4674_v25  ;;  %7317 = vpow2.f32 %v4207_v56 }
 0x66c   :  { %v6470_v33 = vpop.permute.xlu2 %6469  ;;  %v7316_v1 = vpop.eup %7315  ;;  %7319 = vtanh.f32 %v4579_v4 }
 0x66d   :  { %v6472_v59 = vunpack.i.h.bf16 %v6470_v33  ;;  %v6471_v21 = vunpack.i.l.bf16 %v6470_v33  ;;  %v6483_v0 = vpack.i.bf16 %v4722_v18, %v4721_v41  ;;  %v3324_v24 = vsel %vm3084_vm8, %v10047_v13, %v5871_v39  ;;  %v4488_v53 = vpop.f32.mrf.mxu3 }
 0x66e   :  { %v3348_v50 = vpack.c.bf16 %v3324_v24, %v3323_v52  ;;  %v4489_v22 = vadd.f32 %v10018_v45, %v4488_v53  ;;  %v6044_v63 = vadd.f32 -1.0, %v7316_v1  ;;  %v6347_v13 = vunpack.i.h.bf16 %v9877_v40  ;;  %v10613_v40 = vld [vmem:[#allocation13_spill] sm:$0xff] }
 0x66f   :  { %v5198_v19 = vsel %vm5186_vm15, %v5149_v61, %v6472_v59  ;;  %v5197_v3 = vsel %vm5186_vm15, %v5148_v60, %v6471_v21  ;;  %6484 = vrot.lane.b32.xlu2 %v6483_v0, %s7503_s25  ;;  %v10614_v59 = vld [vmem:[#allocation11_spill] sm:$0xff] }
 0x670   :  { %v5247_v8 = vsel %vm5235_vm0, %v5198_v19, 0.0  ;;  %v5246_v17 = vsel %vm5235_vm0, %v5197_v3, 0.0  ;;  %3539 = vmatmul.bf16.gmra.mxu1 %v3348_v50  ;;  %v4580_v56 = vmul.f32 0.5, %v4489_v22  ;;  %v4321_v39 = vsel %vm4081_vm9, %v10045_v23, %v6044_v63 }
 0x671   :  { %v6204_v25 = vpack.c.bf16 %v5247_v8, %v5246_v17  ;;  %v7318_v58 = vpop.eup %7317  ;;  %v5147_v33 = vsel %vm5137_vm14, %v10613_v40, %v6347_v13  ;;  %v5146_v21 = vsel %vm5137_vm14, %v10614_v59, %v6346_v2  ;;  %v10115_v2 = vld [vmem:[%s10460_s2 + $0x5] ss:$0 sm:$0xff] }
 0x672   :  { %v6045_v31 = vadd.f32 -1.0, %v7318_v58  ;;  %7321 = vtanh.f32 %v4580_v56  ;;  %v7320_v4 = vpop.eup %7319 }
 0x673   :  { %6300 = vst [vmem:[%s10462_s3 + $0x28] sm:$0xff] %v6204_v25  }
 0x674   :  { %v6465_v47 = vpop.permute.xlu1 %6464  ;;  %v4322_v18 = vsel %vm4082_vm11, %v10062_v11, %v6045_v31  ;;  %v4675_v11 = vadd.f32 1.0, %v7320_v4 }
 0x675   :  { %v6467_v61 = vunpack.i.h.bf16 %v6465_v47  ;;  %v6466_v41 = vunpack.i.l.bf16 %v6465_v47  ;;  %v4355_v1 = vpack.c.bf16 %v4322_v18, %v4321_v39  ;;  %v4491_v0 = vpop.f32.mrf.mxu3 }
 0x676   :  { %v4492_v23 = vadd.f32 %v10018_v45, %v4491_v0  ;;  %v4723_v8 = vmul.f32 0.5, %v4675_v11 }
 0x677   :  { %v5196_v43 = vsel %vm5186_vm15, %v5147_v33, %v6467_v61  ;;  %v5195_v60 = vsel %vm5186_vm15, %v5146_v21, %v6466_v41  ;;  %4510 = vmatmul.bf16.gmra.mxu3 %v4355_v1 }
 0x678   :  { %v5245_v52 = vsel %vm5235_vm0, %v5196_v43, 0.0  ;;  %v5244_v24 = vsel %vm5235_vm0, %v5195_v60, 0.0  ;;  %v7322_v3 = vpop.eup %7321  ;;  %v4581_v50 = vmul.f32 0.5, %v4492_v23 }
 0x679   :  { %v6199_v19 = vpack.c.bf16 %v5245_v52, %v5244_v24  ;;  %v4676_v53 = vadd.f32 1.0, %v7322_v3  ;;  %v6357_v52 = vunpack.i.h.bf16 %v9845_v15  ;;  %v6356_v24 = vunpack.i.l.bf16 %v9845_v15 }
 0x67a   :  { %7323 = vtanh.f32 %v4581_v50 }
 0x67b   :  { %6299 = vst [vmem:[%s10462_s3 + $0x20] sm:$0xff] %v6199_v19   ;;  %v4724_v17 = vmul.f32 0.5, %v4676_v53 }
 0x67d   :  { %v4493_v22 = vpop.f32.mrf.mxu3  ;;  %v6488_v63 = vpack.i.bf16 %v4724_v17, %v4723_v8  ;;  %v10615_v17 = vld [vmem:[#allocation17_spill] sm:$0xff] }
 0x67e   :  { %v4494_v25 = vadd.f32 %v10018_v45, %v4493_v22  ;;  %v5151_v22 = vsel %vm5137_vm14, %v10615_v17, %v6357_v52 }
 0x67f   :  { %6489 = vrot.lane.b32.xlu0 %v6488_v63, %s7503_s25  ;;  %v10616_v63 = vld [vmem:[#allocation12_spill] sm:$0xff] }
 0x680   :  { %v3520_v58 = vpop.f32.mrf.mxu1  ;;  %v4582_v13 = vmul.f32 0.5, %v4494_v25  ;;  %v7324_v47 = vpop.eup %7323  ;;  %v5150_v25 = vsel %vm5137_vm14, %v10616_v63, %v6356_v24 }
 0x681   :  { %v3521_v56 = vadd.f32 %v10115_v2, %v3520_v58  ;;  %v4677_v41 = vadd.f32 1.0, %v7324_v47 }
 0x682   :  { %7325 = vtanh.f32 %v4582_v13 }
 0x683   :  { %v3631_v31 = vmin.f32 %v3521_v56, 0.0  ;;  %v4725_v59 = vmul.f32 0.5, %v4677_v41  ;;  %vm3583_vm12 = vcmp.gt.f32.partialorder %v3521_v56, 0.0 }
 0x685   :  { %v3717_v61 = vmul.f32 1.442695, %v3631_v31 }
 0x687   :  { %7327 = vpow2.f32 %v3717_v61 }
 0x688   :  { %v3522_v39 = vpop.f32.mrf.mxu1  ;;  %v7326_v18 = vpop.eup %7325 }
 0x689   :  { %v3523_v4 = vadd.f32 %v10115_v2, %v3522_v39  ;;  %v4678_v40 = vadd.f32 1.0, %v7326_v18 }
 0x68b   :  { %v3632_v33 = vmin.f32 %v3523_v4, 0.0  ;;  %v4726_v21 = vmul.f32 0.5, %v4678_v40  ;;  %vm3584_vm13 = vcmp.gt.f32.partialorder %v3523_v4, 0.0 }
 0x68d   :  { %v3719_v1 = vmul.f32 1.442695, %v3632_v33  ;;  %v6493_v43 = vpack.i.bf16 %v4726_v21, %v4725_v59  ;;  %v7328_v0 = vpop.eup %7327 }
 0x68e   :  { %v5958_v3 = vadd.f32 -1.0, %v7328_v0 }
 0x68f   :  { %7329 = vpow2.f32 %v3719_v1  ;;  %6494 = vrot.lane.b32.xlu1 %v6493_v43, %s7503_s25 }
 0x690   :  { %v3525_v60 = vpop.f32.mrf.mxu1  ;;  %v3823_v18 = vsel %vm3583_vm12, %v3521_v56, %v5958_v3 }
 0x691   :  { %v3526_v23 = vadd.f32 %v10115_v2, %v3525_v60 }
 0x693   :  { %v3633_v11 = vmin.f32 %v3526_v23, 0.0  ;;  %vm3585_vm10 = vcmp.gt.f32.partialorder %v3526_v23, 0.0 }
 0x694   :  { %v6475_v19 = vpop.permute.xlu0 %6474 }
 0x695   :  { %v6477_v53 = vunpack.i.h.bf16 %v6475_v19  ;;  %v6476_v50 = vunpack.i.l.bf16 %v6475_v19  ;;  %v7330_v8 = vpop.eup %7329  ;;  %v3721_v31 = vmul.f32 1.442695, %v3633_v11 }
 0x696   :  { %v5959_v58 = vadd.f32 -1.0, %v7330_v8 }
 0x697   :  { %v5199_v13 = vsel %vm5186_vm15, %v5150_v25, %v6476_v50  ;;  %v5200_v15 = vsel %vm5186_vm15, %v5151_v22, %v6477_v53  ;;  %7331 = vpow2.f32 %v3721_v31 }
 0x698   :  { %v5248_v47 = vsel %vm5235_vm0, %v5199_v13, 0.0  ;;  %v5249_v61 = vsel %vm5235_vm0, %v5200_v15, 0.0  ;;  %v3527_v39 = vpop.f32.mrf.mxu1  ;;  %v3824_v40 = vsel %vm3584_vm13, %v3523_v4, %v5959_v58 }
 0x699   :  { %v6209_v41 = vpack.c.bf16 %v5249_v61, %v5248_v47  ;;  %v3528_v33 = vadd.f32 %v10115_v2, %v3527_v39  ;;  %v3852_v59 = vpack.c.bf16 %v3824_v40, %v3823_v18 }
 0x69b   :  { %6301 = vst [vmem:[%s10462_s3 + $0x30] sm:$0xff] %v6209_v41   ;;  %v3634_v21 = vmin.f32 %v3528_v33, 0.0  ;;  %4027 = vmatmul.bf16.gmra.mxu2 %v3852_v59  ;;  %vm3586_vm1 = vcmp.gt.f32.partialorder %v3528_v33, 0.0 }
 0x69d   :  { %v3723_v1 = vmul.f32 1.442695, %v3634_v21  ;;  %v7332_v60 = vpop.eup %7331 }
 0x69e   :  { %v5960_v24 = vadd.f32 -1.0, %v7332_v60 }
 0x69f   :  { %7333 = vpow2.f32 %v3723_v1 }
 0x6a0   :  { %v3825_v3 = vsel %vm3585_vm10, %v3526_v23, %v5960_v24 }
 0x6a1   :  { %v3530_v43 = vpop.f32.mrf.mxu1 }
 0x6a2   :  { %v3531_v0 = vadd.f32 %v10115_v2, %v3530_v43 }
 0x6a4   :  { %v3635_v52 = vmin.f32 %v3531_v0, 0.0  ;;  %vm3587_vm2 = vcmp.gt.f32.partialorder %v3531_v0, 0.0 }
 0x6a5   :  { %v7334_v56 = vpop.eup %7333 }
 0x6a6   :  { %v5961_v4 = vadd.f32 -1.0, %v7334_v56  ;;  %v3725_v11 = vmul.f32 1.442695, %v3635_v52 }
 0x6a8   :  { %v3826_v53 = vsel %vm3586_vm1, %v3528_v33, %v5961_v4  ;;  %7335 = vpow2.f32 %v3725_v11  ;;  %v6366_v4 = vunpack.i.l.bf16 %v9908_v57 }
 0x6a9   :  { %v3532_v19 = vpop.f32.mrf.mxu1  ;;  %v3853_v8 = vpack.c.bf16 %v3826_v53, %v3825_v3 }
 0x6aa   :  { %v3533_v50 = vadd.f32 %v10115_v2, %v3532_v19 }
 0x6ab   :  { %4032 = vmatmul.bf16.gmra.mxu2 %v3853_v8 }
 0x6ac   :  { %v3636_v17 = vmin.f32 %v3533_v50, 0.0  ;;  %vm3588_vm3 = vcmp.gt.f32.partialorder %v3533_v50, 0.0 }
 0x6ae   :  { %v3727_v22 = vmul.f32 1.442695, %v3636_v17  ;;  %v7336_v25 = vpop.eup %7335 }
 0x6af   :  { %v5962_v15 = vadd.f32 -1.0, %v7336_v25 }
 0x6b0   :  { %7337 = vpow2.f32 %v3727_v22 }
 0x6b1   :  { %v4008_v63 = vpop.f32.mrf.mxu2  ;;  %v3827_v41 = vsel %vm3587_vm2, %v3531_v0, %v5962_v15  ;;  %v6367_v0 = vunpack.i.h.bf16 %v9908_v57 }
 0x6b2   :  { %v4009_v58 = vadd.f32 %v9960_v49, %v4008_v63 }
 0x6b4   :  { %v4131_v13 = vmin.f32 %v4009_v58, 0.0  ;;  %vm4083_vm4 = vcmp.gt.f32.partialorder %v4009_v58, 0.0 }
 0x6b6   :  { %v7338_v31 = vpop.eup %7337  ;;  %v4209_v23 = vmul.f32 1.442695, %v4131_v13  ;;  %v10617_v13 = vld [vmem:[#allocation19_spill] sm:$0xff] }
 0x6b7   :  { %v5963_v47 = vadd.f32 -1.0, %v7338_v31  ;;  %v5155_v15 = vsel %vm5137_vm14, %v10617_v13, %v6367_v0 }
 0x6b8   :  { %7339 = vpow2.f32 %v4209_v23 }
 0x6b9   :  { %v4010_v61 = vpop.f32.mrf.mxu2  ;;  %v3828_v39 = vsel %vm3588_vm3, %v3533_v50, %v5963_v47  ;;  %v10618_v47 = vld [vmem:[#allocation25_spill] sm:$0xff] }
 0x6ba   :  { %v4011_v18 = vadd.f32 %v9960_v49, %v4010_v61  ;;  %v3854_v40 = vpack.c.bf16 %v3828_v39, %v3827_v41  ;;  %v5154_v23 = vsel %vm5137_vm14, %v10618_v47, %v6366_v4 }
 0x6bc   :  { %v4132_v33 = vmin.f32 %v4011_v18, 0.0  ;;  %4037 = vmatmul.bf16.gmra.mxu2 %v3854_v40  ;;  %vm4084_vm5 = vcmp.gt.f32.partialorder %v4011_v18, 0.0 }
 0x6be   :  { %v4211_v59 = vmul.f32 1.442695, %v4132_v33  ;;  %v7340_v1 = vpop.eup %7339 }
 0x6bf   :  { %v6046_v52 = vadd.f32 -1.0, %v7340_v1  ;;  %v6361_v1 = vunpack.i.l.bf16 %v9889_v20 }
 0x6c0   :  { %7341 = vpow2.f32 %v4211_v59 }
 0x6c1   :  { %v4013_v21 = vpop.f32.mrf.mxu2  ;;  %v4323_v53 = vsel %vm4083_vm4, %v4009_v58, %v6046_v52 }
 0x6c2   :  { %v10140_v43 = vadd.f32 %v9960_v49, %v4013_v21  ;;  %v6362_v21 = vunpack.i.h.bf16 %v9889_v20 }
 0x6c4   :  { %v4133_v60 = vmin.f32 %v10140_v43, 0.0  ;;  %vm4085_vm6 = vcmp.gt.f32.partialorder %v10140_v43, 0.0 }
 0x6c6   :  { %v7342_v24 = vpop.eup %7341  ;;  %v4213_v11 = vmul.f32 1.442695, %v4133_v60 }
 0x6c7   :  { %v6047_v56 = vadd.f32 -1.0, %v7342_v24 }
 0x6c8   :  { %v3535_v19 = vpop.f32.mrf.mxu1  ;;  %7343 = vpow2.f32 %v4213_v11 }
 0x6c9   :  { %v4015_v3 = vpop.f32.mrf.mxu2  ;;  %v4324_v50 = vsel %vm4084_vm5, %v4011_v18, %v6047_v56  ;;  %v10146_v8 = vadd.f32 %v10115_v2, %v3535_v19  ;;  %v6485_v22 = vpop.permute.xlu2 %6484 }
 0x6ca   :  { %v4016_v17 = vadd.f32 %v9960_v49, %v4015_v3  ;;  %v4496_v63 = vpop.f32.mrf.mxu3  ;;  %v4356_v25 = vpack.c.bf16 %v4324_v50, %v4323_v53  ;;  %v6487_v31 = vunpack.i.h.bf16 %v6485_v22  ;;  %v6486_v57 = vunpack.i.l.bf16 %v6485_v22  ;;  %v10619_v22 = vld [vmem:[#allocation23_spill] sm:$0xff] }
 0x6cb   :  { %v3637_v58 = vmin.f32 %v10146_v8, 0.0  ;;  %v4497_v59 = vadd.f32 %v10018_v45, %v4496_v63  ;;  %v5153_v20 = vsel %vm5137_vm14, %v10619_v22, %v6362_v21  ;;  %v10620_v63 = vld [vmem:[#allocation18_spill] sm:$0xff]  ;;  %vm3589_vm8 = vcmp.gt.f32.partialorder %v10146_v8, 0.0 }
 0x6cc   :  { %v4134_v61 = vmin.f32 %v4016_v17, 0.0  ;;  %4515 = vmatmul.bf16.gmra.mxu3 %v4356_v25  ;;  %v5204_v41 = vsel %vm5186_vm15, %v5155_v15, %v6487_v31  ;;  %v5203_v39 = vsel %vm5186_vm15, %v5154_v23, %v6486_v57  ;;  %v5152_v25 = vsel %vm5137_vm14, %v10620_v63, %v6361_v1 }
 0x6cd   :  { %v5253_v40 = vsel %vm5235_vm0, %v5204_v41, 0.0  ;;  %v5252_v33 = vsel %vm5235_vm0, %v5203_v39, 0.0  ;;  %v3729_v52 = vmul.f32 1.442695, %v3637_v58  ;;  %v4583_v4 = vmul.f32 0.5, %v4497_v59 }
 0x6ce   :  { %v4215_v18 = vmul.f32 1.442695, %v4134_v61  ;;  %v6219_v60 = vpack.c.bf16 %v5253_v40, %v5252_v33  ;;  %v7344_v56 = vpop.eup %7343  ;;  %vm4086_vm7 = vcmp.gt.f32.partialorder %v4016_v17, 0.0 }
 0x6cf   :  { %v6048_v23 = vadd.f32 -1.0, %v7344_v56 }
 0x6d0   :  { %7345 = vpow2.f32 %v4215_v18  ;;  %6303 = vst [vmem:[%s10462_s3 + $0x40] sm:$0xff] %v6219_v60   ;;  %v3537_v24 = vpop.f32.mrf.mxu1 }
 0x6d1   :  { %v6480_v0 = vpop.permute.xlu1 %6479  ;;  %v3538_v11 = vadd.f32 %v10115_v2, %v3537_v24  ;;  %v4018_v19 = vpop.f32.mrf.mxu2  ;;  %7347 = vpow2.f32 %v3729_v52  ;;  %v4325_v52 = vsel %vm4085_vm6, %v10140_v43, %v6048_v23 }
 0x6d2   :  { %v6482_v3 = vunpack.i.h.bf16 %v6480_v0  ;;  %v6481_v53 = vunpack.i.l.bf16 %v6480_v0  ;;  %v4498_v50 = vpop.f32.mrf.mxu3  ;;  %v10170_v13 = vadd.f32 %v9960_v49, %v4018_v19  ;;  %7349 = vtanh.f32 %v4583_v4 }
 0x6d3   :  { %v4499_v15 = vadd.f32 %v10018_v45, %v4498_v50  ;;  %v3638_v31 = vmin.f32 %v3538_v11, 0.0  ;;  %vm3590_vm9 = vcmp.gt.f32.partialorder %v3538_v11, 0.0 }
 0x6d4   :  { %v5202_v57 = vsel %vm5186_vm15, %v5153_v20, %v6482_v3  ;;  %v5201_v47 = vsel %vm5186_vm15, %v5152_v25, %v6481_v53  ;;  %v4135_v58 = vmin.f32 %v10170_v13, 0.0  ;;  %vm4087_vm11 = vcmp.gt.f32.partialorder %v10170_v13, 0.0 }
 0x6d5   :  { %v5251_v61 = vsel %vm5235_vm0, %v5202_v57, 0.0  ;;  %v5250_v41 = vsel %vm5235_vm0, %v5201_v47, 0.0  ;;  %v3731_v39 = vmul.f32 1.442695, %v3638_v31  ;;  %v4584_v40 = vmul.f32 0.5, %v4499_v15 }
 0x6d6   :  { %v6214_v18 = vpack.c.bf16 %v5251_v61, %v5250_v41  ;;  %v7346_v33 = vpop.eup %7345  ;;  %v4217_v21 = vmul.f32 1.442695, %v4135_v58 }
 0x6d7   :  { %v6049_v59 = vadd.f32 -1.0, %v7346_v33  ;;  %7351 = vpow2.f32 %v3731_v39  ;;  %v7348_v1 = vpop.eup %7347 }
 0x6d8   :  { %6302 = vst [vmem:[%s10462_s3 + $0x38] sm:$0xff] %v6214_v18   ;;  %7353 = vtanh.f32 %v4584_v40  ;;  %v7350_v19 = vpop.eup %7349  ;;  %v5964_v53 = vadd.f32 -1.0, %v7348_v1 }
 0x6d9   :  { %v4020_v60 = vpop.f32.mrf.mxu2  ;;  %v4326_v24 = vsel %vm4086_vm7, %v4016_v17, %v6049_v59  ;;  %7355 = vpow2.f32 %v4217_v21  ;;  %v4679_v20 = vadd.f32 1.0, %v7350_v19 }
 0x6da   :  { %v4021_v0 = vadd.f32 %v9960_v49, %v4020_v60  ;;  %v4501_v56 = vpop.f32.mrf.mxu3  ;;  %v4357_v4 = vpack.c.bf16 %v4326_v24, %v4325_v52  ;;  %v3829_v31 = vsel %vm3589_vm8, %v10146_v8, %v5964_v53 }
 0x6db   :  { %v4502_v3 = vadd.f32 %v10018_v45, %v4501_v56  ;;  %v4727_v61 = vmul.f32 0.5, %v4679_v20 }
 0x6dc   :  { %v4136_v50 = vmin.f32 %v4021_v0, 0.0  ;;  %4520 = vmatmul.bf16.gmra.mxu3 %v4357_v4  ;;  %vm4088_vm12 = vcmp.gt.f32.partialorder %v4021_v0, 0.0 }
 0x6dd   :  { %v7352_v22 = vpop.eup %7351  ;;  %v4585_v43 = vmul.f32 0.5, %v4502_v3 }
 0x6de   :  { %v5965_v63 = vadd.f32 -1.0, %v7352_v22  ;;  %v4219_v25 = vmul.f32 1.442695, %v4136_v50  ;;  %v7354_v15 = vpop.eup %7353 }
 0x6df   :  { %v4680_v17 = vadd.f32 1.0, %v7354_v15  ;;  %v7356_v58 = vpop.eup %7355 }
 0x6e0   :  { %7357 = vpow2.f32 %v4219_v25  ;;  %v3830_v57 = vsel %vm3590_vm9, %v3538_v11, %v5965_v63  ;;  %v6050_v21 = vadd.f32 -1.0, %v7356_v58 }
 0x6e1   :  { %v3855_v23 = vpack.c.bf16 %v3830_v57, %v3829_v31  ;;  %v4728_v41 = vmul.f32 0.5, %v4680_v17  ;;  %7359 = vtanh.f32 %v4585_v43 }
 0x6e2   :  { %v4023_v47 = vpop.f32.mrf.mxu2  ;;  %v4503_v18 = vpop.f32.mrf.mxu3  ;;  %v4327_v56 = vsel %vm4087_vm11, %v10170_v13, %v6050_v21  ;;  %v6372_v13 = vunpack.i.h.bf16 %v9853_v10  ;;  %v10621_v21 = vld [vmem:[#allocation24_spill] sm:$0xff] }
 0x6e3   :  { %v10188_v39 = vadd.f32 %v9960_v49, %v4023_v47  ;;  %v4504_v40 = vadd.f32 %v10018_v45, %v4503_v18  ;;  %4042 = vmatmul.bf16.gmra.mxu2 %v3855_v23  ;;  %v6498_v59 = vpack.i.bf16 %v4728_v41, %v4727_v61 }
 0x6e5   :  { %v4137_v33 = vmin.f32 %v10188_v39, 0.0  ;;  %v4586_v1 = vmul.f32 0.5, %v4504_v40  ;;  %6499 = vrot.lane.b32.xlu2 %v6498_v59, %s7503_s25  ;;  %vm4089_vm13 = vcmp.gt.f32.partialorder %v10188_v39, 0.0 }
 0x6e6   :  { %v7358_v8 = vpop.eup %7357 }
 0x6e7   :  { %v6051_v11 = vadd.f32 -1.0, %v7358_v8  ;;  %7361 = vtanh.f32 %v4586_v1  ;;  %v4221_v60 = vmul.f32 1.442695, %v4137_v33  ;;  %v7360_v52 = vpop.eup %7359  ;;  %v5157_v1 = vsel %vm5137_vm14, %v10621_v21, %v6372_v13 }
 0x6e8   :  { %v4681_v22 = vadd.f32 1.0, %v7360_v52 }
 0x6e9   :  { %v4328_v4 = vsel %vm4088_vm12, %v4021_v0, %v6051_v11  ;;  %7363 = vpow2.f32 %v4221_v60  ;;  %v6371_v0 = vunpack.i.l.bf16 %v9853_v10  ;;  %v10622_v10 = vld [vmem:[#allocation22_spill] sm:$0xff] }
 0x6ea   :  { %v4025_v24 = vpop.f32.mrf.mxu2  ;;  %v4506_v3 = vpop.f32.mrf.mxu3  ;;  %v4358_v53 = vpack.c.bf16 %v4328_v4, %v4327_v56  ;;  %v4729_v31 = vmul.f32 0.5, %v4681_v22 }
 0x6eb   :  { %v4026_v19 = vadd.f32 %v9960_v49, %v4025_v24  ;;  %v4507_v50 = vadd.f32 %v10018_v45, %v4506_v3  ;;  %v5156_v8 = vsel %vm5137_vm14, %v10622_v10, %v6371_v0 }
 0x6ec   :  { %4525 = vmatmul.bf16.gmra.mxu3 %v4358_v53 }
 0x6ed   :  { %v4138_v20 = vmin.f32 %v4026_v19, 0.0  ;;  %v7362_v63 = vpop.eup %7361  ;;  %v3540_v25 = vpop.f32.mrf.mxu1  ;;  %v4587_v49 = vmul.f32 0.5, %v4507_v50  ;;  %vm4090_vm10 = vcmp.gt.f32.partialorder %v4026_v19, 0.0 }
 0x6ee   :  { %v4682_v15 = vadd.f32 1.0, %v7362_v63  ;;  %v10198_v17 = vadd.f32 %v10115_v2, %v3540_v25 }
 0x6ef   :  { %v4223_v43 = vmul.f32 1.442695, %v4138_v20  ;;  %v7364_v23 = vpop.eup %7363 }
 0x6f0   :  { %v4730_v57 = vmul.f32 0.5, %v4682_v15  ;;  %v3639_v47 = vmin.f32 %v10198_v17, 0.0  ;;  %v6052_v11 = vadd.f32 -1.0, %v7364_v23  ;;  %vm3591_vm1 = vcmp.gt.f32.partialorder %v10198_v17, 0.0 }
 0x6f1   :  { %7365 = vpow2.f32 %v4223_v43  ;;  %v6490_v61 = vpop.permute.xlu0 %6489 }
 0x6f2   :  { %v3733_v58 = vmul.f32 1.442695, %v3639_v47  ;;  %v4508_v41 = vpop.f32.mrf.mxu3  ;;  %v6503_v18 = vpack.i.bf16 %v4730_v57, %v4729_v31  ;;  %7367 = vtanh.f32 %v4587_v49  ;;  %v6492_v40 = vunpack.i.h.bf16 %v6490_v61 }
 0x6f3   :  { %v6491_v33 = vunpack.i.l.bf16 %v6490_v61  ;;  %v4509_v59 = vadd.f32 %v10018_v45, %v4508_v41  ;;  %v4329_v15 = vsel %vm4089_vm13, %v10188_v39, %v6052_v11  ;;  %v6377_v61 = vunpack.i.h.bf16 %v9902_v30 }
 0x6f4   :  { %6504 = vrot.lane.b32.xlu0 %v6503_v18, %s7503_s25  ;;  %v5206_v52 = vsel %vm5186_vm15, %v5157_v1, %v6492_v40  ;;  %7369 = vpow2.f32 %v3733_v58  ;;  %v6376_v41 = vunpack.i.l.bf16 %v9902_v30 }
 0x6f5   :  { %v5205_v60 = vsel %vm5186_vm15, %v5156_v8, %v6491_v33  ;;  %v4588_v24 = vmul.f32 0.5, %v4509_v59  ;;  %v3542_v56 = vpop.f32.mrf.mxu1  ;;  %v5255_v53 = vsel %vm5235_vm0, %v5206_v52, 0.0 }
 0x6f6   :  { %v5254_v3 = vsel %vm5235_vm0, %v5205_v60, 0.0  ;;  %v3543_v50 = vadd.f32 %v10115_v2, %v3542_v56  ;;  %v10623_v60 = vld [vmem:[#allocation27_spill] sm:$0xff] }
 0x6f7   :  { %v7366_v4 = vpop.eup %7365  ;;  %v6224_v20 = vpack.c.bf16 %v5255_v53, %v5254_v3  ;;  %7371 = vtanh.f32 %v4588_v24  ;;  %v5159_v52 = vsel %vm5137_vm14, %v10623_v60, %v6377_v61  ;;  %v10624_v24 = vld [vmem:[#allocation26_spill] sm:$0xff] }
 0x6f8   :  { %v6053_v22 = vadd.f32 -1.0, %v7366_v4  ;;  %v3640_v63 = vmin.f32 %v3543_v50, 0.0  ;;  %v7368_v25 = vpop.eup %7367  ;;  %v5158_v30 = vsel %vm5137_vm14, %v10624_v24, %v6376_v41  ;;  %vm3592_vm2 = vcmp.gt.f32.partialorder %v3543_v50, 0.0 }
 0x6f9   :  { %6304 = vst [vmem:[%s10462_s3 + $0x48] sm:$0xff] %v6224_v20   ;;  %v4683_v57 = vadd.f32 1.0, %v7368_v25 }
 0x6fa   :  { %v4330_v43 = vsel %vm4090_vm10, %v4026_v19, %v6053_v22  ;;  %v3735_v13 = vmul.f32 1.442695, %v3640_v63  ;;  %v4511_v0 = vpop.f32.mrf.mxu3  ;;  %v7370_v31 = vpop.eup %7369 }
 0x6fb   :  { %v4359_v49 = vpack.c.bf16 %v4330_v43, %v4329_v15  ;;  %v4512_v2 = vadd.f32 %v10018_v45, %v4511_v0  ;;  %v4731_v18 = vmul.f32 0.5, %v4683_v57  ;;  %v5966_v40 = vadd.f32 -1.0, %v7370_v31  ;;  %v10241_v31 = vld [vmem:[%s10460_s2 + $0x6] ss:$0 sm:$0xff] }
 0x6fc   :  { %7373 = vpow2.f32 %v3735_v13 }
 0x6fd   :  { %4530 = vmatmul.bf16.gmra.mxu3 %v4359_v49  ;;  %v7372_v47 = vpop.eup %7371  ;;  %v4589_v58 = vmul.f32 0.5, %v4512_v2  ;;  %v3831_v56 = vsel %vm3591_vm1, %v10198_v17, %v5966_v40 }
 0x6fe   :  { %v4684_v23 = vadd.f32 1.0, %v7372_v47 }
 0x6ff   :  { %7375 = vtanh.f32 %v4589_v58 }
 0x700   :  { %v4732_v39 = vmul.f32 0.5, %v4684_v23 }
 0x701   :  { %v6495_v33 = vpop.permute.xlu1 %6494 }
 0x702   :  { %v7374_v19 = vpop.eup %7373  ;;  %v4513_v59 = vpop.f32.mrf.mxu3  ;;  %v6508_v21 = vpack.i.bf16 %v4732_v39, %v4731_v18  ;;  %v6497_v10 = vunpack.i.h.bf16 %v6495_v33  ;;  %v6496_v8 = vunpack.i.l.bf16 %v6495_v33 }
 0x703   :  { %v5967_v1 = vadd.f32 -1.0, %v7374_v19  ;;  %v4514_v11 = vadd.f32 %v10018_v45, %v4513_v59 }
 0x704   :  { %6509 = vrot.lane.b32.xlu1 %v6508_v21, %s7503_s25  ;;  %v5208_v4 = vsel %vm5186_vm15, %v5159_v52, %v6497_v10  ;;  %v5207_v3 = vsel %vm5186_vm15, %v5158_v30, %v6496_v8 }
 0x705   :  { %v4590_v53 = vmul.f32 0.5, %v4514_v11  ;;  %v3832_v22 = vsel %vm3592_vm2, %v3543_v50, %v5967_v1  ;;  %v5257_v20 = vsel %vm5235_vm0, %v5208_v4, 0.0  ;;  %v5256_v45 = vsel %vm5235_vm0, %v5207_v3, 0.0  ;;  %v7376_v15 = vpop.eup %7375 }
 0x706   :  { %v3856_v63 = vpack.c.bf16 %v3832_v22, %v3831_v56  ;;  %v6229_v25 = vpack.c.bf16 %v5257_v20, %v5256_v45  ;;  %v4685_v17 = vadd.f32 1.0, %v7376_v15  ;;  %v6382_v4 = vunpack.i.h.bf16 %v9925_v55 }
 0x707   :  { %7377 = vtanh.f32 %v4590_v53  ;;  %v6381_v3 = vunpack.i.l.bf16 %v9925_v55 }
 0x708   :  { %4047 = vmatmul.bf16.gmra.mxu2 %v3856_v63  ;;  %6305 = vst [vmem:[%s10462_s3 + $0x50] sm:$0xff] %v6229_v25   ;;  %v4733_v0 = vmul.f32 0.5, %v4685_v17  ;;  %v10625_v17 = vld [vmem:[#allocation29_spill] sm:$0xff] }
 0x70d   :  { %v7378_v43 = vpop.eup %7377 }
 0x70e   :  { %v4686_v13 = vadd.f32 1.0, %v7378_v43  ;;  %v5161_v43 = vsel %vm5137_vm14, %v10625_v17, %v6382_v4 }
 0x710   :  { %v4734_v49 = vmul.f32 0.5, %v4686_v13  ;;  %v10626_v13 = vld [vmem:[#allocation28_spill] sm:$0xff] }
 0x712   :  { %v6513_v2 = vpack.i.bf16 %v4734_v49, %v4733_v0  ;;  %v5160_v0 = vsel %vm5137_vm14, %v10626_v13, %v6381_v3 }
 0x714   :  { %6514 = vrot.lane.b32.xlu2 %v6513_v2, %s7503_s25 }
 0x71e   :  { %v4028_v50 = vpop.f32.mrf.mxu2 }
 0x71f   :  { %v4029_v57 = vadd.f32 %v10241_v31, %v4028_v50 }
 0x721   :  { %v4139_v47 = vmin.f32 %v4029_v57, 0.0  ;;  %vm4091_vm3 = vcmp.gt.f32.partialorder %v4029_v57, 0.0 }
 0x723   :  { %v4225_v23 = vmul.f32 1.442695, %v4139_v47 }
 0x725   :  { %7379 = vpow2.f32 %v4225_v23 }
 0x726   :  { %v4030_v58 = vpop.f32.mrf.mxu2 }
 0x727   :  { %v4031_v61 = vadd.f32 %v10241_v31, %v4030_v58 }
 0x729   :  { %v4140_v41 = vmin.f32 %v4031_v61, 0.0  ;;  %vm4092_vm4 = vcmp.gt.f32.partialorder %v4031_v61, 0.0 }
 0x72b   :  { %v4227_v18 = vmul.f32 1.442695, %v4140_v41  ;;  %v7380_v39 = vpop.eup %7379 }
 0x72c   :  { %v6054_v59 = vadd.f32 -1.0, %v7380_v39 }
 0x72d   :  { %7381 = vpow2.f32 %v4227_v18 }
 0x72e   :  { %v4033_v40 = vpop.f32.mrf.mxu2  ;;  %v4331_v11 = vsel %vm4091_vm3, %v4029_v57, %v6054_v59 }
 0x72f   :  { %v4034_v19 = vadd.f32 %v10241_v31, %v4033_v40 }
 0x731   :  { %v4141_v33 = vmin.f32 %v4034_v19, 0.0  ;;  %vm4093_vm5 = vcmp.gt.f32.partialorder %v4034_v19, 0.0 }
 0x733   :  { %v7382_v21 = vpop.eup %7381  ;;  %v4229_v10 = vmul.f32 1.442695, %v4141_v33 }
 0x734   :  { %v6055_v1 = vadd.f32 -1.0, %v7382_v21 }
 0x735   :  { %7383 = vpow2.f32 %v4229_v10 }
 0x736   :  { %v4035_v8 = vpop.f32.mrf.mxu2  ;;  %v4332_v60 = vsel %vm4092_vm4, %v4031_v61, %v6055_v1 }
 0x737   :  { %v4036_v52 = vadd.f32 %v10241_v31, %v4035_v8  ;;  %v4360_v24 = vpack.c.bf16 %v4332_v60, %v4331_v11  ;;  %v10265_v8 = vld [vmem:[%s10460_s2 + $0x7] ss:$0 sm:$0xff] }
 0x739   :  { %v4142_v30 = vmin.f32 %v4036_v52, 0.0  ;;  %4535 = vmatmul.bf16.gmra.mxu3 %v4360_v24  ;;  %vm4094_vm6 = vcmp.gt.f32.partialorder %v4036_v52, 0.0 }
 0x73b   :  { %v4231_v56 = vmul.f32 1.442695, %v4142_v30  ;;  %v7384_v22 = vpop.eup %7383 }
 0x73c   :  { %v6056_v49 = vadd.f32 -1.0, %v7384_v22 }
 0x73d   :  { %7385 = vpow2.f32 %v4231_v56 }
 0x73e   :  { %v4333_v18 = vsel %vm4093_vm5, %v4034_v19, %v6056_v49 }
 0x73f   :  { %v4038_v53 = vpop.f32.mrf.mxu2  ;;  %v6500_v45 = vpop.permute.xlu2 %6499 }
 0x740   :  { %v4039_v20 = vadd.f32 %v10241_v31, %v4038_v53  ;;  %v6502_v63 = vunpack.i.h.bf16 %v6500_v45  ;;  %v6501_v25 = vunpack.i.l.bf16 %v6500_v45 }
 0x742   :  { %v4143_v15 = vmin.f32 %v4039_v20, 0.0  ;;  %v5210_v50 = vsel %vm5186_vm15, %v5161_v43, %v6502_v63  ;;  %v5209_v55 = vsel %vm5186_vm15, %v5160_v0, %v6501_v25  ;;  %vm4095_vm7 = vcmp.gt.f32.partialorder %v4039_v20, 0.0 }
 0x743   :  { %v7386_v2 = vpop.eup %7385  ;;  %v5259_v47 = vsel %vm5235_vm0, %v5210_v50, 0.0  ;;  %v5258_v23 = vsel %vm5235_vm0, %v5209_v55, 0.0  ;;  %v6387_v0 = vunpack.i.h.bf16 %v9871_v44 }
 0x744   :  { %v6057_v57 = vadd.f32 -1.0, %v7386_v2  ;;  %v6234_v58 = vpack.c.bf16 %v5259_v47, %v5258_v23  ;;  %v4233_v61 = vmul.f32 1.442695, %v4143_v15 }
 0x746   :  { %v4334_v40 = vsel %vm4094_vm6, %v4036_v52, %v6057_v57  ;;  %6306 = vst [vmem:[%s10462_s3 + $0x58] sm:$0xff] %v6234_v58   ;;  %7387 = vpow2.f32 %v4233_v61 }
 0x747   :  { %v4040_v41 = vpop.f32.mrf.mxu2  ;;  %v4361_v33 = vpack.c.bf16 %v4334_v40, %v4333_v18  ;;  %v10628_v40 = vld [vmem:[#allocation32_spill] sm:$0xff] }
 0x748   :  { %v4041_v39 = vadd.f32 %v10241_v31, %v4040_v41  ;;  %v10627_v41 = vld [vmem:[#allocation33_spill] sm:$0xff] }
 0x749   :  { %4540 = vmatmul.bf16.gmra.mxu3 %v4361_v33  ;;  %v5163_v18 = vsel %vm5137_vm14, %v10627_v41, %v6387_v0 }
 0x74a   :  { %v4144_v59 = vmin.f32 %v4041_v39, 0.0  ;;  %vm4096_vm8 = vcmp.gt.f32.partialorder %v4041_v39, 0.0 }
 0x74c   :  { %v4235_v21 = vmul.f32 1.442695, %v4144_v59  ;;  %v7388_v10 = vpop.eup %7387 }
 0x74d   :  { %v6058_v11 = vadd.f32 -1.0, %v7388_v10 }
 0x74e   :  { %7389 = vpow2.f32 %v4235_v21 }
 0x74f   :  { %v4516_v1 = vpop.f32.mrf.mxu3  ;;  %v4335_v56 = vsel %vm4095_vm7, %v4039_v20, %v6058_v11  ;;  %v6386_v20 = vunpack.i.l.bf16 %v9871_v44 }
 0x750   :  { %v4517_v19 = vadd.f32 %v10265_v8, %v4516_v1 }
 0x752   :  { %v4591_v52 = vmul.f32 0.5, %v4517_v19 }
 0x754   :  { %v7390_v60 = vpop.eup %7389  ;;  %7391 = vtanh.f32 %v4591_v52  ;;  %v6396_v52 = vunpack.i.l.bf16 %v9938_v38 }
 0x755   :  { %v6059_v24 = vadd.f32 -1.0, %v7390_v60  ;;  %v6397_v60 = vunpack.i.h.bf16 %v9938_v38 }
 0x757   :  { %v4518_v30 = vpop.f32.mrf.mxu3  ;;  %v4336_v4 = vsel %vm4096_vm8, %v4041_v39, %v6059_v24  ;;  %v5162_v39 = vsel %vm5137_vm14, %v10628_v40, %v6386_v20 }
 0x758   :  { %v4519_v3 = vadd.f32 %v10265_v8, %v4518_v30  ;;  %v4362_v53 = vpack.c.bf16 %v4336_v4, %v4335_v56 }
 0x75a   :  { %v4592_v22 = vmul.f32 0.5, %v4519_v3  ;;  %4545 = vmatmul.bf16.gmra.mxu3 %v4362_v53  ;;  %v7392_v45 = vpop.eup %7391 }
 0x75b   :  { %v4687_v25 = vadd.f32 1.0, %v7392_v45 }
 0x75c   :  { %7393 = vtanh.f32 %v4592_v22 }
 0x75d   :  { %v4735_v49 = vmul.f32 0.5, %v4687_v25 }
 0x75f   :  { %v4521_v63 = vpop.f32.mrf.mxu3 }
 0x760   :  { %v4522_v15 = vadd.f32 %v10265_v8, %v4521_v63  ;;  %v10629_v63 = vld [vmem:[#allocation37_spill] sm:$0xff] }
 0x761   :  { %v5167_v25 = vsel %vm5137_vm14, %v10629_v63, %v6397_v60 }
 0x762   :  { %v7394_v17 = vpop.eup %7393  ;;  %v4593_v13 = vmul.f32 0.5, %v4522_v15  ;;  %v10630_v15 = vld [vmem:[#allocation36_spill] sm:$0xff] }
 0x763   :  { %v4688_v43 = vadd.f32 1.0, %v7394_v17  ;;  %v5166_v38 = vsel %vm5137_vm14, %v10630_v15, %v6396_v52 }
 0x764   :  { %7395 = vtanh.f32 %v4593_v13 }
 0x765   :  { %v4736_v2 = vmul.f32 0.5, %v4688_v43 }
 0x766   :  { %v4043_v50 = vpop.f32.mrf.mxu2  ;;  %v6505_v55 = vpop.permute.xlu0 %6504 }
 0x767   :  { %v6518_v57 = vpack.i.bf16 %v4736_v2, %v4735_v49  ;;  %v10273_v47 = vadd.f32 %v10241_v31, %v4043_v50  ;;  %v6507_v23 = vunpack.i.h.bf16 %v6505_v55  ;;  %v6506_v58 = vunpack.i.l.bf16 %v6505_v55  ;;  %v4523_v61 = vpop.f32.mrf.mxu3 }
 0x768   :  { %v4524_v44 = vadd.f32 %v10265_v8, %v4523_v61  ;;  %v6391_v61 = vunpack.i.l.bf16 %v9920_v35 }
 0x769   :  { %6519 = vrot.lane.b32.xlu0 %v6518_v57, %s7503_s25  ;;  %v4145_v33 = vmin.f32 %v10273_v47, 0.0  ;;  %v5211_v59 = vsel %vm5186_vm15, %v5162_v39, %v6506_v58  ;;  %v5212_v21 = vsel %vm5186_vm15, %v5163_v18, %v6507_v23  ;;  %v6392_v58 = vunpack.i.h.bf16 %v9920_v35 }
 0x76a   :  { %v5260_v1 = vsel %vm5235_vm0, %v5211_v59, 0.0  ;;  %v5261_v10 = vsel %vm5235_vm0, %v5212_v21, 0.0  ;;  %v4594_v19 = vmul.f32 0.5, %v4524_v44  ;;  %v7396_v24 = vpop.eup %7395  ;;  %vm4097_vm9 = vcmp.gt.f32.partialorder %v10273_v47, 0.0 }
 0x76b   :  { %v6239_v11 = vpack.c.bf16 %v5261_v10, %v5260_v1  ;;  %v4237_v30 = vmul.f32 1.442695, %v4145_v33  ;;  %v4689_v17 = vadd.f32 1.0, %v7396_v24  ;;  %v10631_v10 = vld [vmem:[#allocation35_spill] sm:$0xff] }
 0x76c   :  { %7397 = vtanh.f32 %v4594_v19  ;;  %v5165_v19 = vsel %vm5137_vm14, %v10631_v10, %v6392_v58 }
 0x76d   :  { %6307 = vst [vmem:[%s10462_s3 + $0x60] sm:$0xff] %v6239_v11   ;;  %7399 = vpow2.f32 %v4237_v30  ;;  %v4737_v18 = vmul.f32 0.5, %v4689_v17  ;;  %v10632_v11 = vld [vmem:[#allocation34_spill] sm:$0xff] }
 0x76e   :  { %v6515_v56 = vpop.permute.xlu2 %6514  ;;  %v4045_v4 = vpop.f32.mrf.mxu2  ;;  %v5164_v35 = vsel %vm5137_vm14, %v10632_v11, %v6391_v61 }
 0x76f   :  { %v6517_v3 = vunpack.i.h.bf16 %v6515_v56  ;;  %v6516_v53 = vunpack.i.l.bf16 %v6515_v56  ;;  %v4046_v22 = vadd.f32 %v10241_v31, %v4045_v4  ;;  %v4526_v45 = vpop.f32.mrf.mxu3 }
 0x770   :  { %v4527_v43 = vadd.f32 %v10265_v8, %v4526_v45 }
 0x771   :  { %v5216_v13 = vsel %vm5186_vm15, %v5167_v25, %v6517_v3  ;;  %v5215_v0 = vsel %vm5186_vm15, %v5166_v38, %v6516_v53  ;;  %v4146_v20 = vmin.f32 %v4046_v22, 0.0  ;;  %vm4098_vm11 = vcmp.gt.f32.partialorder %v4046_v22, 0.0 }
 0x772   :  { %v7398_v49 = vpop.eup %7397  ;;  %v5265_v2 = vsel %vm5235_vm0, %v5216_v13, 0.0  ;;  %v5264_v50 = vsel %vm5235_vm0, %v5215_v0, 0.0  ;;  %v4595_v41 = vmul.f32 0.5, %v4527_v43 }
 0x773   :  { %v4690_v55 = vadd.f32 1.0, %v7398_v49  ;;  %v6249_v57 = vpack.c.bf16 %v5265_v2, %v5264_v50  ;;  %v4239_v23 = vmul.f32 1.442695, %v4146_v20  ;;  %v7400_v44 = vpop.eup %7399 }
 0x774   :  { %v6060_v30 = vadd.f32 -1.0, %v7400_v44 }
 0x775   :  { %v4738_v40 = vmul.f32 0.5, %v4690_v55  ;;  %6309 = vst [vmem:[%s10462_s3 + $0x70] sm:$0xff] %v6249_v57   ;;  %7401 = vpow2.f32 %v4239_v23 }
 0x776   :  { %v6510_v39 = vpop.permute.xlu1 %6509  ;;  %7403 = vtanh.f32 %v4595_v41  ;;  %v4337_v15 = vsel %vm4097_vm9, %v10273_v47, %v6060_v30 }
 0x777   :  { %v6512_v33 = vunpack.i.h.bf16 %v6510_v39  ;;  %v6511_v59 = vunpack.i.l.bf16 %v6510_v39  ;;  %v4528_v21 = vpop.f32.mrf.mxu3  ;;  %v6523_v1 = vpack.i.bf16 %v4738_v40, %v4737_v18 }
 0x778   :  { %v4529_v60 = vadd.f32 %v10265_v8, %v4528_v21 }
 0x779   :  { %v5214_v52 = vsel %vm5186_vm15, %v5165_v19, %v6512_v33  ;;  %v5213_v24 = vsel %vm5186_vm15, %v5164_v35, %v6511_v59  ;;  %6524 = vrot.lane.b32.xlu1 %v6523_v1, %s7503_s25 }
 0x77a   :  { %v5263_v56 = vsel %vm5235_vm0, %v5214_v52, 0.0  ;;  %v5262_v4 = vsel %vm5235_vm0, %v5213_v24, 0.0  ;;  %v4596_v3 = vmul.f32 0.5, %v4529_v60 }
 0x77b   :  { %v7402_v53 = vpop.eup %7401  ;;  %v6244_v45 = vpack.c.bf16 %v5263_v56, %v5262_v4 }
 0x77c   :  { %v6061_v63 = vadd.f32 -1.0, %v7402_v53  ;;  %7405 = vtanh.f32 %v4596_v3  ;;  %v7404_v25 = vpop.eup %7403 }
 0x77d   :  { %6308 = vst [vmem:[%s10462_s3 + $0x68] sm:$0xff] %v6244_v45   ;;  %v4691_v0 = vadd.f32 1.0, %v7404_v25 }
 0x77e   :  { %v4338_v38 = vsel %vm4098_vm11, %v4046_v22, %v6061_v63 }
 0x77f   :  { %v4363_v43 = vpack.c.bf16 %v4338_v38, %v4337_v15  ;;  %v4739_v50 = vmul.f32 0.5, %v4691_v0 }
 0x780   :  { %v4531_v17 = vpop.f32.mrf.mxu3 }
 0x781   :  { %v4532_v13 = vadd.f32 %v10265_v8, %v4531_v17  ;;  %4550 = vmatmul.bf16.gmra.mxu3 %v4363_v43 }
 0x782   :  { %v7406_v20 = vpop.eup %7405 }
 0x783   :  { %v4692_v49 = vadd.f32 1.0, %v7406_v20  ;;  %v4597_v2 = vmul.f32 0.5, %v4532_v13 }
 0x785   :  { %v4740_v55 = vmul.f32 0.5, %v4692_v49  ;;  %7407 = vtanh.f32 %v4597_v2 }
 0x787   :  { %v6528_v23 = vpack.i.bf16 %v4740_v55, %v4739_v50 }
 0x788   :  { %v4533_v57 = vpop.f32.mrf.mxu3 }
 0x789   :  { %v4534_v58 = vadd.f32 %v10265_v8, %v4533_v57  ;;  %6529 = vrot.lane.b32.xlu2 %v6528_v23, %s7503_s25 }
 0x78b   :  { %v4598_v47 = vmul.f32 0.5, %v4534_v58  ;;  %v4048_v22 = vpop.f32.mrf.mxu2  ;;  %v7408_v41 = vpop.eup %7407 }
 0x78c   :  { %v4049_v61 = vadd.f32 %v10241_v31, %v4048_v22  ;;  %v4693_v40 = vadd.f32 1.0, %v7408_v41  ;;  %v6401_v22 = vunpack.i.l.bf16 %v9879_v36 }
 0x78d   :  { %7409 = vtanh.f32 %v4598_v47  ;;  %v6402_v47 = vunpack.i.h.bf16 %v9879_v36 }
 0x78e   :  { %v4147_v18 = vmin.f32 %v4049_v61, 0.0  ;;  %v4741_v1 = vmul.f32 0.5, %v4693_v40  ;;  %vm4099_vm12 = vcmp.gt.f32.partialorder %v4049_v61, 0.0 }
 0x790   :  { %v4241_v44 = vmul.f32 1.442695, %v4147_v18 }
 0x792   :  { %7411 = vpow2.f32 %v4241_v44 }
 0x793   :  { %v7410_v39 = vpop.eup %7409  ;;  %v4050_v59 = vpop.f32.mrf.mxu2 }
 0x794   :  { %v4694_v33 = vadd.f32 1.0, %v7410_v39  ;;  %v4051_v21 = vadd.f32 %v10241_v31, %v4050_v59  ;;  %v10633_v39 = vld [vmem:[#allocation41_spill] sm:$0xff] }
 0x795   :  { %v5169_v44 = vsel %vm5137_vm14, %v10633_v39, %v6402_v47 }
 0x796   :  { %v4742_v10 = vmul.f32 0.5, %v4694_v33  ;;  %v4148_v19 = vmin.f32 %v4051_v21, 0.0  ;;  %vm4100_vm13 = vcmp.gt.f32.partialorder %v4051_v21, 0.0  ;;  %v10634_v33 = vld [vmem:[#allocation38_spill] sm:$0xff] }
 0x797   :  { %v5168_v59 = vsel %vm5137_vm14, %v10634_v33, %v6401_v22 }
 0x798   :  { %v6533_v11 = vpack.i.bf16 %v4742_v10, %v4741_v1  ;;  %v4243_v35 = vmul.f32 1.442695, %v4148_v19  ;;  %v7412_v60 = vpop.eup %7411 }
 0x799   :  { %v6062_v52 = vadd.f32 -1.0, %v7412_v60 }
 0x79a   :  { %6534 = vrot.lane.b32.xlu0 %v6533_v11, %s7503_s25  ;;  %7413 = vpow2.f32 %v4243_v35 }
 0x79b   :  { %v4339_v56 = vsel %vm4099_vm12, %v4049_v61, %v6062_v52 }
 0x7a0   :  { %v7414_v24 = vpop.eup %7413 }
 0x7a1   :  { %v6063_v30 = vadd.f32 -1.0, %v7414_v24 }
 0x7a3   :  { %v4340_v4 = vsel %vm4100_vm13, %v4051_v21, %v6063_v30  ;;  %v6412_v30 = vunpack.i.h.bf16 %v9943_v62 }
 0x7a4   :  { %v4364_v3 = vpack.c.bf16 %v4340_v4, %v4339_v56  ;;  %v6411_v56 = vunpack.i.l.bf16 %v9943_v62 }
 0x7a6   :  { %4555 = vmatmul.bf16.gmra.mxu3 %v4364_v3 }
 0x7bc   :  { %v4536_v31 = vpop.f32.mrf.mxu3 }
 0x7bd   :  { %v4537_v53 = vadd.f32 %v10265_v8, %v4536_v31 }
 0x7bf   :  { %v4599_v45 = vmul.f32 0.5, %v4537_v53 }
 0x7c1   :  { %7415 = vtanh.f32 %v4599_v45 }
 0x7c4   :  { %v4538_v63 = vpop.f32.mrf.mxu3 }
 0x7c5   :  { %v4539_v25 = vadd.f32 %v10265_v8, %v4538_v63 }
 0x7c7   :  { %v4600_v15 = vmul.f32 0.5, %v4539_v25  ;;  %v7416_v38 = vpop.eup %7415 }
 0x7c8   :  { %v4695_v13 = vadd.f32 1.0, %v7416_v38  ;;  %v10635_v38 = vld [vmem:[#allocation42_spill] sm:$0xff] }
 0x7c9   :  { %7417 = vtanh.f32 %v4600_v15 }
 0x7ca   :  { %v4743_v2 = vmul.f32 0.5, %v4695_v13 }
 0x7cc   :  { %v4541_v17 = vpop.f32.mrf.mxu3 }
 0x7cd   :  { %v4542_v43 = vadd.f32 %v10265_v8, %v4541_v17  ;;  %v5173_v17 = vsel %vm5137_vm14, %v10635_v38, %v6412_v30  ;;  %v6416_v30 = vunpack.i.l.bf16 %v9891_v34 }
 0x7cf   :  { %v7418_v0 = vpop.eup %7417  ;;  %v4601_v49 = vmul.f32 0.5, %v4542_v43  ;;  %v10636_v43 = vld [vmem:[#allocation46_spill] sm:$0xff] }
 0x7d0   :  { %v4696_v20 = vadd.f32 1.0, %v7418_v0  ;;  %v5172_v13 = vsel %vm5137_vm14, %v10636_v43, %v6411_v56 }
 0x7d1   :  { %7419 = vtanh.f32 %v4601_v49 }
 0x7d2   :  { %v4744_v50 = vmul.f32 0.5, %v4696_v20 }
 0x7d4   :  { %v4543_v55 = vpop.f32.mrf.mxu3  ;;  %v6538_v57 = vpack.i.bf16 %v4744_v50, %v4743_v2 }
 0x7d5   :  { %v4544_v23 = vadd.f32 %v10265_v8, %v4543_v55 }
 0x7d6   :  { %6539 = vrot.lane.b32.xlu1 %v6538_v57, %s7503_s25  ;;  %v6407_v57 = vunpack.i.h.bf16 %v9935_v12 }
 0x7d7   :  { %v4602_v58 = vmul.f32 0.5, %v4544_v23  ;;  %v7420_v41 = vpop.eup %7419  ;;  %v6406_v23 = vunpack.i.l.bf16 %v9935_v12 }
 0x7d8   :  { %v4697_v11 = vadd.f32 1.0, %v7420_v41  ;;  %v10637_v41 = vld [vmem:[#allocation45_spill] sm:$0xff] }
 0x7d9   :  { %7421 = vtanh.f32 %v4602_v58 }
 0x7da   :  { %v4745_v3 = vmul.f32 0.5, %v4697_v11 }
 0x7db   :  { %v6520_v61 = vpop.permute.xlu0 %6519 }
 0x7dc   :  { %v6522_v18 = vunpack.i.h.bf16 %v6520_v61  ;;  %v6521_v40 = vunpack.i.l.bf16 %v6520_v61 }
 0x7dd   :  { %v4546_v21 = vpop.f32.mrf.mxu3 }
 0x7de   :  { %v5217_v1 = vsel %vm5186_vm15, %v5168_v59, %v6521_v40  ;;  %v5218_v10 = vsel %vm5186_vm15, %v5169_v44, %v6522_v18  ;;  %v4547_v19 = vadd.f32 %v10265_v8, %v4546_v21  ;;  %v5171_v18 = vsel %vm5137_vm14, %v10637_v41, %v6407_v57  ;;  %v10638_v40 = vld [vmem:[#allocation43_spill] sm:$0xff] }
 0x7df   :  { %v5266_v36 = vsel %vm5235_vm0, %v5217_v1, 0.0  ;;  %v5267_v35 = vsel %vm5235_vm0, %v5218_v10, 0.0  ;;  %v7422_v60 = vpop.eup %7421  ;;  %v5170_v39 = vsel %vm5137_vm14, %v10638_v40, %v6406_v23  ;;  %v6427_v40 = vunpack.i.h.bf16 %v9952_v5 }
 0x7e0   :  { %v6254_v52 = vpack.c.bf16 %v5267_v35, %v5266_v36  ;;  %v4698_v24 = vadd.f32 1.0, %v7422_v60  ;;  %v4603_v4 = vmul.f32 0.5, %v4547_v19 }
 0x7e2   :  { %6310 = vst [vmem:[%s10462_s3 + $0x78] sm:$0xff] %v6254_v52   ;;  %v4746_v31 = vmul.f32 0.5, %v4698_v24  ;;  %7423 = vtanh.f32 %v4603_v4  ;;  %v6417_v24 = vunpack.i.h.bf16 %v9891_v34 }
 0x7e3   :  { %v6530_v53 = vpop.permute.xlu2 %6529 }
 0x7e4   :  { %v6532_v45 = vunpack.i.h.bf16 %v6530_v53  ;;  %v6531_v63 = vunpack.i.l.bf16 %v6530_v53  ;;  %v6543_v15 = vpack.i.bf16 %v4746_v31, %v4745_v3 }
 0x7e5   :  { %v4548_v25 = vpop.f32.mrf.mxu3 }
 0x7e6   :  { %v4549_v62 = vadd.f32 %v10265_v8, %v4548_v25  ;;  %v5222_v0 = vsel %vm5186_vm15, %v5173_v17, %v6532_v45  ;;  %v5221_v20 = vsel %vm5186_vm15, %v5172_v13, %v6531_v63  ;;  %6544 = vrot.lane.b32.xlu2 %v6543_v15, %s7503_s25  ;;  %v5175_v45 = vsel %vm5137_vm14, %v9315_v28, %v6417_v24 }
 0x7e7   :  { %v5271_v49 = vsel %vm5235_vm0, %v5222_v0, 0.0  ;;  %v5270_v2 = vsel %vm5235_vm0, %v5221_v20, 0.0  ;;  %v5174_v63 = vsel %vm5137_vm14, %v9215_v26, %v6416_v30 }
 0x7e8   :  { %v4604_v50 = vmul.f32 0.5, %v4549_v62  ;;  %v6264_v55 = vpack.c.bf16 %v5271_v49, %v5270_v2  ;;  %v7424_v58 = vpop.eup %7423 }
 0x7e9   :  { %v4699_v44 = vadd.f32 1.0, %v7424_v58 }
 0x7ea   :  { %7425 = vtanh.f32 %v4604_v50  ;;  %6312 = vst [vmem:[%s10462_s3 + $0x88] sm:$0xff] %v6264_v55  }
 0x7eb   :  { %v6525_v47 = vpop.permute.xlu1 %6524  ;;  %v4747_v11 = vmul.f32 0.5, %v4699_v44 }
 0x7ec   :  { %v6527_v22 = vunpack.i.h.bf16 %v6525_v47  ;;  %v6526_v61 = vunpack.i.l.bf16 %v6525_v47 }
 0x7ee   :  { %v5220_v33 = vsel %vm5186_vm15, %v5171_v18, %v6527_v22  ;;  %v5219_v12 = vsel %vm5186_vm15, %v5170_v39, %v6526_v61  ;;  %v6426_v39 = vunpack.i.l.bf16 %v9952_v5 }
 0x7ef   :  { %v5269_v21 = vsel %vm5235_vm0, %v5220_v33, 0.0  ;;  %v5268_v1 = vsel %vm5235_vm0, %v5219_v12, 0.0 }
 0x7f0   :  { %v7426_v59 = vpop.eup %7425  ;;  %v6259_v19 = vpack.c.bf16 %v5269_v21, %v5268_v1 }
 0x7f1   :  { %v4700_v10 = vadd.f32 1.0, %v7426_v59 }
 0x7f2   :  { %6311 = vst [vmem:[%s10462_s3 + $0x80] sm:$0xff] %v6259_v19  }
 0x7f3   :  { %v4748_v36 = vmul.f32 0.5, %v4700_v10  ;;  %v5179_v10 = vsel %vm5137_vm14, %v10584_v46, %v6427_v40 }
 0x7f5   :  { %v6548_v35 = vpack.i.bf16 %v4748_v36, %v4747_v11 }
 0x7f7   :  { %6549 = vrot.lane.b32.xlu0 %v6548_v35, %s7503_s25 }
 0x804   :  { %v4551_v60 = vpop.f32.mrf.mxu3 }
 0x805   :  { %v4552_v52 = vadd.f32 %v10265_v8, %v4551_v60  ;;  %v6422_v60 = vunpack.i.h.bf16 %v9941_v51 }
 0x807   :  { %v4605_v56 = vmul.f32 0.5, %v4552_v52  ;;  %v6421_v52 = vunpack.i.l.bf16 %v9941_v51  ;;  %v5177_v30 = vsel %vm5137_vm14, %v9474_v48, %v6422_v60  ;;  %v6431_v48 = vunpack.i.l.bf16 %v9900_v9 }
 0x809   :  { %7427 = vtanh.f32 %v4605_v56  ;;  %v5176_v56 = vsel %vm5137_vm14, %v9335_v54, %v6421_v52 }
 0x80c   :  { %v6535_v4 = vpop.permute.xlu0 %6534  ;;  %v4553_v53 = vpop.f32.mrf.mxu3 }
 0x80d   :  { %v6537_v3 = vunpack.i.h.bf16 %v6535_v4  ;;  %v6536_v31 = vunpack.i.l.bf16 %v6535_v4  ;;  %v4554_v25 = vadd.f32 %v10265_v8, %v4553_v53 }
 0x80f   :  { %v5223_v15 = vsel %vm5186_vm15, %v5174_v63, %v6536_v31  ;;  %v5224_v38 = vsel %vm5186_vm15, %v5175_v45, %v6537_v3  ;;  %v4606_v43 = vmul.f32 0.5, %v4554_v25  ;;  %v7428_v28 = vpop.eup %7427  ;;  %v6432_v45 = vunpack.i.h.bf16 %v9900_v9 }
 0x810   :  { %v5272_v34 = vsel %vm5235_vm0, %v5223_v15, 0.0  ;;  %v5273_v17 = vsel %vm5235_vm0, %v5224_v38, 0.0  ;;  %v4701_v26 = vadd.f32 1.0, %v7428_v28  ;;  %v5180_v38 = vsel %vm5137_vm14, %v10588_v37, %v6431_v48 }
 0x811   :  { %v6269_v13 = vpack.c.bf16 %v5273_v17, %v5272_v34  ;;  %7429 = vtanh.f32 %v4606_v43  ;;  %v5181_v15 = vsel %vm5137_vm14, %v9516_v42, %v6432_v45  ;;  %v6437_v9 = vunpack.i.h.bf16 %v9950_v7 }
 0x812   :  { %v4749_v20 = vmul.f32 0.5, %v4701_v26  ;;  %v6436_v42 = vunpack.i.l.bf16 %v9950_v7  ;;  %v6442_v7 = vunpack.i.h.bf16 %v9977_v16 }
 0x813   :  { %6313 = vst [vmem:[%s10462_s3 + $0x90] sm:$0xff] %v6269_v13  }
 0x817   :  { %v7430_v62 = vpop.eup %7429 }
 0x818   :  { %v4702_v0 = vadd.f32 1.0, %v7430_v62 }
 0x81a   :  { %v4750_v49 = vmul.f32 0.5, %v4702_v0  ;;  %v5183_v0 = vsel %vm5137_vm14, %v9589_v32, %v6437_v9  ;;  %v6441_v32 = vunpack.i.l.bf16 %v9977_v16 }
 0x81c   :  { %v6553_v2 = vpack.i.bf16 %v4750_v49, %v4749_v20  ;;  %v5182_v20 = vsel %vm5137_vm14, %v9549_v29, %v6436_v42 }
 0x81e   :  { %6554 = vrot.lane.b32.xlu1 %v6553_v2, %s7503_s25 }
 0x829   :  { %v4556_v50 = vpop.f32.mrf.mxu3 }
 0x82a   :  { %v4557_v55 = vadd.f32 %v10265_v8, %v4556_v50 }
 0x82c   :  { %v4607_v57 = vmul.f32 0.5, %v4557_v55 }
 0x82e   :  { %7431 = vtanh.f32 %v4607_v57 }
 0x831   :  { %v4558_v23 = vpop.f32.mrf.mxu3 }
 0x832   :  { %v4559_v58 = vadd.f32 %v10265_v8, %v4558_v23  ;;  %v5178_v8 = vsel %vm5137_vm14, %v9509_v27, %v6426_v39 }
 0x834   :  { %v4608_v47 = vmul.f32 0.5, %v4559_v58  ;;  %v7432_v22 = vpop.eup %7431 }
 0x835   :  { %v4703_v61 = vadd.f32 1.0, %v7432_v22  ;;  %v5184_v22 = vsel %vm5137_vm14, %v9607_v6, %v6441_v32 }
 0x836   :  { %7433 = vtanh.f32 %v4608_v47  ;;  %v5185_v47 = vsel %vm5137_vm14, %v9699_v14, %v6442_v7 }
 0x837   :  { %v4751_v44 = vmul.f32 0.5, %v4703_v61 }
 0x83c   :  { %v7434_v41 = vpop.eup %7433 }
 0x83d   :  { %v4704_v18 = vadd.f32 1.0, %v7434_v41 }
 0x83f   :  { %v4752_v33 = vmul.f32 0.5, %v4704_v18 }
 0x840   :  { %v6545_v12 = vpop.permute.xlu2 %6544 }
 0x841   :  { %v6547_v59 = vunpack.i.h.bf16 %v6545_v12  ;;  %v6546_v21 = vunpack.i.l.bf16 %v6545_v12  ;;  %v6558_v1 = vpack.i.bf16 %v4752_v33, %v4751_v44 }
 0x843   :  { %v5228_v19 = vsel %vm5186_vm15, %v5179_v10, %v6547_v59  ;;  %v5227_v11 = vsel %vm5186_vm15, %v5178_v8, %v6546_v21  ;;  %6559 = vrot.lane.b32.xlu2 %v6558_v1, %s7503_s25 }
 0x844   :  { %v5277_v5 = vsel %vm5235_vm0, %v5228_v19, 0.0  ;;  %v5276_v36 = vsel %vm5235_vm0, %v5227_v11, 0.0 }
 0x845   :  { %v6279_v35 = vpack.c.bf16 %v5277_v5, %v5276_v36 }
 0x847   :  { %6315 = vst [vmem:[%s10462_s3 + $0xa0] sm:$0xff] %v6279_v35  }
 0x848   :  { %v6540_v27 = vpop.permute.xlu1 %6539 }
 0x849   :  { %v6542_v46 = vunpack.i.h.bf16 %v6540_v27  ;;  %v6541_v24 = vunpack.i.l.bf16 %v6540_v27 }
 0x84b   :  { %v5226_v4 = vsel %vm5186_vm15, %v5177_v30, %v6542_v46  ;;  %v5225_v3 = vsel %vm5186_vm15, %v5176_v56, %v6541_v24 }
 0x84c   :  { %v5275_v31 = vsel %vm5235_vm0, %v5226_v4, 0.0  ;;  %v5274_v51 = vsel %vm5235_vm0, %v5225_v3, 0.0 }
 0x84d   :  { %v6274_v53 = vpack.c.bf16 %v5275_v31, %v5274_v51 }
 0x84f   :  { %6314 = vst [vmem:[%s10462_s3 + $0x98] sm:$0xff] %v6274_v53  }
 0x869   :  { %v6550_v63 = vpop.permute.xlu0 %6549 }
 0x86a   :  { %v6552_v25 = vunpack.i.h.bf16 %v6550_v63  ;;  %v6551_v54 = vunpack.i.l.bf16 %v6550_v63 }
 0x86c   :  { %v5229_v34 = vsel %vm5186_vm15, %v5180_v38, %v6551_v54  ;;  %v5230_v17 = vsel %vm5186_vm15, %v5181_v15, %v6552_v25 }
 0x86d   :  { %v5278_v43 = vsel %vm5235_vm0, %v5229_v34, 0.0  ;;  %v5279_v13 = vsel %vm5235_vm0, %v5230_v17, 0.0 }
 0x86e   :  { %v6284_v28 = vpack.c.bf16 %v5279_v13, %v5278_v43 }
 0x870   :  { %6316 = vst [vmem:[%s10462_s3 + $0xa8] sm:$0xff] %v6284_v28  }
 0x890   :  { %v6555_v26 = vpop.permute.xlu1 %6554 }
 0x891   :  { %v6557_v62 = vunpack.i.h.bf16 %v6555_v26  ;;  %v6556_v37 = vunpack.i.l.bf16 %v6555_v26 }
 0x893   :  { %v5232_v49 = vsel %vm5186_vm15, %v5183_v0, %v6557_v62  ;;  %v5231_v2 = vsel %vm5186_vm15, %v5182_v20, %v6556_v37 }
 0x894   :  { %v5281_v50 = vsel %vm5235_vm0, %v5232_v49, 0.0  ;;  %v5280_v55 = vsel %vm5235_vm0, %v5231_v2, 0.0 }
 0x895   :  { %v6289_v57 = vpack.c.bf16 %v5281_v50, %v5280_v55 }
 0x897   :  { %6317 = vst [vmem:[%s10462_s3 + $0xb0] sm:$0xff] %v6289_v57  }
 0x89d   :  { %v6560_v23 = vpop.permute.xlu2 %6559 }
 0x89e   :  { %v6562_v58 = vunpack.i.h.bf16 %v6560_v23  ;;  %v6561_v29 = vunpack.i.l.bf16 %v6560_v23 }
 0x8a0   :  { %v5234_v61 = vsel %vm5186_vm15, %v5185_v47, %v6562_v58  ;;  %v5233_v41 = vsel %vm5186_vm15, %v5184_v22, %v6561_v29 }
 0x8a1   :  { %v5283_v18 = vsel %vm5235_vm0, %v5234_v61, 0.0  ;;  %v5282_v40 = vsel %vm5235_vm0, %v5233_v41, 0.0 }
 0x8a2   :  { %v6294_v39 = vpack.c.bf16 %v5283_v18, %v5282_v40 }
 0x8a4   :  { %6318 = vst [vmem:[%s10462_s3 + $0xb8] sm:$0xff] %v6294_v39  }

</bundles_post_ra>
